<compile_context>
chip_gen: v7x
topology: tpu7x:2x2x1
jax: 0.10.0
libtpu: 0.0.40
codegen_flags: <defaults>
</compile_context>

<pallas_src>
import math
import functools

import jax
import jax.numpy as jnp
from jax import lax
from jax.experimental import pallas as pl
from jax.experimental.pallas import tpu as pltpu


# ----------------------------------------------------------------------------
# VMEM budgets: tiles are sized for ~24 MiB so (double-buffered blocks + scratch +
# resident weights) stays well under 48 MiB -> safe on v7x (64 MiB physical VMEM)
# as well as v5e / v6e (128 MiB).
# ----------------------------------------------------------------------------
_VMEM_TILE_BUDGET = 24 * 1024 * 1024
_VMEM_LIMIT_BYTES = 48 * 1024 * 1024


# ----------------------------------------------------------------------------
# small helpers
# ----------------------------------------------------------------------------
def _ln(x, w, b, eps):
    mean = jnp.mean(x, axis=-1, keepdims=True)
    var = jnp.mean((x - mean) ** 2, axis=-1, keepdims=True)
    return (x - mean) * lax.rsqrt(var + eps) * w + b


def _full_spec(shape):
    nd = len(shape)
    return pl.BlockSpec(tuple(shape), lambda *args, nd=nd: (0,) * nd)


def _row_block(M):
    # Whole array for small M (block == full dim is always legal); otherwise a large
    # 8-aligned row tile to amortize the ~0.35us per-grid-step overhead of these
    # mem-bound row kernels.
    # TODO(synk): sweep 1024-2048 per TPU generation (keep smaller on v7x).
    return M if M <= 2048 else 1024


def _pick_s_tile(S, bytes_per_row, budget_bytes):
    # Largest multiple-of-8 divisor of S whose per-block VMEM footprint fits the budget.
    cap = max(8, budget_bytes // max(1, bytes_per_row))
    if S <= cap:
        return S
    t = (min(cap, S) // 8) * 8
    while t >= 8:
        if S % t == 0:
            return t
        t -= 8
    # TODO(synk): support ragged S tiles when S has no multiple-of-8 divisor under budget.
    return S


# ----------------------------------------------------------------------------
# fused kernel 1: LayerNorm -> Linear   (input stage)
# ----------------------------------------------------------------------------
def _ln_linear_kernel(x_ref, lnw_ref, lnb_ref, w_ref, b_ref, o_ref, *, eps):
    xn = _ln(x_ref[...], lnw_ref[...], lnb_ref[...], eps)
    o_ref[...] = jnp.dot(xn, w_ref[...], preferred_element_type=jnp.float32) + b_ref[...]


def ln_linear(x2d, ln_w, ln_b, w, b, eps=1e-5):
    M, Din = x2d.shape
    Dout = w.shape[1]
    bm = _row_block(M)
    return pl.pallas_call(
        functools.partial(_ln_linear_kernel, eps=eps),
        grid=(pl.cdiv(M, bm),),
        in_specs=[pl.BlockSpec((bm, Din), lambda i: (i, 0)),
                  _full_spec(ln_w.shape), _full_spec(ln_b.shape),
                  _full_spec(w.shape), _full_spec(b.shape)],
        out_specs=pl.BlockSpec((bm, Dout), lambda i: (i, 0)),
        out_shape=jax.ShapeDtypeStruct((M, Dout), jnp.float32),
        compiler_params=pltpu.CompilerParams(dimension_semantics=("parallel",)),
    )(x2d, ln_w, ln_b, w, b)


# ----------------------------------------------------------------------------
# fused kernel 2: Locally Recurrent (+ block LayerNorm + block residual)
#   y = blk_LN( lr_LN( Linear( BiLSTM(x) ) + x ) ) + x
# ----------------------------------------------------------------------------
def _locally_recurrent_kernel(x_ref, wih_ref, bih_ref, whh_ref,
                              linw_ref, linb_ref, lrw_ref, lrb_ref,
                              blkw_ref, blkb_ref, o_ref,
                              gxf_ref, gxb_ref, hcat_ref, *, hidden, eps):
    x = x_ref[0]                                     # [K, Sb, N]  (time, batch, feature)
    K, Sb, N = x.shape
    H = hidden
    x2d = x.reshape(K * Sb, N)

    # Input projection for both directions in one MXU call: [K*Sb, 8H].  Stored as bf16
    # scratch (halves the dominant VMEM term), widened back to f32 inside the recurrence.
    gx = jnp.dot(x2d, wih_ref[...], preferred_element_type=jnp.float32) + bih_ref[...]
    gx = gx.reshape(K, Sb, 8 * H)
    gxf_ref[...] = gx[..., :4 * H].astype(jnp.bfloat16)
    gxb_ref[...] = gx[..., 4 * H:].astype(jnp.bfloat16)

    whh = whh_ref[...]                               # [2H, 8H] block-diag (fwd | bwd)

    def step(t, carry):
        h, c_f, c_b = carry                          # h = [h_fwd | h_bwd]   [Sb, 2H]
        tb = K - 1 - t
        # one fused recurrent matmul for both directions (2H contraction)
        r = jnp.dot(h, whh, preferred_element_type=jnp.float32)           # [Sb, 8H]
        gf = gxf_ref[t].astype(jnp.float32) + r[:, :4 * H]
        gb = gxb_ref[tb].astype(jnp.float32) + r[:, 4 * H:]
        # gate columns re-laid-out to [i, f, o, g]: one wide sigmoid + one tanh / direction
        sf = jax.nn.sigmoid(gf[:, :3 * H])
        gtf = jnp.tanh(gf[:, 3 * H:])
        sb = jax.nn.sigmoid(gb[:, :3 * H])
        gtb = jnp.tanh(gb[:, 3 * H:])
        c_f = sf[:, H:2 * H] * c_f + sf[:, :H] * gtf
        h_f = sf[:, 2 * H:] * jnp.tanh(c_f)
        c_b = sb[:, H:2 * H] * c_b + sb[:, :H] * gtb
        h_b = sb[:, 2 * H:] * jnp.tanh(c_b)
        hcat_ref[t, :, :H] = h_f                     # bidirectional output = [fwd | bwd]
        hcat_ref[tb, :, H:] = h_b
        return jnp.concatenate([h_f, h_b], axis=-1), c_f, c_b

    zh = jnp.zeros((Sb, 2 * H), jnp.float32)
    zc = jnp.zeros((Sb, H), jnp.float32)
    lax.fori_loop(0, K, step, (zh, zc, zc))

    hcat = hcat_ref[...].reshape(K * Sb, 2 * H)
    y = jnp.dot(hcat, linw_ref[...], preferred_element_type=jnp.float32) + linb_ref[...]
    y = y + x2d                                      # Locally_Recurrent residual
    y = _ln(y, lrw_ref[...], lrb_ref[...], eps)      # Locally_Recurrent LayerNorm
    y = _ln(y, blkw_ref[...], blkb_ref[...], eps)    # Sandglasset block LayerNorm
    y = y + x2d                                      # block residual
    o_ref[0] = y.reshape(K, Sb, N)


def locally_recurrent_block(x, p, hidden, eps=1e-5):
    # x: canonical [B, K, S, N]
    B, K, S, N = x.shape
    H = hidden
    # per-Sb-row VMEM: in/out blocks double-buffered (16*K*N) + bf16 gx (16*K*H) + hcat (8*K*H)
    bytes_per_row = K * (16 * N + 24 * H)
    Sb = _pick_s_tile(S, bytes_per_row, _VMEM_TILE_BUDGET)
    grid = (B, S // Sb)
    x_spec = pl.BlockSpec((1, K, Sb, N), lambda b, s: (b, 0, s, 0))
    weights = [p["wih"], p["b_gates"], p["whh_blk"],
               p["lin_w"], p["lin_b"], p["lr_ln_w"], p["lr_ln_b"],
               p["blk_ln_w"], p["blk_ln_b"]]
    return pl.pallas_call(
        functools.partial(_locally_recurrent_kernel, hidden=hidden, eps=eps),
        grid=grid,
        in_specs=[x_spec] + [_full_spec(w.shape) for w in weights],
        out_specs=x_spec,
        out_shape=jax.ShapeDtypeStruct((B, K, S, N), jnp.float32),
        scratch_shapes=[pltpu.VMEM((K, Sb, 4 * H), jnp.bfloat16),   # fwd input gates
                        pltpu.VMEM((K, Sb, 4 * H), jnp.bfloat16),   # bwd input gates
                        pltpu.VMEM((K, Sb, 2 * H), jnp.float32)],   # [fwd | bwd] hidden states
        compiler_params=pltpu.CompilerParams(
            dimension_semantics=("parallel", "parallel"),
            vmem_limit_bytes=_VMEM_LIMIT_BYTES),
    )(x, *weights)


# ----------------------------------------------------------------------------
# fused kernel 3: Downsample + Globally Attentive + Upsample (+ optional skip add)
# ----------------------------------------------------------------------------
def _down_ga_up_kernel(x_ref, dw_ref, db_ref, ln1w_ref, ln1b_ref, pe_ref,
                       qkvw_ref, qkvb_ref, ow3_ref, ob_ref, ln2w_ref, ln2b_ref,
                       upw_ref, upb_ref, *rest, num_heads, eps, has_skip):
    if has_skip:
        skip_ref, o_ref = rest
    else:
        (o_ref,) = rest

    x = x_ref[0]                                        # [Sd, k, N]
    Sd, _, N = x.shape
    nh = num_heads
    Dh = N // nh
    scale = 1.0 / math.sqrt(Dh)

    # depthwise strided Conv1d (kernel = stride = k) downsample -> residual_1
    xd = jnp.sum(x * dw_ref[...][None, :, :], axis=1) + db_ref[...]            # [Sd, N]

    # LayerNorm1 + positional encoding -> residual_2
    xn = _ln(xd, ln1w_ref[...], ln1b_ref[...], eps) + pe_ref[...]              # [Sd, N]

    # qkv projection for all heads in one MXU call (N contraction)
    qkv = jnp.dot(xn, qkvw_ref[...], preferred_element_type=jnp.float32) + qkvb_ref[...]

    # head-batched attention: split heads once onto a leading axis, then two batched
    # dot_generals (no per-head matmul loop, no lane-axis concat of the head outputs).
    q = jnp.stack([qkv[:, h * Dh:(h + 1) * Dh] for h in range(nh)], axis=0) * scale
    k = jnp.stack([qkv[:, N + h * Dh:N + (h + 1) * Dh] for h in range(nh)], axis=0)
    v = jnp.stack([qkv[:, 2 * N + h * Dh:2 * N + (h + 1) * Dh] for h in range(nh)], axis=0)
    s = jnp.einsum('hqd,hkd->hqk', q, k, preferred_element_type=jnp.float32)   # [nh, Sd, Sd]
    s = s - jnp.max(s, axis=-1, keepdims=True)
    p_un = jnp.exp(s)
    p_at = p_un * pl.reciprocal(jnp.sum(p_un, axis=-1, keepdims=True), approx=True)
    ctx = jnp.einsum('hqk,hkd->hqd', p_at, v, preferred_element_type=jnp.float32)
    # out-projection folded per head ([nh, Dh, N] weight) and summed over heads.
    o = jnp.sum(jnp.einsum('hqd,hdn->hqn', ctx, ow3_ref[...],
                           preferred_element_type=jnp.float32), axis=0) + ob_ref[...]
    # TODO(synk): for very long inputs (large Sd, v7x 64MiB VMEM) tile the attention over
    # query rows with an online softmax instead of materializing [nh, Sd, Sd].

    x3 = _ln(o + xn, ln2w_ref[...], ln2b_ref[...], eps)                        # + res_2, LN2
    ga = x3 + xd                                                               # + res_1

    # depthwise ConvTranspose1d (kernel = stride = k) upsample
    up = ga[:, None, :] * upw_ref[...][None, :, :] + upb_ref[...][None, :, :]  # [Sd, k, N]
    if has_skip:
        up = up + skip_ref[0]
    o_ref[0] = up


def down_ga_up(x, p, k, num_heads, pe, skip=None, eps=1e-5):
    # x: canonical [B, K, S, N]; skip (same shape) added to the block output if given.
    B, K, S, N = x.shape
    Sd = S // k
    G = B * K
    x4 = x.reshape(G, Sd, k, N)                                  # contiguous (free) reshape
    x_spec = pl.BlockSpec((1, Sd, k, N), lambda g: (g, 0, 0, 0))
    ow3 = p["out_w"].reshape(num_heads, N // num_heads, N)       # [nh, Dh, N] (free reshape)
    weights = [p["down_w"], p["down_b"], p["ln1_w"], p["ln1_b"], pe,
               p["qkv_w"], p["qkv_b"], ow3, p["out_b"],
               p["ln2_w"], p["ln2_b"], p["up_w"], p["up_b"]]
    in_specs = [x_spec] + [_full_spec(w.shape) for w in weights]
    args = [x4] + weights
    has_skip = skip is not None
    if has_skip:
        in_specs.append(x_spec)
        args.append(skip.reshape(G, Sd, k, N))
    out = pl.pallas_call(
        functools.partial(_down_ga_up_kernel, num_heads=num_heads, eps=eps, has_skip=has_skip),
        grid=(G,),
        in_specs=in_specs,
        out_specs=x_spec,
        out_shape=jax.ShapeDtypeStruct((G, Sd, k, N), jnp.float32),
        compiler_params=pltpu.CompilerParams(dimension_semantics=("parallel",),
                                             vmem_limit_bytes=_VMEM_LIMIT_BYTES),
    )(*args)
    return out.reshape(B, K, S, N)


# ----------------------------------------------------------------------------
# fused kernel 4: PReLU -> 1x1 Conv2d
# ----------------------------------------------------------------------------
def _prelu_linear_kernel(x_ref, alpha_ref, w_ref, b_ref, o_ref):
    x = x_ref[...]
    xp = jnp.where(x >= 0, x, alpha_ref[...] * x)
    o_ref[...] = jnp.dot(xp, w_ref[...], preferred_element_type=jnp.float32) + b_ref[...]


def prelu_linear(x2d, alpha11, w, b):
    M, Din = x2d.shape
    Dout = w.shape[1]
    bm = _row_block(M)
    return pl.pallas_call(
        _prelu_linear_kernel,
        grid=(pl.cdiv(M, bm),),
        in_specs=[pl.BlockSpec((bm, Din), lambda i: (i, 0)),
                  _full_spec(alpha11.shape), _full_spec(w.shape), _full_spec(b.shape)],
        out_specs=pl.BlockSpec((bm, Dout), lambda i: (i, 0)),
        out_shape=jax.ShapeDtypeStruct((M, Dout), jnp.float32),
        compiler_params=pltpu.CompilerParams(dimension_semantics=("parallel",)),
    )(x2d, alpha11, w, b)


# ----------------------------------------------------------------------------
# fused kernel 5: output 1x1 conv + tanh, depthwise gate + sigmoid, bottleneck, ReLU
# ----------------------------------------------------------------------------
def _output_tail_kernel(x_ref, ow_ref, ob_ref, gw_ref, gb_ref, bw_ref, o_ref):
    x = x_ref[...]
    a = jnp.tanh(jnp.dot(x, ow_ref[...], preferred_element_type=jnp.float32) + ob_ref[...])
    g = jax.nn.sigmoid(x * gw_ref[...] + gb_ref[...])
    y = jnp.dot(a * g, bw_ref[...], preferred_element_type=jnp.float32)
    o_ref[...] = jnp.maximum(y, 0.0)


def output_tail(x2d, ow, ob, gw, gb, bw):
    M, Din = x2d.shape
    Dout = bw.shape[1]
    bm = _row_block(M)
    return pl.pallas_call(
        _output_tail_kernel,
        grid=(pl.cdiv(M, bm),),
        in_specs=[pl.BlockSpec((bm, Din), lambda i: (i, 0))] +
                 [_full_spec(w.shape) for w in (ow, ob, gw, gb, bw)],
        out_specs=pl.BlockSpec((bm, Dout), lambda i: (i, 0)),
        out_shape=jax.ShapeDtypeStruct((M, Dout), jnp.float32),
        compiler_params=pltpu.CompilerParams(dimension_semantics=("parallel",)),
    )(x2d, ow, ob, gw, gb, bw)


# ----------------------------------------------------------------------------
# plain-JAX glue: positional encoding, segmentation, overlap-add (index plumbing only)
# ----------------------------------------------------------------------------
def positional_encoding(T, d_model):
    pos = jnp.arange(T, dtype=jnp.float32)[:, None]
    div = jnp.exp(jnp.arange(0, d_model, 2, dtype=jnp.float32)
                  * (-math.log(10000.0) / d_model))
    pe = jnp.zeros((T, d_model), jnp.float32)
    pe = pe.at[:, 0::2].set(jnp.sin(pos * div))
    pe = pe.at[:, 1::2].set(jnp.cos(pos * div))
    return pe


def segmentation_cl(x, K):
    # x: [B, L, N] (channel-last) -> canonical [B, K, S, N], gap   (same math as PyTorch ref)
    B, L, N = x.shape
    P = K // 2
    gap = K - L % P
    x = jnp.concatenate([x, jnp.zeros((B, gap, N), jnp.float32)], axis=1)
    pad = jnp.zeros((B, P, N), jnp.float32)
    x = jnp.concatenate([pad, x, pad], axis=1)
    left = x[:, :-P, :].reshape(B, -1, K, N)
    right = x[:, P:, :].reshape(B, -1, K, N)
    x = jnp.stack([left, right], axis=2).reshape(B, -1, K, N)   # [B, S, K, N]
    # TODO(synk): the one-time [B,S,K,N]->[B,K,S,N] permute below fuses into the preceding
    # XLA copy under jit; absorbing it into the first locally_recurrent BlockSpec would need
    # mid-axis time indexing inside the LSTM kernel.
    return x.transpose(0, 2, 1, 3), gap                         # [B, K, S, N]


def overlap_add_cl(x, gap):
    # x: [Bs, S, K, N] (channel-last) -> [Bs, L, N]
    Bs, S, K, N = x.shape
    P = K // 2
    x = x.reshape(Bs, S // 2, 2, K, N)
    left = x[:, :, 0, :, :].reshape(Bs, -1, N)[:, P:, :]
    right = x[:, :, 1, :, :].reshape(Bs, -1, N)[:, :-P, :]
    audio = left + right
    return audio[:, :-gap, :]


# ----------------------------------------------------------------------------
# parameter re-layout (PyTorch shapes -> kernel-friendly, done once)
# ----------------------------------------------------------------------------
def _reorder_gate_rows(w):
    # PyTorch LSTM gate order [i, f, g, o] -> [i, f, o, g] so the three sigmoid gates are
    # contiguous (one wide sigmoid per direction per step).
    H = w.shape[0] // 4
    return jnp.concatenate([w[:2 * H], w[3 * H:], w[2 * H:3 * H]], axis=0)


def prepare_params(params):
    P = {"ln0_w": params["ln0_w"].reshape(1, -1),
         "ln0_b": params["ln0_b"].reshape(1, -1),
         "lin0_w": params["lin0_w"].T,
         "lin0_b": params["lin0_b"].reshape(1, -1)}
    blocks = []
    for b in params["blocks"]:
        w_ih_f, w_hh_f, b_ih_f, b_hh_f = b["lstm"]["fwd"]
        w_ih_b, w_hh_b, b_ih_b, b_hh_b = b["lstm"]["bwd"]
        H = w_hh_f.shape[1]
        whh_f = _reorder_gate_rows(w_hh_f).T                                  # [H, 4H]
        whh_b = _reorder_gate_rows(w_hh_b).T
        whh_blk = jnp.zeros((2 * H, 8 * H), jnp.float32)                      # block-diagonal
        whh_blk = whh_blk.at[:H, :4 * H].set(whh_f).at[H:, 4 * H:].set(whh_b)
        fb = {
            "wih": jnp.concatenate([_reorder_gate_rows(w_ih_f).T,
                                    _reorder_gate_rows(w_ih_b).T], axis=1),   # [N, 8H]
            "b_gates": jnp.concatenate([_reorder_gate_rows(b_ih_f + b_hh_f),
                                        _reorder_gate_rows(b_ih_b + b_hh_b)]).reshape(1, -1),
            "whh_blk": whh_blk,                                               # [2H, 8H]
            "lin_w": b["lr_lin_w"].T, "lin_b": b["lr_lin_b"].reshape(1, -1),
            "lr_ln_w": b["lr_ln_w"].reshape(1, -1), "lr_ln_b": b["lr_ln_b"].reshape(1, -1),
            "blk_ln_w": b["blk_ln_w"].reshape(1, -1), "blk_ln_b": b["blk_ln_b"].reshape(1, -1),
            "down_w": b["down_w"], "down_b": b["down_b"].reshape(1, -1),
            "ln1_w": b["ln1_w"].reshape(1, -1), "ln1_b": b["ln1_b"].reshape(1, -1),
            "qkv_w": b["in_proj_w"].T, "qkv_b": b["in_proj_b"].reshape(1, -1),
            "out_w": b["out_proj_w"].T, "out_b": b["out_proj_b"].reshape(1, -1),
            "ln2_w": b["ln2_w"].reshape(1, -1), "ln2_b": b["ln2_b"].reshape(1, -1),
            "up_w": b["up_w"], "up_b": b["up_b"].reshape(1, -1),
        }
        blocks.append(fb)
    P["blocks"] = blocks
    P["prelu_alpha"] = params["prelu_alpha"].reshape(1, 1)
    P["conv2d_w"] = params["conv2d_w"].T
    P["conv2d_b"] = params["conv2d_b"].reshape(1, -1)
    P["out_conv_w"] = params["out_conv_w"].T
    P["out_conv_b"] = params["out_conv_b"].reshape(1, -1)
    P["gate_w"] = params["gate_w"].reshape(1, -1)
    P["gate_b"] = params["gate_b"].reshape(1, -1)
    P["bottleneck_w"] = params["bottleneck_w"].T
    return P


# ----------------------------------------------------------------------------
# full Separation forward
# ----------------------------------------------------------------------------
def separation_forward(x, params, *, K_len, depth, spk, num_heads, hidden, ks):
    # x: [B, in_channels, L]  (PyTorch NCL)
    B, Nin, L = x.shape
    P = prepare_params(params)

    # ---- input LayerNorm + Linear (fused) ----
    x_cl = x.transpose(0, 2, 1).reshape(B * L, Nin)
    x_cl = ln_linear(x_cl, P["ln0_w"], P["ln0_b"], P["lin0_w"], P["lin0_b"])
    N = x_cl.shape[-1]

    # ---- segmentation -> canonical [B, K, S, N] ----
    xseg, gap = segmentation_cl(x_cl.reshape(B, L, N), K_len)

    # ---- Sandglasset blocks (no HBM transposes inside this loop) ----
    pe_cache = {}
    residuals = []
    for i in range(2 * depth):
        bp = P["blocks"][i]
        k = ks[i]
        xseg = locally_recurrent_block(xseg, bp, hidden)
        Sd = xseg.shape[2] // k
        if Sd not in pe_cache:
            pe_cache[Sd] = positional_encoding(Sd, N)
        skip = residuals[2 * depth - 1 - i] if i >= depth else None
        xseg = down_ga_up(xseg, bp, k, num_heads, pe_cache[Sd], skip=skip)
        if i < depth:
            residuals.append(xseg)

    # ---- PReLU + 1x1 Conv2d (fused) ----
    Bq, Kq, Sq, _ = xseg.shape
    xf = prelu_linear(xseg.reshape(Bq * Kq * Sq, N),
                      P["prelu_alpha"], P["conv2d_w"], P["conv2d_b"])        # [.., spk*N]
    # TODO(synk): this speaker-split permute is outside the block loop and fuses into the
    # overlap-add fusion under jit; writing it directly from the kernel needs an in-kernel
    # [K,S,N]->[S,K,N] relayout (kept out for lowering safety).
    x5 = xf.reshape(Bq, Kq, Sq, spk, N).transpose(0, 3, 2, 1, 4)             # [B, spk, S, K, N]
    x5 = x5.reshape(Bq * spk, Sq, Kq, N)

    # ---- overlap-add ----
    audio = overlap_add_cl(x5, gap)                                          # [B*spk, L, N]
    Bs, Lc, _ = audio.shape

    # ---- fused output tail: conv1x1+tanh x depthwise gate+sigmoid -> bottleneck -> ReLU ----
    y = output_tail(audio.reshape(Bs * Lc, N), P["out_conv_w"], P["out_conv_b"],
                    P["gate_w"], P["gate_b"], P["bottleneck_w"])             # [Bs*Lc, Nin]
    y = y.reshape(Bq, spk, Lc, Nin).transpose(1, 0, 3, 2)                    # [spk, B, Nin, L]
    return y


# ----------------------------------------------------------------------------
# deterministic synthetic parameters (PyTorch shapes)
# ----------------------------------------------------------------------------
def init_params(key, in_ch, out_ch, hidden, depth, spk, ks):
    keys = iter(jax.random.split(key, 1024))

    def nrm(shape, scale=0.1):
        return scale * jax.random.normal(next(keys), shape, dtype=jnp.float32)

    p = {"ln0_w": jnp.ones((in_ch,), jnp.float32),
         "ln0_b": jnp.zeros((in_ch,), jnp.float32),
         "lin0_w": nrm((out_ch, in_ch)),
         "lin0_b": nrm((out_ch,))}
    blocks = []
    for i in range(2 * depth):
        k = ks[i]
        b = {
            "lstm": {
                "fwd": (nrm((4 * hidden, out_ch)), nrm((4 * hidden, hidden)),
                        nrm((4 * hidden,)), nrm((4 * hidden,))),
                "bwd": (nrm((4 * hidden, out_ch)), nrm((4 * hidden, hidden)),
                        nrm((4 * hidden,)), nrm((4 * hidden,))),
            },
            "lr_lin_w": nrm((out_ch, 2 * hidden)), "lr_lin_b": nrm((out_ch,)),
            "lr_ln_w": jnp.ones((out_ch,), jnp.float32), "lr_ln_b": jnp.zeros((out_ch,), jnp.float32),
            "blk_ln_w": jnp.ones((out_ch,), jnp.float32), "blk_ln_b": jnp.zeros((out_ch,), jnp.float32),
            "down_w": nrm((k, out_ch)), "down_b": nrm((out_ch,)),   # Conv1d(N,N,k,groups=N).weight[:,0,:].T
            "ln1_w": jnp.ones((out_ch,), jnp.float32), "ln1_b": jnp.zeros((out_ch,), jnp.float32),
            "in_proj_w": nrm((3 * out_ch, out_ch)), "in_proj_b": nrm((3 * out_ch,)),
            "out_proj_w": nrm((out_ch, out_ch)), "out_proj_b": nrm((out_ch,)),
            "ln2_w": jnp.ones((out_ch,), jnp.float32), "ln2_b": jnp.zeros((out_ch,), jnp.float32),
            "up_w": nrm((k, out_ch)), "up_b": nrm((out_ch,)),       # ConvTranspose1d depthwise
        }
        blocks.append(b)
    p["blocks"] = blocks
    p["prelu_alpha"] = jnp.full((1, 1), 0.25, jnp.float32)
    p["conv2d_w"] = nrm((spk * out_ch, out_ch))
    p["conv2d_b"] = nrm((spk * out_ch,))
    p["out_conv_w"] = nrm((out_ch, out_ch))
    p["out_conv_b"] = nrm((out_ch,))
    p["gate_w"] = nrm((out_ch,))
    p["gate_b"] = nrm((out_ch,))
    p["bottleneck_w"] = nrm((in_ch, out_ch))
    return p


# ----------------------------------------------------------------------------
if __name__ == "__main__":
    # Small config consistent with the module:
    #   in_channels = out_channels = 16, length (K) = 8, hidden = 16, num_heads = 4,
    #   depth = 2 -> kernel/stride schedule [1, 4, 4, 1], speakers = 2, batch = 2, L = 22.
    B, in_ch, out_ch, L = 2, 16, 16, 22
    K_len, hidden, num_heads, depth, spk = 8, 16, 4, 2, 2
    ks = tuple([4 ** i for i in range(depth)] + [4 ** i for i in reversed(range(depth))])

    key = jax.random.PRNGKey(0)
    pkey, xkey = jax.random.split(key)
    params = init_params(pkey, in_ch, out_ch, hidden, depth, spk, ks)
    x = jax.random.normal(xkey, (B, in_ch, L), dtype=jnp.float32)

    fwd = jax.jit(functools.partial(separation_forward, K_len=K_len, depth=depth, spk=spk,
                                    num_heads=num_heads, hidden=hidden, ks=ks))
    out = jax.block_until_ready(fwd(x, params))
    assert out.shape == (spk, B, in_ch, L), out.shape
    assert bool(jnp.all(jnp.isfinite(out)))
    print("KERNEL_OK")
</pallas_src>

<mosaic_0001>
module attributes {stable_mosaic.version = 11 : i64} {
  func.func @_ln_linear_kernel(%arg0: i32, %arg1: memref<44x16xf32, #tpu.memory_space<vmem>>, %arg2: memref<1x16xf32, #tpu.memory_space<vmem>>, %arg3: memref<1x16xf32, #tpu.memory_space<vmem>>, %arg4: memref<16x16xf32, #tpu.memory_space<vmem>>, %arg5: memref<1x16xf32, #tpu.memory_space<vmem>>, %arg6: memref<44x16xf32, #tpu.memory_space<vmem>>) attributes {dimension_semantics = [#tpu.dimension_semantics<parallel>], iteration_bounds = array<i64: 1>, scalar_prefetch = 0 : i64, scratch_operands = 0 : i64, tpu.core_type = #tpu.core_type<tc>, window_params = [{transform_indices = @transform_0, window_bounds = array<i64: 44, 16>}, {pipeline_mode = #tpu.pipeline_mode<synchronous>, transform_indices = @transform_1, window_bounds = array<i64: 1, 16>}, {pipeline_mode = #tpu.pipeline_mode<synchronous>, transform_indices = @transform_2, window_bounds = array<i64: 1, 16>}, {pipeline_mode = #tpu.pipeline_mode<synchronous>, transform_indices = @transform_3, window_bounds = array<i64: 16, 16>}, {pipeline_mode = #tpu.pipeline_mode<synchronous>, transform_indices = @transform_4, window_bounds = array<i64: 1, 16>}, {transform_indices = @transform_5, window_bounds = array<i64: 44, 16>}]} {
    %c0 = arith.constant 0 : index
    %c0_0 = arith.constant 0 : index
    %0 = vector.load %arg1[%c0, %c0_0] : memref<44x16xf32, #tpu.memory_space<vmem>>, vector<44x16xf32>
    %c0_1 = arith.constant 0 : index
    %c0_2 = arith.constant 0 : index
    %1 = vector.load %arg2[%c0_1, %c0_2] : memref<1x16xf32, #tpu.memory_space<vmem>>, vector<1x16xf32>
    %c0_3 = arith.constant 0 : index
    %c0_4 = arith.constant 0 : index
    %2 = vector.load %arg3[%c0_3, %c0_4] : memref<1x16xf32, #tpu.memory_space<vmem>>, vector<1x16xf32>
    %cst = arith.constant dense<0.000000e+00> : vector<44xf32>
    %3 = vector.multi_reduction <add>, %0, %cst [1] : vector<44x16xf32> to vector<44xf32>
    %4 = vector.shape_cast %3 : vector<44xf32> to vector<44x1xf32>
    %cst_5 = arith.constant 1.600000e+01 : f32
    %5 = vector.broadcast %cst_5 : f32 to vector<44x1xf32>
    %6 = arith.divf %4, %5 : vector<44x1xf32>
    %7 = vector.broadcast %6 : vector<44x1xf32> to vector<44x16xf32>
    %8 = arith.subf %0, %7 : vector<44x16xf32>
    %9 = arith.mulf %8, %8 : vector<44x16xf32>
    %cst_6 = arith.constant dense<0.000000e+00> : vector<44xf32>
    %10 = vector.multi_reduction <add>, %9, %cst_6 [1] : vector<44x16xf32> to vector<44xf32>
    %11 = vector.shape_cast %10 : vector<44xf32> to vector<44x1xf32>
    %cst_7 = arith.constant 1.600000e+01 : f32
    %12 = vector.broadcast %cst_7 : f32 to vector<44x1xf32>
    %13 = arith.divf %11, %12 : vector<44x1xf32>
    %14 = vector.broadcast %6 : vector<44x1xf32> to vector<44x16xf32>
    %15 = arith.subf %0, %14 : vector<44x16xf32>
    %cst_8 = arith.constant 9.99999974E-6 : f32
    %16 = vector.broadcast %cst_8 : f32 to vector<44x1xf32>
    %17 = arith.addf %13, %16 : vector<44x1xf32>
    %18 = math.rsqrt %17 : vector<44x1xf32>
    %19 = vector.broadcast %18 : vector<44x1xf32> to vector<44x16xf32>
    %20 = arith.mulf %15, %19 : vector<44x16xf32>
    %21 = vector.broadcast %1 : vector<1x16xf32> to vector<44x16xf32>
    %22 = arith.mulf %20, %21 : vector<44x16xf32>
    %23 = vector.broadcast %2 : vector<1x16xf32> to vector<44x16xf32>
    %24 = arith.addf %22, %23 : vector<44x16xf32>
    %c0_9 = arith.constant 0 : index
    %c0_10 = arith.constant 0 : index
    %25 = vector.load %arg4[%c0_9, %c0_10] : memref<16x16xf32, #tpu.memory_space<vmem>>, vector<16x16xf32>
    %cst_11 = arith.constant dense<0.000000e+00> : vector<44x16xf32>
    %26 = tpu.matmul %24, %25, %cst_11 {dimension_numbers = #tpu.dot_dimension_numbers<[1], [0], [0], [1], [0, 0, 1, 1], [], []>} : vector<44x16xf32>, vector<16x16xf32>, vector<44x16xf32> -> vector<44x16xf32>
    %c0_12 = arith.constant 0 : index
    %c0_13 = arith.constant 0 : index
    %27 = vector.load %arg5[%c0_12, %c0_13] : memref<1x16xf32, #tpu.memory_space<vmem>>, vector<1x16xf32>
    %28 = vector.broadcast %27 : vector<1x16xf32> to vector<44x16xf32>
    %29 = arith.addf %26, %28 : vector<44x16xf32>
    %c0_14 = arith.constant 0 : index
    %c0_15 = arith.constant 0 : index
    %30 = vector.load %arg6[%c0_14, %c0_15] : memref<44x16xf32, #tpu.memory_space<vmem>>, vector<44x16xf32>
    tpu.vector_store %arg6[%c0_14, %c0_15], %29 {strides = array<i32>} : memref<44x16xf32, #tpu.memory_space<vmem>>, vector<44x16xf32>,
    return
  }
  func.func @transform_0(%arg0: i32) -> (i32, i32) {
    %c0_i32 = arith.constant 0 : i32
    %c0_i32_0 = arith.constant 0 : i32
    return %arg0, %c0_i32 : i32, i32
  }
  func.func @transform_1(%arg0: i32) -> (i32, i32) {
    %c0_i32 = arith.constant 0 : i32
    %c0_i32_0 = arith.constant 0 : i32
    %c0_i32_1 = arith.constant 0 : i32
    return %c0_i32, %c0_i32_0 : i32, i32
  }
  func.func @transform_2(%arg0: i32) -> (i32, i32) {
    %c0_i32 = arith.constant 0 : i32
    %c0_i32_0 = arith.constant 0 : i32
    %c0_i32_1 = arith.constant 0 : i32
    return %c0_i32, %c0_i32_0 : i32, i32
  }
  func.func @transform_3(%arg0: i32) -> (i32, i32) {
    %c0_i32 = arith.constant 0 : i32
    %c0_i32_0 = arith.constant 0 : i32
    %c0_i32_1 = arith.constant 0 : i32
    return %c0_i32, %c0_i32_0 : i32, i32
  }
  func.func @transform_4(%arg0: i32) -> (i32, i32) {
    %c0_i32 = arith.constant 0 : i32
    %c0_i32_0 = arith.constant 0 : i32
    %c0_i32_1 = arith.constant 0 : i32
    return %c0_i32, %c0_i32_0 : i32, i32
  }
  func.func @transform_5(%arg0: i32) -> (i32, i32) {
    %c0_i32 = arith.constant 0 : i32
    %c0_i32_0 = arith.constant 0 : i32
    return %arg0, %c0_i32 : i32, i32
  }
}

module attributes {stable_mosaic.version = 11 : i64} {
  func.func @_locally_recurrent_kernel(%arg0: i32, %arg1: i32, %arg2: memref<1x8x8x16xf32, #tpu.memory_space<vmem>>, %arg3: memref<16x128xf32, #tpu.memory_space<vmem>>, %arg4: memref<1x128xf32, #tpu.memory_space<vmem>>, %arg5: memref<32x128xf32, #tpu.memory_space<vmem>>, %arg6: memref<32x16xf32, #tpu.memory_space<vmem>>, %arg7: memref<1x16xf32, #tpu.memory_space<vmem>>, %arg8: memref<1x16xf32, #tpu.memory_space<vmem>>, %arg9: memref<1x16xf32, #tpu.memory_space<vmem>>, %arg10: memref<1x16xf32, #tpu.memory_space<vmem>>, %arg11: memref<1x16xf32, #tpu.memory_space<vmem>>, %arg12: memref<1x8x8x16xf32, #tpu.memory_space<vmem>>, %arg13: memref<8x8x64xbf16, #tpu.memory_space<vmem>>, %arg14: memref<8x8x64xbf16, #tpu.memory_space<vmem>>, %arg15: memref<8x8x32xf32, #tpu.memory_space<vmem>>) attributes {dimension_semantics = [#tpu.dimension_semantics<parallel>, #tpu.dimension_semantics<parallel>], iteration_bounds = array<i64: 2, 1>, scalar_prefetch = 0 : i64, scratch_operands = 3 : i64, tpu.core_type = #tpu.core_type<tc>, window_params = [{transform_indices = @transform_0, window_bounds = array<i64: 1, 8, 8, 16>}, {pipeline_mode = #tpu.pipeline_mode<synchronous>, transform_indices = @transform_1, window_bounds = array<i64: 16, 128>}, {pipeline_mode = #tpu.pipeline_mode<synchronous>, transform_indices = @transform_2, window_bounds = array<i64: 1, 128>}, {pipeline_mode = #tpu.pipeline_mode<synchronous>, transform_indices = @transform_3, window_bounds = array<i64: 32, 128>}, {pipeline_mode = #tpu.pipeline_mode<synchronous>, transform_indices = @transform_4, window_bounds = array<i64: 32, 16>}, {pipeline_mode = #tpu.pipeline_mode<synchronous>, transform_indices = @transform_5, window_bounds = array<i64: 1, 16>}, {pipeline_mode = #tpu.pipeline_mode<synchronous>, transform_indices = @transform_6, window_bounds = array<i64: 1, 16>}, {pipeline_mode = #tpu.pipeline_mode<synchronous>, transform_indices = @transform_7, window_bounds = array<i64: 1, 16>}, {pipeline_mode = #tpu.pipeline_mode<synchronous>, transform_indices = @transform_8, window_bounds = array<i64: 1, 16>}, {pipeline_mode = #tpu.pipeline_mode<synchronous>, transform_indices = @transform_9, window_bounds = array<i64: 1, 16>}, {transform_indices = @transform_10, window_bounds = array<i64: 1, 8, 8, 16>}]} {
    %c0 = arith.constant 0 : index
    %c0_0 = arith.constant 0 : index
    %c0_1 = arith.constant 0 : index
    %c0_2 = arith.constant 0 : index
    %0 = vector.load %arg2[%c0, %c0_0, %c0_1, %c0_2] : memref<1x8x8x16xf32, #tpu.memory_space<vmem>>, vector<1x8x8x16xf32>
    %1 = vector.shape_cast %0 : vector<1x8x8x16xf32> to vector<8x8x16xf32>
    %2 = vector.shape_cast %1 : vector<8x8x16xf32> to vector<64x16xf32>
    %c0_3 = arith.constant 0 : index
    %c0_4 = arith.constant 0 : index
    %3 = vector.load %arg3[%c0_3, %c0_4] : memref<16x128xf32, #tpu.memory_space<vmem>>, vector<16x128xf32>
    %cst = arith.constant dense<0.000000e+00> : vector<64x128xf32>
    %4 = tpu.matmul %2, %3, %cst {dimension_numbers = #tpu.dot_dimension_numbers<[1], [0], [0], [1], [0, 0, 1, 1], [], []>} : vector<64x16xf32>, vector<16x128xf32>, vector<64x128xf32> -> vector<64x128xf32>
    %c0_5 = arith.constant 0 : index
    %c0_6 = arith.constant 0 : index
    %5 = vector.load %arg4[%c0_5, %c0_6] : memref<1x128xf32, #tpu.memory_space<vmem>>, vector<1x128xf32>
    %6 = vector.broadcast %5 : vector<1x128xf32> to vector<64x128xf32>
    %7 = arith.addf %4, %6 : vector<64x128xf32>
    %8 = vector.shape_cast %7 : vector<64x128xf32> to vector<8x8x128xf32>
    %9 = vector.extract_strided_slice %8 {offsets = [0, 0, 0], sizes = [8, 8, 64], strides = [1, 1, 1]} : vector<8x8x128xf32> to vector<8x8x64xf32>
    %10 = arith.truncf %9 : vector<8x8x64xf32> to vector<8x8x64xbf16>
    %c0_7 = arith.constant 0 : index
    %c0_8 = arith.constant 0 : index
    %c0_9 = arith.constant 0 : index
    %11 = vector.load %arg13[%c0_7, %c0_8, %c0_9] : memref<8x8x64xbf16, #tpu.memory_space<vmem>>, vector<8x8x64xbf16>
    tpu.vector_store %arg13[%c0_7, %c0_8, %c0_9], %10 {strides = array<i32>} : memref<8x8x64xbf16, #tpu.memory_space<vmem>>, vector<8x8x64xbf16>,
    %12 = vector.extract_strided_slice %8 {offsets = [0, 0, 64], sizes = [8, 8, 64], strides = [1, 1, 1]} : vector<8x8x128xf32> to vector<8x8x64xf32>
    %13 = arith.truncf %12 : vector<8x8x64xf32> to vector<8x8x64xbf16>
    %c0_10 = arith.constant 0 : index
    %c0_11 = arith.constant 0 : index
    %c0_12 = arith.constant 0 : index
    %14 = vector.load %arg14[%c0_10, %c0_11, %c0_12] : memref<8x8x64xbf16, #tpu.memory_space<vmem>>, vector<8x8x64xbf16>
    tpu.vector_store %arg14[%c0_10, %c0_11, %c0_12], %13 {strides = array<i32>} : memref<8x8x64xbf16, #tpu.memory_space<vmem>>, vector<8x8x64xbf16>,
    %c0_13 = arith.constant 0 : index
    %c0_14 = arith.constant 0 : index
    %15 = vector.load %arg5[%c0_13, %c0_14] : memref<32x128xf32, #tpu.memory_space<vmem>>, vector<32x128xf32>
    %cst_15 = arith.constant 0.000000e+00 : f32
    %16 = vector.broadcast %cst_15 : f32 to vector<8x32xf32>
    %cst_16 = arith.constant 0.000000e+00 : f32
    %17 = vector.broadcast %cst_16 : f32 to vector<8x16xf32>
    %c0_i32 = arith.constant 0 : i32
    %c8_i32 = arith.constant 8 : i32
    %18 = arith.addi %c0_i32, %c8_i32 : i32
    %c1_i32 = arith.constant 1 : i32
    %19:3 = scf.for %arg16 = %c0_i32 to %18 step %c1_i32 iter_args(%arg17 = %16, %arg18 = %17, %arg19 = %17) -> (vector<8x32xf32>, vector<8x16xf32>, vector<8x16xf32>)  : i32 {
      %c7_i32 = arith.constant 7 : i32
      %81 = arith.subi %c7_i32, %arg16 : i32
      %cst_48 = arith.constant dense<0.000000e+00> : vector<8x128xf32>
      %82 = tpu.matmul %arg17, %15, %cst_48 {dimension_numbers = #tpu.dot_dimension_numbers<[1], [0], [0], [1], [0, 0, 1, 1], [], []>} : vector<8x32xf32>, vector<32x128xf32>, vector<8x128xf32> -> vector<8x128xf32>
      %83 = arith.index_cast %arg16 : i32 to index
      %c0_49 = arith.constant 0 : index
      %c0_50 = arith.constant 0 : index
      %84 = vector.load %arg13[%83, %c0_49, %c0_50] : memref<8x8x64xbf16, #tpu.memory_space<vmem>>, vector<1x8x64xbf16>
      %85 = vector.shape_cast %84 : vector<1x8x64xbf16> to vector<8x64xbf16>
      %86 = arith.extf %85 : vector<8x64xbf16> to vector<8x64xf32>
      %87 = vector.extract_strided_slice %82 {offsets = [0, 0], sizes = [8, 64], strides = [1, 1]} : vector<8x128xf32> to vector<8x64xf32>
      %88 = arith.addf %86, %87 : vector<8x64xf32>
      %89 = arith.index_cast %81 : i32 to index
      %c0_51 = arith.constant 0 : index
      %c0_52 = arith.constant 0 : index
      %90 = vector.load %arg14[%89, %c0_51, %c0_52] : memref<8x8x64xbf16, #tpu.memory_space<vmem>>, vector<1x8x64xbf16>
      %91 = vector.shape_cast %90 : vector<1x8x64xbf16> to vector<8x64xbf16>
      %92 = arith.extf %91 : vector<8x64xbf16> to vector<8x64xf32>
      %93 = vector.extract_strided_slice %82 {offsets = [0, 64], sizes = [8, 64], strides = [1, 1]} : vector<8x128xf32> to vector<8x64xf32>
      %94 = arith.addf %92, %93 : vector<8x64xf32>
      %95 = vector.extract_strided_slice %88 {offsets = [0, 0], sizes = [8, 48], strides = [1, 1]} : vector<8x64xf32> to vector<8x48xf32>
      %96 = arith.negf %95 : vector<8x48xf32>
      %97 = math.exp %96 : vector<8x48xf32>
      %cst_53 = arith.constant 1.000000e+00 : f32
      %98 = vector.broadcast %cst_53 : f32 to vector<8x48xf32>
      %99 = arith.addf %98, %97 : vector<8x48xf32>
      %100 = arith.divf %98, %99 : vector<8x48xf32>
      %101 = vector.extract_strided_slice %88 {offsets = [0, 48], sizes = [8, 16], strides = [1, 1]} : vector<8x64xf32> to vector<8x16xf32>
      %102 = math.tanh %101 : vector<8x16xf32>
      %103 = vector.extract_strided_slice %94 {offsets = [0, 0], sizes = [8, 48], strides = [1, 1]} : vector<8x64xf32> to vector<8x48xf32>
      %104 = arith.negf %103 : vector<8x48xf32>
      %105 = math.exp %104 : vector<8x48xf32>
      %cst_54 = arith.constant 1.000000e+00 : f32
      %106 = vector.broadcast %cst_54 : f32 to vector<8x48xf32>
      %107 = arith.addf %106, %105 : vector<8x48xf32>
      %108 = arith.divf %106, %107 : vector<8x48xf32>
      %109 = vector.extract_strided_slice %94 {offsets = [0, 48], sizes = [8, 16], strides = [1, 1]} : vector<8x64xf32> to vector<8x16xf32>
      %110 = math.tanh %109 : vector<8x16xf32>
      %111 = vector.extract_strided_slice %100 {offsets = [0, 16], sizes = [8, 16], strides = [1, 1]} : vector<8x48xf32> to vector<8x16xf32>
      %112 = arith.mulf %111, %arg18 : vector<8x16xf32>
      %113 = vector.extract_strided_slice %100 {offsets = [0, 0], sizes = [8, 16], strides = [1, 1]} : vector<8x48xf32> to vector<8x16xf32>
      %114 = arith.mulf %113, %102 : vector<8x16xf32>
      %115 = arith.addf %112, %114 : vector<8x16xf32>
      %116 = vector.extract_strided_slice %100 {offsets = [0, 32], sizes = [8, 16], strides = [1, 1]} : vector<8x48xf32> to vector<8x16xf32>
      %117 = math.tanh %115 : vector<8x16xf32>
      %118 = arith.mulf %116, %117 : vector<8x16xf32>
      %119 = vector.extract_strided_slice %108 {offsets = [0, 16], sizes = [8, 16], strides = [1, 1]} : vector<8x48xf32> to vector<8x16xf32>
      %120 = arith.mulf %119, %arg19 : vector<8x16xf32>
      %121 = vector.extract_strided_slice %108 {offsets = [0, 0], sizes = [8, 16], strides = [1, 1]} : vector<8x48xf32> to vector<8x16xf32>
      %122 = arith.mulf %121, %110 : vector<8x16xf32>
      %123 = arith.addf %120, %122 : vector<8x16xf32>
      %124 = vector.extract_strided_slice %108 {offsets = [0, 32], sizes = [8, 16], strides = [1, 1]} : vector<8x48xf32> to vector<8x16xf32>
      %125 = math.tanh %123 : vector<8x16xf32>
      %126 = arith.mulf %124, %125 : vector<8x16xf32>
      %127 = arith.index_cast %arg16 : i32 to index
      %c0_55 = arith.constant 0 : index
      %c0_56 = arith.constant 0 : index
      %128 = vector.load %arg15[%127, %c0_55, %c0_56] : memref<8x8x32xf32, #tpu.memory_space<vmem>>, vector<1x8x16xf32>
      %129 = vector.shape_cast %128 : vector<1x8x16xf32> to vector<8x16xf32>
      %130 = vector.shape_cast %118 : vector<8x16xf32> to vector<1x8x16xf32>
      tpu.vector_store %arg15[%127, %c0_55, %c0_56], %130 {strides = array<i32>} : memref<8x8x32xf32, #tpu.memory_space<vmem>>, vector<1x8x16xf32>,
      %131 = arith.index_cast %81 : i32 to index
      %c0_57 = arith.constant 0 : index
      %c16 = arith.constant 16 : index
      %132 = vector.load %arg15[%131, %c0_57, %c16] : memref<8x8x32xf32, #tpu.memory_space<vmem>>, vector<1x8x16xf32>
      %133 = vector.shape_cast %132 : vector<1x8x16xf32> to vector<8x16xf32>
      %134 = vector.shape_cast %126 : vector<8x16xf32> to vector<1x8x16xf32>
      tpu.vector_store %arg15[%131, %c0_57, %c16], %134 {strides = array<i32>} : memref<8x8x32xf32, #tpu.memory_space<vmem>>, vector<1x8x16xf32>,
      %135 = tpu.concatenate %118, %126 in 1 : vector<8x16xf32>, vector<8x16xf32> -> vector<8x32xf32>
      scf.yield %135, %115, %123 : vector<8x32xf32>, vector<8x16xf32>, vector<8x16xf32>
    }
    %c8_i32_17 = arith.constant 8 : i32
    %c0_18 = arith.constant 0 : index
    %c0_19 = arith.constant 0 : index
    %c0_20 = arith.constant 0 : index
    %20 = vector.load %arg15[%c0_18, %c0_19, %c0_20] : memref<8x8x32xf32, #tpu.memory_space<vmem>>, vector<8x8x32xf32>
    %21 = vector.shape_cast %20 : vector<8x8x32xf32> to vector<64x32xf32>
    %c0_21 = arith.constant 0 : index
    %c0_22 = arith.constant 0 : index
    %22 = vector.load %arg6[%c0_21, %c0_22] : memref<32x16xf32, #tpu.memory_space<vmem>>, vector<32x16xf32>
    %cst_23 = arith.constant dense<0.000000e+00> : vector<64x16xf32>
    %23 = tpu.matmul %21, %22, %cst_23 {dimension_numbers = #tpu.dot_dimension_numbers<[1], [0], [0], [1], [0, 0, 1, 1], [], []>} : vector<64x32xf32>, vector<32x16xf32>, vector<64x16xf32> -> vector<64x16xf32>
    %c0_24 = arith.constant 0 : index
    %c0_25 = arith.constant 0 : index
    %24 = vector.load %arg7[%c0_24, %c0_25] : memref<1x16xf32, #tpu.memory_space<vmem>>, vector<1x16xf32>
    %25 = vector.broadcast %24 : vector<1x16xf32> to vector<64x16xf32>
    %26 = arith.addf %23, %25 : vector<64x16xf32>
    %27 = arith.addf %26, %2 : vector<64x16xf32>
    %c0_26 = arith.constant 0 : index
    %c0_27 = arith.constant 0 : index
    %28 = vector.load %arg8[%c0_26, %c0_27] : memref<1x16xf32, #tpu.memory_space<vmem>>, vector<1x16xf32>
    %c0_28 = arith.constant 0 : index
    %c0_29 = arith.constant 0 : index
    %29 = vector.load %arg9[%c0_28, %c0_29] : memref<1x16xf32, #tpu.memory_space<vmem>>, vector<1x16xf32>
    %cst_30 = arith.constant dense<0.000000e+00> : vector<64xf32>
    %30 = vector.multi_reduction <add>, %27, %cst_30 [1] : vector<64x16xf32> to vector<64xf32>
    %31 = vector.shape_cast %30 : vector<64xf32> to vector<64x1xf32>
    %cst_31 = arith.constant 1.600000e+01 : f32
    %32 = vector.broadcast %cst_31 : f32 to vector<64x1xf32>
    %33 = arith.divf %31, %32 : vector<64x1xf32>
    %34 = vector.broadcast %33 : vector<64x1xf32> to vector<64x16xf32>
    %35 = arith.subf %27, %34 : vector<64x16xf32>
    %36 = arith.mulf %35, %35 : vector<64x16xf32>
    %cst_32 = arith.constant dense<0.000000e+00> : vector<64xf32>
    %37 = vector.multi_reduction <add>, %36, %cst_32 [1] : vector<64x16xf32> to vector<64xf32>
    %38 = vector.shape_cast %37 : vector<64xf32> to vector<64x1xf32>
    %cst_33 = arith.constant 1.600000e+01 : f32
    %39 = vector.broadcast %cst_33 : f32 to vector<64x1xf32>
    %40 = arith.divf %38, %39 : vector<64x1xf32>
    %41 = vector.broadcast %33 : vector<64x1xf32> to vector<64x16xf32>
    %42 = arith.subf %27, %41 : vector<64x16xf32>
    %cst_34 = arith.constant 9.99999974E-6 : f32
    %43 = vector.broadcast %cst_34 : f32 to vector<64x1xf32>
    %44 = arith.addf %40, %43 : vector<64x1xf32>
    %45 = math.rsqrt %44 : vector<64x1xf32>
    %46 = vector.broadcast %45 : vector<64x1xf32> to vector<64x16xf32>
    %47 = arith.mulf %42, %46 : vector<64x16xf32>
    %48 = vector.broadcast %28 : vector<1x16xf32> to vector<64x16xf32>
    %49 = arith.mulf %47, %48 : vector<64x16xf32>
    %50 = vector.broadcast %29 : vector<1x16xf32> to vector<64x16xf32>
    %51 = arith.addf %49, %50 : vector<64x16xf32>
    %c0_35 = arith.constant 0 : index
    %c0_36 = arith.constant 0 : index
    %52 = vector.load %arg10[%c0_35, %c0_36] : memref<1x16xf32, #tpu.memory_space<vmem>>, vector<1x16xf32>
    %c0_37 = arith.constant 0 : index
    %c0_38 = arith.constant 0 : index
    %53 = vector.load %arg11[%c0_37, %c0_38] : memref<1x16xf32, #tpu.memory_space<vmem>>, vector<1x16xf32>
    %cst_39 = arith.constant dense<0.000000e+00> : vector<64xf32>
    %54 = vector.multi_reduction <add>, %51, %cst_39 [1] : vector<64x16xf32> to vector<64xf32>
    %55 = vector.shape_cast %54 : vector<64xf32> to vector<64x1xf32>
    %cst_40 = arith.constant 1.600000e+01 : f32
    %56 = vector.broadcast %cst_40 : f32 to vector<64x1xf32>
    %57 = arith.divf %55, %56 : vector<64x1xf32>
    %58 = vector.broadcast %57 : vector<64x1xf32> to vector<64x16xf32>
    %59 = arith.subf %51, %58 : vector<64x16xf32>
    %60 = arith.mulf %59, %59 : vector<64x16xf32>
    %cst_41 = arith.constant dense<0.000000e+00> : vector<64xf32>
    %61 = vector.multi_reduction <add>, %60, %cst_41 [1] : vector<64x16xf32> to vector<64xf32>
    %62 = vector.shape_cast %61 : vector<64xf32> to vector<64x1xf32>
    %cst_42 = arith.constant 1.600000e+01 : f32
    %63 = vector.broadcast %cst_42 : f32 to vector<64x1xf32>
    %64 = arith.divf %62, %63 : vector<64x1xf32>
    %65 = vector.broadcast %57 : vector<64x1xf32> to vector<64x16xf32>
    %66 = arith.subf %51, %65 : vector<64x16xf32>
    %cst_43 = arith.constant 9.99999974E-6 : f32
    %67 = vector.broadcast %cst_43 : f32 to vector<64x1xf32>
    %68 = arith.addf %64, %67 : vector<64x1xf32>
    %69 = math.rsqrt %68 : vector<64x1xf32>
    %70 = vector.broadcast %69 : vector<64x1xf32> to vector<64x16xf32>
    %71 = arith.mulf %66, %70 : vector<64x16xf32>
    %72 = vector.broadcast %52 : vector<1x16xf32> to vector<64x16xf32>
    %73 = arith.mulf %71, %72 : vector<64x16xf32>
    %74 = vector.broadcast %53 : vector<1x16xf32> to vector<64x16xf32>
    %75 = arith.addf %73, %74 : vector<64x16xf32>
    %76 = arith.addf %75, %2 : vector<64x16xf32>
    %77 = vector.shape_cast %76 : vector<64x16xf32> to vector<8x8x16xf32>
    %c0_44 = arith.constant 0 : index
    %c0_45 = arith.constant 0 : index
    %c0_46 = arith.constant 0 : index
    %c0_47 = arith.constant 0 : index
    %78 = vector.load %arg12[%c0_44, %c0_45, %c0_46, %c0_47] : memref<1x8x8x16xf32, #tpu.memory_space<vmem>>, vector<1x8x8x16xf32>
    %79 = vector.shape_cast %78 : vector<1x8x8x16xf32> to vector<8x8x16xf32>
    %80 = vector.shape_cast %77 : vector<8x8x16xf32> to vector<1x8x8x16xf32>
    tpu.vector_store %arg12[%c0_44, %c0_45, %c0_46, %c0_47], %80 {strides = array<i32>} : memref<1x8x8x16xf32, #tpu.memory_space<vmem>>, vector<1x8x8x16xf32>,
    return
  }
  func.func @transform_0(%arg0: i32, %arg1: i32) -> (i32, i32, i32, i32) {
    %c0_i32 = arith.constant 0 : i32
    %c0_i32_0 = arith.constant 0 : i32
    %c0_i32_1 = arith.constant 0 : i32
    return %arg0, %c0_i32, %arg1, %c0_i32_0 : i32, i32, i32, i32
  }
  func.func @transform_1(%arg0: i32, %arg1: i32) -> (i32, i32) {
    %c0_i32 = arith.constant 0 : i32
    %c0_i32_0 = arith.constant 0 : i32
    %c0_i32_1 = arith.constant 0 : i32
    return %c0_i32, %c0_i32_0 : i32, i32
  }
  func.func @transform_2(%arg0: i32, %arg1: i32) -> (i32, i32) {
    %c0_i32 = arith.constant 0 : i32
    %c0_i32_0 = arith.constant 0 : i32
    %c0_i32_1 = arith.constant 0 : i32
    return %c0_i32, %c0_i32_0 : i32, i32
  }
  func.func @transform_3(%arg0: i32, %arg1: i32) -> (i32, i32) {
    %c0_i32 = arith.constant 0 : i32
    %c0_i32_0 = arith.constant 0 : i32
    %c0_i32_1 = arith.constant 0 : i32
    return %c0_i32, %c0_i32_0 : i32, i32
  }
  func.func @transform_4(%arg0: i32, %arg1: i32) -> (i32, i32) {
    %c0_i32 = arith.constant 0 : i32
    %c0_i32_0 = arith.constant 0 : i32
    %c0_i32_1 = arith.constant 0 : i32
    return %c0_i32, %c0_i32_0 : i32, i32
  }
  func.func @transform_5(%arg0: i32, %arg1: i32) -> (i32, i32) {
    %c0_i32 = arith.constant 0 : i32
    %c0_i32_0 = arith.constant 0 : i32
    %c0_i32_1 = arith.constant 0 : i32
    return %c0_i32, %c0_i32_0 : i32, i32
  }
  func.func @transform_6(%arg0: i32, %arg1: i32) -> (i32, i32) {
    %c0_i32 = arith.constant 0 : i32
    %c0_i32_0 = arith.constant 0 : i32
    %c0_i32_1 = arith.constant 0 : i32
    return %c0_i32, %c0_i32_0 : i32, i32
  }
  func.func @transform_7(%arg0: i32, %arg1: i32) -> (i32, i32) {
    %c0_i32 = arith.constant 0 : i32
    %c0_i32_0 = arith.constant 0 : i32
    %c0_i32_1 = arith.constant 0 : i32
    return %c0_i32, %c0_i32_0 : i32, i32
  }
  func.func @transform_8(%arg0: i32, %arg1: i32) -> (i32, i32) {
    %c0_i32 = arith.constant 0 : i32
    %c0_i32_0 = arith.constant 0 : i32
    %c0_i32_1 = arith.constant 0 : i32
    return %c0_i32, %c0_i32_0 : i32, i32
  }
  func.func @transform_9(%arg0: i32, %arg1: i32) -> (i32, i32) {
    %c0_i32 = arith.constant 0 : i32
    %c0_i32_0 = arith.constant 0 : i32
    %c0_i32_1 = arith.constant 0 : i32
    return %c0_i32, %c0_i32_0 : i32, i32
  }
  func.func @transform_10(%arg0: i32, %arg1: i32) -> (i32, i32, i32, i32) {
    %c0_i32 = arith.constant 0 : i32
    %c0_i32_0 = arith.constant 0 : i32
    %c0_i32_1 = arith.constant 0 : i32
    return %arg0, %c0_i32, %arg1, %c0_i32_0 : i32, i32, i32, i32
  }
}

module attributes {stable_mosaic.version = 11 : i64} {
  func.func @_down_ga_up_kernel(%arg0: i32, %arg1: memref<1x8x1x16xf32, #tpu.memory_space<vmem>>, %arg2: memref<1x16xf32, #tpu.memory_space<vmem>>, %arg3: memref<1x16xf32, #tpu.memory_space<vmem>>, %arg4: memref<1x16xf32, #tpu.memory_space<vmem>>, %arg5: memref<1x16xf32, #tpu.memory_space<vmem>>, %arg6: memref<8x16xf32, #tpu.memory_space<vmem>>, %arg7: memref<16x48xf32, #tpu.memory_space<vmem>>, %arg8: memref<1x48xf32, #tpu.memory_space<vmem>>, %arg9: memref<4x4x16xf32, #tpu.memory_space<vmem>>, %arg10: memref<1x16xf32, #tpu.memory_space<vmem>>, %arg11: memref<1x16xf32, #tpu.memory_space<vmem>>, %arg12: memref<1x16xf32, #tpu.memory_space<vmem>>, %arg13: memref<1x16xf32, #tpu.memory_space<vmem>>, %arg14: memref<1x16xf32, #tpu.memory_space<vmem>>, %arg15: memref<1x8x1x16xf32, #tpu.memory_space<vmem>>) attributes {dimension_semantics = [#tpu.dimension_semantics<parallel>], iteration_bounds = array<i64: 16>, scalar_prefetch = 0 : i64, scratch_operands = 0 : i64, tpu.core_type = #tpu.core_type<tc>, window_params = [{transform_indices = @transform_0, window_bounds = array<i64: 1, 8, 1, 16>}, {pipeline_mode = #tpu.pipeline_mode<synchronous>, transform_indices = @transform_1, window_bounds = array<i64: 1, 16>}, {pipeline_mode = #tpu.pipeline_mode<synchronous>, transform_indices = @transform_2, window_bounds = array<i64: 1, 16>}, {pipeline_mode = #tpu.pipeline_mode<synchronous>, transform_indices = @transform_3, window_bounds = array<i64: 1, 16>}, {pipeline_mode = #tpu.pipeline_mode<synchronous>, transform_indices = @transform_4, window_bounds = array<i64: 1, 16>}, {pipeline_mode = #tpu.pipeline_mode<synchronous>, transform_indices = @transform_5, window_bounds = array<i64: 8, 16>}, {pipeline_mode = #tpu.pipeline_mode<synchronous>, transform_indices = @transform_6, window_bounds = array<i64: 16, 48>}, {pipeline_mode = #tpu.pipeline_mode<synchronous>, transform_indices = @transform_7, window_bounds = array<i64: 1, 48>}, {pipeline_mode = #tpu.pipeline_mode<synchronous>, transform_indices = @transform_8, window_bounds = array<i64: 4, 4, 16>}, {pipeline_mode = #tpu.pipeline_mode<synchronous>, transform_indices = @transform_9, window_bounds = array<i64: 1, 16>}, {pipeline_mode = #tpu.pipeline_mode<synchronous>, transform_indices = @transform_10, window_bounds = array<i64: 1, 16>}, {pipeline_mode = #tpu.pipeline_mode<synchronous>, transform_indices = @transform_11, window_bounds = array<i64: 1, 16>}, {pipeline_mode = #tpu.pipeline_mode<synchronous>, transform_indices = @transform_12, window_bounds = array<i64: 1, 16>}, {pipeline_mode = #tpu.pipeline_mode<synchronous>, transform_indices = @transform_13, window_bounds = array<i64: 1, 16>}, {transform_indices = @transform_14, window_bounds = array<i64: 1, 8, 1, 16>}]} {
    %c0 = arith.constant 0 : index
    %c0_0 = arith.constant 0 : index
    %c0_1 = arith.constant 0 : index
    %c0_2 = arith.constant 0 : index
    %0 = vector.load %arg1[%c0, %c0_0, %c0_1, %c0_2] : memref<1x8x1x16xf32, #tpu.memory_space<vmem>>, vector<1x8x1x16xf32>
    %1 = vector.shape_cast %0 : vector<1x8x1x16xf32> to vector<8x1x16xf32>
    %c0_3 = arith.constant 0 : index
    %c0_4 = arith.constant 0 : index
    %2 = vector.load %arg2[%c0_3, %c0_4] : memref<1x16xf32, #tpu.memory_space<vmem>>, vector<1x16xf32>
    %3 = vector.shape_cast %2 : vector<1x16xf32> to vector<1x1x16xf32>
    %4 = vector.broadcast %3 : vector<1x1x16xf32> to vector<8x1x16xf32>
    %5 = arith.mulf %1, %4 : vector<8x1x16xf32>
    %cst = arith.constant dense<0.000000e+00> : vector<8x16xf32>
    %6 = vector.multi_reduction <add>, %5, %cst [1] : vector<8x1x16xf32> to vector<8x16xf32>
    %c0_5 = arith.constant 0 : index
    %c0_6 = arith.constant 0 : index
    %7 = vector.load %arg3[%c0_5, %c0_6] : memref<1x16xf32, #tpu.memory_space<vmem>>, vector<1x16xf32>
    %8 = vector.broadcast %7 : vector<1x16xf32> to vector<8x16xf32>
    %9 = arith.addf %6, %8 : vector<8x16xf32>
    %c0_7 = arith.constant 0 : index
    %c0_8 = arith.constant 0 : index
    %10 = vector.load %arg4[%c0_7, %c0_8] : memref<1x16xf32, #tpu.memory_space<vmem>>, vector<1x16xf32>
    %c0_9 = arith.constant 0 : index
    %c0_10 = arith.constant 0 : index
    %11 = vector.load %arg5[%c0_9, %c0_10] : memref<1x16xf32, #tpu.memory_space<vmem>>, vector<1x16xf32>
    %cst_11 = arith.constant dense<0.000000e+00> : vector<8xf32>
    %12 = vector.multi_reduction <add>, %9, %cst_11 [1] : vector<8x16xf32> to vector<8xf32>
    %13 = vector.shape_cast %12 : vector<8xf32> to vector<8x1xf32>
    %cst_12 = arith.constant 1.600000e+01 : f32
    %14 = vector.broadcast %cst_12 : f32 to vector<8x1xf32>
    %15 = arith.divf %13, %14 : vector<8x1xf32>
    %16 = vector.broadcast %15 : vector<8x1xf32> to vector<8x16xf32>
    %17 = arith.subf %9, %16 : vector<8x16xf32>
    %18 = arith.mulf %17, %17 : vector<8x16xf32>
    %cst_13 = arith.constant dense<0.000000e+00> : vector<8xf32>
    %19 = vector.multi_reduction <add>, %18, %cst_13 [1] : vector<8x16xf32> to vector<8xf32>
    %20 = vector.shape_cast %19 : vector<8xf32> to vector<8x1xf32>
    %cst_14 = arith.constant 1.600000e+01 : f32
    %21 = vector.broadcast %cst_14 : f32 to vector<8x1xf32>
    %22 = arith.divf %20, %21 : vector<8x1xf32>
    %23 = vector.broadcast %15 : vector<8x1xf32> to vector<8x16xf32>
    %24 = arith.subf %9, %23 : vector<8x16xf32>
    %cst_15 = arith.constant 9.99999974E-6 : f32
    %25 = vector.broadcast %cst_15 : f32 to vector<8x1xf32>
    %26 = arith.addf %22, %25 : vector<8x1xf32>
    %27 = math.rsqrt %26 : vector<8x1xf32>
    %28 = vector.broadcast %27 : vector<8x1xf32> to vector<8x16xf32>
    %29 = arith.mulf %24, %28 : vector<8x16xf32>
    %30 = vector.broadcast %10 : vector<1x16xf32> to vector<8x16xf32>
    %31 = arith.mulf %29, %30 : vector<8x16xf32>
    %32 = vector.broadcast %11 : vector<1x16xf32> to vector<8x16xf32>
    %33 = arith.addf %31, %32 : vector<8x16xf32>
    %c0_16 = arith.constant 0 : index
    %c0_17 = arith.constant 0 : index
    %34 = vector.load %arg6[%c0_16, %c0_17] : memref<8x16xf32, #tpu.memory_space<vmem>>, vector<8x16xf32>
    %35 = arith.addf %33, %34 : vector<8x16xf32>
    %c0_18 = arith.constant 0 : index
    %c0_19 = arith.constant 0 : index
    %36 = vector.load %arg7[%c0_18, %c0_19] : memref<16x48xf32, #tpu.memory_space<vmem>>, vector<16x48xf32>
    %cst_20 = arith.constant dense<0.000000e+00> : vector<8x48xf32>
    %37 = tpu.matmul %35, %36, %cst_20 {dimension_numbers = #tpu.dot_dimension_numbers<[1], [0], [0], [1], [0, 0, 1, 1], [], []>} : vector<8x16xf32>, vector<16x48xf32>, vector<8x48xf32> -> vector<8x48xf32>
    %c0_21 = arith.constant 0 : index
    %c0_22 = arith.constant 0 : index
    %38 = vector.load %arg8[%c0_21, %c0_22] : memref<1x48xf32, #tpu.memory_space<vmem>>, vector<1x48xf32>
    %39 = vector.broadcast %38 : vector<1x48xf32> to vector<8x48xf32>
    %40 = arith.addf %37, %39 : vector<8x48xf32>
    %41 = vector.extract_strided_slice %40 {offsets = [0, 0], sizes = [8, 4], strides = [1, 1]} : vector<8x48xf32> to vector<8x4xf32>
    %42 = vector.extract_strided_slice %40 {offsets = [0, 4], sizes = [8, 4], strides = [1, 1]} : vector<8x48xf32> to vector<8x4xf32>
    %43 = vector.extract_strided_slice %40 {offsets = [0, 8], sizes = [8, 4], strides = [1, 1]} : vector<8x48xf32> to vector<8x4xf32>
    %44 = vector.extract_strided_slice %40 {offsets = [0, 12], sizes = [8, 4], strides = [1, 1]} : vector<8x48xf32> to vector<8x4xf32>
    %45 = vector.shape_cast %41 : vector<8x4xf32> to vector<1x8x4xf32>
    %46 = vector.shape_cast %42 : vector<8x4xf32> to vector<1x8x4xf32>
    %47 = vector.shape_cast %43 : vector<8x4xf32> to vector<1x8x4xf32>
    %48 = vector.shape_cast %44 : vector<8x4xf32> to vector<1x8x4xf32>
    %49 = tpu.concatenate %45, %46, %47, %48 in 0 : vector<1x8x4xf32>, vector<1x8x4xf32>, vector<1x8x4xf32>, vector<1x8x4xf32> -> vector<4x8x4xf32>
    %cst_23 = arith.constant 5.000000e-01 : f32
    %50 = vector.broadcast %cst_23 : f32 to vector<4x8x4xf32>
    %51 = arith.mulf %49, %50 : vector<4x8x4xf32>
    %52 = vector.extract_strided_slice %40 {offsets = [0, 16], sizes = [8, 4], strides = [1, 1]} : vector<8x48xf32> to vector<8x4xf32>
    %53 = vector.extract_strided_slice %40 {offsets = [0, 20], sizes = [8, 4], strides = [1, 1]} : vector<8x48xf32> to vector<8x4xf32>
    %54 = vector.extract_strided_slice %40 {offsets = [0, 24], sizes = [8, 4], strides = [1, 1]} : vector<8x48xf32> to vector<8x4xf32>
    %55 = vector.extract_strided_slice %40 {offsets = [0, 28], sizes = [8, 4], strides = [1, 1]} : vector<8x48xf32> to vector<8x4xf32>
    %56 = vector.shape_cast %52 : vector<8x4xf32> to vector<1x8x4xf32>
    %57 = vector.shape_cast %53 : vector<8x4xf32> to vector<1x8x4xf32>
    %58 = vector.shape_cast %54 : vector<8x4xf32> to vector<1x8x4xf32>
    %59 = vector.shape_cast %55 : vector<8x4xf32> to vector<1x8x4xf32>
    %60 = tpu.concatenate %56, %57, %58, %59 in 0 : vector<1x8x4xf32>, vector<1x8x4xf32>, vector<1x8x4xf32>, vector<1x8x4xf32> -> vector<4x8x4xf32>
    %61 = vector.extract_strided_slice %40 {offsets = [0, 32], sizes = [8, 4], strides = [1, 1]} : vector<8x48xf32> to vector<8x4xf32>
    %62 = vector.extract_strided_slice %40 {offsets = [0, 36], sizes = [8, 4], strides = [1, 1]} : vector<8x48xf32> to vector<8x4xf32>
    %63 = vector.extract_strided_slice %40 {offsets = [0, 40], sizes = [8, 4], strides = [1, 1]} : vector<8x48xf32> to vector<8x4xf32>
    %64 = vector.extract_strided_slice %40 {offsets = [0, 44], sizes = [8, 4], strides = [1, 1]} : vector<8x48xf32> to vector<8x4xf32>
    %65 = vector.shape_cast %61 : vector<8x4xf32> to vector<1x8x4xf32>
    %66 = vector.shape_cast %62 : vector<8x4xf32> to vector<1x8x4xf32>
    %67 = vector.shape_cast %63 : vector<8x4xf32> to vector<1x8x4xf32>
    %68 = vector.shape_cast %64 : vector<8x4xf32> to vector<1x8x4xf32>
    %69 = tpu.concatenate %65, %66, %67, %68 in 0 : vector<1x8x4xf32>, vector<1x8x4xf32>, vector<1x8x4xf32>, vector<1x8x4xf32> -> vector<4x8x4xf32>
    "tpu.trace_start"() <{level = 10 : i32, message = "hqd,hkd->hqk"}> : () -> ()
    %cst_24 = arith.constant dense<0.000000e+00> : vector<4x8x8xf32>
    %70 = tpu.matmul %51, %60, %cst_24 {dimension_numbers = #tpu.dot_dimension_numbers<[2], [2], [1], [1], [0, 0, 0, 1, 1, 1], [0], [0]>} : vector<4x8x4xf32>, vector<4x8x4xf32>, vector<4x8x8xf32> -> vector<4x8x8xf32>
    "tpu.trace_stop"() : () -> ()
    %cst_25 = arith.constant dense<0xFF800000> : vector<4x8xf32>
    %71 = vector.multi_reduction <maximumf>, %70, %cst_25 [2] : vector<4x8x8xf32> to vector<4x8xf32>
    %72 = vector.shape_cast %71 : vector<4x8xf32> to vector<4x8x1xf32>
    %73 = vector.broadcast %72 : vector<4x8x1xf32> to vector<4x8x8xf32>
    %74 = arith.subf %70, %73 : vector<4x8x8xf32>
    %75 = math.exp %74 : vector<4x8x8xf32>
    %cst_26 = arith.constant dense<0.000000e+00> : vector<4x8xf32>
    %76 = vector.multi_reduction <add>, %75, %cst_26 [2] : vector<4x8x8xf32> to vector<4x8xf32>
    %77 = vector.shape_cast %76 : vector<4x8xf32> to vector<4x8x1xf32>
    %78 = tpu.reciprocal %77 {approx = true} : vector<4x8x1xf32> -> vector<4x8x1xf32>
    %79 = vector.broadcast %78 : vector<4x8x1xf32> to vector<4x8x8xf32>
    %80 = arith.mulf %75, %79 : vector<4x8x8xf32>
    "tpu.trace_start"() <{level = 10 : i32, message = "hqk,hkd->hqd"}> : () -> ()
    %cst_27 = arith.constant dense<0.000000e+00> : vector<4x8x4xf32>
    %81 = tpu.matmul %80, %69, %cst_27 {dimension_numbers = #tpu.dot_dimension_numbers<[2], [1], [1], [2], [0, 0, 0, 1, 1, 2], [0], [0]>} : vector<4x8x8xf32>, vector<4x8x4xf32>, vector<4x8x4xf32> -> vector<4x8x4xf32>
    "tpu.trace_stop"() : () -> ()
    %c0_28 = arith.constant 0 : index
    %c0_29 = arith.constant 0 : index
    %c0_30 = arith.constant 0 : index
    %82 = vector.load %arg9[%c0_28, %c0_29, %c0_30] : memref<4x4x16xf32, #tpu.memory_space<vmem>>, vector<4x4x16xf32>
    "tpu.trace_start"() <{level = 10 : i32, message = "hqd,hdn->hqn"}> : () -> ()
    %cst_31 = arith.constant dense<0.000000e+00> : vector<4x8x16xf32>
    %83 = tpu.matmul %81, %82, %cst_31 {dimension_numbers = #tpu.dot_dimension_numbers<[2], [1], [1], [2], [0, 0, 0, 1, 1, 2], [0], [0]>} : vector<4x8x4xf32>, vector<4x4x16xf32>, vector<4x8x16xf32> -> vector<4x8x16xf32>
    "tpu.trace_stop"() : () -> ()
    %cst_32 = arith.constant dense<0.000000e+00> : vector<8x16xf32>
    %84 = vector.multi_reduction <add>, %83, %cst_32 [0] : vector<4x8x16xf32> to vector<8x16xf32>
    %c0_33 = arith.constant 0 : index
    %c0_34 = arith.constant 0 : index
    %85 = vector.load %arg10[%c0_33, %c0_34] : memref<1x16xf32, #tpu.memory_space<vmem>>, vector<1x16xf32>
    %86 = vector.broadcast %85 : vector<1x16xf32> to vector<8x16xf32>
    %87 = arith.addf %84, %86 : vector<8x16xf32>
    %88 = arith.addf %87, %35 : vector<8x16xf32>
    %c0_35 = arith.constant 0 : index
    %c0_36 = arith.constant 0 : index
    %89 = vector.load %arg11[%c0_35, %c0_36] : memref<1x16xf32, #tpu.memory_space<vmem>>, vector<1x16xf32>
    %c0_37 = arith.constant 0 : index
    %c0_38 = arith.constant 0 : index
    %90 = vector.load %arg12[%c0_37, %c0_38] : memref<1x16xf32, #tpu.memory_space<vmem>>, vector<1x16xf32>
    %cst_39 = arith.constant dense<0.000000e+00> : vector<8xf32>
    %91 = vector.multi_reduction <add>, %88, %cst_39 [1] : vector<8x16xf32> to vector<8xf32>
    %92 = vector.shape_cast %91 : vector<8xf32> to vector<8x1xf32>
    %cst_40 = arith.constant 1.600000e+01 : f32
    %93 = vector.broadcast %cst_40 : f32 to vector<8x1xf32>
    %94 = arith.divf %92, %93 : vector<8x1xf32>
    %95 = vector.broadcast %94 : vector<8x1xf32> to vector<8x16xf32>
    %96 = arith.subf %88, %95 : vector<8x16xf32>
    %97 = arith.mulf %96, %96 : vector<8x16xf32>
    %cst_41 = arith.constant dense<0.000000e+00> : vector<8xf32>
    %98 = vector.multi_reduction <add>, %97, %cst_41 [1] : vector<8x16xf32> to vector<8xf32>
    %99 = vector.shape_cast %98 : vector<8xf32> to vector<8x1xf32>
    %cst_42 = arith.constant 1.600000e+01 : f32
    %100 = vector.broadcast %cst_42 : f32 to vector<8x1xf32>
    %101 = arith.divf %99, %100 : vector<8x1xf32>
    %102 = vector.broadcast %94 : vector<8x1xf32> to vector<8x16xf32>
    %103 = arith.subf %88, %102 : vector<8x16xf32>
    %cst_43 = arith.constant 9.99999974E-6 : f32
    %104 = vector.broadcast %cst_43 : f32 to vector<8x1xf32>
    %105 = arith.addf %101, %104 : vector<8x1xf32>
    %106 = math.rsqrt %105 : vector<8x1xf32>
    %107 = vector.broadcast %106 : vector<8x1xf32> to vector<8x16xf32>
    %108 = arith.mulf %103, %107 : vector<8x16xf32>
    %109 = vector.broadcast %89 : vector<1x16xf32> to vector<8x16xf32>
    %110 = arith.mulf %108, %109 : vector<8x16xf32>
    %111 = vector.broadcast %90 : vector<1x16xf32> to vector<8x16xf32>
    %112 = arith.addf %110, %111 : vector<8x16xf32>
    %113 = arith.addf %112, %9 : vector<8x16xf32>
    %114 = vector.shape_cast %113 : vector<8x16xf32> to vector<8x1x16xf32>
    %c0_44 = arith.constant 0 : index
    %c0_45 = arith.constant 0 : index
    %115 = vector.load %arg13[%c0_44, %c0_45] : memref<1x16xf32, #tpu.memory_space<vmem>>, vector<1x16xf32>
    %116 = vector.shape_cast %115 : vector<1x16xf32> to vector<1x1x16xf32>
    %117 = vector.broadcast %116 : vector<1x1x16xf32> to vector<8x1x16xf32>
    %118 = arith.mulf %114, %117 : vector<8x1x16xf32>
    %c0_46 = arith.constant 0 : index
    %c0_47 = arith.constant 0 : index
    %119 = vector.load %arg14[%c0_46, %c0_47] : memref<1x16xf32, #tpu.memory_space<vmem>>, vector<1x16xf32>
    %120 = vector.shape_cast %119 : vector<1x16xf32> to vector<1x1x16xf32>
    %121 = vector.broadcast %120 : vector<1x1x16xf32> to vector<8x1x16xf32>
    %122 = arith.addf %118, %121 : vector<8x1x16xf32>
    %c0_48 = arith.constant 0 : index
    %c0_49 = arith.constant 0 : index
    %c0_50 = arith.constant 0 : index
    %c0_51 = arith.constant 0 : index
    %123 = vector.load %arg15[%c0_48, %c0_49, %c0_50, %c0_51] : memref<1x8x1x16xf32, #tpu.memory_space<vmem>>, vector<1x8x1x16xf32>
    %124 = vector.shape_cast %123 : vector<1x8x1x16xf32> to vector<8x1x16xf32>
    %125 = vector.shape_cast %122 : vector<8x1x16xf32> to vector<1x8x1x16xf32>
    tpu.vector_store %arg15[%c0_48, %c0_49, %c0_50, %c0_51], %125 {strides = array<i32>} : memref<1x8x1x16xf32, #tpu.memory_space<vmem>>, vector<1x8x1x16xf32>,
    return
  }
  func.func @transform_0(%arg0: i32) -> (i32, i32, i32, i32) {
    %c0_i32 = arith.constant 0 : i32
    %c0_i32_0 = arith.constant 0 : i32
    %c0_i32_1 = arith.constant 0 : i32
    %c0_i32_2 = arith.constant 0 : i32
    return %arg0, %c0_i32, %c0_i32_0, %c0_i32_1 : i32, i32, i32, i32
  }
  func.func @transform_1(%arg0: i32) -> (i32, i32) {
    %c0_i32 = arith.constant 0 : i32
    %c0_i32_0 = arith.constant 0 : i32
    %c0_i32_1 = arith.constant 0 : i32
    return %c0_i32, %c0_i32_0 : i32, i32
  }
  func.func @transform_2(%arg0: i32) -> (i32, i32) {
    %c0_i32 = arith.constant 0 : i32
    %c0_i32_0 = arith.constant 0 : i32
    %c0_i32_1 = arith.constant 0 : i32
    return %c0_i32, %c0_i32_0 : i32, i32
  }
  func.func @transform_3(%arg0: i32) -> (i32, i32) {
    %c0_i32 = arith.constant 0 : i32
    %c0_i32_0 = arith.constant 0 : i32
    %c0_i32_1 = arith.constant 0 : i32
    return %c0_i32, %c0_i32_0 : i32, i32
  }
  func.func @transform_4(%arg0: i32) -> (i32, i32) {
    %c0_i32 = arith.constant 0 : i32
    %c0_i32_0 = arith.constant 0 : i32
    %c0_i32_1 = arith.constant 0 : i32
    return %c0_i32, %c0_i32_0 : i32, i32
  }
  func.func @transform_5(%arg0: i32) -> (i32, i32) {
    %c0_i32 = arith.constant 0 : i32
    %c0_i32_0 = arith.constant 0 : i32
    %c0_i32_1 = arith.constant 0 : i32
    return %c0_i32, %c0_i32_0 : i32, i32
  }
  func.func @transform_6(%arg0: i32) -> (i32, i32) {
    %c0_i32 = arith.constant 0 : i32
    %c0_i32_0 = arith.constant 0 : i32
    %c0_i32_1 = arith.constant 0 : i32
    return %c0_i32, %c0_i32_0 : i32, i32
  }
  func.func @transform_7(%arg0: i32) -> (i32, i32) {
    %c0_i32 = arith.constant 0 : i32
    %c0_i32_0 = arith.constant 0 : i32
    %c0_i32_1 = arith.constant 0 : i32
    return %c0_i32, %c0_i32_0 : i32, i32
  }
  func.func @transform_8(%arg0: i32) -> (i32, i32, i32) {
    %c0_i32 = arith.constant 0 : i32
    %c0_i32_0 = arith.constant 0 : i32
    %c0_i32_1 = arith.constant 0 : i32
    %c0_i32_2 = arith.constant 0 : i32
    return %c0_i32, %c0_i32_0, %c0_i32_1 : i32, i32, i32
  }
  func.func @transform_9(%arg0: i32) -> (i32, i32) {
    %c0_i32 = arith.constant 0 : i32
    %c0_i32_0 = arith.constant 0 : i32
    %c0_i32_1 = arith.constant 0 : i32
    return %c0_i32, %c0_i32_0 : i32, i32
  }
  func.func @transform_10(%arg0: i32) -> (i32, i32) {
    %c0_i32 = arith.constant 0 : i32
    %c0_i32_0 = arith.constant 0 : i32
    %c0_i32_1 = arith.constant 0 : i32
    return %c0_i32, %c0_i32_0 : i32, i32
  }
  func.func @transform_11(%arg0: i32) -> (i32, i32) {
    %c0_i32 = arith.constant 0 : i32
    %c0_i32_0 = arith.constant 0 : i32
    %c0_i32_1 = arith.constant 0 : i32
    return %c0_i32, %c0_i32_0 : i32, i32
  }
  func.func @transform_12(%arg0: i32) -> (i32, i32) {
    %c0_i32 = arith.constant 0 : i32
    %c0_i32_0 = arith.constant 0 : i32
    %c0_i32_1 = arith.constant 0 : i32
    return %c0_i32, %c0_i32_0 : i32, i32
  }
  func.func @transform_13(%arg0: i32) -> (i32, i32) {
    %c0_i32 = arith.constant 0 : i32
    %c0_i32_0 = arith.constant 0 : i32
    %c0_i32_1 = arith.constant 0 : i32
    return %c0_i32, %c0_i32_0 : i32, i32
  }
  func.func @transform_14(%arg0: i32) -> (i32, i32, i32, i32) {
    %c0_i32 = arith.constant 0 : i32
    %c0_i32_0 = arith.constant 0 : i32
    %c0_i32_1 = arith.constant 0 : i32
    %c0_i32_2 = arith.constant 0 : i32
    return %arg0, %c0_i32, %c0_i32_0, %c0_i32_1 : i32, i32, i32, i32
  }
}

module attributes {stable_mosaic.version = 11 : i64} {
  func.func @_down_ga_up_kernel(%arg0: i32, %arg1: memref<1x2x4x16xf32, #tpu.memory_space<vmem>>, %arg2: memref<4x16xf32, #tpu.memory_space<vmem>>, %arg3: memref<1x16xf32, #tpu.memory_space<vmem>>, %arg4: memref<1x16xf32, #tpu.memory_space<vmem>>, %arg5: memref<1x16xf32, #tpu.memory_space<vmem>>, %arg6: memref<2x16xf32, #tpu.memory_space<vmem>>, %arg7: memref<16x48xf32, #tpu.memory_space<vmem>>, %arg8: memref<1x48xf32, #tpu.memory_space<vmem>>, %arg9: memref<4x4x16xf32, #tpu.memory_space<vmem>>, %arg10: memref<1x16xf32, #tpu.memory_space<vmem>>, %arg11: memref<1x16xf32, #tpu.memory_space<vmem>>, %arg12: memref<1x16xf32, #tpu.memory_space<vmem>>, %arg13: memref<4x16xf32, #tpu.memory_space<vmem>>, %arg14: memref<1x16xf32, #tpu.memory_space<vmem>>, %arg15: memref<1x2x4x16xf32, #tpu.memory_space<vmem>>) attributes {dimension_semantics = [#tpu.dimension_semantics<parallel>], iteration_bounds = array<i64: 16>, scalar_prefetch = 0 : i64, scratch_operands = 0 : i64, tpu.core_type = #tpu.core_type<tc>, window_params = [{transform_indices = @transform_0, window_bounds = array<i64: 1, 2, 4, 16>}, {pipeline_mode = #tpu.pipeline_mode<synchronous>, transform_indices = @transform_1, window_bounds = array<i64: 4, 16>}, {pipeline_mode = #tpu.pipeline_mode<synchronous>, transform_indices = @transform_2, window_bounds = array<i64: 1, 16>}, {pipeline_mode = #tpu.pipeline_mode<synchronous>, transform_indices = @transform_3, window_bounds = array<i64: 1, 16>}, {pipeline_mode = #tpu.pipeline_mode<synchronous>, transform_indices = @transform_4, window_bounds = array<i64: 1, 16>}, {pipeline_mode = #tpu.pipeline_mode<synchronous>, transform_indices = @transform_5, window_bounds = array<i64: 2, 16>}, {pipeline_mode = #tpu.pipeline_mode<synchronous>, transform_indices = @transform_6, window_bounds = array<i64: 16, 48>}, {pipeline_mode = #tpu.pipeline_mode<synchronous>, transform_indices = @transform_7, window_bounds = array<i64: 1, 48>}, {pipeline_mode = #tpu.pipeline_mode<synchronous>, transform_indices = @transform_8, window_bounds = array<i64: 4, 4, 16>}, {pipeline_mode = #tpu.pipeline_mode<synchronous>, transform_indices = @transform_9, window_bounds = array<i64: 1, 16>}, {pipeline_mode = #tpu.pipeline_mode<synchronous>, transform_indices = @transform_10, window_bounds = array<i64: 1, 16>}, {pipeline_mode = #tpu.pipeline_mode<synchronous>, transform_indices = @transform_11, window_bounds = array<i64: 1, 16>}, {pipeline_mode = #tpu.pipeline_mode<synchronous>, transform_indices = @transform_12, window_bounds = array<i64: 4, 16>}, {pipeline_mode = #tpu.pipeline_mode<synchronous>, transform_indices = @transform_13, window_bounds = array<i64: 1, 16>}, {transform_indices = @transform_14, window_bounds = array<i64: 1, 2, 4, 16>}]} {
    %c0 = arith.constant 0 : index
    %c0_0 = arith.constant 0 : index
    %c0_1 = arith.constant 0 : index
    %c0_2 = arith.constant 0 : index
    %0 = vector.load %arg1[%c0, %c0_0, %c0_1, %c0_2] : memref<1x2x4x16xf32, #tpu.memory_space<vmem>>, vector<1x2x4x16xf32>
    %1 = vector.shape_cast %0 : vector<1x2x4x16xf32> to vector<2x4x16xf32>
    %c0_3 = arith.constant 0 : index
    %c0_4 = arith.constant 0 : index
    %2 = vector.load %arg2[%c0_3, %c0_4] : memref<4x16xf32, #tpu.memory_space<vmem>>, vector<4x16xf32>
    %3 = vector.shape_cast %2 : vector<4x16xf32> to vector<1x4x16xf32>
    %4 = vector.broadcast %3 : vector<1x4x16xf32> to vector<2x4x16xf32>
    %5 = arith.mulf %1, %4 : vector<2x4x16xf32>
    %cst = arith.constant dense<0.000000e+00> : vector<2x16xf32>
    %6 = vector.multi_reduction <add>, %5, %cst [1] : vector<2x4x16xf32> to vector<2x16xf32>
    %c0_5 = arith.constant 0 : index
    %c0_6 = arith.constant 0 : index
    %7 = vector.load %arg3[%c0_5, %c0_6] : memref<1x16xf32, #tpu.memory_space<vmem>>, vector<1x16xf32>
    %8 = vector.broadcast %7 : vector<1x16xf32> to vector<2x16xf32>
    %9 = arith.addf %6, %8 : vector<2x16xf32>
    %c0_7 = arith.constant 0 : index
    %c0_8 = arith.constant 0 : index
    %10 = vector.load %arg4[%c0_7, %c0_8] : memref<1x16xf32, #tpu.memory_space<vmem>>, vector<1x16xf32>
    %c0_9 = arith.constant 0 : index
    %c0_10 = arith.constant 0 : index
    %11 = vector.load %arg5[%c0_9, %c0_10] : memref<1x16xf32, #tpu.memory_space<vmem>>, vector<1x16xf32>
    %cst_11 = arith.constant dense<0.000000e+00> : vector<2xf32>
    %12 = vector.multi_reduction <add>, %9, %cst_11 [1] : vector<2x16xf32> to vector<2xf32>
    %13 = vector.shape_cast %12 : vector<2xf32> to vector<2x1xf32>
    %cst_12 = arith.constant 1.600000e+01 : f32
    %14 = vector.broadcast %cst_12 : f32 to vector<2x1xf32>
    %15 = arith.divf %13, %14 : vector<2x1xf32>
    %16 = vector.broadcast %15 : vector<2x1xf32> to vector<2x16xf32>
    %17 = arith.subf %9, %16 : vector<2x16xf32>
    %18 = arith.mulf %17, %17 : vector<2x16xf32>
    %cst_13 = arith.constant dense<0.000000e+00> : vector<2xf32>
    %19 = vector.multi_reduction <add>, %18, %cst_13 [1] : vector<2x16xf32> to vector<2xf32>
    %20 = vector.shape_cast %19 : vector<2xf32> to vector<2x1xf32>
    %cst_14 = arith.constant 1.600000e+01 : f32
    %21 = vector.broadcast %cst_14 : f32 to vector<2x1xf32>
    %22 = arith.divf %20, %21 : vector<2x1xf32>
    %23 = vector.broadcast %15 : vector<2x1xf32> to vector<2x16xf32>
    %24 = arith.subf %9, %23 : vector<2x16xf32>
    %cst_15 = arith.constant 9.99999974E-6 : f32
    %25 = vector.broadcast %cst_15 : f32 to vector<2x1xf32>
    %26 = arith.addf %22, %25 : vector<2x1xf32>
    %27 = math.rsqrt %26 : vector<2x1xf32>
    %28 = vector.broadcast %27 : vector<2x1xf32> to vector<2x16xf32>
    %29 = arith.mulf %24, %28 : vector<2x16xf32>
    %30 = vector.broadcast %10 : vector<1x16xf32> to vector<2x16xf32>
    %31 = arith.mulf %29, %30 : vector<2x16xf32>
    %32 = vector.broadcast %11 : vector<1x16xf32> to vector<2x16xf32>
    %33 = arith.addf %31, %32 : vector<2x16xf32>
    %c0_16 = arith.constant 0 : index
    %c0_17 = arith.constant 0 : index
    %34 = vector.load %arg6[%c0_16, %c0_17] : memref<2x16xf32, #tpu.memory_space<vmem>>, vector<2x16xf32>
    %35 = arith.addf %33, %34 : vector<2x16xf32>
    %c0_18 = arith.constant 0 : index
    %c0_19 = arith.constant 0 : index
    %36 = vector.load %arg7[%c0_18, %c0_19] : memref<16x48xf32, #tpu.memory_space<vmem>>, vector<16x48xf32>
    %cst_20 = arith.constant dense<0.000000e+00> : vector<2x48xf32>
    %37 = tpu.matmul %35, %36, %cst_20 {dimension_numbers = #tpu.dot_dimension_numbers<[1], [0], [0], [1], [0, 0, 1, 1], [], []>} : vector<2x16xf32>, vector<16x48xf32>, vector<2x48xf32> -> vector<2x48xf32>
    %c0_21 = arith.constant 0 : index
    %c0_22 = arith.constant 0 : index
    %38 = vector.load %arg8[%c0_21, %c0_22] : memref<1x48xf32, #tpu.memory_space<vmem>>, vector<1x48xf32>
    %39 = vector.broadcast %38 : vector<1x48xf32> to vector<2x48xf32>
    %40 = arith.addf %37, %39 : vector<2x48xf32>
    %41 = vector.extract_strided_slice %40 {offsets = [0, 0], sizes = [2, 4], strides = [1, 1]} : vector<2x48xf32> to vector<2x4xf32>
    %42 = vector.extract_strided_slice %40 {offsets = [0, 4], sizes = [2, 4], strides = [1, 1]} : vector<2x48xf32> to vector<2x4xf32>
    %43 = vector.extract_strided_slice %40 {offsets = [0, 8], sizes = [2, 4], strides = [1, 1]} : vector<2x48xf32> to vector<2x4xf32>
    %44 = vector.extract_strided_slice %40 {offsets = [0, 12], sizes = [2, 4], strides = [1, 1]} : vector<2x48xf32> to vector<2x4xf32>
    %45 = vector.shape_cast %41 : vector<2x4xf32> to vector<1x2x4xf32>
    %46 = vector.shape_cast %42 : vector<2x4xf32> to vector<1x2x4xf32>
    %47 = vector.shape_cast %43 : vector<2x4xf32> to vector<1x2x4xf32>
    %48 = vector.shape_cast %44 : vector<2x4xf32> to vector<1x2x4xf32>
    %49 = tpu.concatenate %45, %46, %47, %48 in 0 : vector<1x2x4xf32>, vector<1x2x4xf32>, vector<1x2x4xf32>, vector<1x2x4xf32> -> vector<4x2x4xf32>
    %cst_23 = arith.constant 5.000000e-01 : f32
    %50 = vector.broadcast %cst_23 : f32 to vector<4x2x4xf32>
    %51 = arith.mulf %49, %50 : vector<4x2x4xf32>
    %52 = vector.extract_strided_slice %40 {offsets = [0, 16], sizes = [2, 4], strides = [1, 1]} : vector<2x48xf32> to vector<2x4xf32>
    %53 = vector.extract_strided_slice %40 {offsets = [0, 20], sizes = [2, 4], strides = [1, 1]} : vector<2x48xf32> to vector<2x4xf32>
    %54 = vector.extract_strided_slice %40 {offsets = [0, 24], sizes = [2, 4], strides = [1, 1]} : vector<2x48xf32> to vector<2x4xf32>
    %55 = vector.extract_strided_slice %40 {offsets = [0, 28], sizes = [2, 4], strides = [1, 1]} : vector<2x48xf32> to vector<2x4xf32>
    %56 = vector.shape_cast %52 : vector<2x4xf32> to vector<1x2x4xf32>
    %57 = vector.shape_cast %53 : vector<2x4xf32> to vector<1x2x4xf32>
    %58 = vector.shape_cast %54 : vector<2x4xf32> to vector<1x2x4xf32>
    %59 = vector.shape_cast %55 : vector<2x4xf32> to vector<1x2x4xf32>
    %60 = tpu.concatenate %56, %57, %58, %59 in 0 : vector<1x2x4xf32>, vector<1x2x4xf32>, vector<1x2x4xf32>, vector<1x2x4xf32> -> vector<4x2x4xf32>
    %61 = vector.extract_strided_slice %40 {offsets = [0, 32], sizes = [2, 4], strides = [1, 1]} : vector<2x48xf32> to vector<2x4xf32>
    %62 = vector.extract_strided_slice %40 {offsets = [0, 36], sizes = [2, 4], strides = [1, 1]} : vector<2x48xf32> to vector<2x4xf32>
    %63 = vector.extract_strided_slice %40 {offsets = [0, 40], sizes = [2, 4], strides = [1, 1]} : vector<2x48xf32> to vector<2x4xf32>
    %64 = vector.extract_strided_slice %40 {offsets = [0, 44], sizes = [2, 4], strides = [1, 1]} : vector<2x48xf32> to vector<2x4xf32>
    %65 = vector.shape_cast %61 : vector<2x4xf32> to vector<1x2x4xf32>
    %66 = vector.shape_cast %62 : vector<2x4xf32> to vector<1x2x4xf32>
    %67 = vector.shape_cast %63 : vector<2x4xf32> to vector<1x2x4xf32>
    %68 = vector.shape_cast %64 : vector<2x4xf32> to vector<1x2x4xf32>
    %69 = tpu.concatenate %65, %66, %67, %68 in 0 : vector<1x2x4xf32>, vector<1x2x4xf32>, vector<1x2x4xf32>, vector<1x2x4xf32> -> vector<4x2x4xf32>
    "tpu.trace_start"() <{level = 10 : i32, message = "hqd,hkd->hqk"}> : () -> ()
    %cst_24 = arith.constant dense<0.000000e+00> : vector<4x2x2xf32>
    %70 = tpu.matmul %51, %60, %cst_24 {dimension_numbers = #tpu.dot_dimension_numbers<[2], [2], [1], [1], [0, 0, 0, 1, 1, 1], [0], [0]>} : vector<4x2x4xf32>, vector<4x2x4xf32>, vector<4x2x2xf32> -> vector<4x2x2xf32>
    "tpu.trace_stop"() : () -> ()
    %cst_25 = arith.constant dense<0xFF800000> : vector<4x2xf32>
    %71 = vector.multi_reduction <maximumf>, %70, %cst_25 [2] : vector<4x2x2xf32> to vector<4x2xf32>
    %72 = vector.shape_cast %71 : vector<4x2xf32> to vector<4x2x1xf32>
    %73 = vector.broadcast %72 : vector<4x2x1xf32> to vector<4x2x2xf32>
    %74 = arith.subf %70, %73 : vector<4x2x2xf32>
    %75 = math.exp %74 : vector<4x2x2xf32>
    %cst_26 = arith.constant dense<0.000000e+00> : vector<4x2xf32>
    %76 = vector.multi_reduction <add>, %75, %cst_26 [2] : vector<4x2x2xf32> to vector<4x2xf32>
    %77 = vector.shape_cast %76 : vector<4x2xf32> to vector<4x2x1xf32>
    %78 = tpu.reciprocal %77 {approx = true} : vector<4x2x1xf32> -> vector<4x2x1xf32>
    %79 = vector.broadcast %78 : vector<4x2x1xf32> to vector<4x2x2xf32>
    %80 = arith.mulf %75, %79 : vector<4x2x2xf32>
    "tpu.trace_start"() <{level = 10 : i32, message = "hqk,hkd->hqd"}> : () -> ()
    %cst_27 = arith.constant dense<0.000000e+00> : vector<4x2x4xf32>
    %81 = tpu.matmul %80, %69, %cst_27 {dimension_numbers = #tpu.dot_dimension_numbers<[2], [1], [1], [2], [0, 0, 0, 1, 1, 2], [0], [0]>} : vector<4x2x2xf32>, vector<4x2x4xf32>, vector<4x2x4xf32> -> vector<4x2x4xf32>
    "tpu.trace_stop"() : () -> ()
    %c0_28 = arith.constant 0 : index
    %c0_29 = arith.constant 0 : index
    %c0_30 = arith.constant 0 : index
    %82 = vector.load %arg9[%c0_28, %c0_29, %c0_30] : memref<4x4x16xf32, #tpu.memory_space<vmem>>, vector<4x4x16xf32>
    "tpu.trace_start"() <{level = 10 : i32, message = "hqd,hdn->hqn"}> : () -> ()
    %cst_31 = arith.constant dense<0.000000e+00> : vector<4x2x16xf32>
    %83 = tpu.matmul %81, %82, %cst_31 {dimension_numbers = #tpu.dot_dimension_numbers<[2], [1], [1], [2], [0, 0, 0, 1, 1, 2], [0], [0]>} : vector<4x2x4xf32>, vector<4x4x16xf32>, vector<4x2x16xf32> -> vector<4x2x16xf32>
    "tpu.trace_stop"() : () -> ()
    %cst_32 = arith.constant dense<0.000000e+00> : vector<2x16xf32>
    %84 = vector.multi_reduction <add>, %83, %cst_32 [0] : vector<4x2x16xf32> to vector<2x16xf32>
    %c0_33 = arith.constant 0 : index
    %c0_34 = arith.constant 0 : index
    %85 = vector.load %arg10[%c0_33, %c0_34] : memref<1x16xf32, #tpu.memory_space<vmem>>, vector<1x16xf32>
    %86 = vector.broadcast %85 : vector<1x16xf32> to vector<2x16xf32>
    %87 = arith.addf %84, %86 : vector<2x16xf32>
    %88 = arith.addf %87, %35 : vector<2x16xf32>
    %c0_35 = arith.constant 0 : index
    %c0_36 = arith.constant 0 : index
    %89 = vector.load %arg11[%c0_35, %c0_36] : memref<1x16xf32, #tpu.memory_space<vmem>>, vector<1x16xf32>
    %c0_37 = arith.constant 0 : index
    %c0_38 = arith.constant 0 : index
    %90 = vector.load %arg12[%c0_37, %c0_38] : memref<1x16xf32, #tpu.memory_space<vmem>>, vector<1x16xf32>
    %cst_39 = arith.constant dense<0.000000e+00> : vector<2xf32>
    %91 = vector.multi_reduction <add>, %88, %cst_39 [1] : vector<2x16xf32> to vector<2xf32>
    %92 = vector.shape_cast %91 : vector<2xf32> to vector<2x1xf32>
    %cst_40 = arith.constant 1.600000e+01 : f32
    %93 = vector.broadcast %cst_40 : f32 to vector<2x1xf32>
    %94 = arith.divf %92, %93 : vector<2x1xf32>
    %95 = vector.broadcast %94 : vector<2x1xf32> to vector<2x16xf32>
    %96 = arith.subf %88, %95 : vector<2x16xf32>
    %97 = arith.mulf %96, %96 : vector<2x16xf32>
    %cst_41 = arith.constant dense<0.000000e+00> : vector<2xf32>
    %98 = vector.multi_reduction <add>, %97, %cst_41 [1] : vector<2x16xf32> to vector<2xf32>
    %99 = vector.shape_cast %98 : vector<2xf32> to vector<2x1xf32>
    %cst_42 = arith.constant 1.600000e+01 : f32
    %100 = vector.broadcast %cst_42 : f32 to vector<2x1xf32>
    %101 = arith.divf %99, %100 : vector<2x1xf32>
    %102 = vector.broadcast %94 : vector<2x1xf32> to vector<2x16xf32>
    %103 = arith.subf %88, %102 : vector<2x16xf32>
    %cst_43 = arith.constant 9.99999974E-6 : f32
    %104 = vector.broadcast %cst_43 : f32 to vector<2x1xf32>
    %105 = arith.addf %101, %104 : vector<2x1xf32>
    %106 = math.rsqrt %105 : vector<2x1xf32>
    %107 = vector.broadcast %106 : vector<2x1xf32> to vector<2x16xf32>
    %108 = arith.mulf %103, %107 : vector<2x16xf32>
    %109 = vector.broadcast %89 : vector<1x16xf32> to vector<2x16xf32>
    %110 = arith.mulf %108, %109 : vector<2x16xf32>
    %111 = vector.broadcast %90 : vector<1x16xf32> to vector<2x16xf32>
    %112 = arith.addf %110, %111 : vector<2x16xf32>
    %113 = arith.addf %112, %9 : vector<2x16xf32>
    %114 = vector.shape_cast %113 : vector<2x16xf32> to vector<2x1x16xf32>
    %c0_44 = arith.constant 0 : index
    %c0_45 = arith.constant 0 : index
    %115 = vector.load %arg13[%c0_44, %c0_45] : memref<4x16xf32, #tpu.memory_space<vmem>>, vector<4x16xf32>
    %116 = vector.shape_cast %115 : vector<4x16xf32> to vector<1x4x16xf32>
    %117 = vector.broadcast %114 : vector<2x1x16xf32> to vector<2x4x16xf32>
    %118 = vector.broadcast %116 : vector<1x4x16xf32> to vector<2x4x16xf32>
    %119 = arith.mulf %117, %118 : vector<2x4x16xf32>
    %c0_46 = arith.constant 0 : index
    %c0_47 = arith.constant 0 : index
    %120 = vector.load %arg14[%c0_46, %c0_47] : memref<1x16xf32, #tpu.memory_space<vmem>>, vector<1x16xf32>
    %121 = vector.shape_cast %120 : vector<1x16xf32> to vector<1x1x16xf32>
    %122 = vector.broadcast %121 : vector<1x1x16xf32> to vector<2x4x16xf32>
    %123 = arith.addf %119, %122 : vector<2x4x16xf32>
    %c0_48 = arith.constant 0 : index
    %c0_49 = arith.constant 0 : index
    %c0_50 = arith.constant 0 : index
    %c0_51 = arith.constant 0 : index
    %124 = vector.load %arg15[%c0_48, %c0_49, %c0_50, %c0_51] : memref<1x2x4x16xf32, #tpu.memory_space<vmem>>, vector<1x2x4x16xf32>
    %125 = vector.shape_cast %124 : vector<1x2x4x16xf32> to vector<2x4x16xf32>
    %126 = vector.shape_cast %123 : vector<2x4x16xf32> to vector<1x2x4x16xf32>
    tpu.vector_store %arg15[%c0_48, %c0_49, %c0_50, %c0_51], %126 {strides = array<i32>} : memref<1x2x4x16xf32, #tpu.memory_space<vmem>>, vector<1x2x4x16xf32>,
    return
  }
  func.func @transform_0(%arg0: i32) -> (i32, i32, i32, i32) {
    %c0_i32 = arith.constant 0 : i32
    %c0_i32_0 = arith.constant 0 : i32
    %c0_i32_1 = arith.constant 0 : i32
    %c0_i32_2 = arith.constant 0 : i32
    return %arg0, %c0_i32, %c0_i32_0, %c0_i32_1 : i32, i32, i32, i32
  }
  func.func @transform_1(%arg0: i32) -> (i32, i32) {
    %c0_i32 = arith.constant 0 : i32
    %c0_i32_0 = arith.constant 0 : i32
    %c0_i32_1 = arith.constant 0 : i32
    return %c0_i32, %c0_i32_0 : i32, i32
  }
  func.func @transform_2(%arg0: i32) -> (i32, i32) {
    %c0_i32 = arith.constant 0 : i32
    %c0_i32_0 = arith.constant 0 : i32
    %c0_i32_1 = arith.constant 0 : i32
    return %c0_i32, %c0_i32_0 : i32, i32
  }
  func.func @transform_3(%arg0: i32) -> (i32, i32) {
    %c0_i32 = arith.constant 0 : i32
    %c0_i32_0 = arith.constant 0 : i32
    %c0_i32_1 = arith.constant 0 : i32
    return %c0_i32, %c0_i32_0 : i32, i32
  }
  func.func @transform_4(%arg0: i32) -> (i32, i32) {
    %c0_i32 = arith.constant 0 : i32
    %c0_i32_0 = arith.constant 0 : i32
    %c0_i32_1 = arith.constant 0 : i32
    return %c0_i32, %c0_i32_0 : i32, i32
  }
  func.func @transform_5(%arg0: i32) -> (i32, i32) {
    %c0_i32 = arith.constant 0 : i32
    %c0_i32_0 = arith.constant 0 : i32
    %c0_i32_1 = arith.constant 0 : i32
    return %c0_i32, %c0_i32_0 : i32, i32
  }
  func.func @transform_6(%arg0: i32) -> (i32, i32) {
    %c0_i32 = arith.constant 0 : i32
    %c0_i32_0 = arith.constant 0 : i32
    %c0_i32_1 = arith.constant 0 : i32
    return %c0_i32, %c0_i32_0 : i32, i32
  }
  func.func @transform_7(%arg0: i32) -> (i32, i32) {
    %c0_i32 = arith.constant 0 : i32
    %c0_i32_0 = arith.constant 0 : i32
    %c0_i32_1 = arith.constant 0 : i32
    return %c0_i32, %c0_i32_0 : i32, i32
  }
  func.func @transform_8(%arg0: i32) -> (i32, i32, i32) {
    %c0_i32 = arith.constant 0 : i32
    %c0_i32_0 = arith.constant 0 : i32
    %c0_i32_1 = arith.constant 0 : i32
    %c0_i32_2 = arith.constant 0 : i32
    return %c0_i32, %c0_i32_0, %c0_i32_1 : i32, i32, i32
  }
  func.func @transform_9(%arg0: i32) -> (i32, i32) {
    %c0_i32 = arith.constant 0 : i32
    %c0_i32_0 = arith.constant 0 : i32
    %c0_i32_1 = arith.constant 0 : i32
    return %c0_i32, %c0_i32_0 : i32, i32
  }
  func.func @transform_10(%arg0: i32) -> (i32, i32) {
    %c0_i32 = arith.constant 0 : i32
    %c0_i32_0 = arith.constant 0 : i32
    %c0_i32_1 = arith.constant 0 : i32
    return %c0_i32, %c0_i32_0 : i32, i32
  }
  func.func @transform_11(%arg0: i32) -> (i32, i32) {
    %c0_i32 = arith.constant 0 : i32
    %c0_i32_0 = arith.constant 0 : i32
    %c0_i32_1 = arith.constant 0 : i32
    return %c0_i32, %c0_i32_0 : i32, i32
  }
  func.func @transform_12(%arg0: i32) -> (i32, i32) {
    %c0_i32 = arith.constant 0 : i32
    %c0_i32_0 = arith.constant 0 : i32
    %c0_i32_1 = arith.constant 0 : i32
    return %c0_i32, %c0_i32_0 : i32, i32
  }
  func.func @transform_13(%arg0: i32) -> (i32, i32) {
    %c0_i32 = arith.constant 0 : i32
    %c0_i32_0 = arith.constant 0 : i32
    %c0_i32_1 = arith.constant 0 : i32
    return %c0_i32, %c0_i32_0 : i32, i32
  }
  func.func @transform_14(%arg0: i32) -> (i32, i32, i32, i32) {
    %c0_i32 = arith.constant 0 : i32
    %c0_i32_0 = arith.constant 0 : i32
    %c0_i32_1 = arith.constant 0 : i32
    %c0_i32_2 = arith.constant 0 : i32
    return %arg0, %c0_i32, %c0_i32_0, %c0_i32_1 : i32, i32, i32, i32
  }
}

module attributes {stable_mosaic.version = 11 : i64} {
  func.func @_down_ga_up_kernel(%arg0: i32, %arg1: memref<1x2x4x16xf32, #tpu.memory_space<vmem>>, %arg2: memref<4x16xf32, #tpu.memory_space<vmem>>, %arg3: memref<1x16xf32, #tpu.memory_space<vmem>>, %arg4: memref<1x16xf32, #tpu.memory_space<vmem>>, %arg5: memref<1x16xf32, #tpu.memory_space<vmem>>, %arg6: memref<2x16xf32, #tpu.memory_space<vmem>>, %arg7: memref<16x48xf32, #tpu.memory_space<vmem>>, %arg8: memref<1x48xf32, #tpu.memory_space<vmem>>, %arg9: memref<4x4x16xf32, #tpu.memory_space<vmem>>, %arg10: memref<1x16xf32, #tpu.memory_space<vmem>>, %arg11: memref<1x16xf32, #tpu.memory_space<vmem>>, %arg12: memref<1x16xf32, #tpu.memory_space<vmem>>, %arg13: memref<4x16xf32, #tpu.memory_space<vmem>>, %arg14: memref<1x16xf32, #tpu.memory_space<vmem>>, %arg15: memref<1x2x4x16xf32, #tpu.memory_space<vmem>>, %arg16: memref<1x2x4x16xf32, #tpu.memory_space<vmem>>) attributes {dimension_semantics = [#tpu.dimension_semantics<parallel>], iteration_bounds = array<i64: 16>, scalar_prefetch = 0 : i64, scratch_operands = 0 : i64, tpu.core_type = #tpu.core_type<tc>, window_params = [{transform_indices = @transform_0, window_bounds = array<i64: 1, 2, 4, 16>}, {pipeline_mode = #tpu.pipeline_mode<synchronous>, transform_indices = @transform_1, window_bounds = array<i64: 4, 16>}, {pipeline_mode = #tpu.pipeline_mode<synchronous>, transform_indices = @transform_2, window_bounds = array<i64: 1, 16>}, {pipeline_mode = #tpu.pipeline_mode<synchronous>, transform_indices = @transform_3, window_bounds = array<i64: 1, 16>}, {pipeline_mode = #tpu.pipeline_mode<synchronous>, transform_indices = @transform_4, window_bounds = array<i64: 1, 16>}, {pipeline_mode = #tpu.pipeline_mode<synchronous>, transform_indices = @transform_5, window_bounds = array<i64: 2, 16>}, {pipeline_mode = #tpu.pipeline_mode<synchronous>, transform_indices = @transform_6, window_bounds = array<i64: 16, 48>}, {pipeline_mode = #tpu.pipeline_mode<synchronous>, transform_indices = @transform_7, window_bounds = array<i64: 1, 48>}, {pipeline_mode = #tpu.pipeline_mode<synchronous>, transform_indices = @transform_8, window_bounds = array<i64: 4, 4, 16>}, {pipeline_mode = #tpu.pipeline_mode<synchronous>, transform_indices = @transform_9, window_bounds = array<i64: 1, 16>}, {pipeline_mode = #tpu.pipeline_mode<synchronous>, transform_indices = @transform_10, window_bounds = array<i64: 1, 16>}, {pipeline_mode = #tpu.pipeline_mode<synchronous>, transform_indices = @transform_11, window_bounds = array<i64: 1, 16>}, {pipeline_mode = #tpu.pipeline_mode<synchronous>, transform_indices = @transform_12, window_bounds = array<i64: 4, 16>}, {pipeline_mode = #tpu.pipeline_mode<synchronous>, transform_indices = @transform_13, window_bounds = array<i64: 1, 16>}, {transform_indices = @transform_14, window_bounds = array<i64: 1, 2, 4, 16>}, {transform_indices = @transform_15, window_bounds = array<i64: 1, 2, 4, 16>}]} {
    %c0 = arith.constant 0 : index
    %c0_0 = arith.constant 0 : index
    %c0_1 = arith.constant 0 : index
    %c0_2 = arith.constant 0 : index
    %0 = vector.load %arg1[%c0, %c0_0, %c0_1, %c0_2] : memref<1x2x4x16xf32, #tpu.memory_space<vmem>>, vector<1x2x4x16xf32>
    %1 = vector.shape_cast %0 : vector<1x2x4x16xf32> to vector<2x4x16xf32>
    %c0_3 = arith.constant 0 : index
    %c0_4 = arith.constant 0 : index
    %2 = vector.load %arg2[%c0_3, %c0_4] : memref<4x16xf32, #tpu.memory_space<vmem>>, vector<4x16xf32>
    %3 = vector.shape_cast %2 : vector<4x16xf32> to vector<1x4x16xf32>
    %4 = vector.broadcast %3 : vector<1x4x16xf32> to vector<2x4x16xf32>
    %5 = arith.mulf %1, %4 : vector<2x4x16xf32>
    %cst = arith.constant dense<0.000000e+00> : vector<2x16xf32>
    %6 = vector.multi_reduction <add>, %5, %cst [1] : vector<2x4x16xf32> to vector<2x16xf32>
    %c0_5 = arith.constant 0 : index
    %c0_6 = arith.constant 0 : index
    %7 = vector.load %arg3[%c0_5, %c0_6] : memref<1x16xf32, #tpu.memory_space<vmem>>, vector<1x16xf32>
    %8 = vector.broadcast %7 : vector<1x16xf32> to vector<2x16xf32>
    %9 = arith.addf %6, %8 : vector<2x16xf32>
    %c0_7 = arith.constant 0 : index
    %c0_8 = arith.constant 0 : index
    %10 = vector.load %arg4[%c0_7, %c0_8] : memref<1x16xf32, #tpu.memory_space<vmem>>, vector<1x16xf32>
    %c0_9 = arith.constant 0 : index
    %c0_10 = arith.constant 0 : index
    %11 = vector.load %arg5[%c0_9, %c0_10] : memref<1x16xf32, #tpu.memory_space<vmem>>, vector<1x16xf32>
    %cst_11 = arith.constant dense<0.000000e+00> : vector<2xf32>
    %12 = vector.multi_reduction <add>, %9, %cst_11 [1] : vector<2x16xf32> to vector<2xf32>
    %13 = vector.shape_cast %12 : vector<2xf32> to vector<2x1xf32>
    %cst_12 = arith.constant 1.600000e+01 : f32
    %14 = vector.broadcast %cst_12 : f32 to vector<2x1xf32>
    %15 = arith.divf %13, %14 : vector<2x1xf32>
    %16 = vector.broadcast %15 : vector<2x1xf32> to vector<2x16xf32>
    %17 = arith.subf %9, %16 : vector<2x16xf32>
    %18 = arith.mulf %17, %17 : vector<2x16xf32>
    %cst_13 = arith.constant dense<0.000000e+00> : vector<2xf32>
    %19 = vector.multi_reduction <add>, %18, %cst_13 [1] : vector<2x16xf32> to vector<2xf32>
    %20 = vector.shape_cast %19 : vector<2xf32> to vector<2x1xf32>
    %cst_14 = arith.constant 1.600000e+01 : f32
    %21 = vector.broadcast %cst_14 : f32 to vector<2x1xf32>
    %22 = arith.divf %20, %21 : vector<2x1xf32>
    %23 = vector.broadcast %15 : vector<2x1xf32> to vector<2x16xf32>
    %24 = arith.subf %9, %23 : vector<2x16xf32>
    %cst_15 = arith.constant 9.99999974E-6 : f32
    %25 = vector.broadcast %cst_15 : f32 to vector<2x1xf32>
    %26 = arith.addf %22, %25 : vector<2x1xf32>
    %27 = math.rsqrt %26 : vector<2x1xf32>
    %28 = vector.broadcast %27 : vector<2x1xf32> to vector<2x16xf32>
    %29 = arith.mulf %24, %28 : vector<2x16xf32>
    %30 = vector.broadcast %10 : vector<1x16xf32> to vector<2x16xf32>
    %31 = arith.mulf %29, %30 : vector<2x16xf32>
    %32 = vector.broadcast %11 : vector<1x16xf32> to vector<2x16xf32>
    %33 = arith.addf %31, %32 : vector<2x16xf32>
    %c0_16 = arith.constant 0 : index
    %c0_17 = arith.constant 0 : index
    %34 = vector.load %arg6[%c0_16, %c0_17] : memref<2x16xf32, #tpu.memory_space<vmem>>, vector<2x16xf32>
    %35 = arith.addf %33, %34 : vector<2x16xf32>
    %c0_18 = arith.constant 0 : index
    %c0_19 = arith.constant 0 : index
    %36 = vector.load %arg7[%c0_18, %c0_19] : memref<16x48xf32, #tpu.memory_space<vmem>>, vector<16x48xf32>
    %cst_20 = arith.constant dense<0.000000e+00> : vector<2x48xf32>
    %37 = tpu.matmul %35, %36, %cst_20 {dimension_numbers = #tpu.dot_dimension_numbers<[1], [0], [0], [1], [0, 0, 1, 1], [], []>} : vector<2x16xf32>, vector<16x48xf32>, vector<2x48xf32> -> vector<2x48xf32>
    %c0_21 = arith.constant 0 : index
    %c0_22 = arith.constant 0 : index
    %38 = vector.load %arg8[%c0_21, %c0_22] : memref<1x48xf32, #tpu.memory_space<vmem>>, vector<1x48xf32>
    %39 = vector.broadcast %38 : vector<1x48xf32> to vector<2x48xf32>
    %40 = arith.addf %37, %39 : vector<2x48xf32>
    %41 = vector.extract_strided_slice %40 {offsets = [0, 0], sizes = [2, 4], strides = [1, 1]} : vector<2x48xf32> to vector<2x4xf32>
    %42 = vector.extract_strided_slice %40 {offsets = [0, 4], sizes = [2, 4], strides = [1, 1]} : vector<2x48xf32> to vector<2x4xf32>
    %43 = vector.extract_strided_slice %40 {offsets = [0, 8], sizes = [2, 4], strides = [1, 1]} : vector<2x48xf32> to vector<2x4xf32>
    %44 = vector.extract_strided_slice %40 {offsets = [0, 12], sizes = [2, 4], strides = [1, 1]} : vector<2x48xf32> to vector<2x4xf32>
    %45 = vector.shape_cast %41 : vector<2x4xf32> to vector<1x2x4xf32>
    %46 = vector.shape_cast %42 : vector<2x4xf32> to vector<1x2x4xf32>
    %47 = vector.shape_cast %43 : vector<2x4xf32> to vector<1x2x4xf32>
    %48 = vector.shape_cast %44 : vector<2x4xf32> to vector<1x2x4xf32>
    %49 = tpu.concatenate %45, %46, %47, %48 in 0 : vector<1x2x4xf32>, vector<1x2x4xf32>, vector<1x2x4xf32>, vector<1x2x4xf32> -> vector<4x2x4xf32>
    %cst_23 = arith.constant 5.000000e-01 : f32
    %50 = vector.broadcast %cst_23 : f32 to vector<4x2x4xf32>
    %51 = arith.mulf %49, %50 : vector<4x2x4xf32>
    %52 = vector.extract_strided_slice %40 {offsets = [0, 16], sizes = [2, 4], strides = [1, 1]} : vector<2x48xf32> to vector<2x4xf32>
    %53 = vector.extract_strided_slice %40 {offsets = [0, 20], sizes = [2, 4], strides = [1, 1]} : vector<2x48xf32> to vector<2x4xf32>
    %54 = vector.extract_strided_slice %40 {offsets = [0, 24], sizes = [2, 4], strides = [1, 1]} : vector<2x48xf32> to vector<2x4xf32>
    %55 = vector.extract_strided_slice %40 {offsets = [0, 28], sizes = [2, 4], strides = [1, 1]} : vector<2x48xf32> to vector<2x4xf32>
    %56 = vector.shape_cast %52 : vector<2x4xf32> to vector<1x2x4xf32>
    %57 = vector.shape_cast %53 : vector<2x4xf32> to vector<1x2x4xf32>
    %58 = vector.shape_cast %54 : vector<2x4xf32> to vector<1x2x4xf32>
    %59 = vector.shape_cast %55 : vector<2x4xf32> to vector<1x2x4xf32>
    %60 = tpu.concatenate %56, %57, %58, %59 in 0 : vector<1x2x4xf32>, vector<1x2x4xf32>, vector<1x2x4xf32>, vector<1x2x4xf32> -> vector<4x2x4xf32>
    %61 = vector.extract_strided_slice %40 {offsets = [0, 32], sizes = [2, 4], strides = [1, 1]} : vector<2x48xf32> to vector<2x4xf32>
    %62 = vector.extract_strided_slice %40 {offsets = [0, 36], sizes = [2, 4], strides = [1, 1]} : vector<2x48xf32> to vector<2x4xf32>
    %63 = vector.extract_strided_slice %40 {offsets = [0, 40], sizes = [2, 4], strides = [1, 1]} : vector<2x48xf32> to vector<2x4xf32>
    %64 = vector.extract_strided_slice %40 {offsets = [0, 44], sizes = [2, 4], strides = [1, 1]} : vector<2x48xf32> to vector<2x4xf32>
    %65 = vector.shape_cast %61 : vector<2x4xf32> to vector<1x2x4xf32>
    %66 = vector.shape_cast %62 : vector<2x4xf32> to vector<1x2x4xf32>
    %67 = vector.shape_cast %63 : vector<2x4xf32> to vector<1x2x4xf32>
    %68 = vector.shape_cast %64 : vector<2x4xf32> to vector<1x2x4xf32>
    %69 = tpu.concatenate %65, %66, %67, %68 in 0 : vector<1x2x4xf32>, vector<1x2x4xf32>, vector<1x2x4xf32>, vector<1x2x4xf32> -> vector<4x2x4xf32>
    "tpu.trace_start"() <{level = 10 : i32, message = "hqd,hkd->hqk"}> : () -> ()
    %cst_24 = arith.constant dense<0.000000e+00> : vector<4x2x2xf32>
    %70 = tpu.matmul %51, %60, %cst_24 {dimension_numbers = #tpu.dot_dimension_numbers<[2], [2], [1], [1], [0, 0, 0, 1, 1, 1], [0], [0]>} : vector<4x2x4xf32>, vector<4x2x4xf32>, vector<4x2x2xf32> -> vector<4x2x2xf32>
    "tpu.trace_stop"() : () -> ()
    %cst_25 = arith.constant dense<0xFF800000> : vector<4x2xf32>
    %71 = vector.multi_reduction <maximumf>, %70, %cst_25 [2] : vector<4x2x2xf32> to vector<4x2xf32>
    %72 = vector.shape_cast %71 : vector<4x2xf32> to vector<4x2x1xf32>
    %73 = vector.broadcast %72 : vector<4x2x1xf32> to vector<4x2x2xf32>
    %74 = arith.subf %70, %73 : vector<4x2x2xf32>
    %75 = math.exp %74 : vector<4x2x2xf32>
    %cst_26 = arith.constant dense<0.000000e+00> : vector<4x2xf32>
    %76 = vector.multi_reduction <add>, %75, %cst_26 [2] : vector<4x2x2xf32> to vector<4x2xf32>
    %77 = vector.shape_cast %76 : vector<4x2xf32> to vector<4x2x1xf32>
    %78 = tpu.reciprocal %77 {approx = true} : vector<4x2x1xf32> -> vector<4x2x1xf32>
    %79 = vector.broadcast %78 : vector<4x2x1xf32> to vector<4x2x2xf32>
    %80 = arith.mulf %75, %79 : vector<4x2x2xf32>
    "tpu.trace_start"() <{level = 10 : i32, message = "hqk,hkd->hqd"}> : () -> ()
    %cst_27 = arith.constant dense<0.000000e+00> : vector<4x2x4xf32>
    %81 = tpu.matmul %80, %69, %cst_27 {dimension_numbers = #tpu.dot_dimension_numbers<[2], [1], [1], [2], [0, 0, 0, 1, 1, 2], [0], [0]>} : vector<4x2x2xf32>, vector<4x2x4xf32>, vector<4x2x4xf32> -> vector<4x2x4xf32>
    "tpu.trace_stop"() : () -> ()
    %c0_28 = arith.constant 0 : index
    %c0_29 = arith.constant 0 : index
    %c0_30 = arith.constant 0 : index
    %82 = vector.load %arg9[%c0_28, %c0_29, %c0_30] : memref<4x4x16xf32, #tpu.memory_space<vmem>>, vector<4x4x16xf32>
    "tpu.trace_start"() <{level = 10 : i32, message = "hqd,hdn->hqn"}> : () -> ()
    %cst_31 = arith.constant dense<0.000000e+00> : vector<4x2x16xf32>
    %83 = tpu.matmul %81, %82, %cst_31 {dimension_numbers = #tpu.dot_dimension_numbers<[2], [1], [1], [2], [0, 0, 0, 1, 1, 2], [0], [0]>} : vector<4x2x4xf32>, vector<4x4x16xf32>, vector<4x2x16xf32> -> vector<4x2x16xf32>
    "tpu.trace_stop"() : () -> ()
    %cst_32 = arith.constant dense<0.000000e+00> : vector<2x16xf32>
    %84 = vector.multi_reduction <add>, %83, %cst_32 [0] : vector<4x2x16xf32> to vector<2x16xf32>
    %c0_33 = arith.constant 0 : index
    %c0_34 = arith.constant 0 : index
    %85 = vector.load %arg10[%c0_33, %c0_34] : memref<1x16xf32, #tpu.memory_space<vmem>>, vector<1x16xf32>
    %86 = vector.broadcast %85 : vector<1x16xf32> to vector<2x16xf32>
    %87 = arith.addf %84, %86 : vector<2x16xf32>
    %88 = arith.addf %87, %35 : vector<2x16xf32>
    %c0_35 = arith.constant 0 : index
    %c0_36 = arith.constant 0 : index
    %89 = vector.load %arg11[%c0_35, %c0_36] : memref<1x16xf32, #tpu.memory_space<vmem>>, vector<1x16xf32>
    %c0_37 = arith.constant 0 : index
    %c0_38 = arith.constant 0 : index
    %90 = vector.load %arg12[%c0_37, %c0_38] : memref<1x16xf32, #tpu.memory_space<vmem>>, vector<1x16xf32>
    %cst_39 = arith.constant dense<0.000000e+00> : vector<2xf32>
    %91 = vector.multi_reduction <add>, %88, %cst_39 [1] : vector<2x16xf32> to vector<2xf32>
    %92 = vector.shape_cast %91 : vector<2xf32> to vector<2x1xf32>
    %cst_40 = arith.constant 1.600000e+01 : f32
    %93 = vector.broadcast %cst_40 : f32 to vector<2x1xf32>
    %94 = arith.divf %92, %93 : vector<2x1xf32>
    %95 = vector.broadcast %94 : vector<2x1xf32> to vector<2x16xf32>
    %96 = arith.subf %88, %95 : vector<2x16xf32>
    %97 = arith.mulf %96, %96 : vector<2x16xf32>
    %cst_41 = arith.constant dense<0.000000e+00> : vector<2xf32>
    %98 = vector.multi_reduction <add>, %97, %cst_41 [1] : vector<2x16xf32> to vector<2xf32>
    %99 = vector.shape_cast %98 : vector<2xf32> to vector<2x1xf32>
    %cst_42 = arith.constant 1.600000e+01 : f32
    %100 = vector.broadcast %cst_42 : f32 to vector<2x1xf32>
    %101 = arith.divf %99, %100 : vector<2x1xf32>
    %102 = vector.broadcast %94 : vector<2x1xf32> to vector<2x16xf32>
    %103 = arith.subf %88, %102 : vector<2x16xf32>
    %cst_43 = arith.constant 9.99999974E-6 : f32
    %104 = vector.broadcast %cst_43 : f32 to vector<2x1xf32>
    %105 = arith.addf %101, %104 : vector<2x1xf32>
    %106 = math.rsqrt %105 : vector<2x1xf32>
    %107 = vector.broadcast %106 : vector<2x1xf32> to vector<2x16xf32>
    %108 = arith.mulf %103, %107 : vector<2x16xf32>
    %109 = vector.broadcast %89 : vector<1x16xf32> to vector<2x16xf32>
    %110 = arith.mulf %108, %109 : vector<2x16xf32>
    %111 = vector.broadcast %90 : vector<1x16xf32> to vector<2x16xf32>
    %112 = arith.addf %110, %111 : vector<2x16xf32>
    %113 = arith.addf %112, %9 : vector<2x16xf32>
    %114 = vector.shape_cast %113 : vector<2x16xf32> to vector<2x1x16xf32>
    %c0_44 = arith.constant 0 : index
    %c0_45 = arith.constant 0 : index
    %115 = vector.load %arg13[%c0_44, %c0_45] : memref<4x16xf32, #tpu.memory_space<vmem>>, vector<4x16xf32>
    %116 = vector.shape_cast %115 : vector<4x16xf32> to vector<1x4x16xf32>
    %117 = vector.broadcast %114 : vector<2x1x16xf32> to vector<2x4x16xf32>
    %118 = vector.broadcast %116 : vector<1x4x16xf32> to vector<2x4x16xf32>
    %119 = arith.mulf %117, %118 : vector<2x4x16xf32>
    %c0_46 = arith.constant 0 : index
    %c0_47 = arith.constant 0 : index
    %120 = vector.load %arg14[%c0_46, %c0_47] : memref<1x16xf32, #tpu.memory_space<vmem>>, vector<1x16xf32>
    %121 = vector.shape_cast %120 : vector<1x16xf32> to vector<1x1x16xf32>
    %122 = vector.broadcast %121 : vector<1x1x16xf32> to vector<2x4x16xf32>
    %123 = arith.addf %119, %122 : vector<2x4x16xf32>
    %c0_48 = arith.constant 0 : index
    %c0_49 = arith.constant 0 : index
    %c0_50 = arith.constant 0 : index
    %c0_51 = arith.constant 0 : index
    %124 = vector.load %arg15[%c0_48, %c0_49, %c0_50, %c0_51] : memref<1x2x4x16xf32, #tpu.memory_space<vmem>>, vector<1x2x4x16xf32>
    %125 = vector.shape_cast %124 : vector<1x2x4x16xf32> to vector<2x4x16xf32>
    %126 = arith.addf %123, %125 : vector<2x4x16xf32>
    %c0_52 = arith.constant 0 : index
    %c0_53 = arith.constant 0 : index
    %c0_54 = arith.constant 0 : index
    %c0_55 = arith.constant 0 : index
    %127 = vector.load %arg16[%c0_52, %c0_53, %c0_54, %c0_55] : memref<1x2x4x16xf32, #tpu.memory_space<vmem>>, vector<1x2x4x16xf32>
    %128 = vector.shape_cast %127 : vector<1x2x4x16xf32> to vector<2x4x16xf32>
    %129 = vector.shape_cast %126 : vector<2x4x16xf32> to vector<1x2x4x16xf32>
    tpu.vector_store %arg16[%c0_52, %c0_53, %c0_54, %c0_55], %129 {strides = array<i32>} : memref<1x2x4x16xf32, #tpu.memory_space<vmem>>, vector<1x2x4x16xf32>,
    return
  }
  func.func @transform_0(%arg0: i32) -> (i32, i32, i32, i32) {
    %c0_i32 = arith.constant 0 : i32
    %c0_i32_0 = arith.constant 0 : i32
    %c0_i32_1 = arith.constant 0 : i32
    %c0_i32_2 = arith.constant 0 : i32
    return %arg0, %c0_i32, %c0_i32_0, %c0_i32_1 : i32, i32, i32, i32
  }
  func.func @transform_1(%arg0: i32) -> (i32, i32) {
    %c0_i32 = arith.constant 0 : i32
    %c0_i32_0 = arith.constant 0 : i32
    %c0_i32_1 = arith.constant 0 : i32
    return %c0_i32, %c0_i32_0 : i32, i32
  }
  func.func @transform_2(%arg0: i32) -> (i32, i32) {
    %c0_i32 = arith.constant 0 : i32
    %c0_i32_0 = arith.constant 0 : i32
    %c0_i32_1 = arith.constant 0 : i32
    return %c0_i32, %c0_i32_0 : i32, i32
  }
  func.func @transform_3(%arg0: i32) -> (i32, i32) {
    %c0_i32 = arith.constant 0 : i32
    %c0_i32_0 = arith.constant 0 : i32
    %c0_i32_1 = arith.constant 0 : i32
    return %c0_i32, %c0_i32_0 : i32, i32
  }
  func.func @transform_4(%arg0: i32) -> (i32, i32) {
    %c0_i32 = arith.constant 0 : i32
    %c0_i32_0 = arith.constant 0 : i32
    %c0_i32_1 = arith.constant 0 : i32
    return %c0_i32, %c0_i32_0 : i32, i32
  }
  func.func @transform_5(%arg0: i32) -> (i32, i32) {
    %c0_i32 = arith.constant 0 : i32
    %c0_i32_0 = arith.constant 0 : i32
    %c0_i32_1 = arith.constant 0 : i32
    return %c0_i32, %c0_i32_0 : i32, i32
  }
  func.func @transform_6(%arg0: i32) -> (i32, i32) {
    %c0_i32 = arith.constant 0 : i32
    %c0_i32_0 = arith.constant 0 : i32
    %c0_i32_1 = arith.constant 0 : i32
    return %c0_i32, %c0_i32_0 : i32, i32
  }
  func.func @transform_7(%arg0: i32) -> (i32, i32) {
    %c0_i32 = arith.constant 0 : i32
    %c0_i32_0 = arith.constant 0 : i32
    %c0_i32_1 = arith.constant 0 : i32
    return %c0_i32, %c0_i32_0 : i32, i32
  }
  func.func @transform_8(%arg0: i32) -> (i32, i32, i32) {
    %c0_i32 = arith.constant 0 : i32
    %c0_i32_0 = arith.constant 0 : i32
    %c0_i32_1 = arith.constant 0 : i32
    %c0_i32_2 = arith.constant 0 : i32
    return %c0_i32, %c0_i32_0, %c0_i32_1 : i32, i32, i32
  }
  func.func @transform_9(%arg0: i32) -> (i32, i32) {
    %c0_i32 = arith.constant 0 : i32
    %c0_i32_0 = arith.constant 0 : i32
    %c0_i32_1 = arith.constant 0 : i32
    return %c0_i32, %c0_i32_0 : i32, i32
  }
  func.func @transform_10(%arg0: i32) -> (i32, i32) {
    %c0_i32 = arith.constant 0 : i32
    %c0_i32_0 = arith.constant 0 : i32
    %c0_i32_1 = arith.constant 0 : i32
    return %c0_i32, %c0_i32_0 : i32, i32
  }
  func.func @transform_11(%arg0: i32) -> (i32, i32) {
    %c0_i32 = arith.constant 0 : i32
    %c0_i32_0 = arith.constant 0 : i32
    %c0_i32_1 = arith.constant 0 : i32
    return %c0_i32, %c0_i32_0 : i32, i32
  }
  func.func @transform_12(%arg0: i32) -> (i32, i32) {
    %c0_i32 = arith.constant 0 : i32
    %c0_i32_0 = arith.constant 0 : i32
    %c0_i32_1 = arith.constant 0 : i32
    return %c0_i32, %c0_i32_0 : i32, i32
  }
  func.func @transform_13(%arg0: i32) -> (i32, i32) {
    %c0_i32 = arith.constant 0 : i32
    %c0_i32_0 = arith.constant 0 : i32
    %c0_i32_1 = arith.constant 0 : i32
    return %c0_i32, %c0_i32_0 : i32, i32
  }
  func.func @transform_14(%arg0: i32) -> (i32, i32, i32, i32) {
    %c0_i32 = arith.constant 0 : i32
    %c0_i32_0 = arith.constant 0 : i32
    %c0_i32_1 = arith.constant 0 : i32
    %c0_i32_2 = arith.constant 0 : i32
    return %arg0, %c0_i32, %c0_i32_0, %c0_i32_1 : i32, i32, i32, i32
  }
  func.func @transform_15(%arg0: i32) -> (i32, i32, i32, i32) {
    %c0_i32 = arith.constant 0 : i32
    %c0_i32_0 = arith.constant 0 : i32
    %c0_i32_1 = arith.constant 0 : i32
    %c0_i32_2 = arith.constant 0 : i32
    return %arg0, %c0_i32, %c0_i32_0, %c0_i32_1 : i32, i32, i32, i32
  }
}

module attributes {stable_mosaic.version = 11 : i64} {
  func.func @_down_ga_up_kernel(%arg0: i32, %arg1: memref<1x8x1x16xf32, #tpu.memory_space<vmem>>, %arg2: memref<1x16xf32, #tpu.memory_space<vmem>>, %arg3: memref<1x16xf32, #tpu.memory_space<vmem>>, %arg4: memref<1x16xf32, #tpu.memory_space<vmem>>, %arg5: memref<1x16xf32, #tpu.memory_space<vmem>>, %arg6: memref<8x16xf32, #tpu.memory_space<vmem>>, %arg7: memref<16x48xf32, #tpu.memory_space<vmem>>, %arg8: memref<1x48xf32, #tpu.memory_space<vmem>>, %arg9: memref<4x4x16xf32, #tpu.memory_space<vmem>>, %arg10: memref<1x16xf32, #tpu.memory_space<vmem>>, %arg11: memref<1x16xf32, #tpu.memory_space<vmem>>, %arg12: memref<1x16xf32, #tpu.memory_space<vmem>>, %arg13: memref<1x16xf32, #tpu.memory_space<vmem>>, %arg14: memref<1x16xf32, #tpu.memory_space<vmem>>, %arg15: memref<1x8x1x16xf32, #tpu.memory_space<vmem>>, %arg16: memref<1x8x1x16xf32, #tpu.memory_space<vmem>>) attributes {dimension_semantics = [#tpu.dimension_semantics<parallel>], iteration_bounds = array<i64: 16>, scalar_prefetch = 0 : i64, scratch_operands = 0 : i64, tpu.core_type = #tpu.core_type<tc>, window_params = [{transform_indices = @transform_0, window_bounds = array<i64: 1, 8, 1, 16>}, {pipeline_mode = #tpu.pipeline_mode<synchronous>, transform_indices = @transform_1, window_bounds = array<i64: 1, 16>}, {pipeline_mode = #tpu.pipeline_mode<synchronous>, transform_indices = @transform_2, window_bounds = array<i64: 1, 16>}, {pipeline_mode = #tpu.pipeline_mode<synchronous>, transform_indices = @transform_3, window_bounds = array<i64: 1, 16>}, {pipeline_mode = #tpu.pipeline_mode<synchronous>, transform_indices = @transform_4, window_bounds = array<i64: 1, 16>}, {pipeline_mode = #tpu.pipeline_mode<synchronous>, transform_indices = @transform_5, window_bounds = array<i64: 8, 16>}, {pipeline_mode = #tpu.pipeline_mode<synchronous>, transform_indices = @transform_6, window_bounds = array<i64: 16, 48>}, {pipeline_mode = #tpu.pipeline_mode<synchronous>, transform_indices = @transform_7, window_bounds = array<i64: 1, 48>}, {pipeline_mode = #tpu.pipeline_mode<synchronous>, transform_indices = @transform_8, window_bounds = array<i64: 4, 4, 16>}, {pipeline_mode = #tpu.pipeline_mode<synchronous>, transform_indices = @transform_9, window_bounds = array<i64: 1, 16>}, {pipeline_mode = #tpu.pipeline_mode<synchronous>, transform_indices = @transform_10, window_bounds = array<i64: 1, 16>}, {pipeline_mode = #tpu.pipeline_mode<synchronous>, transform_indices = @transform_11, window_bounds = array<i64: 1, 16>}, {pipeline_mode = #tpu.pipeline_mode<synchronous>, transform_indices = @transform_12, window_bounds = array<i64: 1, 16>}, {pipeline_mode = #tpu.pipeline_mode<synchronous>, transform_indices = @transform_13, window_bounds = array<i64: 1, 16>}, {transform_indices = @transform_14, window_bounds = array<i64: 1, 8, 1, 16>}, {transform_indices = @transform_15, window_bounds = array<i64: 1, 8, 1, 16>}]} {
    %c0 = arith.constant 0 : index
    %c0_0 = arith.constant 0 : index
    %c0_1 = arith.constant 0 : index
    %c0_2 = arith.constant 0 : index
    %0 = vector.load %arg1[%c0, %c0_0, %c0_1, %c0_2] : memref<1x8x1x16xf32, #tpu.memory_space<vmem>>, vector<1x8x1x16xf32>
    %1 = vector.shape_cast %0 : vector<1x8x1x16xf32> to vector<8x1x16xf32>
    %c0_3 = arith.constant 0 : index
    %c0_4 = arith.constant 0 : index
    %2 = vector.load %arg2[%c0_3, %c0_4] : memref<1x16xf32, #tpu.memory_space<vmem>>, vector<1x16xf32>
    %3 = vector.shape_cast %2 : vector<1x16xf32> to vector<1x1x16xf32>
    %4 = vector.broadcast %3 : vector<1x1x16xf32> to vector<8x1x16xf32>
    %5 = arith.mulf %1, %4 : vector<8x1x16xf32>
    %cst = arith.constant dense<0.000000e+00> : vector<8x16xf32>
    %6 = vector.multi_reduction <add>, %5, %cst [1] : vector<8x1x16xf32> to vector<8x16xf32>
    %c0_5 = arith.constant 0 : index
    %c0_6 = arith.constant 0 : index
    %7 = vector.load %arg3[%c0_5, %c0_6] : memref<1x16xf32, #tpu.memory_space<vmem>>, vector<1x16xf32>
    %8 = vector.broadcast %7 : vector<1x16xf32> to vector<8x16xf32>
    %9 = arith.addf %6, %8 : vector<8x16xf32>
    %c0_7 = arith.constant 0 : index
    %c0_8 = arith.constant 0 : index
    %10 = vector.load %arg4[%c0_7, %c0_8] : memref<1x16xf32, #tpu.memory_space<vmem>>, vector<1x16xf32>
    %c0_9 = arith.constant 0 : index
    %c0_10 = arith.constant 0 : index
    %11 = vector.load %arg5[%c0_9, %c0_10] : memref<1x16xf32, #tpu.memory_space<vmem>>, vector<1x16xf32>
    %cst_11 = arith.constant dense<0.000000e+00> : vector<8xf32>
    %12 = vector.multi_reduction <add>, %9, %cst_11 [1] : vector<8x16xf32> to vector<8xf32>
    %13 = vector.shape_cast %12 : vector<8xf32> to vector<8x1xf32>
    %cst_12 = arith.constant 1.600000e+01 : f32
    %14 = vector.broadcast %cst_12 : f32 to vector<8x1xf32>
    %15 = arith.divf %13, %14 : vector<8x1xf32>
    %16 = vector.broadcast %15 : vector<8x1xf32> to vector<8x16xf32>
    %17 = arith.subf %9, %16 : vector<8x16xf32>
    %18 = arith.mulf %17, %17 : vector<8x16xf32>
    %cst_13 = arith.constant dense<0.000000e+00> : vector<8xf32>
    %19 = vector.multi_reduction <add>, %18, %cst_13 [1] : vector<8x16xf32> to vector<8xf32>
    %20 = vector.shape_cast %19 : vector<8xf32> to vector<8x1xf32>
    %cst_14 = arith.constant 1.600000e+01 : f32
    %21 = vector.broadcast %cst_14 : f32 to vector<8x1xf32>
    %22 = arith.divf %20, %21 : vector<8x1xf32>
    %23 = vector.broadcast %15 : vector<8x1xf32> to vector<8x16xf32>
    %24 = arith.subf %9, %23 : vector<8x16xf32>
    %cst_15 = arith.constant 9.99999974E-6 : f32
    %25 = vector.broadcast %cst_15 : f32 to vector<8x1xf32>
    %26 = arith.addf %22, %25 : vector<8x1xf32>
    %27 = math.rsqrt %26 : vector<8x1xf32>
    %28 = vector.broadcast %27 : vector<8x1xf32> to vector<8x16xf32>
    %29 = arith.mulf %24, %28 : vector<8x16xf32>
    %30 = vector.broadcast %10 : vector<1x16xf32> to vector<8x16xf32>
    %31 = arith.mulf %29, %30 : vector<8x16xf32>
    %32 = vector.broadcast %11 : vector<1x16xf32> to vector<8x16xf32>
    %33 = arith.addf %31, %32 : vector<8x16xf32>
    %c0_16 = arith.constant 0 : index
    %c0_17 = arith.constant 0 : index
    %34 = vector.load %arg6[%c0_16, %c0_17] : memref<8x16xf32, #tpu.memory_space<vmem>>, vector<8x16xf32>
    %35 = arith.addf %33, %34 : vector<8x16xf32>
    %c0_18 = arith.constant 0 : index
    %c0_19 = arith.constant 0 : index
    %36 = vector.load %arg7[%c0_18, %c0_19] : memref<16x48xf32, #tpu.memory_space<vmem>>, vector<16x48xf32>
    %cst_20 = arith.constant dense<0.000000e+00> : vector<8x48xf32>
    %37 = tpu.matmul %35, %36, %cst_20 {dimension_numbers = #tpu.dot_dimension_numbers<[1], [0], [0], [1], [0, 0, 1, 1], [], []>} : vector<8x16xf32>, vector<16x48xf32>, vector<8x48xf32> -> vector<8x48xf32>
    %c0_21 = arith.constant 0 : index
    %c0_22 = arith.constant 0 : index
    %38 = vector.load %arg8[%c0_21, %c0_22] : memref<1x48xf32, #tpu.memory_space<vmem>>, vector<1x48xf32>
    %39 = vector.broadcast %38 : vector<1x48xf32> to vector<8x48xf32>
    %40 = arith.addf %37, %39 : vector<8x48xf32>
    %41 = vector.extract_strided_slice %40 {offsets = [0, 0], sizes = [8, 4], strides = [1, 1]} : vector<8x48xf32> to vector<8x4xf32>
    %42 = vector.extract_strided_slice %40 {offsets = [0, 4], sizes = [8, 4], strides = [1, 1]} : vector<8x48xf32> to vector<8x4xf32>
    %43 = vector.extract_strided_slice %40 {offsets = [0, 8], sizes = [8, 4], strides = [1, 1]} : vector<8x48xf32> to vector<8x4xf32>
    %44 = vector.extract_strided_slice %40 {offsets = [0, 12], sizes = [8, 4], strides = [1, 1]} : vector<8x48xf32> to vector<8x4xf32>
    %45 = vector.shape_cast %41 : vector<8x4xf32> to vector<1x8x4xf32>
    %46 = vector.shape_cast %42 : vector<8x4xf32> to vector<1x8x4xf32>
    %47 = vector.shape_cast %43 : vector<8x4xf32> to vector<1x8x4xf32>
    %48 = vector.shape_cast %44 : vector<8x4xf32> to vector<1x8x4xf32>
    %49 = tpu.concatenate %45, %46, %47, %48 in 0 : vector<1x8x4xf32>, vector<1x8x4xf32>, vector<1x8x4xf32>, vector<1x8x4xf32> -> vector<4x8x4xf32>
    %cst_23 = arith.constant 5.000000e-01 : f32
    %50 = vector.broadcast %cst_23 : f32 to vector<4x8x4xf32>
    %51 = arith.mulf %49, %50 : vector<4x8x4xf32>
    %52 = vector.extract_strided_slice %40 {offsets = [0, 16], sizes = [8, 4], strides = [1, 1]} : vector<8x48xf32> to vector<8x4xf32>
    %53 = vector.extract_strided_slice %40 {offsets = [0, 20], sizes = [8, 4], strides = [1, 1]} : vector<8x48xf32> to vector<8x4xf32>
    %54 = vector.extract_strided_slice %40 {offsets = [0, 24], sizes = [8, 4], strides = [1, 1]} : vector<8x48xf32> to vector<8x4xf32>
    %55 = vector.extract_strided_slice %40 {offsets = [0, 28], sizes = [8, 4], strides = [1, 1]} : vector<8x48xf32> to vector<8x4xf32>
    %56 = vector.shape_cast %52 : vector<8x4xf32> to vector<1x8x4xf32>
    %57 = vector.shape_cast %53 : vector<8x4xf32> to vector<1x8x4xf32>
    %58 = vector.shape_cast %54 : vector<8x4xf32> to vector<1x8x4xf32>
    %59 = vector.shape_cast %55 : vector<8x4xf32> to vector<1x8x4xf32>
    %60 = tpu.concatenate %56, %57, %58, %59 in 0 : vector<1x8x4xf32>, vector<1x8x4xf32>, vector<1x8x4xf32>, vector<1x8x4xf32> -> vector<4x8x4xf32>
    %61 = vector.extract_strided_slice %40 {offsets = [0, 32], sizes = [8, 4], strides = [1, 1]} : vector<8x48xf32> to vector<8x4xf32>
    %62 = vector.extract_strided_slice %40 {offsets = [0, 36], sizes = [8, 4], strides = [1, 1]} : vector<8x48xf32> to vector<8x4xf32>
    %63 = vector.extract_strided_slice %40 {offsets = [0, 40], sizes = [8, 4], strides = [1, 1]} : vector<8x48xf32> to vector<8x4xf32>
    %64 = vector.extract_strided_slice %40 {offsets = [0, 44], sizes = [8, 4], strides = [1, 1]} : vector<8x48xf32> to vector<8x4xf32>
    %65 = vector.shape_cast %61 : vector<8x4xf32> to vector<1x8x4xf32>
    %66 = vector.shape_cast %62 : vector<8x4xf32> to vector<1x8x4xf32>
    %67 = vector.shape_cast %63 : vector<8x4xf32> to vector<1x8x4xf32>
    %68 = vector.shape_cast %64 : vector<8x4xf32> to vector<1x8x4xf32>
    %69 = tpu.concatenate %65, %66, %67, %68 in 0 : vector<1x8x4xf32>, vector<1x8x4xf32>, vector<1x8x4xf32>, vector<1x8x4xf32> -> vector<4x8x4xf32>
    "tpu.trace_start"() <{level = 10 : i32, message = "hqd,hkd->hqk"}> : () -> ()
    %cst_24 = arith.constant dense<0.000000e+00> : vector<4x8x8xf32>
    %70 = tpu.matmul %51, %60, %cst_24 {dimension_numbers = #tpu.dot_dimension_numbers<[2], [2], [1], [1], [0, 0, 0, 1, 1, 1], [0], [0]>} : vector<4x8x4xf32>, vector<4x8x4xf32>, vector<4x8x8xf32> -> vector<4x8x8xf32>
    "tpu.trace_stop"() : () -> ()
    %cst_25 = arith.constant dense<0xFF800000> : vector<4x8xf32>
    %71 = vector.multi_reduction <maximumf>, %70, %cst_25 [2] : vector<4x8x8xf32> to vector<4x8xf32>
    %72 = vector.shape_cast %71 : vector<4x8xf32> to vector<4x8x1xf32>
    %73 = vector.broadcast %72 : vector<4x8x1xf32> to vector<4x8x8xf32>
    %74 = arith.subf %70, %73 : vector<4x8x8xf32>
    %75 = math.exp %74 : vector<4x8x8xf32>
    %cst_26 = arith.constant dense<0.000000e+00> : vector<4x8xf32>
    %76 = vector.multi_reduction <add>, %75, %cst_26 [2] : vector<4x8x8xf32> to vector<4x8xf32>
    %77 = vector.shape_cast %76 : vector<4x8xf32> to vector<4x8x1xf32>
    %78 = tpu.reciprocal %77 {approx = true} : vector<4x8x1xf32> -> vector<4x8x1xf32>
    %79 = vector.broadcast %78 : vector<4x8x1xf32> to vector<4x8x8xf32>
    %80 = arith.mulf %75, %79 : vector<4x8x8xf32>
    "tpu.trace_start"() <{level = 10 : i32, message = "hqk,hkd->hqd"}> : () -> ()
    %cst_27 = arith.constant dense<0.000000e+00> : vector<4x8x4xf32>
    %81 = tpu.matmul %80, %69, %cst_27 {dimension_numbers = #tpu.dot_dimension_numbers<[2], [1], [1], [2], [0, 0, 0, 1, 1, 2], [0], [0]>} : vector<4x8x8xf32>, vector<4x8x4xf32>, vector<4x8x4xf32> -> vector<4x8x4xf32>
    "tpu.trace_stop"() : () -> ()
    %c0_28 = arith.constant 0 : index
    %c0_29 = arith.constant 0 : index
    %c0_30 = arith.constant 0 : index
    %82 = vector.load %arg9[%c0_28, %c0_29, %c0_30] : memref<4x4x16xf32, #tpu.memory_space<vmem>>, vector<4x4x16xf32>
    "tpu.trace_start"() <{level = 10 : i32, message = "hqd,hdn->hqn"}> : () -> ()
    %cst_31 = arith.constant dense<0.000000e+00> : vector<4x8x16xf32>
    %83 = tpu.matmul %81, %82, %cst_31 {dimension_numbers = #tpu.dot_dimension_numbers<[2], [1], [1], [2], [0, 0, 0, 1, 1, 2], [0], [0]>} : vector<4x8x4xf32>, vector<4x4x16xf32>, vector<4x8x16xf32> -> vector<4x8x16xf32>
    "tpu.trace_stop"() : () -> ()
    %cst_32 = arith.constant dense<0.000000e+00> : vector<8x16xf32>
    %84 = vector.multi_reduction <add>, %83, %cst_32 [0] : vector<4x8x16xf32> to vector<8x16xf32>
    %c0_33 = arith.constant 0 : index
    %c0_34 = arith.constant 0 : index
    %85 = vector.load %arg10[%c0_33, %c0_34] : memref<1x16xf32, #tpu.memory_space<vmem>>, vector<1x16xf32>
    %86 = vector.broadcast %85 : vector<1x16xf32> to vector<8x16xf32>
    %87 = arith.addf %84, %86 : vector<8x16xf32>
    %88 = arith.addf %87, %35 : vector<8x16xf32>
    %c0_35 = arith.constant 0 : index
    %c0_36 = arith.constant 0 : index
    %89 = vector.load %arg11[%c0_35, %c0_36] : memref<1x16xf32, #tpu.memory_space<vmem>>, vector<1x16xf32>
    %c0_37 = arith.constant 0 : index
    %c0_38 = arith.constant 0 : index
    %90 = vector.load %arg12[%c0_37, %c0_38] : memref<1x16xf32, #tpu.memory_space<vmem>>, vector<1x16xf32>
    %cst_39 = arith.constant dense<0.000000e+00> : vector<8xf32>
    %91 = vector.multi_reduction <add>, %88, %cst_39 [1] : vector<8x16xf32> to vector<8xf32>
    %92 = vector.shape_cast %91 : vector<8xf32> to vector<8x1xf32>
    %cst_40 = arith.constant 1.600000e+01 : f32
    %93 = vector.broadcast %cst_40 : f32 to vector<8x1xf32>
    %94 = arith.divf %92, %93 : vector<8x1xf32>
    %95 = vector.broadcast %94 : vector<8x1xf32> to vector<8x16xf32>
    %96 = arith.subf %88, %95 : vector<8x16xf32>
    %97 = arith.mulf %96, %96 : vector<8x16xf32>
    %cst_41 = arith.constant dense<0.000000e+00> : vector<8xf32>
    %98 = vector.multi_reduction <add>, %97, %cst_41 [1] : vector<8x16xf32> to vector<8xf32>
    %99 = vector.shape_cast %98 : vector<8xf32> to vector<8x1xf32>
    %cst_42 = arith.constant 1.600000e+01 : f32
    %100 = vector.broadcast %cst_42 : f32 to vector<8x1xf32>
    %101 = arith.divf %99, %100 : vector<8x1xf32>
    %102 = vector.broadcast %94 : vector<8x1xf32> to vector<8x16xf32>
    %103 = arith.subf %88, %102 : vector<8x16xf32>
    %cst_43 = arith.constant 9.99999974E-6 : f32
    %104 = vector.broadcast %cst_43 : f32 to vector<8x1xf32>
    %105 = arith.addf %101, %104 : vector<8x1xf32>
    %106 = math.rsqrt %105 : vector<8x1xf32>
    %107 = vector.broadcast %106 : vector<8x1xf32> to vector<8x16xf32>
    %108 = arith.mulf %103, %107 : vector<8x16xf32>
    %109 = vector.broadcast %89 : vector<1x16xf32> to vector<8x16xf32>
    %110 = arith.mulf %108, %109 : vector<8x16xf32>
    %111 = vector.broadcast %90 : vector<1x16xf32> to vector<8x16xf32>
    %112 = arith.addf %110, %111 : vector<8x16xf32>
    %113 = arith.addf %112, %9 : vector<8x16xf32>
    %114 = vector.shape_cast %113 : vector<8x16xf32> to vector<8x1x16xf32>
    %c0_44 = arith.constant 0 : index
    %c0_45 = arith.constant 0 : index
    %115 = vector.load %arg13[%c0_44, %c0_45] : memref<1x16xf32, #tpu.memory_space<vmem>>, vector<1x16xf32>
    %116 = vector.shape_cast %115 : vector<1x16xf32> to vector<1x1x16xf32>
    %117 = vector.broadcast %116 : vector<1x1x16xf32> to vector<8x1x16xf32>
    %118 = arith.mulf %114, %117 : vector<8x1x16xf32>
    %c0_46 = arith.constant 0 : index
    %c0_47 = arith.constant 0 : index
    %119 = vector.load %arg14[%c0_46, %c0_47] : memref<1x16xf32, #tpu.memory_space<vmem>>, vector<1x16xf32>
    %120 = vector.shape_cast %119 : vector<1x16xf32> to vector<1x1x16xf32>
    %121 = vector.broadcast %120 : vector<1x1x16xf32> to vector<8x1x16xf32>
    %122 = arith.addf %118, %121 : vector<8x1x16xf32>
    %c0_48 = arith.constant 0 : index
    %c0_49 = arith.constant 0 : index
    %c0_50 = arith.constant 0 : index
    %c0_51 = arith.constant 0 : index
    %123 = vector.load %arg15[%c0_48, %c0_49, %c0_50, %c0_51] : memref<1x8x1x16xf32, #tpu.memory_space<vmem>>, vector<1x8x1x16xf32>
    %124 = vector.shape_cast %123 : vector<1x8x1x16xf32> to vector<8x1x16xf32>
    %125 = arith.addf %122, %124 : vector<8x1x16xf32>
    %c0_52 = arith.constant 0 : index
    %c0_53 = arith.constant 0 : index
    %c0_54 = arith.constant 0 : index
    %c0_55 = arith.constant 0 : index
    %126 = vector.load %arg16[%c0_52, %c0_53, %c0_54, %c0_55] : memref<1x8x1x16xf32, #tpu.memory_space<vmem>>, vector<1x8x1x16xf32>
    %127 = vector.shape_cast %126 : vector<1x8x1x16xf32> to vector<8x1x16xf32>
    %128 = vector.shape_cast %125 : vector<8x1x16xf32> to vector<1x8x1x16xf32>
    tpu.vector_store %arg16[%c0_52, %c0_53, %c0_54, %c0_55], %128 {strides = array<i32>} : memref<1x8x1x16xf32, #tpu.memory_space<vmem>>, vector<1x8x1x16xf32>,
    return
  }
  func.func @transform_0(%arg0: i32) -> (i32, i32, i32, i32) {
    %c0_i32 = arith.constant 0 : i32
    %c0_i32_0 = arith.constant 0 : i32
    %c0_i32_1 = arith.constant 0 : i32
    %c0_i32_2 = arith.constant 0 : i32
    return %arg0, %c0_i32, %c0_i32_0, %c0_i32_1 : i32, i32, i32, i32
  }
  func.func @transform_1(%arg0: i32) -> (i32, i32) {
    %c0_i32 = arith.constant 0 : i32
    %c0_i32_0 = arith.constant 0 : i32
    %c0_i32_1 = arith.constant 0 : i32
    return %c0_i32, %c0_i32_0 : i32, i32
  }
  func.func @transform_2(%arg0: i32) -> (i32, i32) {
    %c0_i32 = arith.constant 0 : i32
    %c0_i32_0 = arith.constant 0 : i32
    %c0_i32_1 = arith.constant 0 : i32
    return %c0_i32, %c0_i32_0 : i32, i32
  }
  func.func @transform_3(%arg0: i32) -> (i32, i32) {
    %c0_i32 = arith.constant 0 : i32
    %c0_i32_0 = arith.constant 0 : i32
    %c0_i32_1 = arith.constant 0 : i32
    return %c0_i32, %c0_i32_0 : i32, i32
  }
  func.func @transform_4(%arg0: i32) -> (i32, i32) {
    %c0_i32 = arith.constant 0 : i32
    %c0_i32_0 = arith.constant 0 : i32
    %c0_i32_1 = arith.constant 0 : i32
    return %c0_i32, %c0_i32_0 : i32, i32
  }
  func.func @transform_5(%arg0: i32) -> (i32, i32) {
    %c0_i32 = arith.constant 0 : i32
    %c0_i32_0 = arith.constant 0 : i32
    %c0_i32_1 = arith.constant 0 : i32
    return %c0_i32, %c0_i32_0 : i32, i32
  }
  func.func @transform_6(%arg0: i32) -> (i32, i32) {
    %c0_i32 = arith.constant 0 : i32
    %c0_i32_0 = arith.constant 0 : i32
    %c0_i32_1 = arith.constant 0 : i32
    return %c0_i32, %c0_i32_0 : i32, i32
  }
  func.func @transform_7(%arg0: i32) -> (i32, i32) {
    %c0_i32 = arith.constant 0 : i32
    %c0_i32_0 = arith.constant 0 : i32
    %c0_i32_1 = arith.constant 0 : i32
    return %c0_i32, %c0_i32_0 : i32, i32
  }
  func.func @transform_8(%arg0: i32) -> (i32, i32, i32) {
    %c0_i32 = arith.constant 0 : i32
    %c0_i32_0 = arith.constant 0 : i32
    %c0_i32_1 = arith.constant 0 : i32
    %c0_i32_2 = arith.constant 0 : i32
    return %c0_i32, %c0_i32_0, %c0_i32_1 : i32, i32, i32
  }
  func.func @transform_9(%arg0: i32) -> (i32, i32) {
    %c0_i32 = arith.constant 0 : i32
    %c0_i32_0 = arith.constant 0 : i32
    %c0_i32_1 = arith.constant 0 : i32
    return %c0_i32, %c0_i32_0 : i32, i32
  }
  func.func @transform_10(%arg0: i32) -> (i32, i32) {
    %c0_i32 = arith.constant 0 : i32
    %c0_i32_0 = arith.constant 0 : i32
    %c0_i32_1 = arith.constant 0 : i32
    return %c0_i32, %c0_i32_0 : i32, i32
  }
  func.func @transform_11(%arg0: i32) -> (i32, i32) {
    %c0_i32 = arith.constant 0 : i32
    %c0_i32_0 = arith.constant 0 : i32
    %c0_i32_1 = arith.constant 0 : i32
    return %c0_i32, %c0_i32_0 : i32, i32
  }
  func.func @transform_12(%arg0: i32) -> (i32, i32) {
    %c0_i32 = arith.constant 0 : i32
    %c0_i32_0 = arith.constant 0 : i32
    %c0_i32_1 = arith.constant 0 : i32
    return %c0_i32, %c0_i32_0 : i32, i32
  }
  func.func @transform_13(%arg0: i32) -> (i32, i32) {
    %c0_i32 = arith.constant 0 : i32
    %c0_i32_0 = arith.constant 0 : i32
    %c0_i32_1 = arith.constant 0 : i32
    return %c0_i32, %c0_i32_0 : i32, i32
  }
  func.func @transform_14(%arg0: i32) -> (i32, i32, i32, i32) {
    %c0_i32 = arith.constant 0 : i32
    %c0_i32_0 = arith.constant 0 : i32
    %c0_i32_1 = arith.constant 0 : i32
    %c0_i32_2 = arith.constant 0 : i32
    return %arg0, %c0_i32, %c0_i32_0, %c0_i32_1 : i32, i32, i32, i32
  }
  func.func @transform_15(%arg0: i32) -> (i32, i32, i32, i32) {
    %c0_i32 = arith.constant 0 : i32
    %c0_i32_0 = arith.constant 0 : i32
    %c0_i32_1 = arith.constant 0 : i32
    %c0_i32_2 = arith.constant 0 : i32
    return %arg0, %c0_i32, %c0_i32_0, %c0_i32_1 : i32, i32, i32, i32
  }
}

module attributes {stable_mosaic.version = 11 : i64} {
  func.func @_prelu_linear_kernel(%arg0: i32, %arg1: memref<128x16xf32, #tpu.memory_space<vmem>>, %arg2: memref<1x1xf32, #tpu.memory_space<vmem>>, %arg3: memref<16x32xf32, #tpu.memory_space<vmem>>, %arg4: memref<1x32xf32, #tpu.memory_space<vmem>>, %arg5: memref<128x32xf32, #tpu.memory_space<vmem>>) attributes {dimension_semantics = [#tpu.dimension_semantics<parallel>], iteration_bounds = array<i64: 1>, scalar_prefetch = 0 : i64, scratch_operands = 0 : i64, tpu.core_type = #tpu.core_type<tc>, window_params = [{transform_indices = @transform_0, window_bounds = array<i64: 128, 16>}, {pipeline_mode = #tpu.pipeline_mode<synchronous>, transform_indices = @transform_1, window_bounds = array<i64: 1, 1>}, {pipeline_mode = #tpu.pipeline_mode<synchronous>, transform_indices = @transform_2, window_bounds = array<i64: 16, 32>}, {pipeline_mode = #tpu.pipeline_mode<synchronous>, transform_indices = @transform_3, window_bounds = array<i64: 1, 32>}, {transform_indices = @transform_4, window_bounds = array<i64: 128, 32>}]} {
    %c0 = arith.constant 0 : index
    %c0_0 = arith.constant 0 : index
    %0 = vector.load %arg1[%c0, %c0_0] : memref<128x16xf32, #tpu.memory_space<vmem>>, vector<128x16xf32>
    %cst = arith.constant 0.000000e+00 : f32
    %1 = vector.broadcast %cst : f32 to vector<128x16xf32>
    %2 = arith.cmpf oge, %0, %1 : vector<128x16xf32>
    %c0_1 = arith.constant 0 : index
    %c0_2 = arith.constant 0 : index
    %3 = vector.load %arg2[%c0_1, %c0_2] : memref<1x1xf32, #tpu.memory_space<vmem>>, vector<1x1xf32>
    %4 = vector.broadcast %3 : vector<1x1xf32> to vector<128x16xf32>
    %5 = arith.mulf %4, %0 : vector<128x16xf32>
    %6 = arith.select %2, %0, %5 : vector<128x16xi1>, vector<128x16xf32>
    %c0_3 = arith.constant 0 : index
    %c0_4 = arith.constant 0 : index
    %7 = vector.load %arg3[%c0_3, %c0_4] : memref<16x32xf32, #tpu.memory_space<vmem>>, vector<16x32xf32>
    %cst_5 = arith.constant dense<0.000000e+00> : vector<128x32xf32>
    %8 = tpu.matmul %6, %7, %cst_5 {dimension_numbers = #tpu.dot_dimension_numbers<[1], [0], [0], [1], [0, 0, 1, 1], [], []>} : vector<128x16xf32>, vector<16x32xf32>, vector<128x32xf32> -> vector<128x32xf32>
    %c0_6 = arith.constant 0 : index
    %c0_7 = arith.constant 0 : index
    %9 = vector.load %arg4[%c0_6, %c0_7] : memref<1x32xf32, #tpu.memory_space<vmem>>, vector<1x32xf32>
    %10 = vector.broadcast %9 : vector<1x32xf32> to vector<128x32xf32>
    %11 = arith.addf %8, %10 : vector<128x32xf32>
    %c0_8 = arith.constant 0 : index
    %c0_9 = arith.constant 0 : index
    %12 = vector.load %arg5[%c0_8, %c0_9] : memref<128x32xf32, #tpu.memory_space<vmem>>, vector<128x32xf32>
    tpu.vector_store %arg5[%c0_8, %c0_9], %11 {strides = array<i32>} : memref<128x32xf32, #tpu.memory_space<vmem>>, vector<128x32xf32>,
    return
  }
  func.func @transform_0(%arg0: i32) -> (i32, i32) {
    %c0_i32 = arith.constant 0 : i32
    %c0_i32_0 = arith.constant 0 : i32
    return %arg0, %c0_i32 : i32, i32
  }
  func.func @transform_1(%arg0: i32) -> (i32, i32) {
    %c0_i32 = arith.constant 0 : i32
    %c0_i32_0 = arith.constant 0 : i32
    %c0_i32_1 = arith.constant 0 : i32
    return %c0_i32, %c0_i32_0 : i32, i32
  }
  func.func @transform_2(%arg0: i32) -> (i32, i32) {
    %c0_i32 = arith.constant 0 : i32
    %c0_i32_0 = arith.constant 0 : i32
    %c0_i32_1 = arith.constant 0 : i32
    return %c0_i32, %c0_i32_0 : i32, i32
  }
  func.func @transform_3(%arg0: i32) -> (i32, i32) {
    %c0_i32 = arith.constant 0 : i32
    %c0_i32_0 = arith.constant 0 : i32
    %c0_i32_1 = arith.constant 0 : i32
    return %c0_i32, %c0_i32_0 : i32, i32
  }
  func.func @transform_4(%arg0: i32) -> (i32, i32) {
    %c0_i32 = arith.constant 0 : i32
    %c0_i32_0 = arith.constant 0 : i32
    return %arg0, %c0_i32 : i32, i32
  }
}

module attributes {stable_mosaic.version = 11 : i64} {
  func.func @_output_tail_kernel(%arg0: i32, %arg1: memref<88x16xf32, #tpu.memory_space<vmem>>, %arg2: memref<16x16xf32, #tpu.memory_space<vmem>>, %arg3: memref<1x16xf32, #tpu.memory_space<vmem>>, %arg4: memref<1x16xf32, #tpu.memory_space<vmem>>, %arg5: memref<1x16xf32, #tpu.memory_space<vmem>>, %arg6: memref<16x16xf32, #tpu.memory_space<vmem>>, %arg7: memref<88x16xf32, #tpu.memory_space<vmem>>) attributes {dimension_semantics = [#tpu.dimension_semantics<parallel>], iteration_bounds = array<i64: 1>, scalar_prefetch = 0 : i64, scratch_operands = 0 : i64, tpu.core_type = #tpu.core_type<tc>, window_params = [{transform_indices = @transform_0, window_bounds = array<i64: 88, 16>}, {pipeline_mode = #tpu.pipeline_mode<synchronous>, transform_indices = @transform_1, window_bounds = array<i64: 16, 16>}, {pipeline_mode = #tpu.pipeline_mode<synchronous>, transform_indices = @transform_2, window_bounds = array<i64: 1, 16>}, {pipeline_mode = #tpu.pipeline_mode<synchronous>, transform_indices = @transform_3, window_bounds = array<i64: 1, 16>}, {pipeline_mode = #tpu.pipeline_mode<synchronous>, transform_indices = @transform_4, window_bounds = array<i64: 1, 16>}, {pipeline_mode = #tpu.pipeline_mode<synchronous>, transform_indices = @transform_5, window_bounds = array<i64: 16, 16>}, {transform_indices = @transform_6, window_bounds = array<i64: 88, 16>}]} {
    %c0 = arith.constant 0 : index
    %c0_0 = arith.constant 0 : index
    %0 = vector.load %arg1[%c0, %c0_0] : memref<88x16xf32, #tpu.memory_space<vmem>>, vector<88x16xf32>
    %c0_1 = arith.constant 0 : index
    %c0_2 = arith.constant 0 : index
    %1 = vector.load %arg2[%c0_1, %c0_2] : memref<16x16xf32, #tpu.memory_space<vmem>>, vector<16x16xf32>
    %cst = arith.constant dense<0.000000e+00> : vector<88x16xf32>
    %2 = tpu.matmul %0, %1, %cst {dimension_numbers = #tpu.dot_dimension_numbers<[1], [0], [0], [1], [0, 0, 1, 1], [], []>} : vector<88x16xf32>, vector<16x16xf32>, vector<88x16xf32> -> vector<88x16xf32>
    %c0_3 = arith.constant 0 : index
    %c0_4 = arith.constant 0 : index
    %3 = vector.load %arg3[%c0_3, %c0_4] : memref<1x16xf32, #tpu.memory_space<vmem>>, vector<1x16xf32>
    %4 = vector.broadcast %3 : vector<1x16xf32> to vector<88x16xf32>
    %5 = arith.addf %2, %4 : vector<88x16xf32>
    %6 = math.tanh %5 : vector<88x16xf32>
    %c0_5 = arith.constant 0 : index
    %c0_6 = arith.constant 0 : index
    %7 = vector.load %arg4[%c0_5, %c0_6] : memref<1x16xf32, #tpu.memory_space<vmem>>, vector<1x16xf32>
    %8 = vector.broadcast %7 : vector<1x16xf32> to vector<88x16xf32>
    %9 = arith.mulf %0, %8 : vector<88x16xf32>
    %c0_7 = arith.constant 0 : index
    %c0_8 = arith.constant 0 : index
    %10 = vector.load %arg5[%c0_7, %c0_8] : memref<1x16xf32, #tpu.memory_space<vmem>>, vector<1x16xf32>
    %11 = vector.broadcast %10 : vector<1x16xf32> to vector<88x16xf32>
    %12 = arith.addf %9, %11 : vector<88x16xf32>
    %13 = arith.negf %12 : vector<88x16xf32>
    %14 = math.exp %13 : vector<88x16xf32>
    %cst_9 = arith.constant 1.000000e+00 : f32
    %15 = vector.broadcast %cst_9 : f32 to vector<88x16xf32>
    %16 = arith.addf %15, %14 : vector<88x16xf32>
    %17 = arith.divf %15, %16 : vector<88x16xf32>
    %18 = arith.mulf %6, %17 : vector<88x16xf32>
    %c0_10 = arith.constant 0 : index
    %c0_11 = arith.constant 0 : index
    %19 = vector.load %arg6[%c0_10, %c0_11] : memref<16x16xf32, #tpu.memory_space<vmem>>, vector<16x16xf32>
    %cst_12 = arith.constant dense<0.000000e+00> : vector<88x16xf32>
    %20 = tpu.matmul %18, %19, %cst_12 {dimension_numbers = #tpu.dot_dimension_numbers<[1], [0], [0], [1], [0, 0, 1, 1], [], []>} : vector<88x16xf32>, vector<16x16xf32>, vector<88x16xf32> -> vector<88x16xf32>
    %cst_13 = arith.constant 0.000000e+00 : f32
    %21 = vector.broadcast %cst_13 : f32 to vector<88x16xf32>
    %22 = arith.maximumf %20, %21 : vector<88x16xf32>
    %c0_14 = arith.constant 0 : index
    %c0_15 = arith.constant 0 : index
    %23 = vector.load %arg7[%c0_14, %c0_15] : memref<88x16xf32, #tpu.memory_space<vmem>>, vector<88x16xf32>
    tpu.vector_store %arg7[%c0_14, %c0_15], %22 {strides = array<i32>} : memref<88x16xf32, #tpu.memory_space<vmem>>, vector<88x16xf32>,
    return
  }
  func.func @transform_0(%arg0: i32) -> (i32, i32) {
    %c0_i32 = arith.constant 0 : i32
    %c0_i32_0 = arith.constant 0 : i32
    return %arg0, %c0_i32 : i32, i32
  }
  func.func @transform_1(%arg0: i32) -> (i32, i32) {
    %c0_i32 = arith.constant 0 : i32
    %c0_i32_0 = arith.constant 0 : i32
    %c0_i32_1 = arith.constant 0 : i32
    return %c0_i32, %c0_i32_0 : i32, i32
  }
  func.func @transform_2(%arg0: i32) -> (i32, i32) {
    %c0_i32 = arith.constant 0 : i32
    %c0_i32_0 = arith.constant 0 : i32
    %c0_i32_1 = arith.constant 0 : i32
    return %c0_i32, %c0_i32_0 : i32, i32
  }
  func.func @transform_3(%arg0: i32) -> (i32, i32) {
    %c0_i32 = arith.constant 0 : i32
    %c0_i32_0 = arith.constant 0 : i32
    %c0_i32_1 = arith.constant 0 : i32
    return %c0_i32, %c0_i32_0 : i32, i32
  }
  func.func @transform_4(%arg0: i32) -> (i32, i32) {
    %c0_i32 = arith.constant 0 : i32
    %c0_i32_0 = arith.constant 0 : i32
    %c0_i32_1 = arith.constant 0 : i32
    return %c0_i32, %c0_i32_0 : i32, i32
  }
  func.func @transform_5(%arg0: i32) -> (i32, i32) {
    %c0_i32 = arith.constant 0 : i32
    %c0_i32_0 = arith.constant 0 : i32
    %c0_i32_1 = arith.constant 0 : i32
    return %c0_i32, %c0_i32_0 : i32, i32
  }
  func.func @transform_6(%arg0: i32) -> (i32, i32) {
    %c0_i32 = arith.constant 0 : i32
    %c0_i32_0 = arith.constant 0 : i32
    return %arg0, %c0_i32 : i32, i32
  }
}

</mosaic_0001>

<bundles_post_ra>
// kernel: separation_forward.11
= control target key start
LH: loop header
LB: loop body
LE: loop exit
PB: predicated region body
PF: predicated region fallthrough
CT: control target
= control target key end

     0   :  { %vm28_vm0 = vcmask 130048   ;;  %vm44_vm1 = vcmask 125952   ;;  %s448_s0 = inlined_call_operand.vmem [shape: f32[44,16], index: 0, kind: input, shape index: {}]   ;;  %s449_s3 = inlined_call_operand.vmem [shape: f32[16,16], index: 3, kind: input, shape index: {}]   ;;  %s450_s1 = inlined_call_operand.vmem [shape: f32[1,16], index: 1, kind: input, shape index: {}]   ;;  %s451_s2 = inlined_call_operand.vmem [shape: f32[1,16], index: 2, kind: input, shape index: {}]   ;;  %s452_s4 = inlined_call_operand.vmem [shape: f32[1,16], index: 4, kind: input, shape index: {}]   ;;  %s453_s5 = inlined_call_operand.vmem [shape: f32[44,16], index: 5, kind: output, shape index: {}]  }
   0x1   :  { %v22_v0 = vld [vmem:[%s448_s0 + $0x10] sm:$0xff]  ;;  %v23_v1 = vld [vmem:[%s448_s0 + $0x18] sm:$0xff]  ;;  %v20_v2 = vld [vmem:[%s448_s0] sm:$0xff] }
   0x2   :  { %v35_v3 = vsel %vm28_vm0, %v22_v0, 0.0  ;;  %v29_v4 = vsel %vm28_vm0, %v20_v2, 0.0  ;;  %v24_v5 = vld [vmem:[%s448_s0 + $0x20] sm:$0xff]  ;;  %v38_v6 = vsel %vm28_vm0, %v23_v1, 0.0  ;;  %v21_v8 = vld [vmem:[%s448_s0 + $0x8] sm:$0xff] }
   0x3   :  { %36 = vadd.xlane.f32.xlu0 %v35_v3  ;;  %30 = vadd.xlane.f32.xlu1 %v29_v4  ;;  %v41_v7 = vsel %vm28_vm0, %v24_v5, 0.0  ;;  %v25_v9 = vld [vmem:[%s448_s0 + $0x28] sm:$0xf]  ;;  %v32_v10 = vsel %vm28_vm0, %v21_v8, 0.0  ;;  %v133_v42 = vld [vmem:[%s449_s3] sm:$0xff] }
   0x4   :  { %v45_v11 = vsel %vm44_vm1, %v25_v9, 0.0  ;;  %v134_v43 = vld [vmem:[%s449_s3 + $0x8] sm:$0xff] }
   0x5   :  { %v295_v44 = vpack.c.bf16 %v134_v43, %v133_v42 }
   0x7   :  { %39 = vadd.xlane.f32.xlu0 %v38_v6  ;;  %42 = vadd.xlane.f32.xlu1 %v41_v7 }
   0x8   :  { %299 = vmatprep.subr.bf16.mxu1 %v295_v44  ;;  %296 = vmatprep.subr.bf16.mxu0 %v295_v44 }
   0x9   :  { %300 = vmatpush3.bf16.msra.mxu1 %v295_v44  ;;  %298 = vmatpush3.bf16.msra.mxu0 %v295_v44 }
   0xb   :  { %33 = vadd.xlane.f32.xlu0 %v32_v10  ;;  %46 = vadd.xlane.f32.xlu1 %v45_v11 }
  0x90   :  { %v37_v12 = vpop.xlane.xlu0 %36  ;;  %v31_v13 = vpop.xlane.xlu1 %30 }
  0x91   :  { %v51_v14 = vmul.f32 0.0625, %v37_v12  ;;  %v49_v15 = vmul.f32 0.0625, %v31_v13 }
  0x93   :  { %v367_v16 = vsub.f32 %v22_v0, %v51_v14  ;;  %v369_v17 = vsub.f32 %v20_v2, %v49_v15  ;;  %v265_v0 = vld [vmem:[%s450_s1] ss:$0 sm:$0xff] }
  0x94   :  { %v40_v18 = vpop.xlane.xlu0 %39  ;;  %v43_v19 = vpop.xlane.xlu1 %42  ;;  %v266_v2 = vld [vmem:[%s451_s2] ss:$0 sm:$0xff] }
  0x95   :  { %v52_v20 = vmul.f32 0.0625, %v40_v18  ;;  %v63_v21 = vmul.f32 %v367_v16, %v367_v16  ;;  %v53_v22 = vmul.f32 0.0625, %v43_v19  ;;  %v61_v23 = vmul.f32 %v369_v17, %v369_v17 }
  0x97   :  { %v375_v24 = vsub.f32 %v23_v1, %v52_v20  ;;  %v73_v25 = vsel %vm28_vm0, %v63_v21, 0.0  ;;  %v378_v26 = vsub.f32 %v24_v5, %v53_v22  ;;  %v67_v28 = vsel %vm28_vm0, %v61_v23, 0.0 }
  0x98   :  { %74 = vadd.xlane.f32.xlu0 %v73_v25  ;;  %v34_v27 = vpop.xlane.xlu0 %33  ;;  %v47_v29 = vpop.xlane.xlu1 %46  ;;  %v267_v25 = vld [vmem:[%s452_s4] ss:$0 sm:$0xff] }
  0x99   :  { %v50_v30 = vmul.f32 0.0625, %v34_v27  ;;  %v64_v31 = vmul.f32 %v375_v24, %v375_v24  ;;  %v54_v32 = vmul.f32 0.0625, %v47_v29  ;;  %v65_v33 = vmul.f32 %v378_v26, %v378_v26 }
  0x9b   :  { %v385_v34 = vsub.f32 %v21_v8, %v50_v30  ;;  %v76_v35 = vsel %vm28_vm0, %v64_v31, 0.0  ;;  %v388_v36 = vsub.f32 %v25_v9, %v54_v32  ;;  %v79_v38 = vsel %vm28_vm0, %v65_v33, 0.0 }
  0x9c   :  { %77 = vadd.xlane.f32.xlu1 %v76_v35  ;;  %68 = vadd.xlane.f32.xlu0 %v67_v28 }
  0x9d   :  { %v62_v37 = vmul.f32 %v385_v34, %v385_v34  ;;  %v66_v39 = vmul.f32 %v388_v36, %v388_v36 }
  0x9f   :  { %v70_v40 = vsel %vm28_vm0, %v62_v37, 0.0  ;;  %v82_v41 = vsel %vm44_vm1, %v66_v39, 0.0 }
  0xa0   :  { %71 = vadd.xlane.f32.xlu0 %v70_v40  ;;  %80 = vadd.xlane.f32.xlu1 %v79_v38 }
  0xa4   :  { %83 = vadd.xlane.f32.xlu1 %v82_v41 }
 0x125   :  { %v75_v45 = vpop.xlane.xlu0 %74 }
 0x126   :  { %v87_v46 = vmul.f32 0.0625, %v75_v45 }
 0x128   :  { %v93_v47 = vadd.f32 1e-05, %v87_v46 }
 0x129   :  { %v69_v48 = vpop.xlane.xlu0 %68  ;;  %v78_v49 = vpop.xlane.xlu1 %77 }
 0x12a   :  { %301 = vrsqrt.f32 %v93_v47  ;;  %v85_v50 = vmul.f32 0.0625, %v69_v48  ;;  %v88_v51 = vmul.f32 0.0625, %v78_v49 }
 0x12c   :  { %v91_v52 = vadd.f32 1e-05, %v85_v50  ;;  %v94_v53 = vadd.f32 1e-05, %v88_v51 }
 0x12d   :  { %v72_v54 = vpop.xlane.xlu0 %71  ;;  %v81_v55 = vpop.xlane.xlu1 %80 }
 0x12e   :  { %303 = vrsqrt.f32 %v91_v52  ;;  %v86_v56 = vmul.f32 0.0625, %v72_v54  ;;  %v89_v57 = vmul.f32 0.0625, %v81_v55 }
 0x12f   :  { %305 = vrsqrt.f32 %v94_v53 }
 0x130   :  { %v92_v58 = vadd.f32 1e-05, %v86_v56  ;;  %v95_v59 = vadd.f32 1e-05, %v89_v57 }
 0x131   :  { %v84_v60 = vpop.xlane.xlu1 %83 }
 0x132   :  { %307 = vrsqrt.f32 %v92_v58  ;;  %v90_v61 = vmul.f32 0.0625, %v84_v60 }
 0x133   :  { %309 = vrsqrt.f32 %v95_v59 }
 0x134   :  { %v302_v62 = vpop.eup %301  ;;  %v96_v63 = vadd.f32 1e-05, %v90_v61 }
 0x135   :  { %v105_v1 = vmul.f32 %v302_v62, %v367_v16 }
 0x136   :  { %311 = vrsqrt.f32 %v96_v63 }
 0x137   :  { %v117_v3 = vmul.f32 %v265_v0, %v105_v1 }
 0x138   :  { %v304_v4 = vpop.eup %303 }
 0x139   :  { %v306_v5 = vpop.eup %305  ;;  %v129_v6 = vadd.f32 %v266_v2, %v117_v3  ;;  %v103_v7 = vmul.f32 %v304_v4, %v369_v17 }
 0x13a   :  { %v106_v8 = vmul.f32 %v306_v5, %v375_v24 }
 0x13b   :  { %289 = vmatprep.mubr.msk.f32.mxu1 %vm28_vm0, %v129_v6  ;;  %v115_v9 = vmul.f32 %v265_v0, %v103_v7 }
 0x13c   :  { %v308_v10 = vpop.eup %307  ;;  %v118_v11 = vmul.f32 %v265_v0, %v106_v8 }
 0x13d   :  { %v310_v12 = vpop.eup %309  ;;  %v127_v13 = vadd.f32 %v266_v2, %v115_v9  ;;  %v104_v14 = vmul.f32 %v308_v10, %v385_v34 }
 0x13e   :  { %v130_v15 = vadd.f32 %v266_v2, %v118_v11  ;;  %v107_v16 = vmul.f32 %v310_v12, %v378_v26 }
 0x13f   :  { %286 = vmatprep.mubr.msk.f32.mxu0 %vm28_vm0, %v127_v13  ;;  %v116_v18 = vmul.f32 %v265_v0, %v104_v14 }
 0x140   :  { %v312_v19 = vpop.eup %311  ;;  %290 = vmatmul.mubr.msk.f32.vlgmr.msra.gmra.mrb[0].mxu1 %vm28_vm0, %v130_v15  ;;  %v119_v17 = vmul.f32 %v265_v0, %v107_v16 }
 0x141   :  { %v128_v20 = vadd.f32 %v266_v2, %v116_v18  ;;  %v108_v21 = vmul.f32 %v312_v19, %v388_v36 }
 0x142   :  { %v131_v22 = vadd.f32 %v266_v2, %v119_v17 }
 0x143   :  { %287 = vmatmul.mubr.msk.f32.vlgmr.msra.gmra.mrb[0].mxu0 %vm28_vm0, %v128_v20  ;;  %v120_v23 = vmul.f32 %v265_v0, %v108_v21 }
 0x144   :  { %292 = vmatprep.mubr.msk.f32.mxu1 %vm28_vm0, %v131_v22 }
 0x145   :  { %v132_v24 = vadd.f32 %v266_v2, %v120_v23 }
 0x147   :  { %293 = vmatmul.mubr.msk.f32.gmra.mrb[2].mxu1 %vm28_vm0, %v132_v24 }
 0x213   :  { %v291_v26 = vpop.f32.mrb[0].mxu1 }
 0x214   :  { %v242_v27 = vadd.f32 %v291_v26, %v267_v25  ;;  %v236_v28 = vpop.f32.mrb[1].mxu1 }
 0x215   :  { %v237_v29 = vadd.f32 %v267_v25, %v236_v28 }
 0x216   :  { %258 = vst.msk [vmem:[%s453_s5 + $0x18] sm:$0xff] %vm28_vm0, %v242_v27  ;;  %v288_v30 = vpop.f32.mrb[0].mxu0 }
 0x217   :  { %257 = vst.msk [vmem:[%s453_s5 + $0x10] sm:$0xff] %vm28_vm0, %v237_v29  ;;  %v232_v31 = vadd.f32 %v288_v30, %v267_v25  ;;  %v226_v32 = vpop.f32.mrb[1].mxu0 }
 0x218   :  { %v227_v33 = vadd.f32 %v267_v25, %v226_v32 }
 0x219   :  { %256 = vst.msk [vmem:[%s453_s5 + $0x8] sm:$0xff] %vm28_vm0, %v232_v31 }
 0x21a   :  { %255 = vst.msk [vmem:[%s453_s5] sm:$0xff] %vm28_vm0, %v227_v33  ;;  %v294_v34 = vpop.f32.mrb[2].mxu1 }
 0x21b   :  { %v252_v35 = vadd.f32 %v294_v34, %v267_v25  ;;  %v246_v36 = vpop.f32.mrb[3].mxu1 }
 0x21c   :  { %v247_v37 = vadd.f32 %v267_v25, %v246_v36 }
 0x21d   :  { %260 = vst.msk [vmem:[%s453_s5 + $0x28] sm:$0xf] %vm44_vm1, %v252_v35 }
 0x21e   :  { %259 = vst.msk [vmem:[%s453_s5 + $0x20] sm:$0xff] %vm28_vm0, %v247_v37 }

// kernel: separation_forward.12
= control target key start
LH: loop header
LB: loop body
LE: loop exit
PB: predicated region body
PF: predicated region fallthrough
CT: control target
= control target key end

     0   :  { %s1713_s13 = smov 0   ;;  %s1715_s14 = smov 0   ;;  %s2044_s0 = inlined_call_operand.vmem [shape: f32[2,8,8,16], index: 0, kind: input, shape index: {}]   ;;  %s2045_s1 = inlined_call_operand.vmem [shape: f32[16,128], index: 1, kind: input, shape index: {}]   ;;  %s2046_s2 = inlined_call_operand.vmem [shape: f32[1,128], index: 2, kind: input, shape index: {}]   ;;  %s2047_s3 = inlined_call_operand.vmem [shape: f32[32,128], index: 3, kind: input, shape index: {}]   ;;  %s2048_s4 = inlined_call_operand.vmem [shape: f32[32,16], index: 4, kind: input, shape index: {}]   ;;  %s2049_s5 = inlined_call_operand.vmem [shape: f32[1,16], index: 5, kind: input, shape index: {}]   ;;  %s2050_s6 = inlined_call_operand.vmem [shape: f32[1,16], index: 6, kind: input, shape index: {}]   ;;  %s2051_s7 = inlined_call_operand.vmem [shape: f32[1,16], index: 7, kind: input, shape index: {}]   ;;  %s2052_s8 = inlined_call_operand.vmem [shape: f32[1,16], index: 8, kind: input, shape index: {}]   ;;  %s2053_s9 = inlined_call_operand.vmem [shape: f32[1,16], index: 9, kind: input, shape index: {}]   ;;  %s2054_s10 = inlined_call_operand.vmem [shape: f32[2,8,8,16], index: 10, kind: output, shape index: {}]  }
   0x1   :  { %s1717_s15 = smov 0  }
   0x2 LB: > { %s32_s16 = sadd.s32 1, %s1627_s14  ;;  %p1328_p0 = scmp.ge.s32.totalorder %s1631_s15, 1  ;;  %s1631_s15 = sphi %s1717_s15, %s20_s15   ;;  %s1627_s14 = sphi %s1715_s14, %s2056_s14   ;;  %s1623_s13 = sphi %s1713_s13, %s2055_s13  }
   0x3   : > { %p34_p1 = scmp.ge.s32.totalorder %s32_s16, 2  ;;  %p331_p2 = scmp.lt.s32.totalorder %s1631_s15, 3 }
   0x5   : > { %s2058_s16 = smov (%p34_p1, %s32_s16), 0  ;;  %p332_p3 = pnand %p1328_p0, %p331_p2 }
   0x6   : > { %v399_v0 = vld [vmem:[%s2045_s1] sm:$0xff] (!%p332_p3)  ;;  %v400_v1 = vld [vmem:[%s2045_s1 + $0x8] sm:$0xff] (!%p332_p3)  ;;  %p375_p4 = scmp.lt.s32.totalorder (!%p332_p3), %s1623_s13, 1  ;;  %vm408_vm0 = vcmask (!%p332_p3), 130048   ;;  %vm546_vm1 = vcmask (!%p332_p3), 519168   ;;  %v1793_v28 = vld [vmem:[%s2047_s3 + $0x10] sm:$0xff] (!%p332_p3) }
   0x7   : > { %335 = sbr.rel (%p332_p3) target bundleno = 2062 (0x80e), region = 60  ;;  %v1456_v2 = vpack.c.bf16 (!%p332_p3), %v400_v1, %v399_v0  ;;  %v1333_v11 = vld [vmem:[%s2046_s2] ss:$0 sm:$0xff] (!%p332_p3)  ;;  %v1788_v27 = vld [vmem:[%s2047_s3 + $0x8] sm:$0xff] (!%p332_p3)  ;;  %s1649_s19 = smov (!%p332_p3), 64   ;;  %v1800_v33 = vld [vmem:[%s2047_s3 + $0x18] sm:$0xff] (!%p332_p3) }
   0x8   : > { %v1783_v26 = vld [vmem:[%s2047_s3] sm:$0xff] (!%p332_p3)  ;;  %v1816_v48 = vmov (!%p332_p3), 0.0   ;;  %v1818_v49 = vmov (!%p332_p3), 0.0   ;;  %v1820_v50 = vmov (!%p332_p3), 0.0   ;;  %s1822_s22 = smov (!%p332_p3), 0  }
   0x9   : > { %1457 = vmatprep.subr.bf16.mxu0 (!%p332_p3), %v1456_v2  ;;  %1474 = vmatprep.subr.bf16.mxu1 (!%p332_p3), %v1456_v2 }
   0xa   : > { %1459 = vmatpush3.bf16.msra.mxu0 (!%p332_p3), %v1456_v2  ;;  %1475 = vmatpush3.bf16.msra.mxu1 (!%p332_p3), %v1456_v2 }
   0xe   : > { %s2060_s13 = smov (!%p375_p4, %s1623_s13), 1 }
   0xf   : > { %s1372_s21 = sshll.u32 %s2060_s13, 6 }
  0x10   : > { %s382_s24 = scalar_lea.vmem %s2044_s0, %s1372_s21  ;;  %s1743_s27 = scalar_lea.vmem %s2054_s10, %s1372_s21 }
  0x11   : > { %v1745_v3 = vld [vmem:[%s382_s24] sm:$0xff]  ;;  %v1749_v5 = vld [vmem:[%s382_s24 + $0x8] sm:$0xff]  ;;  %v1757_v7 = vld [vmem:[%s382_s24 + $0x10] sm:$0xff] }
  0x12   : > { %v1747_v4 = vld [vmem:[%s382_s24 + $0x20] sm:$0xff]  ;;  %1413 = vmatprep.mubr.msk.f32.mxu0 %vm408_vm0, %v1745_v3  ;;  %v1755_v6 = vld [vmem:[%s382_s24 + $0x28] sm:$0xff]  ;;  %v1763_v8 = vld [vmem:[%s382_s24 + $0x30] sm:$0xff] }
  0x13   : > { %1419 = vmatprep.mubr.msk.f32.mxu1 %vm408_vm0, %v1747_v4  ;;  %1414 = vmatmul.mubr.msk.f32.vlgmr.msra.gmra.mrb[0].mxu0 %vm408_vm0, %v1749_v5  ;;  %v1767_v9 = vld [vmem:[%s382_s24 + $0x18] sm:$0xff] }
  0x14   : > { %1420 = vmatmul.mubr.msk.f32.vlgmr.msra.gmra.mrb[0].mxu1 %vm408_vm0, %v1755_v6  ;;  %1416 = vmatprep.mubr.msk.f32.mxu0 %vm408_vm0, %v1757_v7  ;;  %v1771_v10 = vld [vmem:[%s382_s24 + $0x38] sm:$0xff] }
  0x15   : > { %1422 = vmatprep.mubr.msk.f32.mxu1 %vm408_vm0, %v1763_v8 }
  0x17   : > { %1417 = vmatmul.mubr.msk.f32.gmra.mrb[2].mxu0 %vm408_vm0, %v1767_v9 }
  0x18   : > { %1423 = vmatmul.mubr.msk.f32.gmra.mrb[2].mxu1 %vm408_vm0, %v1771_v10 }
  0xe6   : > { %v1415_v12 = vpop.f32.mrb[0].mxu0 }
  0xe7   : > { %v1421_v13 = vpop.f32.mrb[0].mxu1  ;;  %v505_v14 = vadd.f32 %v1415_v12, %v1333_v11  ;;  %v499_v16 = vpop.f32.mrb[1].mxu0 }
  0xe8   : > { %v525_v15 = vadd.f32 %v1421_v13, %v1333_v11  ;;  %v519_v17 = vpop.f32.mrb[1].mxu1  ;;  %v500_v18 = vadd.f32 %v1333_v11, %v499_v16 }
  0xe9   : > { %v520_v19 = vadd.f32 %v1333_v11, %v519_v17  ;;  %v539_v20 = vpack.c.bf16 %v505_v14, %v505_v14 }
  0xea   : > { %v543_v21 = vpack.c.bf16 %v525_v15, %v525_v15  ;;  %v538_v22 = vpack.c.bf16 %v500_v18, %v500_v18  ;;  %v1418_v24 = vpop.f32.mrb[2].mxu0 }
  0xeb   : > { %v542_v23 = vpack.c.bf16 %v520_v19, %v520_v19  ;;  %v1424_v25 = vpop.f32.mrb[2].mxu1  ;;  %548 = vst.msk [vmem:[#allocation2 + $0x4] sm:$0xf] %vm546_vm1, %v539_v20  ;;  %v515_v29 = vadd.f32 %v1418_v24, %v1333_v11  ;;  %581 = vrot.lane.b32.xlu0 %v539_v20, %s1649_s19  ;;  %v509_v30 = vpop.f32.mrb[3].mxu0 }
  0xec   : > { %552 = vst.msk [vmem:[#allocation2 + $0x14] sm:$0xf] %vm546_vm1, %v543_v21  ;;  %589 = vrot.lane.b32.xlu1 %v543_v21, %s1649_s19  ;;  %v535_v31 = vadd.f32 %v1424_v25, %v1333_v11  ;;  %v529_v32 = vpop.f32.mrb[3].mxu1  ;;  %547 = vst.msk [vmem:[#allocation2] sm:$0xf] %vm546_vm1, %v538_v22  ;;  %v510_v34 = vadd.f32 %v1333_v11, %v509_v30 }
  0xed   : > { %551 = vst.msk [vmem:[#allocation2 + $0x10] sm:$0xf] %vm546_vm1, %v542_v23  ;;  %v530_v35 = vadd.f32 %v1333_v11, %v529_v32  ;;  %v541_v36 = vpack.c.bf16 %v515_v29, %v515_v29 }
  0xee   : > { %v545_v37 = vpack.c.bf16 %v535_v31, %v535_v31  ;;  %v540_v38 = vpack.c.bf16 %v510_v34, %v510_v34 }
  0xef   : > { %v544_v39 = vpack.c.bf16 %v530_v35, %v530_v35  ;;  %550 = vst.msk [vmem:[#allocation2 + $0xc] sm:$0xf] %vm546_vm1, %v541_v36  ;;  %579 = vrot.lane.b32.xlu0 %v538_v22, %s1649_s19 }
  0xf0   : > { %585 = vrot.lane.b32.xlu1 %v541_v36, %s1649_s19  ;;  %554 = vst.msk [vmem:[#allocation2 + $0x1c] sm:$0xf] %vm546_vm1, %v545_v37  ;;  %549 = vst.msk [vmem:[#allocation2 + $0x8] sm:$0xf] %vm546_vm1, %v540_v38 }
  0xf1   : > { %553 = vst.msk [vmem:[#allocation2 + $0x18] sm:$0xf] %vm546_vm1, %v544_v39 }
  0xf3   : > { %587 = vrot.lane.b32.xlu0 %v542_v23, %s1649_s19 }
  0xf4   : > { %583 = vrot.lane.b32.xlu1 %v540_v38, %s1649_s19 }
  0xf7   : > { %591 = vrot.lane.b32.xlu0 %v544_v39, %s1649_s19 }
  0xf8   : > { %593 = vrot.lane.b32.xlu1 %v545_v37, %s1649_s19 }
 0x15d   : > { %v582_v41 = vpop.permute.xlu0 %581 }
 0x15e   : > { %v590_v40 = vpop.permute.xlu1 %589  ;;  %604 = vst.msk [vmem:[#allocation3 + $0x4] sm:$0xf] %vm546_vm1, %v582_v41 }
 0x15f   : > { %608 = vst.msk [vmem:[#allocation3 + $0x14] sm:$0xf] %vm546_vm1, %v590_v40 }
 0x161   : > { %v580_v43 = vpop.permute.xlu0 %579 }
 0x162   : > { %v586_v42 = vpop.permute.xlu1 %585  ;;  %603 = vst.msk [vmem:[#allocation3] sm:$0xf] %vm546_vm1, %v580_v43 }
 0x163   : > { %606 = vst.msk [vmem:[#allocation3 + $0xc] sm:$0xf] %vm546_vm1, %v586_v42 }
 0x165   : > { %v588_v45 = vpop.permute.xlu0 %587 }
 0x166   : > { %v584_v44 = vpop.permute.xlu1 %583  ;;  %607 = vst.msk [vmem:[#allocation3 + $0x10] sm:$0xf] %vm546_vm1, %v588_v45 }
 0x167   : > { %605 = vst.msk [vmem:[#allocation3 + $0x8] sm:$0xf] %vm546_vm1, %v584_v44 }
 0x169   : > { %v592_v47 = vpop.permute.xlu0 %591 }
 0x16a   : > { %v594_v46 = vpop.permute.xlu1 %593  ;;  %609 = vst.msk [vmem:[#allocation3 + $0x18] sm:$0xf] %vm546_vm1, %v592_v47 }
 0x16b   : > { %610 = vst.msk [vmem:[#allocation3 + $0x1c] sm:$0xf] %vm546_vm1, %v594_v46 }
 0x16c LB: >> { %v1461_v51 = vpack.c.bf16 %v1788_v27, %v1783_v26  ;;  %v1650_v52 = vmov 0.0|0.0   ;;  %v1464_v53 = vpack.c.bf16 %v1800_v33, %v1793_v28  ;;  %vm1651_vm2 = vmmov 0   ;;  %s1351_s23 = sshll.u32 %s1647_s22, 2  ;;  %s1653_s25 = smov 64   ;;  %s1647_s22 = sphi %s1822_s22, %s620_s22   ;;  %v1643_v50 = vphi %v1820_v50, %v776_v50   ;;  %v1639_v49 = vphi %v1818_v49, %v737_v49   ;;  %v1635_v48 = vphi %v1816_v48, %v754_v48  }
 0x16d   : >> { %1460 = vmatprep.subr.bf16.mxu0 %v1650_v52  ;;  %v1652_v54 = vmov 0.0   ;;  %vm625_vm3 = vcmask 261120   ;;  %s700_s24 = scalar_lea.vmem [#allocation2], %s1351_s23  ;;  %s1654_s26 = smov 80   ;;  %vm774_vm4 = vcmask 261248  }
 0x16e   : >> { %1462 = vmatpush3.bf16.msra.mxu0 %v1461_v51  ;;  %1433 = vmatprep.mubr.msk.f32.mxu0 %vm1651_vm2, %v1652_v54  ;;  %v701_v55 = vld [vmem:[%s700_s24] sm:$0xf]  ;;  %s624_s28 = ssub.s32 7, %s1647_s22  ;;  %s1655_s11 = smov 16  }
 0x16f   : >> { %1463 = vmatprep.subr.bf16.mxu0 %v1650_v52  ;;  %v702_v56 = vunpack.c.l.bf16 %v701_v55  ;;  %s1352_s29 = sshll.u32 %s624_s28, 2  ;;  %s1656_s12 = smov 96  }
 0x170   : >> { %s705_s30 = scalar_lea.vmem [#allocation3], %s1352_s29  ;;  %s1355_s13 = sshll.u32 %s1647_s22, 3 }
 0x171   : >> { %s1657_s17 = smov 112   ;;  %s766_s18 = scalar_lea.vmem [#allocation4], %s1355_s13 }
 0x172   : >> { %1465 = vmatpush3.bf16.msra.mxu0 %v1464_v53  ;;  %v706_v62 = vld [vmem:[%s705_s30] sm:$0xf]  ;;  %s1356_s19 = sshll.u32 %s624_s28, 3  ;;  %s620_s22 = sadd.s32 1, %s1647_s22  }
 0x173   : >> { %v707_v63 = vunpack.c.l.bf16 %v706_v62  ;;  %s773_s20 = scalar_lea.vmem [#allocation4], %s1356_s19  ;;  %p617_p5 = scmp.ge.s32.totalorder %s620_s22, 8  }
 0x174   : > { %v785_v38 = vld [vmem:[%s2048_s4] sm:$0xff] (%p617_p5)  ;;  %v786_v39 = vld [vmem:[%s2048_s4 + $0x8] sm:$0xff] (%p617_p5)  ;;  %v787_v40 = vld [vmem:[%s2048_s4 + $0x10] sm:$0xff] (%p617_p5) }
 0x175   : >> { %1434 = vmatmul.mubr.msk.f32.vlgmr.msra.gmra.mrb[0].mxu0 %vm625_vm3, %v1643_v50  ;;  %v1466_v41 = vpack.c.bf16 (%p617_p5), %v786_v39, %v785_v38  ;;  %v788_v42 = vld [vmem:[%s2048_s4 + $0x18] sm:$0xff] (%p617_p5) }
 0x176   : > { %v1470_v45 = vpack.c.bf16 (%p617_p5), %v788_v42, %v787_v40 }
 0x177   : > { %1467 = vmatprep.subr.bf16.mxu0 (%p617_p5), %v1466_v41  ;;  %1476 = vmatprep.subr.bf16.mxu1 (%p617_p5), %v1466_v41 }
 0x178   : > { %1469 = vmatpush3.bf16.msra.mxu0 (%p617_p5), %v1466_v41  ;;  %1478 = vmatpush3.bf16.msra.mxu1 (%p617_p5), %v1466_v41 }
 0x179   : > { %1471 = vmatprep.subr.bf16.mxu0 (%p617_p5), %v1470_v45  ;;  %1477 = vmatprep.subr.bf16.mxu1 (%p617_p5), %v1470_v45 }
 0x17c   : > { %1473 = vmatpush3.bf16.msra.mxu0 (%p617_p5), %v1470_v45  ;;  %1479 = vmatpush3.bf16.msra.mxu1 (%p617_p5), %v1470_v45 }
 0x248   : >> { %v695_v57 = vpop.f32.mrb[0].mxu0 }
 0x249   : >> { %v703_v58 = vadd.f32 %v702_v56, %v695_v57  ;;  %709 = vrot.lane.b32.xlu0 %v695_v57, %s1653_s25  ;;  %v1435_v59 = vpop.f32.mrb[1].mxu0 }
 0x24b   : >> { %1545 = vtanh.f32 %v703_v58  ;;  %v1353_v61 = vmul.f32 -1.442695, %v703_v58 }
 0x24d   : >> { %1547 = vpow2.f32 %v1353_v61 }
 0x255   : >> { %v1546_v60 = vpop.eup %1545 }
 0x256   : >> { %729 = vrot.lane.b32.xlu0 %v1546_v60, %s1654_s26 }
 0x257   : >> { %v1548_v0 = vpop.eup %1547 }
 0x258   : >> { %v716_v2 = vadd.f32 1.0, %v1548_v0 }
 0x2bb   : >> { %v710_v1 = vpop.permute.xlu0 %709 }
 0x2bc   : >> { %v712_v11 = vadd.f32 %v710_v1, %v707_v63 }
 0x2be   : >> { %1549 = vtanh.f32 %v712_v11  ;;  %v1354_v16 = vmul.f32 -1.442695, %v712_v11 }
 0x2bf   : >> { %1551 = vrcp.f32 %v716_v2 }
 0x2c0   : >> { %1553 = vpow2.f32 %v1354_v16 }
 0x2c8   : >> { %v1550_v12 = vpop.eup %1549  ;;  %v730_v13 = vpop.permute.xlu0 %729 }
 0x2c9   : >> { %746 = vrot.lane.b32.xlu1 %v1550_v12, %s1654_s26  ;;  %v1552_v14 = vpop.eup %1551 }
 0x2ca   : >> { %v732_v15 = vmul.f32 %v1552_v14, %v730_v13  ;;  %v1554_v17 = vpop.eup %1553  ;;  %v727_v22 = vmul.f32 %v1639_v49, %v1552_v14 }
 0x2cb   : >> { %v723_v18 = vadd.f32 1.0, %v1554_v17 }
 0x2cd   : >> { %734 = vrot.lane.b32.xlu1 %v732_v15, %s1655_s11  ;;  %1555 = vrcp.f32 %v723_v18 }
 0x2d7   : >> { %v1556_v19 = vpop.eup %1555 }
 0x2d8   : >> { %v744_v25 = vmul.f32 %v1635_v48, %v1556_v19 }
 0x33b   : >> { %v747_v20 = vpop.permute.xlu1 %746 }
 0x33c   : >> { %v749_v21 = vmul.f32 %v1556_v19, %v747_v20 }
 0x33e   : >> { %751 = vrot.lane.b32.xlu0 %v749_v21, %s1655_s11 }
 0x33f   : >> { %v735_v23 = vpop.permute.xlu1 %734 }
 0x340   : >> { %v737_v49 = vadd.f32 %v735_v23, %v727_v22  }
 0x342   : >> { %1557 = vtanh.f32 %v737_v49 }
 0x34c   : >> { %v1558_v24 = vpop.eup %1557 }
 0x34d   : >> { %740 = vrot.lane.b32.xlu1 %v1558_v24, %s1655_s11 }
 0x3b0   : >> { %v752_v29 = vpop.permute.xlu0 %751 }
 0x3b1   : >> { %v754_v48 = vadd.f32 %v752_v29, %v744_v25  }
 0x3b3   : >> { %1559 = vtanh.f32 %v754_v48  ;;  %v1357_v48 = vld [vmem:[%s2049_s5] ss:$0 sm:$0xff] (%p617_p5) }
 0x3bd   : >> { %v1560_v30 = vpop.eup %1559 }
 0x3be   : >> { %757 = vrot.lane.b32.xlu0 %v1560_v30, %s1655_s11 }
 0x3bf   : >> { %v741_v31 = vpop.permute.xlu1 %740 }
 0x3c0   : >> { %v743_v32 = vmul.f32 %v1552_v14, %v741_v31 }
 0x3c2   : >> { %762 = vrot.lane.b32.xlu1 %v743_v32, %s1656_s12 }
 0x430   : >> { %v758_v34 = vpop.permute.xlu0 %757 }
 0x431   : >> { %v760_v35 = vmul.f32 %v1556_v19, %v758_v34 }
 0x433   : >> { %769 = vrot.lane.b32.xlu0 %v760_v35, %s1657_s17 }
 0x434   : >> { %v763_v36 = vpop.permute.xlu1 %762 }
 0x435   : >> { %767 = vst.msk [vmem:[%s766_s18] sm:$0xff] %vm408_vm0, %v763_v36 }
 0x4a0   : > { %619 = sbr.rel (!%p617_p5) target bundleno = 364 (0x16c), region = 101 }
 0x4a5   : >> { %v770_v37 = vpop.permute.xlu0 %769 }
 0x4a6   : >> { %775 = vst.msk [vmem:[%s773_s20] sm:$0xff] %vm774_vm4, %v770_v37  ;;  %v776_v50 = vsel %vm408_vm0, %v763_v36, %v770_v37  }
 0x4ad   : > { %v777_v43 = vld [vmem:[#allocation4] sm:$0xff]  ;;  %v778_v26 = vld [vmem:[#allocation4 + $0x8] sm:$0xff]  ;;  %v779_v28 = vld [vmem:[#allocation4 + $0x10] sm:$0xff] }
 0x4ae   : > { %v781_v44 = vld [vmem:[#allocation4 + $0x20] sm:$0xff]  ;;  %1444 = vmatprep.mubr.msk.f32.mxu0 %vm625_vm3, %v777_v43  ;;  %v782_v27 = vld [vmem:[#allocation4 + $0x28] sm:$0xff]  ;;  %v783_v33 = vld [vmem:[#allocation4 + $0x30] sm:$0xff] }
 0x4af   : > { %1450 = vmatprep.mubr.msk.f32.mxu1 %vm625_vm3, %v781_v44  ;;  %1445 = vmatmul.mubr.msk.f32.vlgmr.msra.gmra.mrb[0].mxu0 %vm625_vm3, %v778_v26  ;;  %v780_v46 = vld [vmem:[#allocation4 + $0x18] sm:$0xff] }
 0x4b0   : > { %1451 = vmatmul.mubr.msk.f32.vlgmr.msra.gmra.mrb[0].mxu1 %vm625_vm3, %v782_v27  ;;  %1447 = vmatprep.mubr.msk.f32.mxu0 %vm625_vm3, %v779_v28  ;;  %v784_v47 = vld [vmem:[#allocation4 + $0x38] sm:$0xff] }
 0x4b1   : > { %1453 = vmatprep.mubr.msk.f32.mxu1 %vm625_vm3, %v783_v33 }
 0x4b3   : > { %1448 = vmatmul.mubr.msk.f32.gmra.mrb[2].mxu0 %vm625_vm3, %v780_v46 }
 0x4b4   : > { %1454 = vmatmul.mubr.msk.f32.gmra.mrb[2].mxu1 %vm625_vm3, %v784_v47 }
 0x582   : > { %v1446_v49 = vpop.f32.mrb[0].mxu0 }
 0x583   : > { %v1452_v50 = vpop.f32.mrb[0].mxu1  ;;  %v893_v51 = vadd.f32 %v1446_v49, %v1357_v48  ;;  %v887_v53 = vpop.f32.mrb[1].mxu0 }
 0x584   : > { %v913_v52 = vadd.f32 %v1452_v50, %v1357_v48  ;;  %v907_v54 = vpop.f32.mrb[1].mxu1  ;;  %v888_v55 = vadd.f32 %v1357_v48, %v887_v53 }
 0x585   : > { %v927_v56 = vadd.f32 %v893_v51, %v1749_v5  ;;  %v908_v59 = vadd.f32 %v1357_v48, %v907_v54 }
 0x586   : > { %v931_v57 = vadd.f32 %v913_v52, %v1755_v6  ;;  %v1449_v58 = vpop.f32.mrb[2].mxu0  ;;  %v926_v61 = vadd.f32 %v888_v55, %v1745_v3 }
 0x587   : > { %v1455_v60 = vpop.f32.mrb[2].mxu1  ;;  %v903_v62 = vadd.f32 %v1449_v58, %v1357_v48  ;;  %v939_v0 = vsel %vm408_vm0, %v927_v56, 0.0  ;;  %v897_v1 = vpop.f32.mrb[3].mxu0  ;;  %v930_v16 = vadd.f32 %v908_v59, %v1747_v4 }
 0x588   : > { %v951_v63 = vsel %vm408_vm0, %v931_v57, 0.0  ;;  %v917_v2 = vpop.f32.mrb[3].mxu1  ;;  %940 = vadd.xlane.f32.xlu0 %v939_v0  ;;  %v898_v11 = vadd.f32 %v1357_v48, %v897_v1  ;;  %v923_v13 = vadd.f32 %v1455_v60, %v1357_v48  ;;  %v936_v18 = vsel %vm408_vm0, %v926_v61, 0.0 }
 0x589   : > { %952 = vadd.xlane.f32.xlu1 %v951_v63  ;;  %v929_v12 = vadd.f32 %v903_v62, %v1767_v9  ;;  %v918_v14 = vadd.f32 %v1357_v48, %v917_v2  ;;  %v948_v22 = vsel %vm408_vm0, %v930_v16, 0.0 }
 0x58a   : > { %v928_v15 = vadd.f32 %v898_v11, %v1757_v7  ;;  %v933_v19 = vadd.f32 %v923_v13, %v1771_v10 }
 0x58b   : > { %v945_v17 = vsel %vm408_vm0, %v929_v12, 0.0  ;;  %v932_v20 = vadd.f32 %v918_v14, %v1763_v8 }
 0x58c   : > { %937 = vadd.xlane.f32.xlu0 %v936_v18  ;;  %v942_v21 = vsel %vm408_vm0, %v928_v15, 0.0  ;;  %v957_v23 = vsel %vm408_vm0, %v933_v19, 0.0 }
 0x58d   : > { %946 = vadd.xlane.f32.xlu1 %v945_v17  ;;  %v954_v24 = vsel %vm408_vm0, %v932_v20, 0.0 }
 0x590   : > { %949 = vadd.xlane.f32.xlu0 %v948_v22 }
 0x591   : > { %943 = vadd.xlane.f32.xlu1 %v942_v21 }
 0x594   : > { %955 = vadd.xlane.f32.xlu0 %v954_v24 }
 0x595   : > { %958 = vadd.xlane.f32.xlu1 %v957_v23 }
 0x615   : > { %v941_v29 = vpop.xlane.xlu0 %940 }
 0x616   : > { %v953_v25 = vpop.xlane.xlu1 %952  ;;  %v962_v31 = vmul.f32 0.0625, %v941_v29 }
 0x617   : > { %v966_v30 = vmul.f32 0.0625, %v953_v25 }
 0x618   : > { %v1897_v34 = vsub.f32 %v927_v56, %v962_v31 }
 0x619   : > { %v1895_v32 = vsub.f32 %v931_v57, %v966_v30  ;;  %v938_v36 = vpop.xlane.xlu0 %937 }
 0x61a   : > { %v947_v35 = vpop.xlane.xlu1 %946  ;;  %v961_v38 = vmul.f32 0.0625, %v938_v36  ;;  %v978_v39 = vmul.f32 %v1897_v34, %v1897_v34 }
 0x61b   : > { %v964_v37 = vmul.f32 0.0625, %v947_v35  ;;  %v982_v43 = vmul.f32 %v1895_v32, %v1895_v32 }
 0x61c   : > { %v1903_v41 = vsub.f32 %v926_v61, %v961_v38  ;;  %v988_v42 = vsel %vm408_vm0, %v978_v39, 0.0 }
 0x61d   : > { %v1901_v40 = vsub.f32 %v929_v12, %v964_v37  ;;  %989 = vadd.xlane.f32.xlu1 %v988_v42  ;;  %v950_v45 = vpop.xlane.xlu0 %949  ;;  %v1000_v48 = vsel %vm408_vm0, %v982_v43, 0.0  ;;  %v1366_v37 = vld [vmem:[%s2050_s6] ss:$0 sm:$0xff] }
 0x61e   : > { %v944_v44 = vpop.xlane.xlu1 %943  ;;  %v965_v27 = vmul.f32 0.0625, %v950_v45  ;;  %v977_v28 = vmul.f32 %v1903_v41, %v1903_v41  ;;  %v1367_v43 = vld [vmem:[%s2051_s7] ss:$0 sm:$0xff] }
 0x61f   : > { %v963_v26 = vmul.f32 0.0625, %v944_v44  ;;  %v980_v33 = vmul.f32 %v1901_v40, %v1901_v40 }
 0x620   : > { %v1914_v47 = vsub.f32 %v930_v16, %v965_v27  ;;  %v985_v49 = vsel %vm408_vm0, %v977_v28, 0.0 }
 0x621   : > { %v1912_v46 = vsub.f32 %v928_v15, %v963_v26  ;;  %1001 = vadd.xlane.f32.xlu1 %v1000_v48  ;;  %986 = vadd.xlane.f32.xlu0 %v985_v49  ;;  %v956_v51 = vpop.xlane.xlu0 %955  ;;  %v994_v55 = vsel %vm408_vm0, %v980_v33, 0.0 }
 0x622   : > { %v959_v50 = vpop.xlane.xlu1 %958  ;;  %v967_v53 = vmul.f32 0.0625, %v956_v51  ;;  %v981_v54 = vmul.f32 %v1914_v47, %v1914_v47 }
 0x623   : > { %v968_v52 = vmul.f32 0.0625, %v959_v50  ;;  %v979_v59 = vmul.f32 %v1912_v46, %v1912_v46 }
 0x624   : > { %v1923_v57 = vsub.f32 %v932_v20, %v967_v53  ;;  %v997_v58 = vsel %vm408_vm0, %v981_v54, 0.0 }
 0x625   : > { %v1921_v56 = vsub.f32 %v933_v19, %v968_v52  ;;  %995 = vadd.xlane.f32.xlu1 %v994_v55  ;;  %998 = vadd.xlane.f32.xlu0 %v997_v58  ;;  %v991_v62 = vsel %vm408_vm0, %v979_v59, 0.0 }
 0x626   : > { %v983_v63 = vmul.f32 %v1923_v57, %v1923_v57 }
 0x627   : > { %v984_v60 = vmul.f32 %v1921_v56, %v1921_v56 }
 0x628   : > { %v1003_v0 = vsel %vm408_vm0, %v983_v63, 0.0 }
 0x629   : > { %v1006_v61 = vsel %vm408_vm0, %v984_v60, 0.0  ;;  %992 = vadd.xlane.f32.xlu0 %v991_v62 }
 0x62a   : > { %1007 = vadd.xlane.f32.xlu1 %v1006_v61 }
 0x62d   : > { %1004 = vadd.xlane.f32.xlu0 %v1003_v0 }
 0x6aa   : > { %v990_v1 = vpop.xlane.xlu1 %989 }
 0x6ab   : > { %v1010_v2 = vmul.f32 0.0625, %v990_v1 }
 0x6ad   : > { %v1018_v11 = vadd.f32 1e-05, %v1010_v2 }
 0x6ae   : > { %v1002_v12 = vpop.xlane.xlu1 %1001  ;;  %v987_v13 = vpop.xlane.xlu0 %986 }
 0x6af   : > { %1561 = vrsqrt.f32 %v1018_v11  ;;  %v1014_v14 = vmul.f32 0.0625, %v1002_v12  ;;  %v1009_v15 = vmul.f32 0.0625, %v987_v13 }
 0x6b1   : > { %v1022_v16 = vadd.f32 1e-05, %v1014_v14  ;;  %v1017_v17 = vadd.f32 1e-05, %v1009_v15 }
 0x6b2   : > { %v996_v18 = vpop.xlane.xlu1 %995  ;;  %v999_v19 = vpop.xlane.xlu0 %998 }
 0x6b3   : > { %1563 = vrsqrt.f32 %v1022_v16  ;;  %v1012_v20 = vmul.f32 0.0625, %v996_v18  ;;  %v1013_v21 = vmul.f32 0.0625, %v999_v19 }
 0x6b4   : > { %1565 = vrsqrt.f32 %v1017_v17 }
 0x6b5   : > { %v1020_v22 = vadd.f32 1e-05, %v1012_v20  ;;  %v1021_v23 = vadd.f32 1e-05, %v1013_v21 }
 0x6b6   : > { %v993_v25 = vpop.xlane.xlu0 %992 }
 0x6b7   : > { %v1008_v24 = vpop.xlane.xlu1 %1007  ;;  %1567 = vrsqrt.f32 %v1020_v22  ;;  %v1011_v30 = vmul.f32 0.0625, %v993_v25 }
 0x6b8   : > { %v1016_v29 = vmul.f32 0.0625, %v1008_v24  ;;  %1569 = vrsqrt.f32 %v1021_v23 }
 0x6b9   : > { %v1562_v31 = vpop.eup %1561  ;;  %v1019_v36 = vadd.f32 1e-05, %v1011_v30 }
 0x6ba   : > { %v1024_v35 = vadd.f32 1e-05, %v1016_v29  ;;  %v1005_v38 = vpop.xlane.xlu0 %1004  ;;  %v1034_v39 = vmul.f32 %v1562_v31, %v1897_v34 }
 0x6bb   : > { %v1015_v42 = vmul.f32 0.0625, %v1005_v38 }
 0x6bc   : > { %1571 = vrsqrt.f32 %v1024_v35  ;;  %v1048_v44 = vmul.f32 %v1366_v37, %v1034_v39 }
 0x6bd   : > { %1573 = vrsqrt.f32 %v1019_v36  ;;  %v1564_v45 = vpop.eup %1563  ;;  %v1023_v26 = vadd.f32 1e-05, %v1015_v42 }
 0x6be   : > { %v1566_v27 = vpop.eup %1565  ;;  %v1062_v28 = vadd.f32 %v1367_v43, %v1048_v44  ;;  %v1038_v33 = vmul.f32 %v1564_v45, %v1895_v32 }
 0x6bf   : > { %1575 = vrsqrt.f32 %v1023_v26  ;;  %v1033_v48 = vmul.f32 %v1566_v27, %v1903_v41 }
 0x6c0   : > { %v1074_v49 = vsel %vm408_vm0, %v1062_v28, 0.0  ;;  %v1052_v34 = vmul.f32 %v1366_v37, %v1038_v33 }
 0x6c1   : > { %v1568_v50 = vpop.eup %1567  ;;  %1075 = vadd.xlane.f32.xlu1 %v1074_v49  ;;  %v1047_v51 = vmul.f32 %v1366_v37, %v1033_v48 }
 0x6c2   : > { %v1570_v52 = vpop.eup %1569  ;;  %v1066_v53 = vadd.f32 %v1367_v43, %v1052_v34  ;;  %v1036_v54 = vmul.f32 %v1568_v50, %v1901_v40 }
 0x6c3   : > { %v1061_v55 = vadd.f32 %v1367_v43, %v1047_v51  ;;  %v1037_v58 = vmul.f32 %v1570_v52, %v1914_v47 }
 0x6c4   : > { %v1086_v59 = vsel %vm408_vm0, %v1066_v53, 0.0  ;;  %v1050_v60 = vmul.f32 %v1366_v37, %v1036_v54 }
 0x6c5   : > { %1087 = vadd.xlane.f32.xlu1 %v1086_v59  ;;  %v1071_v41 = vsel %vm408_vm0, %v1061_v55, 0.0  ;;  %v1051_v61 = vmul.f32 %v1366_v37, %v1037_v58 }
 0x6c6   : > { %v1572_v32 = vpop.eup %1571  ;;  %1072 = vadd.xlane.f32.xlu0 %v1071_v41  ;;  %v1064_v63 = vadd.f32 %v1367_v43, %v1050_v60 }
 0x6c7   : > { %v1574_v62 = vpop.eup %1573  ;;  %v1040_v0 = vmul.f32 %v1572_v32, %v1921_v56  ;;  %v1065_v1 = vadd.f32 %v1367_v43, %v1051_v61 }
 0x6c8   : > { %v1035_v2 = vmul.f32 %v1574_v62, %v1912_v46  ;;  %v1080_v40 = vsel %vm408_vm0, %v1064_v63, 0.0 }
 0x6c9   : > { %v1054_v11 = vmul.f32 %v1366_v37, %v1040_v0  ;;  %v1576_v47 = vpop.eup %1575  ;;  %1081 = vadd.xlane.f32.xlu1 %v1080_v40  ;;  %v1083_v12 = vsel %vm408_vm0, %v1065_v1, 0.0 }
 0x6ca   : > { %v1049_v13 = vmul.f32 %v1366_v37, %v1035_v2  ;;  %1084 = vadd.xlane.f32.xlu0 %v1083_v12  ;;  %v1039_v15 = vmul.f32 %v1576_v47, %v1923_v57 }
 0x6cb   : > { %v1068_v14 = vadd.f32 %v1367_v43, %v1054_v11 }
 0x6cc   : > { %v1063_v16 = vadd.f32 %v1367_v43, %v1049_v13  ;;  %v1053_v18 = vmul.f32 %v1366_v37, %v1039_v15 }
 0x6cd   : > { %v1092_v17 = vsel %vm408_vm0, %v1068_v14, 0.0 }
 0x6ce   : > { %1093 = vadd.xlane.f32.xlu1 %v1092_v17  ;;  %v1077_v56 = vsel %vm408_vm0, %v1063_v16, 0.0  ;;  %v1067_v46 = vadd.f32 %v1367_v43, %v1053_v18 }
 0x6cf   : > { %1078 = vadd.xlane.f32.xlu0 %v1077_v56 }
 0x6d0   : > { %v1089_v19 = vsel %vm408_vm0, %v1067_v46, 0.0 }
 0x6d3   : > { %1090 = vadd.xlane.f32.xlu0 %v1089_v19 }
 0x74e   : > { %v1076_v20 = vpop.xlane.xlu1 %1075 }
 0x74f   : > { %v1096_v21 = vmul.f32 0.0625, %v1076_v20 }
 0x751   : > { %v1957_v22 = vsub.f32 %v1062_v28, %v1096_v21 }
 0x752   : > { %v1088_v23 = vpop.xlane.xlu1 %1087 }
 0x753   : > { %v1100_v24 = vmul.f32 0.0625, %v1088_v23  ;;  %v1073_v25 = vpop.xlane.xlu0 %1072  ;;  %v1112_v57 = vmul.f32 %v1957_v22, %v1957_v22 }
 0x754   : > { %v1095_v29 = vmul.f32 0.0625, %v1073_v25  ;;  %v1368_v25 = vld [vmem:[%s2052_s8] ss:$0 sm:$0xff] }
 0x755   : > { %v1961_v30 = vsub.f32 %v1066_v53, %v1100_v24  ;;  %v1122_v31 = vsel %vm408_vm0, %v1112_v57, 0.0 }
 0x756   : > { %v1964_v35 = vsub.f32 %v1061_v55, %v1095_v29  ;;  %1123 = vadd.xlane.f32.xlu1 %v1122_v31  ;;  %v1082_v36 = vpop.xlane.xlu1 %1081 }
 0x757   : > { %v1098_v37 = vmul.f32 0.0625, %v1082_v36  ;;  %v1085_v38 = vpop.xlane.xlu0 %1084  ;;  %v1116_v39 = vmul.f32 %v1961_v30, %v1961_v30  ;;  %v1369_v36 = vld [vmem:[%s2053_s9] ss:$0 sm:$0xff] }
 0x758   : > { %v1099_v42 = vmul.f32 0.0625, %v1085_v38  ;;  %v1111_v43 = vmul.f32 %v1964_v35, %v1964_v35 }
 0x759   : > { %v1970_v44 = vsub.f32 %v1064_v63, %v1098_v37  ;;  %v1134_v45 = vsel %vm408_vm0, %v1116_v39, 0.0 }
 0x75a   : > { %v1973_v26 = vsub.f32 %v1065_v1, %v1099_v42  ;;  %1135 = vadd.xlane.f32.xlu1 %v1134_v45  ;;  %v1119_v28 = vsel %vm408_vm0, %v1111_v43, 0.0 }
 0x75b   : > { %v1094_v27 = vpop.xlane.xlu1 %1093  ;;  %1120 = vadd.xlane.f32.xlu0 %v1119_v28  ;;  %v1114_v49 = vmul.f32 %v1970_v44, %v1970_v44 }
 0x75c   : > { %v1102_v33 = vmul.f32 0.0625, %v1094_v27  ;;  %v1079_v48 = vpop.xlane.xlu0 %1078  ;;  %v1115_v50 = vmul.f32 %v1973_v26, %v1973_v26 }
 0x75d   : > { %v1097_v34 = vmul.f32 0.0625, %v1079_v48  ;;  %v1128_v52 = vsel %vm408_vm0, %v1114_v49, 0.0 }
 0x75e   : > { %v1980_v51 = vsub.f32 %v1068_v14, %v1102_v33  ;;  %1129 = vadd.xlane.f32.xlu1 %v1128_v52  ;;  %v1131_v54 = vsel %vm408_vm0, %v1115_v50, 0.0 }
 0x75f   : > { %v1983_v53 = vsub.f32 %v1063_v16, %v1097_v34  ;;  %1132 = vadd.xlane.f32.xlu0 %v1131_v54 }
 0x760   : > { %v1091_v55 = vpop.xlane.xlu0 %1090  ;;  %v1118_v58 = vmul.f32 %v1980_v51, %v1980_v51 }
 0x761   : > { %v1101_v59 = vmul.f32 0.0625, %v1091_v55  ;;  %v1113_v60 = vmul.f32 %v1983_v53, %v1983_v53 }
 0x762   : > { %v1140_v32 = vsel %vm408_vm0, %v1118_v58, 0.0 }
 0x763   : > { %v1991_v41 = vsub.f32 %v1067_v46, %v1101_v59  ;;  %1141 = vadd.xlane.f32.xlu1 %v1140_v32  ;;  %v1125_v61 = vsel %vm408_vm0, %v1113_v60, 0.0 }
 0x764   : > { %1126 = vadd.xlane.f32.xlu0 %v1125_v61 }
 0x765   : > { %v1117_v62 = vmul.f32 %v1991_v41, %v1991_v41 }
 0x767   : > { %v1137_v63 = vsel %vm408_vm0, %v1117_v62, 0.0 }
 0x768   : > { %1138 = vadd.xlane.f32.xlu0 %v1137_v63 }
 0x7e3   : > { %v1124_v0 = vpop.xlane.xlu1 %1123 }
 0x7e4   : > { %v1144_v1 = vmul.f32 0.0625, %v1124_v0 }
 0x7e6   : > { %v1152_v2 = vadd.f32 1e-05, %v1144_v1 }
 0x7e7   : > { %v1136_v40 = vpop.xlane.xlu1 %1135 }
 0x7e8   : > { %1577 = vrsqrt.f32 %v1152_v2  ;;  %v1148_v11 = vmul.f32 0.0625, %v1136_v40  ;;  %v1121_v47 = vpop.xlane.xlu0 %1120 }
 0x7e9   : > { %v1143_v12 = vmul.f32 0.0625, %v1121_v47 }
 0x7ea   : > { %v1156_v13 = vadd.f32 1e-05, %v1148_v11 }
 0x7eb   : > { %v1151_v14 = vadd.f32 1e-05, %v1143_v12  ;;  %v1130_v15 = vpop.xlane.xlu1 %1129 }
 0x7ec   : > { %1579 = vrsqrt.f32 %v1156_v13  ;;  %v1146_v16 = vmul.f32 0.0625, %v1130_v15  ;;  %v1133_v17 = vpop.xlane.xlu0 %1132 }
 0x7ed   : > { %1581 = vrsqrt.f32 %v1151_v14  ;;  %v1147_v18 = vmul.f32 0.0625, %v1133_v17 }
 0x7ee   : > { %v1154_v56 = vadd.f32 1e-05, %v1146_v16 }
 0x7ef   : > { %v1155_v46 = vadd.f32 1e-05, %v1147_v18 }
 0x7f0   : > { %v1142_v19 = vpop.xlane.xlu1 %1141  ;;  %1583 = vrsqrt.f32 %v1154_v56 }
 0x7f1   : > { %v1150_v20 = vmul.f32 0.0625, %v1142_v19  ;;  %v1127_v21 = vpop.xlane.xlu0 %1126  ;;  %1585 = vrsqrt.f32 %v1155_v46 }
 0x7f2   : > { %v1145_v23 = vmul.f32 0.0625, %v1127_v21  ;;  %v1578_v24 = vpop.eup %1577 }
 0x7f3   : > { %v1158_v57 = vadd.f32 1e-05, %v1150_v20  ;;  %v1168_v29 = vmul.f32 %v1578_v24, %v1957_v22 }
 0x7f4   : > { %v1153_v31 = vadd.f32 1e-05, %v1145_v23 }
 0x7f5   : > { %1587 = vrsqrt.f32 %v1158_v57  ;;  %v1139_v37 = vpop.xlane.xlu0 %1138  ;;  %v1182_v38 = vmul.f32 %v1368_v25, %v1168_v29 }
 0x7f6   : > { %1589 = vrsqrt.f32 %v1153_v31  ;;  %v1149_v39 = vmul.f32 0.0625, %v1139_v37  ;;  %v1580_v42 = vpop.eup %1579 }
 0x7f7   : > { %v1582_v43 = vpop.eup %1581  ;;  %v1196_v45 = vadd.f32 %v1369_v36, %v1182_v38  ;;  %v1172_v27 = vmul.f32 %v1580_v42, %v1961_v30 }
 0x7f8   : > { %v1157_v28 = vadd.f32 1e-05, %v1149_v39  ;;  %v1167_v33 = vmul.f32 %v1582_v43, %v1964_v35 }
 0x7f9   : > { %v1204_v22 = vadd.f32 %v1196_v45, %v1749_v5  ;;  %v1186_v48 = vmul.f32 %v1368_v25, %v1172_v27 }
 0x7fa   : > { %1591 = vrsqrt.f32 %v1157_v28  ;;  %v1584_v49 = vpop.eup %1583  ;;  %v1181_v34 = vmul.f32 %v1368_v25, %v1167_v33 }
 0x7fb   : > { %v1586_v50 = vpop.eup %1585  ;;  %1212 = vst.msk [vmem:[%s1743_s27 + $0x8] sm:$0xff] %vm408_vm0, %v1204_v22  ;;  %v1200_v52 = vadd.f32 %v1369_v36, %v1186_v48  ;;  %v1170_v54 = vmul.f32 %v1584_v49, %v1970_v44 }
 0x7fc   : > { %v1195_v55 = vadd.f32 %v1369_v36, %v1181_v34  ;;  %v1171_v30 = vmul.f32 %v1586_v50, %v1973_v26 }
 0x7fd   : > { %v1208_v58 = vadd.f32 %v1200_v52, %v1755_v6  ;;  %v1184_v35 = vmul.f32 %v1368_v25, %v1170_v54 }
 0x7fe   : > { %v1203_v59 = vadd.f32 %v1195_v55, %v1745_v3  ;;  %v1185_v60 = vmul.f32 %v1368_v25, %v1171_v30 }
 0x7ff   : > { %v1588_v5 = vpop.eup %1587  ;;  %1216 = vst.msk [vmem:[%s1743_s27 + $0x28] sm:$0xff] %vm408_vm0, %v1208_v58  ;;  %v1198_v61 = vadd.f32 %v1369_v36, %v1184_v35 }
 0x800   : > { %v1590_v32 = vpop.eup %1589  ;;  %v1174_v62 = vmul.f32 %v1588_v5, %v1980_v51  ;;  %1211 = vst.msk [vmem:[%s1743_s27] sm:$0xff] %vm408_vm0, %v1203_v59  ;;  %v1199_v44 = vadd.f32 %v1369_v36, %v1185_v60 }
 0x801   : > { %v1169_v6 = vmul.f32 %v1590_v32, %v1983_v53  ;;  %v1206_v26 = vadd.f32 %v1198_v61, %v1767_v9 }
 0x802   : > { %v1188_v63 = vmul.f32 %v1368_v25, %v1174_v62  ;;  %v1207_v3 = vadd.f32 %v1199_v44, %v1747_v4 }
 0x803   : > { %v1183_v0 = vmul.f32 %v1368_v25, %v1169_v6  ;;  %1214 = vst.msk [vmem:[%s1743_s27 + $0x18] sm:$0xff] %vm408_vm0, %v1206_v26 }
 0x804   : > { %v1592_v1 = vpop.eup %1591  ;;  %v1202_v2 = vadd.f32 %v1369_v36, %v1188_v63  ;;  %1215 = vst.msk [vmem:[%s1743_s27 + $0x20] sm:$0xff] %vm408_vm0, %v1207_v3 }
 0x805   : > { %v1197_v51 = vadd.f32 %v1369_v36, %v1183_v0  ;;  %v1173_v40 = vmul.f32 %v1592_v1, %v1991_v41 }
 0x806   : > { %v1210_v11 = vadd.f32 %v1202_v2, %v1771_v10 }
 0x807   : > { %v1205_v53 = vadd.f32 %v1197_v51, %v1757_v7  ;;  %v1187_v47 = vmul.f32 %v1368_v25, %v1173_v40 }
 0x808   : > { %1218 = vst.msk [vmem:[%s1743_s27 + $0x38] sm:$0xff] %vm408_vm0, %v1210_v11 }
 0x809   : > { %1213 = vst.msk [vmem:[%s1743_s27 + $0x10] sm:$0xff] %vm408_vm0, %v1205_v53  ;;  %v1201_v4 = vadd.f32 %v1369_v36, %v1187_v47 }
 0x80b   : > { %v1209_v9 = vadd.f32 %v1201_v4, %v1763_v8 }
 0x80d   : > { %1217 = vst.msk [vmem:[%s1743_s27 + $0x30] sm:$0xff] %vm408_vm0, %v1209_v9 }
 0x80e PF: > { %s20_s15 = sadd.s32 1, %s1631_s15   ;;  %s2055_s13 = smov %s1627_s14 }
 0x80f   : > { %p17_p6 = scmp.ge.s32.totalorder %s20_s15, 4   ;;  %s2056_s14 = smov %s2058_s16 }
 0x811   :  { %19 = sbr.rel (!%p17_p6) target bundleno = 2 (0x2), region = 112 }

// kernel: separation_forward.15
= control target key start
LH: loop header
LB: loop body
LE: loop exit
PB: predicated region body
PF: predicated region fallthrough
CT: control target
= control target key end

     0   :  { %s2053_s29 = smov 0   ;;  %s2240_s0 = inlined_call_operand.vmem [shape: f32[16,2,4,16], index: 0, kind: input, shape index: {}]   ;;  %s2241_s1 = inlined_call_operand.vmem [shape: f32[4,16], index: 1, kind: input, shape index: {}]   ;;  %s2242_s2 = inlined_call_operand.vmem [shape: f32[1,16], index: 2, kind: input, shape index: {}]   ;;  %s2243_s3 = inlined_call_operand.vmem [shape: f32[1,16], index: 3, kind: input, shape index: {}]   ;;  %s2244_s4 = inlined_call_operand.vmem [shape: f32[1,16], index: 4, kind: input, shape index: {}]   ;;  %s2245_s5 = inlined_call_operand.vmem [shape: f32[2,16], index: 5, kind: input, shape index: {}]   ;;  %s2246_s6 = inlined_call_operand.vmem [shape: f32[16,48], index: 6, kind: input, shape index: {}]   ;;  %s2247_s7 = inlined_call_operand.vmem [shape: f32[1,48], index: 7, kind: input, shape index: {}]   ;;  %s2248_s8 = inlined_call_operand.vmem [shape: f32[4,4,16], index: 8, kind: input, shape index: {}]   ;;  %s2249_s9 = inlined_call_operand.vmem [shape: f32[1,16], index: 9, kind: input, shape index: {}]   ;;  %s2250_s10 = inlined_call_operand.vmem [shape: f32[1,16], index: 10, kind: input, shape index: {}]   ;;  %s2251_s11 = inlined_call_operand.vmem [shape: f32[1,16], index: 11, kind: input, shape index: {}]   ;;  %s2252_s12 = inlined_call_operand.vmem [shape: f32[4,16], index: 12, kind: input, shape index: {}]   ;;  %s2253_s13 = inlined_call_operand.vmem [shape: f32[1,16], index: 13, kind: input, shape index: {}]   ;;  %s2254_s14 = inlined_call_operand.vmem [shape: f32[16,2,4,16], index: 14, kind: output, shape index: {}]  }
   0x1 LB: > { %s1781_s30 = sadd.s32 4294967295, %s1967_s29   ;;  %p1785_p0 = scmp.ge.s32.totalorder %s1967_s29, 1  ;;  %s1967_s29 = sphi %s2053_s29, %s24_s29  }
   0x2   : > { %p412_p1 = scmp.lt.s32.totalorder %s1967_s29, 17 }
   0x4   : > { %p413_p2 = pnand %p1785_p0, %p412_p1 }
   0x5   : > { %p458_p3 = scmp.lt.s32.totalorder (!%p413_p2), %s1781_s30, 15  ;;  %v470_v0 = vld [vmem:[%s2241_s1] sm:$0xf] (!%p413_p2)  ;;  %vm473_vm0 = vcmask (!%p413_p2), 125952   ;;  %vm502_vm1 = vcmask (!%p413_p2), 1041409   ;;  %vm505_vm2 = vcmask (!%p413_p2), 123904  }
   0x6   : > { %416 = sbr.rel (%p413_p2) target bundleno = 2102 (0x836), region = 76  ;;  %v1790_v17 = vld [vmem:[%s2242_s2] ss:$0 sm:$0xff] (!%p413_p2)  ;;  %v560_v36 = vld [vmem:[%s2246_s6 + $0x8] sm:$0xff] (!%p413_p2)  ;;  %v1969_v37 = vmov (!%p413_p2), 0.0|0.0   ;;  %vm1970_vm3 = vmmov (!%p413_p2), 0  }
   0x7   : > { %v559_v35 = vld [vmem:[%s2246_s6] sm:$0xff] (!%p413_p2)  ;;  %1921 = vmatprep.subr.bf16.mxu0 (!%p413_p2), %v1969_v37  ;;  %v1971_v39 = vmov (!%p413_p2), 0.0   ;;  %vm572_vm4 = vcmask (!%p413_p2), 130048   ;;  %s1972_s22 = smov (!%p413_p2), 116   ;;  %s1973_s23 = smov (!%p413_p2), 124   ;;  %vm661_vm5 = vcmask (!%p413_p2), 31744  }
   0x8   : > { %v1922_v38 = vpack.c.bf16 (!%p413_p2), %v560_v36, %v559_v35  ;;  %1858 = vmatprep.mubr.msk.f32.mxu0 (!%p413_p2), %vm1970_vm3, %v1971_v39  ;;  %1861 = vmatprep.subr.mxu1 (!%p413_p2), %v1971_v39  ;;  %v1791_v44 = vld [vmem:[%s2243_s3] ss:$0 sm:$0xff] (!%p413_p2)  ;;  %s1974_s24 = smov (!%p413_p2), 120   ;;  %s1975_s25 = smov (!%p413_p2), 112   ;;  %vm968_vm6 = vcmask (!%p413_p2), 9216   ;;  %vm1019_vm7 = vcmask (!%p413_p2), 1041408  }
   0x9   : > { %1863 = vmatprep.mubr.msk.f32.mxu1 (!%p413_p2), %vm1970_vm3, %v1971_v39  ;;  %v552_v47 = vld [vmem:[%s2245_s5] sm:$0x3] (!%p413_p2)  ;;  %s1976_s26 = smov (!%p413_p2), 96   ;;  %vm1015_vm8 = vcmask (!%p413_p2), 15360   ;;  %vm1330_vm9 = vcmask (!%p413_p2), 1043456  }
   0xa   : > { %1923 = vmatpush3.bf16.msra.mxu0 (!%p413_p2), %v1922_v38  ;;  %v1792_v50 = vld [vmem:[%s2244_s4] ss:$0 sm:$0xff] (!%p413_p2)  ;;  %v554_v52 = vrot.slane (!%p413_p2), %v552_v47, 1 }
   0xb   : > { %1866 = vmatprep.subr.mxu0 (!%p413_p2), %v1971_v39  ;;  %v1793_v59 = vld [vmem:[%s2247_s7] ss:$0 sm:$0xff] (!%p413_p2) }
   0xd   : > { %s2256_s30 = smov (!%p458_p3, %s1781_s30), 15 }
   0xe   : > { %s1825_s15 = sshll.u32 %s2256_s30, 3 }
   0xf   : > { %s462_s20 = scalar_lea.vmem %s2240_s0, %s1825_s15  ;;  %s467_s21 = scalar_lea.vmem %s2254_s14, %s1825_s15 }
  0x10   : > { %v468_v1 = vld [vmem:[%s462_s20] sm:$0xf]  ;;  %v469_v2 = vld [vmem:[%s462_s20 + $0x4] sm:$0xf] }
  0x11   : > { %v471_v3 = vmul.f32 %v470_v0, %v468_v1  ;;  %v472_v4 = vmul.f32 %v470_v0, %v469_v2 }
  0x13   : > { %v474_v5 = vsel %vm473_vm0, %v471_v3, 0.0  ;;  %v481_v6 = vsel %vm473_vm0, %v472_v4, 0.0 }
  0x14   : > { %v475_v7 = vrot.slane %v474_v5, 4  ;;  %v482_v8 = vrot.slane %v481_v6, 4 }
  0x16   : > { %v476_v9 = vadd.f32 %v475_v7, %v474_v5  ;;  %v483_v10 = vadd.f32 %v482_v8, %v481_v6 }
  0x18   : > { %v477_v11 = vrot.slane %v476_v9, 2  ;;  %v484_v12 = vrot.slane %v483_v10, 2 }
  0x1a   : > { %v478_v13 = vadd.f32 %v477_v11, %v476_v9  ;;  %v485_v14 = vadd.f32 %v484_v12, %v483_v10 }
  0x1c   : > { %v479_v15 = vrot.slane %v478_v13, 1  ;;  %v486_v16 = vrot.slane %v485_v14, 1 }
  0x1e   : > { %v480_v18 = vadd.f32 %v479_v15, %v478_v13  ;;  %v487_v19 = vadd.f32 %v486_v16, %v485_v14 }
  0x20   : > { %v495_v20 = vadd.f32 %v1790_v17, %v480_v18  ;;  %v496_v21 = vadd.f32 %v1790_v17, %v487_v19 }
  0x22   : > { %v501_v22 = vrot.slane %v496_v21, 7 }
  0x24   : > { %v2078_v23 = vsel %vm502_vm1, %v501_v22, %v495_v20 }
  0x25   : > { %v506_v24 = vsel %vm505_vm2, %v2078_v23, 0.0 }
  0x26   : > { %507 = vadd.xlane.f32.xlu0 %v506_v24 }
  0xb3   : > { %v508_v25 = vpop.xlane.xlu0 %507 }
  0xb4   : > { %v510_v26 = vmul.f32 0.0625, %v508_v25 }
  0xb6   : > { %v512_v27 = vrot.slane %v510_v26, 1  ;;  %v515_v28 = vsub.f32 %v495_v20, %v510_v26 }
  0xb8   : > { %v516_v29 = vsub.f32 %v496_v21, %v512_v27  ;;  %v517_v31 = vmul.f32 %v515_v28, %v515_v28 }
  0xba   : > { %v518_v30 = vmul.f32 %v516_v29, %v516_v29 }
  0xbc   : > { %v521_v32 = vrot.slane %v518_v30, 7 }
  0xbe   : > { %v522_v33 = vsel %vm502_vm1, %v521_v32, %v517_v31 }
  0xbf   : > { %v524_v34 = vsel %vm505_vm2, %v522_v33, 0.0 }
  0xc0   : > { %525 = vadd.xlane.f32.xlu0 %v524_v34 }
 0x14d   : > { %v526_v40 = vpop.xlane.xlu0 %525 }
 0x14e   : > { %v527_v41 = vmul.f32 0.0625, %v526_v40 }
 0x150   : > { %v528_v42 = vadd.f32 1e-05, %v527_v41 }
 0x152   : > { %1941 = vrsqrt.f32 %v528_v42 }
 0x15c   : > { %v1942_v43 = vpop.eup %1941 }
 0x15d   : > { %v531_v45 = vrot.slane %v1942_v43, 1  ;;  %v534_v46 = vmul.f32 %v1942_v43, %v515_v28 }
 0x15f   : > { %v535_v48 = vmul.f32 %v531_v45, %v516_v29  ;;  %v542_v49 = vmul.f32 %v1791_v44, %v534_v46 }
 0x161   : > { %v543_v51 = vmul.f32 %v1791_v44, %v535_v48  ;;  %v550_v53 = vadd.f32 %v1792_v50, %v542_v49 }
 0x163   : > { %v551_v54 = vadd.f32 %v1792_v50, %v543_v51  ;;  %v557_v56 = vadd.f32 %v552_v47, %v550_v53 }
 0x165   : > { %v558_v55 = vadd.f32 %v554_v52, %v551_v54 }
 0x167   : > { %v570_v57 = vrot.slane %v558_v55, 7 }
 0x169   : > { %v2106_v58 = vsel %vm502_vm1, %v570_v57, %v557_v56 }
 0x16a   : > { %1859 = vmatmul.mubr.msk.f32.vlgmr.msra.gmra.mrb[0].mxu0 %vm572_vm4, %v2106_v58 }
 0x16b   : > { %1868 = vmatprep.mubr.msk.f32.mxu0 %vm1970_vm3, %v1971_v39 }
 0x23d   : > { %v641_v60 = vpop.f32.mrb[0].mxu0 }
 0x23e   : > { %v642_v61 = vadd.f32 %v1793_v59, %v641_v60  ;;  %v1860_v62 = vpop.f32.mrb[1].mxu0  ;;  %v1323_v59 = vld [vmem:[%s2248_s8] sm:$0xf] }
 0x23f   : > { %v1324_v62 = vld [vmem:[%s2248_s8 + $0x4] sm:$0xf] }
 0x240   : > { %652 = vrot.lane.b32.xlu0 %v642_v61, %s1972_s22  ;;  %646 = vrot.lane.b32.xlu1 %v642_v61, %s1973_s23  ;;  %v655_v3 = vmul.f32 0.5, %v642_v61 }
 0x244   : > { %649 = vrot.lane.b32.xlu1 %v642_v61, %s1974_s24 }
 0x248   : > { %659 = vrot.lane.b32.xlu1 %v642_v61, %s1975_s25 }
 0x2b2   : > { %v2114_v63 = vpop.permute.xlu1 %646  ;;  %v2120_v1 = vpop.permute.xlu0 %652 }
 0x2b3   : > { %737 = vrot.lane.b32.xlu1 %v2114_v63, %s1975_s25  ;;  %v656_v5 = vmul.f32 0.5, %v2114_v63  ;;  %v658_v9 = vmul.f32 0.5, %v2120_v1 }
 0x2b6   : > { %v2117_v0 = vpop.permute.xlu1 %649 }
 0x2b7   : > { %814 = vrot.lane.b32.xlu1 %v2117_v0, %s1975_s25  ;;  %v657_v7 = vmul.f32 0.5, %v2117_v0 }
 0x2ba   : > { %v660_v2 = vpop.permute.xlu1 %659 }
 0x2bb   : > { %891 = vrot.lane.b32.xlu1 %v2120_v1, %s1975_s25  ;;  %1862 = vmatpush3.xpose.msk.msra.mxu1 %vm661_vm5, %v660_v2  ;;  %v1326_v2 = vld [vmem:[%s2248_s8 + $0xc] sm:$0xf] }
 0x2bc   : > { %1871 = vmatprep.subr.mxu1 %v1971_v39 }
 0x2be   : > { %1864 = vmatmul.mubr.msk.f32.vlgmr.msra.gmra.mrb[0].mxu1 %vm661_vm5, %v655_v3 }
 0x2bf   : > { %1873 = vmatprep.mubr.msk.f32.mxu1 %vm1970_vm3, %v1971_v39 }
 0x325   : > { %v738_v4 = vpop.permute.xlu1 %737 }
 0x326   : > { %1867 = vmatpush3.xpose.msk.msra.mxu0 %vm661_vm5, %v738_v4 }
 0x327   : > { %1876 = vmatprep.subr.mxu0 %v1971_v39 }
 0x329   : > { %1869 = vmatmul.mubr.msk.f32.vlgmr.msra.gmra.mrb[2].mxu0 %vm661_vm5, %v656_v5  ;;  %v815_v6 = vpop.permute.xlu1 %814 }
 0x32a   : > { %1872 = vmatpush3.xpose.msk.msra.mxu1 %vm661_vm5, %v815_v6  ;;  %1878 = vmatprep.mubr.msk.f32.mxu0 %vm1970_vm3, %v1971_v39 }
 0x32b   : > { %1881 = vmatprep.subr.mxu1 %v1971_v39 }
 0x32d   : > { %v892_v8 = vpop.permute.xlu1 %891  ;;  %1874 = vmatmul.mubr.msk.f32.vlgmr.msra.gmra.mrb[2].mxu1 %vm661_vm5, %v657_v7 }
 0x32e   : > { %1877 = vmatpush3.xpose.msk.msra.mxu0 %vm661_vm5, %v892_v8  ;;  %1883 = vmatprep.mubr.msk.f32.mxu1 %vm1970_vm3, %v1971_v39 }
 0x32f   : > { %1886 = vmatprep.subr.mxu0 %v1971_v39 }
 0x331   : > { %1879 = vmatmul.mubr.msk.f32.vlgmr.msra.gmra.mrb[4].mxu0 %vm661_vm5, %v658_v9 }
 0x332   : > { %1888 = vmatprep.mubr.msk.f32.mxu0 %vm1970_vm3, %v1971_v39 }
 0x391   : > { %v733_v10 = vpop.f32.mrb[0].mxu1 }
 0x392   : > { %v1865_v11 = vpop.f32.mrb[1].mxu1  ;;  %v969_v12 = vsel %vm968_vm6, %v733_v10, -inf }
 0x393   : > { %970 = vmax.xlane.f32.xlu1 %v969_v12 }
 0x3fc   : > { %v810_v13 = vpop.f32.mrb[2].mxu0 }
 0x3fd   : > { %v1870_v14 = vpop.f32.mrb[3].mxu0  ;;  %v972_v15 = vsel %vm968_vm6, %v810_v13, -inf }
 0x3fe   : > { %973 = vmax.xlane.f32.xlu0 %v972_v15 }
 0x400   : > { %v887_v16 = vpop.f32.mrb[2].mxu1 }
 0x401   : > { %v1875_v17 = vpop.f32.mrb[3].mxu1  ;;  %v975_v18 = vsel %vm968_vm6, %v887_v16, -inf }
 0x402   : > { %976 = vmax.xlane.f32.xlu1 %v975_v18 }
 0x404   : > { %v964_v19 = vpop.f32.mrb[4].mxu0 }
 0x405   : > { %v1880_v20 = vpop.f32.mrb[5].mxu0  ;;  %v978_v21 = vsel %vm968_vm6, %v964_v19, -inf }
 0x406   : > { %979 = vmax.xlane.f32.xlu0 %v978_v21  ;;  %v1819_v21 = vld [vmem:[%s2249_s9] ss:$0 sm:$0xff] }
 0x413   : > { %1013 = vrot.lane.b32.xlu1 %v642_v61, %s1976_s26 }
 0x420   : > { %v971_v22 = vpop.xlane.xlu1 %970 }
 0x421   : > { %v981_v24 = vsub.f32 %v733_v10, %v971_v22 }
 0x423   : > { %v985_v25 = vmul.f32 1.442695, %v981_v24 }
 0x425   : > { %1943 = vpow2.f32 %v985_v25 }
 0x42f   : > { %v1944_v26 = vpop.eup %1943 }
 0x430   : > { %v993_v27 = vsel %vm968_vm6, %v1944_v26, 0.0 }
 0x437   : > { %994 = vadd.xlane.f32.xlu1 %v993_v27 }
 0x48b   : > { %v974_v28 = vpop.xlane.xlu0 %973 }
 0x48c   : > { %v982_v29 = vsub.f32 %v810_v13, %v974_v28 }
 0x48e   : > { %v987_v30 = vmul.f32 1.442695, %v982_v29 }
 0x48f   : > { %v977_v31 = vpop.xlane.xlu1 %976 }
 0x490   : > { %1945 = vpow2.f32 %v987_v30  ;;  %v983_v32 = vsub.f32 %v887_v16, %v977_v31 }
 0x492   : > { %v989_v33 = vmul.f32 1.442695, %v983_v32 }
 0x493   : > { %v1014_v34 = vpop.permute.xlu1 %1013  ;;  %v980_v35 = vpop.xlane.xlu0 %979 }
 0x494   : > { %1947 = vpow2.f32 %v989_v33  ;;  %v984_v36 = vsub.f32 %v964_v19, %v980_v35  ;;  %1882 = vmatpush3.msk.msra.mxu1 %vm1019_vm7, %v1014_v34 }
 0x495   : > { %1891 = vmatprep.subr.mxu1 %v1971_v39 }
 0x496   : > { %v991_v37 = vmul.f32 1.442695, %v984_v36  ;;  %v1977_v36 = vmov 1966171168  }
 0x498   : > { %1949 = vpow2.f32 %v991_v37  ;;  %v1681_v37 = vunpack.c.l.s4 %v1977_v36 }
 0x49a   : > { %v1946_v38 = vpop.eup %1945 }
 0x49b   : > { %v996_v40 = vsel %vm968_vm6, %v1946_v38, 0.0 }
 0x49c   : > { %997 = vadd.xlane.f32.xlu0 %v996_v40 }
 0x49e   : > { %v1948_v41 = vpop.eup %1947 }
 0x49f   : > { %v999_v42 = vsel %vm968_vm6, %v1948_v41, 0.0 }
 0x4a0   : > { %1000 = vadd.xlane.f32.xlu1 %v999_v42 }
 0x4a2   : > { %v1950_v43 = vpop.eup %1949 }
 0x4a3   : > { %v1002_v44 = vsel %vm968_vm6, %v1950_v43, 0.0 }
 0x4a4   : > { %1003 = vadd.xlane.f32.xlu0 %v1002_v44  ;;  %v1821_v44 = vld [vmem:[%s2251_s11] ss:$0 sm:$0xff] }
 0x4b1   : > { %1169 = vrot.lane.b32.xlu1 %v2117_v0, %s1976_s26 }
 0x4b5   : > { %1246 = vrot.lane.b32.xlu1 %v2120_v1, %s1976_s26 }
 0x4ba   : > { %1092 = vrot.lane.b32.xlu0 %v2114_v63, %s1976_s26  ;;  %v1325_v63 = vld [vmem:[%s2248_s8 + $0x8] sm:$0xf] }
 0x4c4   : > { %v995_v45 = vpop.xlane.xlu1 %994 }
 0x4c5   : > { %1951 = vrcp.f32 %v995_v45 }
 0x4cf   : > { %v1952_v46 = vpop.eup %1951 }
 0x4d0   : > { %v1009_v47 = vmul.f32 %v1952_v46, %v1944_v26 }
 0x4d2   : > { %1884 = vmatmul.mubr.msk.f32.vlgmr.msra.gmra.mrb[4].mxu1 %vm1015_vm8, %v1009_v47 }
 0x4d3   : > { %1893 = vmatprep.mubr.msk.f32.mxu1 %vm1970_vm3, %v1971_v39 }
 0x529   : > { %v998_v48 = vpop.xlane.xlu0 %997 }
 0x52a   : > { %1953 = vrcp.f32 %v998_v48 }
 0x52d   : > { %v1001_v49 = vpop.xlane.xlu1 %1000 }
 0x52e   : > { %1955 = vrcp.f32 %v1001_v49 }
 0x531   : > { %v1170_v50 = vpop.permute.xlu1 %1169  ;;  %v1004_v51 = vpop.xlane.xlu0 %1003 }
 0x532   : > { %1957 = vrcp.f32 %v1004_v51  ;;  %1892 = vmatpush3.msk.msra.mxu1 %vm1019_vm7, %v1170_v50 }
 0x533   : > { %1901 = vmatprep.subr.mxu1 %v1971_v39 }
 0x534   : > { %v1954_v52 = vpop.eup %1953 }
 0x535   : > { %v1010_v53 = vmul.f32 %v1954_v52, %v1946_v38  ;;  %v1093_v54 = vpop.permute.xlu0 %1092  ;;  %v1247_v55 = vpop.permute.xlu1 %1246  ;;  %v1683_v38 = vlaneseq }
 0x536   : > { %1887 = vmatpush3.msk.msra.mxu0 %vm1019_vm7, %v1093_v54 }
 0x537   : > { %1889 = vmatmul.mubr.msk.f32.vlgmr.msra.gmra.mrb[6].mxu0 %vm1015_vm8, %v1010_v53  ;;  %1896 = vmatprep.subr.mxu0 %v1971_v39  ;;  %v1684_v42 = vshrl.u32 %v1683_v38, 7  ;;  %v1702_v53 = vld [vmem:[%s2252_s12] sm:$0xf] }
 0x538   : > { %v1956_v56 = vpop.eup %1955  ;;  %1897 = vmatpush3.msk.msra.mxu0 %vm1019_vm7, %v1247_v55  ;;  %1898 = vmatprep.mubr.msk.f32.mxu0 %vm1970_vm3, %v1971_v39 }
 0x539   : > { %v1011_v57 = vmul.f32 %v1956_v56, %v1948_v41  ;;  %1906 = vmatprep.subr.mxu0 %v1971_v39  ;;  %v1682_v41 = vunpack.c.0.s8 %v1681_v37  ;;  %v1705_v49 = vsub.s32 0, %v1684_v42  ;;  %v1822_v56 = vld [vmem:[%s2253_s13] ss:$0 sm:$0xff] }
 0x53b   : > { %1894 = vmatmul.mubr.msk.f32.vlgmr.msra.gmra.mrb[6].mxu1 %vm1015_vm8, %v1011_v57  ;;  %v1685_v46 = vsub.s32 %v1682_v41, %v1684_v42 }
 0x53c   : > { %v1958_v60 = vpop.eup %1957  ;;  %1902 = vmatpush3.msk.msra.mxu1 %vm1330_vm9, %v1323_v59  ;;  %1903 = vmatprep.mubr.msk.f32.mxu1 %vm1970_vm3, %v1971_v39 }
 0x53d   : > { %v1012_v61 = vmul.f32 %v1958_v60, %v1950_v43  ;;  %1911 = vmatprep.subr.mxu1 %v1971_v39 }
 0x53f   : > { %1899 = vmatmul.mubr.msk.f32.vlgmr.msra.gmra.mrb[8].mxu0 %vm1015_vm8, %v1012_v61 }
 0x540   : > { %1908 = vmatprep.mubr.msk.f32.mxu0 %vm1970_vm3, %v1971_v39  ;;  %1907 = vmatpush3.msk.msra.mxu0 %vm1330_vm9, %v1324_v62 }
 0x541   : > { %1916 = vmatprep.subr.mxu0 %v1971_v39 }
 0x5a5   : > { %v1088_v0 = vpop.f32.mrb[4].mxu1 }
 0x5a6   : > { %v1885_v1 = vpop.f32.mrb[5].mxu1  ;;  %1904 = vmatmul.mubr.msk.f32.vlgmr.msra.gmra.mrb[8].mxu1 %vm661_vm5, %v1088_v0 }
 0x5a7   : > { %1912 = vmatpush3.msk.msra.mxu1 %vm1330_vm9, %v1325_v63  ;;  %1913 = vmatprep.mubr.msk.f32.mxu1 %vm1970_vm3, %v1971_v39 }
 0x60a   : > { %v1165_v3 = vpop.f32.mrb[6].mxu0 }
 0x60b   : > { %v1890_v4 = vpop.f32.mrb[7].mxu0  ;;  %1909 = vmatmul.mubr.msk.f32.vlgmr.msra.gmra.mrb[10].mxu0 %vm661_vm5, %v1165_v3 }
 0x60c   : > { %1917 = vmatpush3.msk.msra.mxu0 %vm1330_vm9, %v1326_v2  ;;  %1918 = vmatprep.mubr.msk.f32.mxu0 %vm1970_vm3, %v1971_v39 }
 0x60e   : > { %v1242_v5 = vpop.f32.mrb[6].mxu1 }
 0x60f   : > { %v1895_v6 = vpop.f32.mrb[7].mxu1  ;;  %1914 = vmatmul.mubr.msk.f32.vlgmr.msra.gmra.mrb[10].mxu1 %vm661_vm5, %v1242_v5 }
 0x612   : > { %v1319_v7 = vpop.f32.mrb[8].mxu0 }
 0x613   : > { %v1900_v8 = vpop.f32.mrb[9].mxu0  ;;  %1919 = vmatmul.mubr.msk.f32.vlgmr.msra.gmra.mrb[12].mxu0 %vm661_vm5, %v1319_v7 }
 0x679   : > { %v1400_v9 = vpop.f32.mrb[8].mxu1 }
 0x67a   : > { %v1905_v10 = vpop.f32.mrb[9].mxu1  ;;  %v1632_v12 = vsel %vm505_vm2, %v1400_v9, 0.0 }
 0x6de   : > { %v1476_v11 = vpop.f32.mrb[10].mxu0 }
 0x6df   : > { %v1633_v13 = vsel %vm505_vm2, %v1476_v11, 0.0  ;;  %v1910_v14 = vpop.f32.mrb[11].mxu0 }
 0x6e0   : > { %v1634_v15 = vadd.f32 %v1633_v13, %v1632_v12 }
 0x6e2   : > { %v1552_v16 = vpop.f32.mrb[10].mxu1 }
 0x6e3   : > { %v1635_v39 = vsel %vm505_vm2, %v1552_v16, 0.0  ;;  %v1915_v17 = vpop.f32.mrb[11].mxu1 }
 0x6e4   : > { %v1636_v18 = vadd.f32 %v1635_v39, %v1634_v15 }
 0x6e6   : > { %v1628_v19 = vpop.f32.mrb[12].mxu0 }
 0x6e7   : > { %v1637_v20 = vsel %vm505_vm2, %v1628_v19, 0.0  ;;  %v1920_v22 = vpop.f32.mrb[13].mxu0 }
 0x6e8   : > { %v1638_v24 = vadd.f32 %v1637_v20, %v1636_v18 }
 0x6ea   : > { %v1646_v25 = vadd.f32 %v1819_v21, %v1638_v24 }
 0x6ec   : > { %v1648_v26 = vadd.f32 %v1646_v25, %v2106_v58  ;;  %v1820_v58 = vld [vmem:[%s2250_s10] ss:$0 sm:$0xff] }
 0x6ee   : > { %v1651_v27 = vsel %vm505_vm2, %v1648_v26, 0.0 }
 0x6ef   : > { %1652 = vadd.xlane.f32.xlu0 %v1651_v27 }
 0x77c   : > { %v1653_v28 = vpop.xlane.xlu0 %1652 }
 0x77d   : > { %v1654_v29 = vmul.f32 0.0625, %v1653_v28 }
 0x77f   : > { %v1655_v30 = vsub.f32 %v1648_v26, %v1654_v29 }
 0x781   : > { %v1656_v31 = vmul.f32 %v1655_v30, %v1655_v30 }
 0x783   : > { %v1657_v32 = vsel %vm505_vm2, %v1656_v31, 0.0 }
 0x784   : > { %1658 = vadd.xlane.f32.xlu1 %v1657_v32 }
 0x811   : > { %v1659_v33 = vpop.xlane.xlu1 %1658 }
 0x812   : > { %v1660_v34 = vmul.f32 0.0625, %v1659_v33 }
 0x814   : > { %v1661_v35 = vadd.f32 1e-05, %v1660_v34 }
 0x816   : > { %1959 = vrsqrt.f32 %v1661_v35 }
 0x820   : > { %v1960_v40 = vpop.eup %1959 }
 0x821   : > { %v1663_v43 = vmul.f32 %v1960_v40, %v1655_v30 }
 0x823   : > { %v1670_v45 = vmul.f32 %v1820_v58, %v1663_v43 }
 0x825   : > { %v1677_v47 = vadd.f32 %v1821_v44, %v1670_v45 }
 0x827   : > { %v1678_v48 = vadd.f32 %v1677_v47, %v2078_v23 }
 0x829   : > { %v1686_v50 = vrot.slane %v1678_v48, %v1685_v46 }
 0x82b   : > { %v1687_v51 = vcombine.high %v1686_v50, %v1686_v50  ;;  %v1694_v52 = vrot.slane %v1686_v50, %v1685_v46 }
 0x82d   : > { %v1701_v54 = vrot.slane %v1687_v51, %v1685_v46  ;;  %v1706_v55 = vrot.slane %v1694_v52, %v1705_v49 }
 0x82f   : > { %v1710_v57 = vrot.slane %v1701_v54, %v1705_v49  ;;  %v1713_v59 = vmul.f32 %v1706_v55, %v1702_v53 }
 0x831   : > { %v1714_v23 = vmul.f32 %v1710_v57, %v1702_v53  ;;  %v1722_v60 = vadd.f32 %v1822_v56, %v1713_v59 }
 0x833   : > { %v1723_v61 = vadd.f32 %v1822_v56, %v1714_v23  ;;  %1724 = vst.msk [vmem:[%s467_s21] sm:$0xf] %vm473_vm0, %v1722_v60 }
 0x835   : > { %1725 = vst.msk [vmem:[%s467_s21 + $0x4] sm:$0xf] %vm473_vm0, %v1723_v61 }
 0x836 PF: > { %s24_s29 = sadd.s32 1, %s1967_s29  }
 0x837   : > { %p21_p4 = scmp.ge.s32.totalorder %s24_s29, 18  }
 0x839   :  { %23 = sbr.rel (!%p21_p4) target bundleno = 1 (0x1), region = 106 }

// kernel: separation_forward.17
= control target key start
LH: loop header
LB: loop body
LE: loop exit
PB: predicated region body
PF: predicated region fallthrough
CT: control target
= control target key end

     0   :  { %s2124_s18 = smov 0   ;;  %s2312_s0 = inlined_call_operand.vmem [shape: f32[16,2,4,16], index: 0, kind: input, shape index: {}]   ;;  %s2313_s1 = inlined_call_operand.vmem [shape: f32[4,16], index: 1, kind: input, shape index: {}]   ;;  %s2314_s2 = inlined_call_operand.vmem [shape: f32[1,16], index: 2, kind: input, shape index: {}]   ;;  %s2315_s3 = inlined_call_operand.vmem [shape: f32[1,16], index: 3, kind: input, shape index: {}]   ;;  %s2316_s4 = inlined_call_operand.vmem [shape: f32[1,16], index: 4, kind: input, shape index: {}]   ;;  %s2317_s5 = inlined_call_operand.vmem [shape: f32[2,16], index: 5, kind: input, shape index: {}]   ;;  %s2318_s6 = inlined_call_operand.vmem [shape: f32[16,48], index: 6, kind: input, shape index: {}]   ;;  %s2319_s7 = inlined_call_operand.vmem [shape: f32[1,48], index: 7, kind: input, shape index: {}]   ;;  %s2320_s8 = inlined_call_operand.vmem [shape: f32[4,4,16], index: 8, kind: input, shape index: {}]   ;;  %s2321_s9 = inlined_call_operand.vmem [shape: f32[1,16], index: 9, kind: input, shape index: {}]   ;;  %s2322_s10 = inlined_call_operand.vmem [shape: f32[1,16], index: 10, kind: input, shape index: {}]   ;;  %s2323_s11 = inlined_call_operand.vmem [shape: f32[1,16], index: 11, kind: input, shape index: {}]   ;;  %s2324_s12 = inlined_call_operand.vmem [shape: f32[4,16], index: 12, kind: input, shape index: {}]   ;;  %s2325_s13 = inlined_call_operand.vmem [shape: f32[1,16], index: 13, kind: input, shape index: {}]   ;;  %s2326_s14 = inlined_call_operand.vmem [shape: f32[16,2,4,16], index: 14, kind: input, shape index: {}]   ;;  %s2327_s15 = inlined_call_operand.vmem [shape: f32[16,2,4,16], index: 15, kind: output, shape index: {}]  }
   0x1 LB: > { %s1844_s19 = sadd.s32 4294967295, %s2033_s18   ;;  %p1848_p0 = scmp.ge.s32.totalorder %s2033_s18, 1  ;;  %s2033_s18 = sphi %s2124_s18, %s25_s18  }
   0x2   : > { %p447_p1 = scmp.lt.s32.totalorder %s2033_s18, 17 }
   0x4   : > { %p448_p2 = pnand %p1848_p0, %p447_p1 }
   0x5   : > { %p500_p3 = scmp.lt.s32.totalorder (!%p448_p2), %s1844_s19, 15  ;;  %v517_v0 = vld [vmem:[%s2313_s1] sm:$0xf] (!%p448_p2)  ;;  %vm520_vm0 = vcmask (!%p448_p2), 125952   ;;  %vm549_vm1 = vcmask (!%p448_p2), 1041409   ;;  %vm552_vm2 = vcmask (!%p448_p2), 123904  }
   0x6   : > { %451 = sbr.rel (%p448_p2) target bundleno = 2104 (0x838), region = 80  ;;  %v1855_v17 = vld [vmem:[%s2314_s2] ss:$0 sm:$0xff] (!%p448_p2)  ;;  %v607_v36 = vld [vmem:[%s2318_s6 + $0x8] sm:$0xff] (!%p448_p2)  ;;  %v2035_v37 = vmov (!%p448_p2), 0.0|0.0   ;;  %vm2036_vm3 = vmmov (!%p448_p2), 0  }
   0x7   : > { %v606_v35 = vld [vmem:[%s2318_s6] sm:$0xff] (!%p448_p2)  ;;  %1987 = vmatprep.subr.bf16.mxu0 (!%p448_p2), %v2035_v37  ;;  %v2037_v39 = vmov (!%p448_p2), 0.0   ;;  %vm619_vm4 = vcmask (!%p448_p2), 130048   ;;  %s2038_s27 = smov (!%p448_p2), 116   ;;  %s2039_s28 = smov (!%p448_p2), 124   ;;  %vm708_vm5 = vcmask (!%p448_p2), 31744  }
   0x8   : > { %v1988_v38 = vpack.c.bf16 (!%p448_p2), %v607_v36, %v606_v35  ;;  %1924 = vmatprep.mubr.msk.f32.mxu0 (!%p448_p2), %vm2036_vm3, %v2037_v39  ;;  %1927 = vmatprep.subr.mxu1 (!%p448_p2), %v2037_v39  ;;  %v1856_v44 = vld [vmem:[%s2315_s3] ss:$0 sm:$0xff] (!%p448_p2)  ;;  %s2040_s29 = smov (!%p448_p2), 120   ;;  %s2041_s30 = smov (!%p448_p2), 112   ;;  %vm1015_vm6 = vcmask (!%p448_p2), 9216   ;;  %vm1066_vm7 = vcmask (!%p448_p2), 1041408  }
   0x9   : > { %1929 = vmatprep.mubr.msk.f32.mxu1 (!%p448_p2), %vm2036_vm3, %v2037_v39  ;;  %v599_v47 = vld [vmem:[%s2317_s5] sm:$0x3] (!%p448_p2)  ;;  %s2042_s16 = smov (!%p448_p2), 96   ;;  %vm1062_vm8 = vcmask (!%p448_p2), 15360   ;;  %vm1377_vm9 = vcmask (!%p448_p2), 1043456  }
   0xa   : > { %1989 = vmatpush3.bf16.msra.mxu0 (!%p448_p2), %v1988_v38  ;;  %v1857_v50 = vld [vmem:[%s2316_s4] ss:$0 sm:$0xff] (!%p448_p2)  ;;  %v601_v52 = vrot.slane (!%p448_p2), %v599_v47, 1 }
   0xb   : > { %1932 = vmatprep.subr.mxu0 (!%p448_p2), %v2037_v39  ;;  %v1858_v59 = vld [vmem:[%s2319_s7] ss:$0 sm:$0xff] (!%p448_p2) }
   0xd   : > { %s2329_s19 = smov (!%p500_p3, %s1844_s19), 15 }
   0xe   : > { %s2132_s20 = sshll.u32 %s2329_s19, 3 }
   0xf   : > { %s504_s25 = scalar_lea.vmem %s2312_s0, %s2132_s20  ;;  %s509_s24 = scalar_lea.vmem %s2326_s14, %s2132_s20 }
  0x10   : > { %v515_v1 = vld [vmem:[%s504_s25] sm:$0xf]  ;;  %v516_v2 = vld [vmem:[%s504_s25 + $0x4] sm:$0xf] }
  0x11   : > { %v518_v3 = vmul.f32 %v517_v0, %v515_v1  ;;  %v519_v4 = vmul.f32 %v517_v0, %v516_v2 }
  0x13   : > { %v521_v5 = vsel %vm520_vm0, %v518_v3, 0.0  ;;  %v528_v6 = vsel %vm520_vm0, %v519_v4, 0.0 }
  0x14   : > { %v522_v7 = vrot.slane %v521_v5, 4  ;;  %v529_v8 = vrot.slane %v528_v6, 4 }
  0x16   : > { %v523_v9 = vadd.f32 %v522_v7, %v521_v5  ;;  %v530_v10 = vadd.f32 %v529_v8, %v528_v6 }
  0x18   : > { %v524_v11 = vrot.slane %v523_v9, 2  ;;  %v531_v12 = vrot.slane %v530_v10, 2 }
  0x1a   : > { %v525_v13 = vadd.f32 %v524_v11, %v523_v9  ;;  %v532_v14 = vadd.f32 %v531_v12, %v530_v10 }
  0x1c   : > { %v526_v15 = vrot.slane %v525_v13, 1  ;;  %v533_v16 = vrot.slane %v532_v14, 1 }
  0x1e   : > { %v527_v18 = vadd.f32 %v526_v15, %v525_v13  ;;  %v534_v19 = vadd.f32 %v533_v16, %v532_v14 }
  0x20   : > { %v542_v20 = vadd.f32 %v1855_v17, %v527_v18  ;;  %v543_v21 = vadd.f32 %v1855_v17, %v534_v19 }
  0x22   : > { %v548_v22 = vrot.slane %v543_v21, 7 }
  0x24   : > { %v2147_v23 = vsel %vm549_vm1, %v548_v22, %v542_v20 }
  0x25   : > { %v553_v24 = vsel %vm552_vm2, %v2147_v23, 0.0 }
  0x26   : > { %554 = vadd.xlane.f32.xlu0 %v553_v24 }
  0xb3   : > { %v555_v25 = vpop.xlane.xlu0 %554 }
  0xb4   : > { %v557_v26 = vmul.f32 0.0625, %v555_v25 }
  0xb6   : > { %v559_v27 = vrot.slane %v557_v26, 1  ;;  %v562_v28 = vsub.f32 %v542_v20, %v557_v26 }
  0xb8   : > { %v563_v29 = vsub.f32 %v543_v21, %v559_v27  ;;  %v564_v31 = vmul.f32 %v562_v28, %v562_v28 }
  0xba   : > { %v565_v30 = vmul.f32 %v563_v29, %v563_v29 }
  0xbc   : > { %v568_v32 = vrot.slane %v565_v30, 7 }
  0xbe   : > { %v569_v33 = vsel %vm549_vm1, %v568_v32, %v564_v31 }
  0xbf   : > { %v571_v34 = vsel %vm552_vm2, %v569_v33, 0.0 }
  0xc0   : > { %572 = vadd.xlane.f32.xlu0 %v571_v34 }
 0x14d   : > { %v573_v40 = vpop.xlane.xlu0 %572 }
 0x14e   : > { %v574_v41 = vmul.f32 0.0625, %v573_v40 }
 0x150   : > { %v575_v42 = vadd.f32 1e-05, %v574_v41 }
 0x152   : > { %2007 = vrsqrt.f32 %v575_v42 }
 0x15c   : > { %v2008_v43 = vpop.eup %2007 }
 0x15d   : > { %v578_v45 = vrot.slane %v2008_v43, 1  ;;  %v581_v46 = vmul.f32 %v2008_v43, %v562_v28 }
 0x15f   : > { %v582_v48 = vmul.f32 %v578_v45, %v563_v29  ;;  %v589_v49 = vmul.f32 %v1856_v44, %v581_v46 }
 0x161   : > { %v590_v51 = vmul.f32 %v1856_v44, %v582_v48  ;;  %v597_v53 = vadd.f32 %v1857_v50, %v589_v49 }
 0x163   : > { %v598_v54 = vadd.f32 %v1857_v50, %v590_v51  ;;  %v604_v56 = vadd.f32 %v599_v47, %v597_v53 }
 0x165   : > { %v605_v55 = vadd.f32 %v601_v52, %v598_v54 }
 0x167   : > { %v617_v57 = vrot.slane %v605_v55, 7 }
 0x169   : > { %v2175_v58 = vsel %vm549_vm1, %v617_v57, %v604_v56 }
 0x16a   : > { %1925 = vmatmul.mubr.msk.f32.vlgmr.msra.gmra.mrb[0].mxu0 %vm619_vm4, %v2175_v58 }
 0x16b   : > { %1934 = vmatprep.mubr.msk.f32.mxu0 %vm2036_vm3, %v2037_v39 }
 0x23d   : > { %v688_v60 = vpop.f32.mrb[0].mxu0 }
 0x23e   : > { %v689_v61 = vadd.f32 %v1858_v59, %v688_v60  ;;  %v1926_v62 = vpop.f32.mrb[1].mxu0  ;;  %v1370_v59 = vld [vmem:[%s2320_s8] sm:$0xf] }
 0x23f   : > { %v1371_v62 = vld [vmem:[%s2320_s8 + $0x4] sm:$0xf] }
 0x240   : > { %699 = vrot.lane.b32.xlu0 %v689_v61, %s2038_s27  ;;  %693 = vrot.lane.b32.xlu1 %v689_v61, %s2039_s28  ;;  %v702_v3 = vmul.f32 0.5, %v689_v61 }
 0x244   : > { %696 = vrot.lane.b32.xlu1 %v689_v61, %s2040_s29  ;;  %s514_s29 = scalar_lea.vmem %s2327_s15, %s2132_s20 }
 0x248   : > { %706 = vrot.lane.b32.xlu1 %v689_v61, %s2041_s30 }
 0x2b2   : > { %v2183_v63 = vpop.permute.xlu1 %693  ;;  %v2189_v1 = vpop.permute.xlu0 %699 }
 0x2b3   : > { %784 = vrot.lane.b32.xlu1 %v2183_v63, %s2041_s30  ;;  %v703_v5 = vmul.f32 0.5, %v2183_v63  ;;  %v705_v9 = vmul.f32 0.5, %v2189_v1 }
 0x2b6   : > { %v2186_v0 = vpop.permute.xlu1 %696 }
 0x2b7   : > { %861 = vrot.lane.b32.xlu1 %v2186_v0, %s2041_s30  ;;  %v704_v7 = vmul.f32 0.5, %v2186_v0 }
 0x2ba   : > { %v707_v2 = vpop.permute.xlu1 %706 }
 0x2bb   : > { %938 = vrot.lane.b32.xlu1 %v2189_v1, %s2041_s30  ;;  %1928 = vmatpush3.xpose.msk.msra.mxu1 %vm708_vm5, %v707_v2  ;;  %v1373_v2 = vld [vmem:[%s2320_s8 + $0xc] sm:$0xf] }
 0x2bc   : > { %1937 = vmatprep.subr.mxu1 %v2037_v39 }
 0x2be   : > { %1930 = vmatmul.mubr.msk.f32.vlgmr.msra.gmra.mrb[0].mxu1 %vm708_vm5, %v702_v3 }
 0x2bf   : > { %1939 = vmatprep.mubr.msk.f32.mxu1 %vm2036_vm3, %v2037_v39 }
 0x325   : > { %v785_v4 = vpop.permute.xlu1 %784 }
 0x326   : > { %1933 = vmatpush3.xpose.msk.msra.mxu0 %vm708_vm5, %v785_v4 }
 0x327   : > { %1942 = vmatprep.subr.mxu0 %v2037_v39 }
 0x329   : > { %1935 = vmatmul.mubr.msk.f32.vlgmr.msra.gmra.mrb[2].mxu0 %vm708_vm5, %v703_v5  ;;  %v862_v6 = vpop.permute.xlu1 %861 }
 0x32a   : > { %1938 = vmatpush3.xpose.msk.msra.mxu1 %vm708_vm5, %v862_v6  ;;  %1944 = vmatprep.mubr.msk.f32.mxu0 %vm2036_vm3, %v2037_v39 }
 0x32b   : > { %1947 = vmatprep.subr.mxu1 %v2037_v39 }
 0x32d   : > { %v939_v8 = vpop.permute.xlu1 %938  ;;  %1940 = vmatmul.mubr.msk.f32.vlgmr.msra.gmra.mrb[2].mxu1 %vm708_vm5, %v704_v7 }
 0x32e   : > { %1943 = vmatpush3.xpose.msk.msra.mxu0 %vm708_vm5, %v939_v8  ;;  %1949 = vmatprep.mubr.msk.f32.mxu1 %vm2036_vm3, %v2037_v39 }
 0x32f   : > { %1952 = vmatprep.subr.mxu0 %v2037_v39 }
 0x331   : > { %1945 = vmatmul.mubr.msk.f32.vlgmr.msra.gmra.mrb[4].mxu0 %vm708_vm5, %v705_v9 }
 0x332   : > { %1954 = vmatprep.mubr.msk.f32.mxu0 %vm2036_vm3, %v2037_v39 }
 0x391   : > { %v780_v10 = vpop.f32.mrb[0].mxu1 }
 0x392   : > { %v1931_v11 = vpop.f32.mrb[1].mxu1  ;;  %v1016_v12 = vsel %vm1015_vm6, %v780_v10, -inf }
 0x393   : > { %1017 = vmax.xlane.f32.xlu1 %v1016_v12 }
 0x3fc   : > { %v857_v13 = vpop.f32.mrb[2].mxu0 }
 0x3fd   : > { %v1936_v14 = vpop.f32.mrb[3].mxu0  ;;  %v1019_v15 = vsel %vm1015_vm6, %v857_v13, -inf }
 0x3fe   : > { %1020 = vmax.xlane.f32.xlu0 %v1019_v15 }
 0x400   : > { %v934_v16 = vpop.f32.mrb[2].mxu1 }
 0x401   : > { %v1941_v17 = vpop.f32.mrb[3].mxu1  ;;  %v1022_v18 = vsel %vm1015_vm6, %v934_v16, -inf }
 0x402   : > { %1023 = vmax.xlane.f32.xlu1 %v1022_v18 }
 0x404   : > { %v1011_v19 = vpop.f32.mrb[4].mxu0 }
 0x405   : > { %v1946_v20 = vpop.f32.mrb[5].mxu0  ;;  %v1025_v21 = vsel %vm1015_vm6, %v1011_v19, -inf }
 0x406   : > { %1026 = vmax.xlane.f32.xlu0 %v1025_v21  ;;  %v1884_v21 = vld [vmem:[%s2321_s9] ss:$0 sm:$0xff] }
 0x413   : > { %1060 = vrot.lane.b32.xlu1 %v689_v61, %s2042_s16 }
 0x420   : > { %v1018_v22 = vpop.xlane.xlu1 %1017 }
 0x421   : > { %v1028_v24 = vsub.f32 %v780_v10, %v1018_v22 }
 0x423   : > { %v1032_v25 = vmul.f32 1.442695, %v1028_v24 }
 0x425   : > { %2009 = vpow2.f32 %v1032_v25 }
 0x42f   : > { %v2010_v26 = vpop.eup %2009 }
 0x430   : > { %v1040_v27 = vsel %vm1015_vm6, %v2010_v26, 0.0 }
 0x437   : > { %1041 = vadd.xlane.f32.xlu1 %v1040_v27 }
 0x48b   : > { %v1021_v28 = vpop.xlane.xlu0 %1020 }
 0x48c   : > { %v1029_v29 = vsub.f32 %v857_v13, %v1021_v28 }
 0x48e   : > { %v1034_v30 = vmul.f32 1.442695, %v1029_v29 }
 0x48f   : > { %v1024_v31 = vpop.xlane.xlu1 %1023 }
 0x490   : > { %2011 = vpow2.f32 %v1034_v30  ;;  %v1030_v32 = vsub.f32 %v934_v16, %v1024_v31 }
 0x492   : > { %v1036_v33 = vmul.f32 1.442695, %v1030_v32 }
 0x493   : > { %v1061_v34 = vpop.permute.xlu1 %1060  ;;  %v1027_v35 = vpop.xlane.xlu0 %1026 }
 0x494   : > { %2013 = vpow2.f32 %v1036_v33  ;;  %v1031_v36 = vsub.f32 %v1011_v19, %v1027_v35  ;;  %1948 = vmatpush3.msk.msra.mxu1 %vm1066_vm7, %v1061_v34 }
 0x495   : > { %1957 = vmatprep.subr.mxu1 %v2037_v39 }
 0x496   : > { %v1038_v37 = vmul.f32 1.442695, %v1031_v36  ;;  %v2043_v36 = vmov 1966171168  }
 0x498   : > { %2015 = vpow2.f32 %v1038_v37  ;;  %v1728_v37 = vunpack.c.l.s4 %v2043_v36 }
 0x49a   : > { %v2012_v38 = vpop.eup %2011 }
 0x49b   : > { %v1043_v40 = vsel %vm1015_vm6, %v2012_v38, 0.0 }
 0x49c   : > { %1044 = vadd.xlane.f32.xlu0 %v1043_v40 }
 0x49e   : > { %v2014_v41 = vpop.eup %2013 }
 0x49f   : > { %v1046_v42 = vsel %vm1015_vm6, %v2014_v41, 0.0 }
 0x4a0   : > { %1047 = vadd.xlane.f32.xlu1 %v1046_v42 }
 0x4a2   : > { %v2016_v43 = vpop.eup %2015 }
 0x4a3   : > { %v1049_v44 = vsel %vm1015_vm6, %v2016_v43, 0.0 }
 0x4a4   : > { %1050 = vadd.xlane.f32.xlu0 %v1049_v44  ;;  %v1886_v44 = vld [vmem:[%s2323_s11] ss:$0 sm:$0xff] }
 0x4b1   : > { %1216 = vrot.lane.b32.xlu1 %v2186_v0, %s2042_s16 }
 0x4b5   : > { %1293 = vrot.lane.b32.xlu1 %v2189_v1, %s2042_s16 }
 0x4ba   : > { %1139 = vrot.lane.b32.xlu0 %v2183_v63, %s2042_s16  ;;  %v1372_v63 = vld [vmem:[%s2320_s8 + $0x8] sm:$0xf] }
 0x4c4   : > { %v1042_v45 = vpop.xlane.xlu1 %1041 }
 0x4c5   : > { %2017 = vrcp.f32 %v1042_v45 }
 0x4cf   : > { %v2018_v46 = vpop.eup %2017 }
 0x4d0   : > { %v1056_v47 = vmul.f32 %v2018_v46, %v2010_v26 }
 0x4d2   : > { %1950 = vmatmul.mubr.msk.f32.vlgmr.msra.gmra.mrb[4].mxu1 %vm1062_vm8, %v1056_v47 }
 0x4d3   : > { %1959 = vmatprep.mubr.msk.f32.mxu1 %vm2036_vm3, %v2037_v39 }
 0x529   : > { %v1045_v48 = vpop.xlane.xlu0 %1044 }
 0x52a   : > { %2019 = vrcp.f32 %v1045_v48 }
 0x52d   : > { %v1048_v49 = vpop.xlane.xlu1 %1047 }
 0x52e   : > { %2021 = vrcp.f32 %v1048_v49 }
 0x531   : > { %v1217_v50 = vpop.permute.xlu1 %1216  ;;  %v1051_v51 = vpop.xlane.xlu0 %1050 }
 0x532   : > { %2023 = vrcp.f32 %v1051_v51  ;;  %1958 = vmatpush3.msk.msra.mxu1 %vm1066_vm7, %v1217_v50 }
 0x533   : > { %1967 = vmatprep.subr.mxu1 %v2037_v39 }
 0x534   : > { %v2020_v52 = vpop.eup %2019 }
 0x535   : > { %v1057_v53 = vmul.f32 %v2020_v52, %v2012_v38  ;;  %v1140_v54 = vpop.permute.xlu0 %1139  ;;  %v1294_v55 = vpop.permute.xlu1 %1293  ;;  %v1730_v38 = vlaneseq }
 0x536   : > { %1953 = vmatpush3.msk.msra.mxu0 %vm1066_vm7, %v1140_v54 }
 0x537   : > { %1955 = vmatmul.mubr.msk.f32.vlgmr.msra.gmra.mrb[6].mxu0 %vm1062_vm8, %v1057_v53  ;;  %1962 = vmatprep.subr.mxu0 %v2037_v39  ;;  %v1731_v42 = vshrl.u32 %v1730_v38, 7  ;;  %v1749_v53 = vld [vmem:[%s2324_s12] sm:$0xf] }
 0x538   : > { %v2022_v56 = vpop.eup %2021  ;;  %1963 = vmatpush3.msk.msra.mxu0 %vm1066_vm7, %v1294_v55  ;;  %1964 = vmatprep.mubr.msk.f32.mxu0 %vm2036_vm3, %v2037_v39 }
 0x539   : > { %v1058_v57 = vmul.f32 %v2022_v56, %v2014_v41  ;;  %1972 = vmatprep.subr.mxu0 %v2037_v39  ;;  %v1729_v41 = vunpack.c.0.s8 %v1728_v37  ;;  %v1752_v49 = vsub.s32 0, %v1731_v42  ;;  %v1887_v56 = vld [vmem:[%s2325_s13] ss:$0 sm:$0xff] }
 0x53b   : > { %1960 = vmatmul.mubr.msk.f32.vlgmr.msra.gmra.mrb[6].mxu1 %vm1062_vm8, %v1058_v57  ;;  %v1732_v46 = vsub.s32 %v1729_v41, %v1731_v42 }
 0x53c   : > { %v2024_v60 = vpop.eup %2023  ;;  %1968 = vmatpush3.msk.msra.mxu1 %vm1377_vm9, %v1370_v59  ;;  %1969 = vmatprep.mubr.msk.f32.mxu1 %vm2036_vm3, %v2037_v39  ;;  %v1771_v59 = vld [vmem:[%s509_s24] sm:$0xf] }
 0x53d   : > { %v1059_v61 = vmul.f32 %v2024_v60, %v2016_v43  ;;  %1977 = vmatprep.subr.mxu1 %v2037_v39 }
 0x53f   : > { %1965 = vmatmul.mubr.msk.f32.vlgmr.msra.gmra.mrb[8].mxu0 %vm1062_vm8, %v1059_v61 }
 0x540   : > { %1974 = vmatprep.mubr.msk.f32.mxu0 %vm2036_vm3, %v2037_v39  ;;  %1973 = vmatpush3.msk.msra.mxu0 %vm1377_vm9, %v1371_v62  ;;  %v1772_v62 = vld [vmem:[%s509_s24 + $0x4] sm:$0xf] }
 0x541   : > { %1982 = vmatprep.subr.mxu0 %v2037_v39 }
 0x5a5   : > { %v1135_v0 = vpop.f32.mrb[4].mxu1 }
 0x5a6   : > { %v1951_v1 = vpop.f32.mrb[5].mxu1  ;;  %1970 = vmatmul.mubr.msk.f32.vlgmr.msra.gmra.mrb[8].mxu1 %vm708_vm5, %v1135_v0 }
 0x5a7   : > { %1978 = vmatpush3.msk.msra.mxu1 %vm1377_vm9, %v1372_v63  ;;  %1979 = vmatprep.mubr.msk.f32.mxu1 %vm2036_vm3, %v2037_v39 }
 0x60a   : > { %v1212_v3 = vpop.f32.mrb[6].mxu0 }
 0x60b   : > { %v1956_v4 = vpop.f32.mrb[7].mxu0  ;;  %1975 = vmatmul.mubr.msk.f32.vlgmr.msra.gmra.mrb[10].mxu0 %vm708_vm5, %v1212_v3 }
 0x60c   : > { %1983 = vmatpush3.msk.msra.mxu0 %vm1377_vm9, %v1373_v2  ;;  %1984 = vmatprep.mubr.msk.f32.mxu0 %vm2036_vm3, %v2037_v39 }
 0x60e   : > { %v1289_v5 = vpop.f32.mrb[6].mxu1 }
 0x60f   : > { %v1961_v6 = vpop.f32.mrb[7].mxu1  ;;  %1980 = vmatmul.mubr.msk.f32.vlgmr.msra.gmra.mrb[10].mxu1 %vm708_vm5, %v1289_v5 }
 0x612   : > { %v1366_v7 = vpop.f32.mrb[8].mxu0 }
 0x613   : > { %v1966_v8 = vpop.f32.mrb[9].mxu0  ;;  %1985 = vmatmul.mubr.msk.f32.vlgmr.msra.gmra.mrb[12].mxu0 %vm708_vm5, %v1366_v7 }
 0x679   : > { %v1447_v9 = vpop.f32.mrb[8].mxu1 }
 0x67a   : > { %v1971_v10 = vpop.f32.mrb[9].mxu1  ;;  %v1679_v12 = vsel %vm552_vm2, %v1447_v9, 0.0 }
 0x6de   : > { %v1523_v11 = vpop.f32.mrb[10].mxu0 }
 0x6df   : > { %v1680_v13 = vsel %vm552_vm2, %v1523_v11, 0.0  ;;  %v1976_v14 = vpop.f32.mrb[11].mxu0 }
 0x6e0   : > { %v1681_v15 = vadd.f32 %v1680_v13, %v1679_v12 }
 0x6e2   : > { %v1599_v16 = vpop.f32.mrb[10].mxu1 }
 0x6e3   : > { %v1682_v39 = vsel %vm552_vm2, %v1599_v16, 0.0  ;;  %v1981_v17 = vpop.f32.mrb[11].mxu1 }
 0x6e4   : > { %v1683_v18 = vadd.f32 %v1682_v39, %v1681_v15 }
 0x6e6   : > { %v1675_v19 = vpop.f32.mrb[12].mxu0 }
 0x6e7   : > { %v1684_v20 = vsel %vm552_vm2, %v1675_v19, 0.0  ;;  %v1986_v22 = vpop.f32.mrb[13].mxu0 }
 0x6e8   : > { %v1685_v24 = vadd.f32 %v1684_v20, %v1683_v18 }
 0x6ea   : > { %v1693_v25 = vadd.f32 %v1884_v21, %v1685_v24 }
 0x6ec   : > { %v1695_v26 = vadd.f32 %v1693_v25, %v2175_v58  ;;  %v1885_v58 = vld [vmem:[%s2322_s10] ss:$0 sm:$0xff] }
 0x6ee   : > { %v1698_v27 = vsel %vm552_vm2, %v1695_v26, 0.0 }
 0x6ef   : > { %1699 = vadd.xlane.f32.xlu0 %v1698_v27 }
 0x77c   : > { %v1700_v28 = vpop.xlane.xlu0 %1699 }
 0x77d   : > { %v1701_v29 = vmul.f32 0.0625, %v1700_v28 }
 0x77f   : > { %v1702_v30 = vsub.f32 %v1695_v26, %v1701_v29 }
 0x781   : > { %v1703_v31 = vmul.f32 %v1702_v30, %v1702_v30 }
 0x783   : > { %v1704_v32 = vsel %vm552_vm2, %v1703_v31, 0.0 }
 0x784   : > { %1705 = vadd.xlane.f32.xlu1 %v1704_v32 }
 0x811   : > { %v1706_v33 = vpop.xlane.xlu1 %1705 }
 0x812   : > { %v1707_v34 = vmul.f32 0.0625, %v1706_v33 }
 0x814   : > { %v1708_v35 = vadd.f32 1e-05, %v1707_v34 }
 0x816   : > { %2025 = vrsqrt.f32 %v1708_v35 }
 0x820   : > { %v2026_v40 = vpop.eup %2025 }
 0x821   : > { %v1710_v43 = vmul.f32 %v2026_v40, %v1702_v30 }
 0x823   : > { %v1717_v45 = vmul.f32 %v1885_v58, %v1710_v43 }
 0x825   : > { %v1724_v47 = vadd.f32 %v1886_v44, %v1717_v45 }
 0x827   : > { %v1725_v48 = vadd.f32 %v1724_v47, %v2147_v23 }
 0x829   : > { %v1733_v50 = vrot.slane %v1725_v48, %v1732_v46 }
 0x82b   : > { %v1734_v51 = vcombine.high %v1733_v50, %v1733_v50  ;;  %v1741_v52 = vrot.slane %v1733_v50, %v1732_v46 }
 0x82d   : > { %v1748_v54 = vrot.slane %v1734_v51, %v1732_v46  ;;  %v1753_v55 = vrot.slane %v1741_v52, %v1752_v49 }
 0x82f   : > { %v1757_v57 = vrot.slane %v1748_v54, %v1752_v49  ;;  %v1760_v23 = vmul.f32 %v1753_v55, %v1749_v53 }
 0x831   : > { %v1761_v60 = vmul.f32 %v1757_v57, %v1749_v53  ;;  %v1769_v61 = vadd.f32 %v1887_v56, %v1760_v23 }
 0x833   : > { %v1770_v63 = vadd.f32 %v1887_v56, %v1761_v60  ;;  %v1773_v0 = vadd.f32 %v1771_v59, %v1769_v61 }
 0x835   : > { %v1774_v1 = vadd.f32 %v1772_v62, %v1770_v63  ;;  %1775 = vst.msk [vmem:[%s514_s29] sm:$0xf] %vm520_vm0, %v1773_v0 }
 0x837   : > { %1776 = vst.msk [vmem:[%s514_s29 + $0x4] sm:$0xf] %vm520_vm0, %v1774_v1 }
 0x838 PF: > { %s25_s18 = sadd.s32 1, %s2033_s18  }
 0x839   : > { %p22_p4 = scmp.ge.s32.totalorder %s25_s18, 18  }
 0x83b   :  { %24 = sbr.rel (!%p22_p4) target bundleno = 1 (0x1), region = 113 }

// kernel: separation_forward.13
= control target key start
LH: loop header
LB: loop body
LE: loop exit
PB: predicated region body
PF: predicated region fallthrough
CT: control target
= control target key end

     0   :  { %s2570_s29 = smov 0   ;;  %s2888_s0 = inlined_call_operand.vmem [shape: f32[16,8,1,16], index: 0, kind: input, shape index: {}]   ;;  %s2889_s1 = inlined_call_operand.vmem [shape: f32[1,16], index: 1, kind: input, shape index: {}]   ;;  %s2890_s2 = inlined_call_operand.vmem [shape: f32[1,16], index: 2, kind: input, shape index: {}]   ;;  %s2891_s3 = inlined_call_operand.vmem [shape: f32[1,16], index: 3, kind: input, shape index: {}]   ;;  %s2892_s4 = inlined_call_operand.vmem [shape: f32[1,16], index: 4, kind: input, shape index: {}]   ;;  %s2893_s5 = inlined_call_operand.vmem [shape: f32[8,16], index: 5, kind: input, shape index: {}]   ;;  %s2894_s6 = inlined_call_operand.vmem [shape: f32[16,48], index: 6, kind: input, shape index: {}]   ;;  %s2895_s7 = inlined_call_operand.vmem [shape: f32[1,48], index: 7, kind: input, shape index: {}]   ;;  %s2896_s8 = inlined_call_operand.vmem [shape: f32[4,4,16], index: 8, kind: input, shape index: {}]   ;;  %s2897_s9 = inlined_call_operand.vmem [shape: f32[1,16], index: 9, kind: input, shape index: {}]   ;;  %s2898_s10 = inlined_call_operand.vmem [shape: f32[1,16], index: 10, kind: input, shape index: {}]   ;;  %s2899_s11 = inlined_call_operand.vmem [shape: f32[1,16], index: 11, kind: input, shape index: {}]   ;;  %s2900_s12 = inlined_call_operand.vmem [shape: f32[1,16], index: 12, kind: input, shape index: {}]   ;;  %s2901_s13 = inlined_call_operand.vmem [shape: f32[1,16], index: 13, kind: input, shape index: {}]   ;;  %s2902_s14 = inlined_call_operand.vmem [shape: f32[16,8,1,16], index: 14, kind: output, shape index: {}]  }
   0x1 LB: > { %s2306_s30 = sadd.s32 4294967295, %s2484_s29   ;;  %p2310_p0 = scmp.ge.s32.totalorder %s2484_s29, 1  ;;  %s2484_s29 = sphi %s2570_s29, %s24_s29  }
   0x2   : > { %p411_p1 = scmp.lt.s32.totalorder %s2484_s29, 17 }
   0x4   : > { %p412_p2 = pnand %p2310_p0, %p411_p1 }
   0x5   : > { %p455_p3 = scmp.lt.s32.totalorder (!%p412_p2), %s2306_s30, 15  ;;  %v498_v0 = vlaneseq (!%p412_p2)  ;;  %v2313_v1 = vld [vmem:[%s2890_s2] ss:$0 sm:$0xff] (!%p412_p2)  ;;  %v2486_v2 = vmov (!%p412_p2), 1966171168   ;;  %vm619_vm0 = vcmask (!%p412_p2), 130048  }
   0x6   : > { %415 = sbr.rel (%p412_p2) target bundleno = 2117 (0x845), region = 76  ;;  %v496_v3 = vunpack.c.l.s4 (!%p412_p2), %v2486_v2  ;;  %v471_v6 = vld [vmem:[%s2889_s1] sm:$0x1] (!%p412_p2)  ;;  %v494_v7 = vcombine.high (!%p412_p2), %v2313_v1, %v2313_v1  ;;  %vm2488_vm1 = vmmov (!%p412_p2), 0   ;;  %s2490_s22 = smov (!%p412_p2), 116   ;;  %vm1156_vm2 = vcmask (!%p412_p2), 31744  }
   0x7   : > { %v2583_v4 = vshrl.u32 (!%p412_p2), %v498_v0, 7  ;;  %s2491_s23 = smov (!%p412_p2), 124   ;;  %s2492_s24 = smov (!%p412_p2), 120   ;;  %vm1463_vm3 = vcmask (!%p412_p2), 64512   ;;  %vm1819_vm4 = vcmask (!%p412_p2), 1043456   ;;  %vm2244_vm5 = vcmask (!%p412_p2), 122880  }
   0x8   : > { %v497_v5 = vunpack.c.0.s8 (!%p412_p2), %v496_v3  ;;  %s2493_s25 = smov (!%p412_p2), 112   ;;  %s2494_s26 = smov (!%p412_p2), 96  }
   0x9   : > { %v628_v59 = vsub.s32 (!%p412_p2), 0, %v2583_v4  ;;  %v632_v60 = vsub.s32 (!%p412_p2), 1, %v2583_v4  ;;  %v636_v61 = vsub.s32 (!%p412_p2), 2, %v2583_v4  ;;  %v640_v62 = vsub.s32 (!%p412_p2), 3, %v2583_v4 }
   0xa   : > { %v2595_v9 = vsub.s32 (!%p412_p2), %v497_v5, %v2583_v4  ;;  %v644_v0 = vsub.s32 (!%p412_p2), 4, %v2583_v4  ;;  %v652_v2 = vsub.s32 (!%p412_p2), 6, %v2583_v4  ;;  %v656_v3 = vsub.s32 (!%p412_p2), 7, %v2583_v4 }
   0xc   : > { %v501_v16 = vrot.slane (!%p412_p2), %v2313_v1, %v2595_v9  ;;  %v508_v19 = vrot.slane (!%p412_p2), %v494_v7, %v2595_v9  ;;  %v648_v1 = vsub.s32 (!%p412_p2), 5, %v2583_v4 }
   0xd   : > { %s2904_s30 = smov (!%p455_p3, %s2306_s30), 15 }
   0xe   : > { %s2311_s17 = sshll.u32 %s2904_s30, 3  ;;  %v509_v23 = vcombine.high %v501_v16, %v501_v16  ;;  %v517_v24 = vrot.slane %v501_v16, %v2595_v9  ;;  %v510_v27 = vcombine.high %v508_v19, %v508_v19  ;;  %v524_v28 = vrot.slane %v508_v19, %v2595_v9 }
   0xf   : > { %s458_s20 = scalar_lea.vmem %s2888_s0, %s2311_s17  ;;  %s462_s21 = scalar_lea.vmem %s2902_s14, %s2311_s17 }
  0x10   : > { %v463_v8 = vld [vmem:[%s458_s20] sm:$0x1]  ;;  %v464_v10 = vld [vmem:[%s458_s20 + $0x1] sm:$0x1]  ;;  %v465_v11 = vld [vmem:[%s458_s20 + $0x2] sm:$0x1]  ;;  %v531_v30 = vrot.slane %v509_v23, %v2595_v9  ;;  %v539_v31 = vcombine.high %v517_v24, %v517_v24  ;;  %v538_v34 = vrot.slane %v510_v27, %v2595_v9  ;;  %v540_v35 = vcombine.high %v524_v28, %v524_v28 }
  0x11   : > { %v467_v12 = vld [vmem:[%s458_s20 + $0x4] sm:$0x1]  ;;  %v468_v13 = vld [vmem:[%s458_s20 + $0x5] sm:$0x1]  ;;  %v469_v14 = vld [vmem:[%s458_s20 + $0x6] sm:$0x1]  ;;  %v472_v15 = vmul.f32 %v471_v6, %v463_v8  ;;  %v473_v21 = vmul.f32 %v471_v6, %v464_v10  ;;  %v474_v22 = vmul.f32 %v471_v6, %v465_v11 }
  0x12   : > { %v466_v17 = vld [vmem:[%s458_s20 + $0x3] sm:$0x1]  ;;  %v476_v18 = vmul.f32 %v471_v6, %v467_v12  ;;  %v470_v20 = vld [vmem:[%s458_s20 + $0x7] sm:$0x1]  ;;  %v477_v25 = vmul.f32 %v471_v6, %v468_v13  ;;  %v478_v26 = vmul.f32 %v471_v6, %v469_v14  ;;  %v541_v37 = vcombine.high %v531_v30, %v531_v30 }
  0x13   : > { %v475_v29 = vmul.f32 %v471_v6, %v466_v17  ;;  %v551_v32 = vadd.f32 %v517_v24, %v472_v15  ;;  %v479_v33 = vmul.f32 %v471_v6, %v470_v20  ;;  %v552_v38 = vadd.f32 %v531_v30, %v473_v21 }
  0x14   : > { %v555_v36 = vadd.f32 %v524_v28, %v476_v18  ;;  %v553_v39 = vadd.f32 %v539_v31, %v474_v22  ;;  %v542_v40 = vcombine.high %v538_v34, %v538_v34  ;;  %v556_v41 = vadd.f32 %v538_v34, %v477_v25 }
  0x15   : > { %v557_v42 = vadd.f32 %v540_v35, %v478_v26  ;;  %v554_v43 = vadd.f32 %v541_v37, %v475_v29  ;;  %v569_v44 = vcombine.low %v551_v32, %v552_v38 }
  0x16   : > { %v558_v45 = vadd.f32 %v542_v40, %v479_v33  ;;  %v571_v46 = vcombine.low %v555_v36, %v556_v41 }
  0x17   : > { %v570_v47 = vcombine.low %v553_v39, %v554_v43  ;;  %v579_v48 = vrot.slane %v569_v44, %v2595_v9 }
  0x18   : > { %v572_v49 = vcombine.low %v557_v42, %v558_v45  ;;  %v593_v50 = vrot.slane %v571_v46, %v2595_v9  ;;  %v1003_v46 = vld [vmem:[%s2894_s6 + $0x8] sm:$0xff] }
  0x19   : > { %v586_v51 = vrot.slane %v570_v47, %v2595_v9  ;;  %v2487_v47 = vmov 0.0|0.0  }
  0x1a   : > { %v600_v52 = vrot.slane %v572_v49, %v2595_v9  ;;  %2437 = vmatprep.subr.bf16.mxu0 %v2487_v47  ;;  %v2489_v49 = vmov 0.0  }
  0x1b   : > { %v601_v53 = vcombine.low %v579_v48, %v586_v51  ;;  %2374 = vmatprep.mubr.msk.f32.mxu0 %vm2488_vm1, %v2489_v49  ;;  %2377 = vmatprep.subr.mxu1 %v2489_v49  ;;  %v2315_v51 = vld [vmem:[%s2892_s4] ss:$0 sm:$0xff] }
  0x1c   : > { %v602_v54 = vcombine.low %v593_v50, %v600_v52  ;;  %2379 = vmatprep.mubr.msk.f32.mxu1 %vm2488_vm1, %v2489_v49  ;;  %v2314_v50 = vld [vmem:[%s2891_s3] ss:$0 sm:$0xff] }
  0x1d   : > { %v609_v55 = vrot.slane %v601_v53, %v2595_v9  ;;  %v935_v52 = vld [vmem:[%s2893_s5] sm:$0xff]  ;;  %v800_v53 = vcombine.high %v2314_v50, %v2314_v50 }
  0x1e   : > { %v616_v56 = vrot.slane %v602_v54, %v2595_v9  ;;  %v870_v54 = vcombine.high %v2315_v51, %v2315_v51 }
  0x20   : > { %v2609_v57 = vcombine.low %v609_v55, %v616_v56  ;;  %v937_v55 = vcombine.high %v935_v52, %v935_v52 }
  0x22   : > { %v620_v58 = vsel %vm619_vm0, %v2609_v57, 0.0 }
  0x23   : > { %621 = vadd.xlane.f32.xlu0 %v620_v58 }
  0xb0   : > { %v622_v63 = vpop.xlane.xlu0 %621 }
  0xb1   : > { %v624_v5 = vmul.f32 0.0625, %v622_v63  ;;  %v807_v63 = vrot.slane %v2314_v50, %v2595_v9 }
  0xb3   : > { %v629_v6 = vrot.slane %v624_v5, %v628_v59  ;;  %v633_v7 = vrot.slane %v624_v5, %v632_v60  ;;  %v637_v8 = vrot.slane %v624_v5, %v636_v61  ;;  %v641_v10 = vrot.slane %v624_v5, %v640_v62 }
  0xb4   : > { %v645_v11 = vrot.slane %v624_v5, %v644_v0  ;;  %v649_v12 = vrot.slane %v624_v5, %v648_v1  ;;  %v653_v13 = vrot.slane %v624_v5, %v652_v2  ;;  %v657_v14 = vrot.slane %v624_v5, %v656_v3 }
  0xb5   : > { %v2637_v15 = vsub.f32 %v551_v32, %v629_v6  ;;  %v2639_v16 = vsub.f32 %v552_v38, %v633_v7  ;;  %v2641_v17 = vsub.f32 %v553_v39, %v637_v8  ;;  %v2643_v18 = vsub.f32 %v554_v43, %v641_v10 }
  0xb6   : > { %v2645_v19 = vsub.f32 %v555_v36, %v645_v11  ;;  %v2647_v20 = vsub.f32 %v556_v41, %v649_v12  ;;  %v2649_v21 = vsub.f32 %v557_v42, %v653_v13  ;;  %v2651_v22 = vsub.f32 %v558_v45, %v657_v14  ;;  %v1002_v45 = vld [vmem:[%s2894_s6] sm:$0xff] }
  0xb7   : > { %v674_v23 = vmul.f32 %v2637_v15, %v2637_v15  ;;  %v675_v24 = vmul.f32 %v2639_v16, %v2639_v16  ;;  %v676_v25 = vmul.f32 %v2641_v17, %v2641_v17  ;;  %v677_v26 = vmul.f32 %v2643_v18, %v2643_v18 }
  0xb8   : > { %v678_v27 = vmul.f32 %v2645_v19, %v2645_v19  ;;  %v679_v28 = vmul.f32 %v2647_v20, %v2647_v20  ;;  %v680_v29 = vmul.f32 %v2649_v21, %v2649_v21  ;;  %v681_v30 = vmul.f32 %v2651_v22, %v2651_v22 }
  0xb9   : > { %v690_v31 = vcombine.low %v674_v23, %v675_v24  ;;  %v691_v32 = vcombine.low %v676_v25, %v677_v26  ;;  %v2438_v48 = vpack.c.bf16 %v1003_v46, %v1002_v45  ;;  %v814_v5 = vrot.slane %v800_v53, %v2595_v9 }
  0xba   : > { %v692_v33 = vcombine.low %v678_v27, %v679_v28  ;;  %v693_v34 = vcombine.low %v680_v29, %v681_v30  ;;  %v877_v6 = vrot.slane %v2315_v51, %v2595_v9  ;;  %v884_v7 = vrot.slane %v870_v54, %v2595_v9 }
  0xbb   : > { %v700_v35 = vrot.slane %v690_v31, %v2595_v9  ;;  %v707_v36 = vrot.slane %v691_v32, %v2595_v9  ;;  %2439 = vmatpush3.bf16.msra.mxu0 %v2438_v48  ;;  %v944_v10 = vrot.slane %v935_v52, %v2595_v9  ;;  %v951_v11 = vrot.slane %v937_v55, %v2595_v9 }
  0xbc   : > { %v714_v37 = vrot.slane %v692_v33, %v2595_v9  ;;  %v721_v38 = vrot.slane %v693_v34, %v2595_v9  ;;  %2382 = vmatprep.subr.mxu0 %v2489_v49  ;;  %v815_v12 = vcombine.high %v807_v63, %v807_v63  ;;  %v816_v13 = vcombine.high %v814_v5, %v814_v5 }
  0xbd   : > { %v722_v39 = vcombine.low %v700_v35, %v707_v36  ;;  %v885_v14 = vcombine.high %v877_v6, %v877_v6  ;;  %v886_v23 = vcombine.high %v884_v7, %v884_v7  ;;  %v952_v24 = vcombine.high %v944_v10, %v944_v10 }
  0xbe   : > { %v723_v40 = vcombine.low %v714_v37, %v721_v38  ;;  %v953_v25 = vcombine.high %v951_v11, %v951_v11  ;;  %v823_v26 = vrot.slane %v807_v63, %v2595_v9  ;;  %v830_v27 = vrot.slane %v814_v5, %v2595_v9 }
  0xbf   : > { %v730_v41 = vrot.slane %v722_v39, %v2595_v9  ;;  %v837_v28 = vrot.slane %v815_v12, %v2595_v9  ;;  %v844_v29 = vrot.slane %v816_v13, %v2595_v9  ;;  %v893_v30 = vrot.slane %v877_v6, %v2595_v9 }
  0xc0   : > { %v737_v42 = vrot.slane %v723_v40, %v2595_v9  ;;  %v900_v31 = vrot.slane %v884_v7, %v2595_v9  ;;  %v907_v32 = vrot.slane %v885_v14, %v2595_v9  ;;  %v914_v33 = vrot.slane %v886_v23, %v2595_v9 }
  0xc1   : > { %v960_v34 = vrot.slane %v944_v10, %v2595_v9  ;;  %v967_v35 = vrot.slane %v951_v11, %v2595_v9  ;;  %v974_v36 = vrot.slane %v952_v24, %v2595_v9  ;;  %v981_v37 = vrot.slane %v953_v25, %v2595_v9 }
  0xc2   : > { %v738_v43 = vcombine.low %v730_v41, %v737_v42  ;;  %v845_v38 = vcombine.high %v823_v26, %v823_v26  ;;  %v846_v39 = vcombine.high %v830_v27, %v830_v27  ;;  %v847_v40 = vcombine.high %v837_v28, %v837_v28 }
  0xc3   : > { %v848_v41 = vcombine.high %v844_v29, %v844_v29  ;;  %v915_v42 = vcombine.high %v893_v30, %v893_v30  ;;  %v918_v45 = vcombine.high %v914_v33, %v914_v33  ;;  %v982_v47 = vcombine.high %v960_v34, %v960_v34 }
  0xc4   : > { %v740_v44 = vsel %vm619_vm0, %v738_v43, 0.0  ;;  %v916_v43 = vcombine.high %v900_v31, %v900_v31  ;;  %v983_v48 = vcombine.high %v967_v35, %v967_v35  ;;  %v984_v50 = vcombine.high %v974_v36, %v974_v36 }
  0xc5   : > { %741 = vadd.xlane.f32.xlu0 %v740_v44  ;;  %v917_v44 = vcombine.high %v907_v32, %v907_v32  ;;  %v985_v51 = vcombine.high %v981_v37, %v981_v37 }
 0x152   : > { %v742_v56 = vpop.xlane.xlu0 %741 }
 0x153   : > { %v743_v58 = vmul.f32 0.0625, %v742_v56 }
 0x155   : > { %v744_v8 = vadd.f32 1e-05, %v743_v58 }
 0x157   : > { %2458 = vrsqrt.f32 %v744_v8 }
 0x161   : > { %v2459_v46 = vpop.eup %2458 }
 0x162   : > { %v750_v52 = vrot.slane %v2459_v46, %v628_v59  ;;  %v754_v53 = vrot.slane %v2459_v46, %v632_v60  ;;  %v758_v54 = vrot.slane %v2459_v46, %v636_v61  ;;  %v762_v55 = vrot.slane %v2459_v46, %v640_v62 }
 0x163   : > { %v766_v56 = vrot.slane %v2459_v46, %v644_v0  ;;  %v770_v58 = vrot.slane %v2459_v46, %v648_v1  ;;  %v774_v63 = vrot.slane %v2459_v46, %v652_v2  ;;  %v778_v59 = vrot.slane %v2459_v46, %v656_v3 }
 0x164   : > { %v787_v60 = vmul.f32 %v750_v52, %v2637_v15  ;;  %v788_v5 = vmul.f32 %v754_v53, %v2639_v16  ;;  %v789_v61 = vmul.f32 %v758_v54, %v2641_v17  ;;  %v790_v62 = vmul.f32 %v762_v55, %v2643_v18 }
 0x165   : > { %v791_v6 = vmul.f32 %v766_v56, %v2645_v19  ;;  %v792_v0 = vmul.f32 %v770_v58, %v2647_v20  ;;  %v793_v1 = vmul.f32 %v774_v63, %v2649_v21  ;;  %v794_v7 = vmul.f32 %v778_v59, %v2651_v22 }
 0x166   : > { %v857_v2 = vmul.f32 %v823_v26, %v787_v60  ;;  %v858_v8 = vmul.f32 %v837_v28, %v788_v5  ;;  %v859_v4 = vmul.f32 %v845_v38, %v789_v61  ;;  %v860_v3 = vmul.f32 %v847_v40, %v790_v62 }
 0x167   : > { %v861_v10 = vmul.f32 %v830_v27, %v791_v6  ;;  %v862_v15 = vmul.f32 %v844_v29, %v792_v0  ;;  %v863_v11 = vmul.f32 %v846_v39, %v793_v1  ;;  %v864_v16 = vmul.f32 %v848_v41, %v794_v7 }
 0x168   : > { %v927_v12 = vadd.f32 %v893_v30, %v857_v2  ;;  %v928_v17 = vadd.f32 %v907_v32, %v858_v8  ;;  %v929_v13 = vadd.f32 %v915_v42, %v859_v4  ;;  %v930_v18 = vadd.f32 %v917_v44, %v860_v3 }
 0x169   : > { %v931_v14 = vadd.f32 %v900_v31, %v861_v10  ;;  %v932_v19 = vadd.f32 %v914_v33, %v862_v15  ;;  %v933_v23 = vadd.f32 %v916_v43, %v863_v11  ;;  %v934_v20 = vadd.f32 %v918_v45, %v864_v16  ;;  %v2316_v43 = vld [vmem:[%s2895_s7] ss:$0 sm:$0xff] }
 0x16a   : > { %v994_v24 = vadd.f32 %v960_v34, %v927_v12  ;;  %v995_v21 = vadd.f32 %v974_v36, %v928_v17  ;;  %v996_v25 = vadd.f32 %v982_v47, %v929_v13  ;;  %v997_v22 = vadd.f32 %v984_v50, %v930_v18 }
 0x16b   : > { %v998_v26 = vadd.f32 %v967_v35, %v931_v14  ;;  %v999_v28 = vadd.f32 %v981_v37, %v932_v19  ;;  %v1000_v38 = vadd.f32 %v983_v48, %v933_v23  ;;  %v1001_v40 = vadd.f32 %v985_v51, %v934_v20 }
 0x16c   : > { %v1019_v27 = vcombine.low %v994_v24, %v995_v21  ;;  %v1020_v29 = vcombine.low %v996_v25, %v997_v22 }
 0x16d   : > { %v1021_v39 = vcombine.low %v998_v26, %v999_v28  ;;  %v1022_v41 = vcombine.low %v1000_v38, %v1001_v40 }
 0x16e   : > { %v1029_v30 = vrot.slane %v1019_v27, %v2595_v9  ;;  %v1036_v32 = vrot.slane %v1020_v29, %v2595_v9 }
 0x16f   : > { %v1043_v31 = vrot.slane %v1021_v39, %v2595_v9  ;;  %v1050_v33 = vrot.slane %v1022_v41, %v2595_v9 }
 0x170   : > { %v1051_v34 = vcombine.low %v1029_v30, %v1036_v32 }
 0x171   : > { %v1052_v36 = vcombine.low %v1043_v31, %v1050_v33 }
 0x172   : > { %v1059_v42 = vrot.slane %v1051_v34, %v2595_v9 }
 0x173   : > { %v1066_v35 = vrot.slane %v1052_v36, %v2595_v9 }
 0x175   : > { %v2745_v37 = vcombine.low %v1059_v42, %v1066_v35 }
 0x177   : > { %2375 = vmatmul.mubr.msk.f32.vlgmr.msra.gmra.mrb[0].mxu0 %vm619_vm0, %v2745_v37 }
 0x178   : > { %2384 = vmatprep.mubr.msk.f32.mxu0 %vm2488_vm1, %v2489_v49 }
 0x24a   : > { %v1136_v44 = vpop.f32.mrb[0].mxu0 }
 0x24b   : > { %v1137_v45 = vadd.f32 %v2316_v43, %v1136_v44  ;;  %v2376_v46 = vpop.f32.mrb[1].mxu0  ;;  %v1812_v44 = vld [vmem:[%s2896_s8] sm:$0xf] }
 0x24d   : > { %1147 = vrot.lane.b32.xlu0 %v1137_v45, %s2490_s22  ;;  %1141 = vrot.lane.b32.xlu1 %v1137_v45, %s2491_s23  ;;  %v1150_v52 = vmul.f32 0.5, %v1137_v45 }
 0x251   : > { %1144 = vrot.lane.b32.xlu1 %v1137_v45, %s2492_s24 }
 0x255   : > { %1154 = vrot.lane.b32.xlu1 %v1137_v45, %s2493_s25 }
 0x2bf   : > { %v2754_v47 = vpop.permute.xlu1 %1141  ;;  %v2760_v50 = vpop.permute.xlu0 %1147 }
 0x2c0   : > { %1232 = vrot.lane.b32.xlu1 %v2754_v47, %s2493_s25  ;;  %v1151_v54 = vmul.f32 0.5, %v2754_v47  ;;  %v1153_v63 = vmul.f32 0.5, %v2760_v50 }
 0x2c3   : > { %v2757_v48 = vpop.permute.xlu1 %1144 }
 0x2c4   : > { %1309 = vrot.lane.b32.xlu1 %v2757_v48, %s2493_s25  ;;  %v1152_v56 = vmul.f32 0.5, %v2757_v48 }
 0x2c7   : > { %v1155_v51 = vpop.permute.xlu1 %1154 }
 0x2c8   : > { %1386 = vrot.lane.b32.xlu1 %v2760_v50, %s2493_s25  ;;  %2378 = vmatpush3.xpose.msk.msra.mxu1 %vm1156_vm2, %v1155_v51 }
 0x2c9   : > { %2387 = vmatprep.subr.mxu1 %v2489_v49 }
 0x2cb   : > { %2380 = vmatmul.mubr.msk.f32.vlgmr.msra.gmra.mrb[0].mxu1 %vm1156_vm2, %v1150_v52  ;;  %v1815_v52 = vld [vmem:[%s2896_s8 + $0xc] sm:$0xf] }
 0x2cc   : > { %2389 = vmatprep.mubr.msk.f32.mxu1 %vm2488_vm1, %v2489_v49 }
 0x332   : > { %v1233_v53 = vpop.permute.xlu1 %1232 }
 0x333   : > { %2383 = vmatpush3.xpose.msk.msra.mxu0 %vm1156_vm2, %v1233_v53 }
 0x334   : > { %2392 = vmatprep.subr.mxu0 %v2489_v49 }
 0x336   : > { %2385 = vmatmul.mubr.msk.f32.vlgmr.msra.gmra.mrb[2].mxu0 %vm1156_vm2, %v1151_v54  ;;  %v1310_v55 = vpop.permute.xlu1 %1309 }
 0x337   : > { %2388 = vmatpush3.xpose.msk.msra.mxu1 %vm1156_vm2, %v1310_v55  ;;  %2394 = vmatprep.mubr.msk.f32.mxu0 %vm2488_vm1, %v2489_v49 }
 0x338   : > { %2397 = vmatprep.subr.mxu1 %v2489_v49 }
 0x33a   : > { %v1387_v58 = vpop.permute.xlu1 %1386  ;;  %2390 = vmatmul.mubr.msk.f32.vlgmr.msra.gmra.mrb[2].mxu1 %vm1156_vm2, %v1152_v56 }
 0x33b   : > { %2393 = vmatpush3.xpose.msk.msra.mxu0 %vm1156_vm2, %v1387_v58  ;;  %2399 = vmatprep.mubr.msk.f32.mxu1 %vm2488_vm1, %v2489_v49 }
 0x33c   : > { %2402 = vmatprep.subr.mxu0 %v2489_v49 }
 0x33e   : > { %2395 = vmatmul.mubr.msk.f32.vlgmr.msra.gmra.mrb[4].mxu0 %vm1156_vm2, %v1153_v63 }
 0x33f   : > { %2404 = vmatprep.mubr.msk.f32.mxu0 %vm2488_vm1, %v2489_v49 }
 0x39e   : > { %v1228_v59 = vpop.f32.mrb[0].mxu1 }
 0x39f   : > { %v2381_v60 = vpop.f32.mrb[1].mxu1  ;;  %v1464_v5 = vsel %vm1463_vm3, %v1228_v59, -inf }
 0x3a0   : > { %1465 = vmax.xlane.f32.xlu1 %v1464_v5 }
 0x409   : > { %v1305_v61 = vpop.f32.mrb[2].mxu0 }
 0x40a   : > { %v2386_v62 = vpop.f32.mrb[3].mxu0  ;;  %v1467_v6 = vsel %vm1463_vm3, %v1305_v61, -inf }
 0x40b   : > { %1468 = vmax.xlane.f32.xlu0 %v1467_v6 }
 0x40d   : > { %v1382_v0 = vpop.f32.mrb[2].mxu1 }
 0x40e   : > { %v2391_v1 = vpop.f32.mrb[3].mxu1  ;;  %v1470_v7 = vsel %vm1463_vm3, %v1382_v0, -inf }
 0x40f   : > { %1471 = vmax.xlane.f32.xlu1 %v1470_v7 }
 0x411   : > { %v1459_v2 = vpop.f32.mrb[4].mxu0 }
 0x412   : > { %v2396_v8 = vpop.f32.mrb[5].mxu0  ;;  %v1473_v4 = vsel %vm1463_vm3, %v1459_v2, -inf }
 0x413   : > { %1474 = vmax.xlane.f32.xlu0 %v1473_v4 }
 0x420   : > { %1508 = vrot.lane.b32.xlu1 %v1137_v45, %s2494_s26 }
 0x42d   : > { %v1466_v3 = vpop.xlane.xlu1 %1465 }
 0x42e   : > { %v1476_v10 = vsub.f32 %v1228_v59, %v1466_v3  ;;  %v2338_v3 = vld [vmem:[%s2897_s9] ss:$0 sm:$0xff] }
 0x430   : > { %v1480_v15 = vmul.f32 1.442695, %v1476_v10 }
 0x432   : > { %2460 = vpow2.f32 %v1480_v15 }
 0x43c   : > { %v2461_v11 = vpop.eup %2460 }
 0x43d   : > { %v1488_v16 = vsel %vm1463_vm3, %v2461_v11, 0.0 }
 0x444   : > { %1489 = vadd.xlane.f32.xlu1 %v1488_v16 }
 0x498   : > { %v1469_v12 = vpop.xlane.xlu0 %1468 }
 0x499   : > { %v1477_v17 = vsub.f32 %v1305_v61, %v1469_v12 }
 0x49b   : > { %v1482_v13 = vmul.f32 1.442695, %v1477_v17 }
 0x49c   : > { %v1472_v18 = vpop.xlane.xlu1 %1471 }
 0x49d   : > { %2462 = vpow2.f32 %v1482_v13  ;;  %v1478_v14 = vsub.f32 %v1382_v0, %v1472_v18 }
 0x49f   : > { %v1484_v19 = vmul.f32 1.442695, %v1478_v14 }
 0x4a0   : > { %v1509_v23 = vpop.permute.xlu1 %1508  ;;  %v1475_v20 = vpop.xlane.xlu0 %1474 }
 0x4a1   : > { %2464 = vpow2.f32 %v1484_v19  ;;  %v1479_v24 = vsub.f32 %v1459_v2, %v1475_v20  ;;  %2398 = vmatpush3.msra.mxu1 %v1509_v23 }
 0x4a2   : > { %2407 = vmatprep.subr.mxu1 %v2489_v49 }
 0x4a3   : > { %v1486_v21 = vmul.f32 1.442695, %v1479_v24 }
 0x4a5   : > { %2466 = vpow2.f32 %v1486_v21 }
 0x4a7   : > { %v2463_v25 = vpop.eup %2462 }
 0x4a8   : > { %v1491_v22 = vsel %vm1463_vm3, %v2463_v25, 0.0 }
 0x4a9   : > { %1492 = vadd.xlane.f32.xlu0 %v1491_v22  ;;  %v2340_v22 = vld [vmem:[%s2899_s11] ss:$0 sm:$0xff] }
 0x4ab   : > { %v2465_v26 = vpop.eup %2464 }
 0x4ac   : > { %v1494_v28 = vsel %vm1463_vm3, %v2465_v26, 0.0 }
 0x4ad   : > { %1495 = vadd.xlane.f32.xlu1 %v1494_v28 }
 0x4af   : > { %v2467_v38 = vpop.eup %2466 }
 0x4b0   : > { %v1497_v40 = vsel %vm1463_vm3, %v2467_v38, 0.0 }
 0x4b1   : > { %1498 = vadd.xlane.f32.xlu0 %v1497_v40 }
 0x4be   : > { %1660 = vrot.lane.b32.xlu1 %v2757_v48, %s2494_s26  ;;  %v1814_v48 = vld [vmem:[%s2896_s8 + $0x8] sm:$0xf] }
 0x4c2   : > { %1736 = vrot.lane.b32.xlu1 %v2760_v50, %s2494_s26 }
 0x4c7   : > { %1584 = vrot.lane.b32.xlu0 %v2754_v47, %s2494_s26  ;;  %v1813_v47 = vld [vmem:[%s2896_s8 + $0x4] sm:$0xf] }
 0x4d1   : > { %v1490_v27 = vpop.xlane.xlu1 %1489 }
 0x4d2   : > { %2468 = vrcp.f32 %v1490_v27 }
 0x4dc   : > { %v2469_v29 = vpop.eup %2468 }
 0x4dd   : > { %v1504_v39 = vmul.f32 %v2469_v29, %v2461_v11  ;;  %v2226_v29 = vld [vmem:[%s2900_s12] sm:$0x1] }
 0x4df   : > { %2400 = vmatmul.mubr.msk.f32.vlgmr.msra.gmra.mrb[4].mxu1 %vm1463_vm3, %v1504_v39 }
 0x4e0   : > { %2409 = vmatprep.mubr.msk.f32.mxu1 %vm2488_vm1, %v2489_v49 }
 0x536   : > { %v1493_v41 = vpop.xlane.xlu0 %1492 }
 0x537   : > { %2470 = vrcp.f32 %v1493_v41 }
 0x53a   : > { %v1496_v30 = vpop.xlane.xlu1 %1495 }
 0x53b   : > { %2472 = vrcp.f32 %v1496_v30 }
 0x53e   : > { %v1661_v32 = vpop.permute.xlu1 %1660  ;;  %v1499_v31 = vpop.xlane.xlu0 %1498 }
 0x53f   : > { %2474 = vrcp.f32 %v1499_v31  ;;  %2408 = vmatpush3.msra.mxu1 %v1661_v32  ;;  %v2235_v32 = vld [vmem:[%s2901_s13] sm:$0x1] }
 0x540   : > { %2417 = vmatprep.subr.mxu1 %v2489_v49 }
 0x541   : > { %v2471_v33 = vpop.eup %2470 }
 0x542   : > { %v1505_v34 = vmul.f32 %v2471_v33, %v2463_v25  ;;  %v1585_v36 = vpop.permute.xlu0 %1584  ;;  %v1737_v42 = vpop.permute.xlu1 %1736  ;;  %v2339_v25 = vld [vmem:[%s2898_s10] ss:$0 sm:$0xff] }
 0x543   : > { %2403 = vmatpush3.msra.mxu0 %v1585_v36 }
 0x544   : > { %2405 = vmatmul.mubr.msk.f32.vlgmr.msra.gmra.mrb[6].mxu0 %vm1463_vm3, %v1505_v34  ;;  %2412 = vmatprep.subr.mxu0 %v2489_v49 }
 0x545   : > { %v2473_v35 = vpop.eup %2472  ;;  %2413 = vmatpush3.msra.mxu0 %v1737_v42  ;;  %2414 = vmatprep.mubr.msk.f32.mxu0 %vm2488_vm1, %v2489_v49 }
 0x546   : > { %v1506_v43 = vmul.f32 %v2473_v35, %v2465_v26  ;;  %2422 = vmatprep.subr.mxu0 %v2489_v49 }
 0x548   : > { %2410 = vmatmul.mubr.msk.f32.vlgmr.msra.gmra.mrb[6].mxu1 %vm1463_vm3, %v1506_v43 }
 0x549   : > { %v2475_v45 = vpop.eup %2474  ;;  %2418 = vmatpush3.msk.msra.mxu1 %vm1819_vm4, %v1812_v44  ;;  %2419 = vmatprep.mubr.msk.f32.mxu1 %vm2488_vm1, %v2489_v49 }
 0x54a   : > { %v1507_v46 = vmul.f32 %v2475_v45, %v2467_v38  ;;  %2427 = vmatprep.subr.mxu1 %v2489_v49 }
 0x54c   : > { %2415 = vmatmul.mubr.msk.f32.vlgmr.msra.gmra.mrb[8].mxu0 %vm1463_vm3, %v1507_v46 }
 0x54d   : > { %2424 = vmatprep.mubr.msk.f32.mxu0 %vm2488_vm1, %v2489_v49  ;;  %2423 = vmatpush3.msk.msra.mxu0 %vm1819_vm4, %v1813_v47 }
 0x54e   : > { %2432 = vmatprep.subr.mxu0 %v2489_v49 }
 0x5b2   : > { %v1580_v50 = vpop.f32.mrb[4].mxu1 }
 0x5b3   : > { %v2401_v51 = vpop.f32.mrb[5].mxu1  ;;  %2420 = vmatmul.mubr.msk.f32.vlgmr.msra.gmra.mrb[8].mxu1 %vm1156_vm2, %v1580_v50 }
 0x5b4   : > { %2428 = vmatpush3.msk.msra.mxu1 %vm1819_vm4, %v1814_v48  ;;  %2429 = vmatprep.mubr.msk.f32.mxu1 %vm2488_vm1, %v2489_v49 }
 0x617   : > { %v1656_v53 = vpop.f32.mrb[6].mxu0 }
 0x618   : > { %v2406_v54 = vpop.f32.mrb[7].mxu0  ;;  %2425 = vmatmul.mubr.msk.f32.vlgmr.msra.gmra.mrb[10].mxu0 %vm1156_vm2, %v1656_v53 }
 0x619   : > { %2433 = vmatpush3.msk.msra.mxu0 %vm1819_vm4, %v1815_v52  ;;  %2434 = vmatprep.mubr.msk.f32.mxu0 %vm2488_vm1, %v2489_v49 }
 0x61b   : > { %v1732_v55 = vpop.f32.mrb[6].mxu1 }
 0x61c   : > { %v2411_v56 = vpop.f32.mrb[7].mxu1  ;;  %2430 = vmatmul.mubr.msk.f32.vlgmr.msra.gmra.mrb[10].mxu1 %vm1156_vm2, %v1732_v55 }
 0x61f   : > { %v1808_v58 = vpop.f32.mrb[8].mxu0 }
 0x620   : > { %v2416_v63 = vpop.f32.mrb[9].mxu0  ;;  %2435 = vmatmul.mubr.msk.f32.vlgmr.msra.gmra.mrb[12].mxu0 %vm1156_vm2, %v1808_v58 }
 0x686   : > { %v1889_v59 = vpop.f32.mrb[8].mxu1 }
 0x687   : > { %v2421_v60 = vpop.f32.mrb[9].mxu1  ;;  %v2121_v61 = vsel %vm619_vm0, %v1889_v59, 0.0 }
 0x6eb   : > { %v1965_v5 = vpop.f32.mrb[10].mxu0 }
 0x6ec   : > { %v2122_v62 = vsel %vm619_vm0, %v1965_v5, 0.0  ;;  %v2426_v6 = vpop.f32.mrb[11].mxu0 }
 0x6ed   : > { %v2123_v0 = vadd.f32 %v2122_v62, %v2121_v61 }
 0x6ef   : > { %v2041_v1 = vpop.f32.mrb[10].mxu1 }
 0x6f0   : > { %v2124_v49 = vsel %vm619_vm0, %v2041_v1, 0.0  ;;  %v2431_v7 = vpop.f32.mrb[11].mxu1 }
 0x6f1   : > { %v2125_v2 = vadd.f32 %v2124_v49, %v2123_v0 }
 0x6f3   : > { %v2117_v8 = vpop.f32.mrb[12].mxu0 }
 0x6f4   : > { %v2126_v4 = vsel %vm619_vm0, %v2117_v8, 0.0  ;;  %v2436_v10 = vpop.f32.mrb[13].mxu0 }
 0x6f5   : > { %v2127_v15 = vadd.f32 %v2126_v4, %v2125_v2 }
 0x6f7   : > { %v2135_v11 = vadd.f32 %v2338_v3, %v2127_v15 }
 0x6f9   : > { %v2137_v16 = vadd.f32 %v2135_v11, %v2745_v37 }
 0x6fb   : > { %v2140_v12 = vsel %vm619_vm0, %v2137_v16, 0.0 }
 0x6fc   : > { %2141 = vadd.xlane.f32.xlu0 %v2140_v12 }
 0x789   : > { %v2142_v17 = vpop.xlane.xlu0 %2141 }
 0x78a   : > { %v2143_v13 = vmul.f32 0.0625, %v2142_v17 }
 0x78c   : > { %v2144_v18 = vsub.f32 %v2137_v16, %v2143_v13 }
 0x78e   : > { %v2145_v14 = vmul.f32 %v2144_v18, %v2144_v18 }
 0x790   : > { %v2146_v19 = vsel %vm619_vm0, %v2145_v14, 0.0 }
 0x791   : > { %2147 = vadd.xlane.f32.xlu1 %v2146_v19 }
 0x81e   : > { %v2148_v23 = vpop.xlane.xlu1 %2147 }
 0x81f   : > { %v2149_v20 = vmul.f32 0.0625, %v2148_v23 }
 0x821   : > { %v2150_v24 = vadd.f32 1e-05, %v2149_v20 }
 0x823   : > { %2476 = vrsqrt.f32 %v2150_v24 }
 0x82d   : > { %v2477_v21 = vpop.eup %2476 }
 0x82e   : > { %v2152_v37 = vmul.f32 %v2477_v21, %v2144_v18 }
 0x830   : > { %v2159_v26 = vmul.f32 %v2339_v25, %v2152_v37 }
 0x832   : > { %v2166_v28 = vadd.f32 %v2340_v22, %v2159_v26 }
 0x834   : > { %v2167_v38 = vadd.f32 %v2166_v28, %v2609_v57 }
 0x836   : > { %v2169_v40 = vcombine.high %v2167_v38, %v2167_v38  ;;  %v2176_v27 = vrot.slane %v2167_v38, %v2595_v9 }
 0x838   : > { %v2183_v39 = vrot.slane %v2169_v40, %v2595_v9  ;;  %v2184_v41 = vcombine.high %v2176_v27, %v2176_v27  ;;  %v2192_v30 = vrot.slane %v2176_v27, %v2595_v9 }
 0x83a   : > { %v2185_v31 = vcombine.high %v2183_v39, %v2183_v39  ;;  %v2199_v33 = vrot.slane %v2183_v39, %v2595_v9  ;;  %v2206_v57 = vrot.slane %v2184_v41, %v2595_v9  ;;  %v2214_v34 = vcombine.high %v2192_v30, %v2192_v30 }
 0x83b   : > { %v2227_v36 = vmul.f32 %v2226_v29, %v2192_v30 }
 0x83c   : > { %v2213_v42 = vrot.slane %v2185_v31, %v2595_v9  ;;  %v2215_v35 = vcombine.high %v2199_v33, %v2199_v33  ;;  %v2216_v43 = vcombine.high %v2206_v57, %v2206_v57  ;;  %v2228_v44 = vmul.f32 %v2226_v29, %v2206_v57 }
 0x83d   : > { %v2229_v45 = vmul.f32 %v2226_v29, %v2214_v34  ;;  %v2231_v46 = vmul.f32 %v2226_v29, %v2199_v33  ;;  %v2236_v47 = vadd.f32 %v2235_v32, %v2227_v36 }
 0x83e   : > { %v2217_v48 = vcombine.high %v2213_v42, %v2213_v42  ;;  %v2230_v50 = vmul.f32 %v2226_v29, %v2216_v43  ;;  %v2232_v51 = vmul.f32 %v2226_v29, %v2213_v42  ;;  %v2233_v52 = vmul.f32 %v2226_v29, %v2215_v35 }
 0x83f   : > { %v2237_v53 = vadd.f32 %v2235_v32, %v2228_v44  ;;  %v2238_v54 = vadd.f32 %v2235_v32, %v2229_v45  ;;  %v2240_v55 = vadd.f32 %v2235_v32, %v2231_v46  ;;  %2245 = vst.msk [vmem:[%s462_s21] sm:$0x1] %vm2244_vm5, %v2236_v47 }
 0x840   : > { %v2234_v56 = vmul.f32 %v2226_v29, %v2217_v48  ;;  %v2239_v58 = vadd.f32 %v2235_v32, %v2230_v50  ;;  %v2241_v63 = vadd.f32 %v2235_v32, %v2232_v51  ;;  %v2242_v59 = vadd.f32 %v2235_v32, %v2233_v52 }
 0x841   : > { %2246 = vst.msk [vmem:[%s462_s21 + $0x1] sm:$0x1] %vm2244_vm5, %v2237_v53  ;;  %2247 = vst.msk [vmem:[%s462_s21 + $0x2] sm:$0x1] %vm2244_vm5, %v2238_v54 }
 0x842   : > { %2249 = vst.msk [vmem:[%s462_s21 + $0x4] sm:$0x1] %vm2244_vm5, %v2240_v55  ;;  %v2243_v9 = vadd.f32 %v2235_v32, %v2234_v56  ;;  %2248 = vst.msk [vmem:[%s462_s21 + $0x3] sm:$0x1] %vm2244_vm5, %v2239_v58 }
 0x843   : > { %2250 = vst.msk [vmem:[%s462_s21 + $0x5] sm:$0x1] %vm2244_vm5, %v2241_v63  ;;  %2251 = vst.msk [vmem:[%s462_s21 + $0x6] sm:$0x1] %vm2244_vm5, %v2242_v59 }
 0x844   : > { %2252 = vst.msk [vmem:[%s462_s21 + $0x7] sm:$0x1] %vm2244_vm5, %v2243_v9 }
 0x845 PF: > { %s24_s29 = sadd.s32 1, %s2484_s29  }
 0x846   : > { %p21_p4 = scmp.ge.s32.totalorder %s24_s29, 18  }
 0x848   :  { %23 = sbr.rel (!%p21_p4) target bundleno = 1 (0x1), region = 106 }

// kernel: separation_forward.19
= control target key start
LH: loop header
LB: loop body
LE: loop exit
PB: predicated region body
PF: predicated region fallthrough
CT: control target
= control target key end

     0   :  { %s2648_s18 = smov 0   ;;  %s2987_s0 = inlined_call_operand.vmem [shape: f32[16,8,1,16], index: 0, kind: input, shape index: {}]   ;;  %s2988_s1 = inlined_call_operand.vmem [shape: f32[1,16], index: 1, kind: input, shape index: {}]   ;;  %s2989_s2 = inlined_call_operand.vmem [shape: f32[1,16], index: 2, kind: input, shape index: {}]   ;;  %s2990_s3 = inlined_call_operand.vmem [shape: f32[1,16], index: 3, kind: input, shape index: {}]   ;;  %s2991_s4 = inlined_call_operand.vmem [shape: f32[1,16], index: 4, kind: input, shape index: {}]   ;;  %s2992_s5 = inlined_call_operand.vmem [shape: f32[8,16], index: 5, kind: input, shape index: {}]   ;;  %s2993_s6 = inlined_call_operand.vmem [shape: f32[16,48], index: 6, kind: input, shape index: {}]   ;;  %s2994_s7 = inlined_call_operand.vmem [shape: f32[1,48], index: 7, kind: input, shape index: {}]   ;;  %s2995_s8 = inlined_call_operand.vmem [shape: f32[4,4,16], index: 8, kind: input, shape index: {}]   ;;  %s2996_s9 = inlined_call_operand.vmem [shape: f32[1,16], index: 9, kind: input, shape index: {}]   ;;  %s2997_s10 = inlined_call_operand.vmem [shape: f32[1,16], index: 10, kind: input, shape index: {}]   ;;  %s2998_s11 = inlined_call_operand.vmem [shape: f32[1,16], index: 11, kind: input, shape index: {}]   ;;  %s2999_s12 = inlined_call_operand.vmem [shape: f32[1,16], index: 12, kind: input, shape index: {}]   ;;  %s3000_s13 = inlined_call_operand.vmem [shape: f32[1,16], index: 13, kind: input, shape index: {}]   ;;  %s3001_s14 = inlined_call_operand.vmem [shape: f32[16,8,1,16], index: 14, kind: input, shape index: {}]   ;;  %s3002_s15 = inlined_call_operand.vmem [shape: f32[16,8,1,16], index: 15, kind: output, shape index: {}]  }
   0x1 LB: > { %s2378_s19 = sadd.s32 4294967295, %s2557_s18   ;;  %p2382_p0 = scmp.ge.s32.totalorder %s2557_s18, 1  ;;  %s2557_s18 = sphi %s2648_s18, %s25_s18  }
   0x2   : > { %p445_p1 = scmp.lt.s32.totalorder %s2557_s18, 17 }
   0x4   : > { %p446_p2 = pnand %p2382_p0, %p445_p1 }
   0x5   : > { %p495_p3 = scmp.lt.s32.totalorder (!%p446_p2), %s2378_s19, 15  ;;  %v542_v0 = vlaneseq (!%p446_p2)  ;;  %v2386_v1 = vld [vmem:[%s2989_s2] ss:$0 sm:$0xff] (!%p446_p2)  ;;  %v2559_v2 = vmov (!%p446_p2), 1966171168   ;;  %vm663_vm0 = vcmask (!%p446_p2), 130048  }
   0x6   : > { %449 = sbr.rel (%p446_p2) target bundleno = 2119 (0x847), region = 80  ;;  %v540_v3 = vunpack.c.l.s4 (!%p446_p2), %v2559_v2  ;;  %v515_v6 = vld [vmem:[%s2988_s1] sm:$0x1] (!%p446_p2)  ;;  %v538_v7 = vcombine.high (!%p446_p2), %v2386_v1, %v2386_v1  ;;  %vm2561_vm1 = vmmov (!%p446_p2), 0   ;;  %s2563_s27 = smov (!%p446_p2), 116   ;;  %vm1200_vm2 = vcmask (!%p446_p2), 31744  }
   0x7   : > { %v2659_v4 = vshrl.u32 (!%p446_p2), %v542_v0, 7  ;;  %s2564_s28 = smov (!%p446_p2), 124   ;;  %s2565_s29 = smov (!%p446_p2), 120   ;;  %vm1507_vm3 = vcmask (!%p446_p2), 64512   ;;  %vm1863_vm4 = vcmask (!%p446_p2), 1043456   ;;  %vm2304_vm5 = vcmask (!%p446_p2), 122880  }
   0x8   : > { %v541_v5 = vunpack.c.0.s8 (!%p446_p2), %v540_v3  ;;  %s2566_s30 = smov (!%p446_p2), 112   ;;  %s2567_s16 = smov (!%p446_p2), 96  }
   0x9   : > { %v672_v59 = vsub.s32 (!%p446_p2), 0, %v2659_v4  ;;  %v676_v60 = vsub.s32 (!%p446_p2), 1, %v2659_v4  ;;  %v680_v61 = vsub.s32 (!%p446_p2), 2, %v2659_v4  ;;  %v684_v62 = vsub.s32 (!%p446_p2), 3, %v2659_v4 }
   0xa   : > { %v2671_v9 = vsub.s32 (!%p446_p2), %v541_v5, %v2659_v4  ;;  %v688_v0 = vsub.s32 (!%p446_p2), 4, %v2659_v4  ;;  %v696_v2 = vsub.s32 (!%p446_p2), 6, %v2659_v4  ;;  %v700_v3 = vsub.s32 (!%p446_p2), 7, %v2659_v4 }
   0xc   : > { %v545_v16 = vrot.slane (!%p446_p2), %v2386_v1, %v2671_v9  ;;  %v552_v19 = vrot.slane (!%p446_p2), %v538_v7, %v2671_v9  ;;  %v692_v1 = vsub.s32 (!%p446_p2), 5, %v2659_v4 }
   0xd   : > { %s3004_s19 = smov (!%p495_p3, %s2378_s19), 15 }
   0xe   : > { %s2661_s22 = sshll.u32 %s3004_s19, 3  ;;  %v553_v23 = vcombine.high %v545_v16, %v545_v16  ;;  %v561_v24 = vrot.slane %v545_v16, %v2671_v9  ;;  %v554_v27 = vcombine.high %v552_v19, %v552_v19  ;;  %v568_v28 = vrot.slane %v552_v19, %v2671_v9 }
   0xf   : > { %s498_s25 = scalar_lea.vmem %s2987_s0, %s2661_s22  ;;  %s2946_s24 = scalar_lea.vmem %s3001_s14, %s2661_s22 }
  0x10   : > { %v507_v8 = vld [vmem:[%s498_s25] sm:$0x1]  ;;  %v508_v10 = vld [vmem:[%s498_s25 + $0x1] sm:$0x1]  ;;  %v509_v11 = vld [vmem:[%s498_s25 + $0x2] sm:$0x1]  ;;  %v575_v30 = vrot.slane %v553_v23, %v2671_v9  ;;  %v583_v31 = vcombine.high %v561_v24, %v561_v24  ;;  %v582_v34 = vrot.slane %v554_v27, %v2671_v9  ;;  %v584_v35 = vcombine.high %v568_v28, %v568_v28 }
  0x11   : > { %v511_v12 = vld [vmem:[%s498_s25 + $0x4] sm:$0x1]  ;;  %v512_v13 = vld [vmem:[%s498_s25 + $0x5] sm:$0x1]  ;;  %v513_v14 = vld [vmem:[%s498_s25 + $0x6] sm:$0x1]  ;;  %v516_v15 = vmul.f32 %v515_v6, %v507_v8  ;;  %v517_v21 = vmul.f32 %v515_v6, %v508_v10  ;;  %v518_v22 = vmul.f32 %v515_v6, %v509_v11 }
  0x12   : > { %v510_v17 = vld [vmem:[%s498_s25 + $0x3] sm:$0x1]  ;;  %v520_v18 = vmul.f32 %v515_v6, %v511_v12  ;;  %v514_v20 = vld [vmem:[%s498_s25 + $0x7] sm:$0x1]  ;;  %v521_v25 = vmul.f32 %v515_v6, %v512_v13  ;;  %v522_v26 = vmul.f32 %v515_v6, %v513_v14  ;;  %v585_v37 = vcombine.high %v575_v30, %v575_v30 }
  0x13   : > { %v519_v29 = vmul.f32 %v515_v6, %v510_v17  ;;  %v595_v32 = vadd.f32 %v561_v24, %v516_v15  ;;  %v523_v33 = vmul.f32 %v515_v6, %v514_v20  ;;  %v596_v38 = vadd.f32 %v575_v30, %v517_v21 }
  0x14   : > { %v599_v36 = vadd.f32 %v568_v28, %v520_v18  ;;  %v597_v39 = vadd.f32 %v583_v31, %v518_v22  ;;  %v586_v40 = vcombine.high %v582_v34, %v582_v34  ;;  %v600_v41 = vadd.f32 %v582_v34, %v521_v25 }
  0x15   : > { %v601_v42 = vadd.f32 %v584_v35, %v522_v26  ;;  %v598_v43 = vadd.f32 %v585_v37, %v519_v29  ;;  %v613_v44 = vcombine.low %v595_v32, %v596_v38 }
  0x16   : > { %v602_v45 = vadd.f32 %v586_v40, %v523_v33  ;;  %v615_v46 = vcombine.low %v599_v36, %v600_v41 }
  0x17   : > { %v614_v47 = vcombine.low %v597_v39, %v598_v43  ;;  %v623_v48 = vrot.slane %v613_v44, %v2671_v9 }
  0x18   : > { %v616_v49 = vcombine.low %v601_v42, %v602_v45  ;;  %v637_v50 = vrot.slane %v615_v46, %v2671_v9  ;;  %v1047_v46 = vld [vmem:[%s2993_s6 + $0x8] sm:$0xff] }
  0x19   : > { %v630_v51 = vrot.slane %v614_v47, %v2671_v9  ;;  %v2560_v47 = vmov 0.0|0.0  }
  0x1a   : > { %v644_v52 = vrot.slane %v616_v49, %v2671_v9  ;;  %2510 = vmatprep.subr.bf16.mxu0 %v2560_v47  ;;  %v2562_v49 = vmov 0.0  }
  0x1b   : > { %v645_v53 = vcombine.low %v623_v48, %v630_v51  ;;  %2447 = vmatprep.mubr.msk.f32.mxu0 %vm2561_vm1, %v2562_v49  ;;  %2450 = vmatprep.subr.mxu1 %v2562_v49  ;;  %v2388_v51 = vld [vmem:[%s2991_s4] ss:$0 sm:$0xff] }
  0x1c   : > { %v646_v54 = vcombine.low %v637_v50, %v644_v52  ;;  %2452 = vmatprep.mubr.msk.f32.mxu1 %vm2561_vm1, %v2562_v49  ;;  %v2387_v50 = vld [vmem:[%s2990_s3] ss:$0 sm:$0xff] }
  0x1d   : > { %v653_v55 = vrot.slane %v645_v53, %v2671_v9  ;;  %v979_v52 = vld [vmem:[%s2992_s5] sm:$0xff]  ;;  %v844_v53 = vcombine.high %v2387_v50, %v2387_v50 }
  0x1e   : > { %v660_v56 = vrot.slane %v646_v54, %v2671_v9  ;;  %v914_v54 = vcombine.high %v2388_v51, %v2388_v51 }
  0x20   : > { %v2685_v57 = vcombine.low %v653_v55, %v660_v56  ;;  %v981_v55 = vcombine.high %v979_v52, %v979_v52 }
  0x22   : > { %v664_v58 = vsel %vm663_vm0, %v2685_v57, 0.0 }
  0x23   : > { %665 = vadd.xlane.f32.xlu0 %v664_v58 }
  0xb0   : > { %v666_v63 = vpop.xlane.xlu0 %665 }
  0xb1   : > { %v668_v5 = vmul.f32 0.0625, %v666_v63  ;;  %v851_v63 = vrot.slane %v2387_v50, %v2671_v9 }
  0xb3   : > { %v673_v6 = vrot.slane %v668_v5, %v672_v59  ;;  %v677_v7 = vrot.slane %v668_v5, %v676_v60  ;;  %v681_v8 = vrot.slane %v668_v5, %v680_v61  ;;  %v685_v10 = vrot.slane %v668_v5, %v684_v62 }
  0xb4   : > { %v689_v11 = vrot.slane %v668_v5, %v688_v0  ;;  %v693_v12 = vrot.slane %v668_v5, %v692_v1  ;;  %v697_v13 = vrot.slane %v668_v5, %v696_v2  ;;  %v701_v14 = vrot.slane %v668_v5, %v700_v3 }
  0xb5   : > { %v2713_v15 = vsub.f32 %v595_v32, %v673_v6  ;;  %v2715_v16 = vsub.f32 %v596_v38, %v677_v7  ;;  %v2717_v17 = vsub.f32 %v597_v39, %v681_v8  ;;  %v2719_v18 = vsub.f32 %v598_v43, %v685_v10 }
  0xb6   : > { %v2721_v19 = vsub.f32 %v599_v36, %v689_v11  ;;  %v2723_v20 = vsub.f32 %v600_v41, %v693_v12  ;;  %v2725_v21 = vsub.f32 %v601_v42, %v697_v13  ;;  %v2727_v22 = vsub.f32 %v602_v45, %v701_v14  ;;  %v1046_v45 = vld [vmem:[%s2993_s6] sm:$0xff] }
  0xb7   : > { %v718_v23 = vmul.f32 %v2713_v15, %v2713_v15  ;;  %v719_v24 = vmul.f32 %v2715_v16, %v2715_v16  ;;  %v720_v25 = vmul.f32 %v2717_v17, %v2717_v17  ;;  %v721_v26 = vmul.f32 %v2719_v18, %v2719_v18 }
  0xb8   : > { %v722_v27 = vmul.f32 %v2721_v19, %v2721_v19  ;;  %v723_v28 = vmul.f32 %v2723_v20, %v2723_v20  ;;  %v724_v29 = vmul.f32 %v2725_v21, %v2725_v21  ;;  %v725_v30 = vmul.f32 %v2727_v22, %v2727_v22 }
  0xb9   : > { %v734_v31 = vcombine.low %v718_v23, %v719_v24  ;;  %v735_v32 = vcombine.low %v720_v25, %v721_v26  ;;  %v2511_v48 = vpack.c.bf16 %v1047_v46, %v1046_v45  ;;  %v858_v5 = vrot.slane %v844_v53, %v2671_v9 }
  0xba   : > { %v736_v33 = vcombine.low %v722_v27, %v723_v28  ;;  %v737_v34 = vcombine.low %v724_v29, %v725_v30  ;;  %v921_v6 = vrot.slane %v2388_v51, %v2671_v9  ;;  %v928_v7 = vrot.slane %v914_v54, %v2671_v9 }
  0xbb   : > { %v744_v35 = vrot.slane %v734_v31, %v2671_v9  ;;  %v751_v36 = vrot.slane %v735_v32, %v2671_v9  ;;  %2512 = vmatpush3.bf16.msra.mxu0 %v2511_v48  ;;  %v988_v10 = vrot.slane %v979_v52, %v2671_v9  ;;  %v995_v11 = vrot.slane %v981_v55, %v2671_v9 }
  0xbc   : > { %v758_v37 = vrot.slane %v736_v33, %v2671_v9  ;;  %v765_v38 = vrot.slane %v737_v34, %v2671_v9  ;;  %2455 = vmatprep.subr.mxu0 %v2562_v49  ;;  %v859_v12 = vcombine.high %v851_v63, %v851_v63  ;;  %v860_v13 = vcombine.high %v858_v5, %v858_v5 }
  0xbd   : > { %v766_v39 = vcombine.low %v744_v35, %v751_v36  ;;  %v929_v14 = vcombine.high %v921_v6, %v921_v6  ;;  %v930_v23 = vcombine.high %v928_v7, %v928_v7  ;;  %v996_v24 = vcombine.high %v988_v10, %v988_v10 }
  0xbe   : > { %v767_v40 = vcombine.low %v758_v37, %v765_v38  ;;  %v997_v25 = vcombine.high %v995_v11, %v995_v11  ;;  %v867_v26 = vrot.slane %v851_v63, %v2671_v9  ;;  %v874_v27 = vrot.slane %v858_v5, %v2671_v9 }
  0xbf   : > { %v774_v41 = vrot.slane %v766_v39, %v2671_v9  ;;  %v881_v28 = vrot.slane %v859_v12, %v2671_v9  ;;  %v888_v29 = vrot.slane %v860_v13, %v2671_v9  ;;  %v937_v30 = vrot.slane %v921_v6, %v2671_v9 }
  0xc0   : > { %v781_v42 = vrot.slane %v767_v40, %v2671_v9  ;;  %v944_v31 = vrot.slane %v928_v7, %v2671_v9  ;;  %v951_v32 = vrot.slane %v929_v14, %v2671_v9  ;;  %v958_v33 = vrot.slane %v930_v23, %v2671_v9 }
  0xc1   : > { %v1004_v34 = vrot.slane %v988_v10, %v2671_v9  ;;  %v1011_v35 = vrot.slane %v995_v11, %v2671_v9  ;;  %v1018_v36 = vrot.slane %v996_v24, %v2671_v9  ;;  %v1025_v37 = vrot.slane %v997_v25, %v2671_v9 }
  0xc2   : > { %v782_v43 = vcombine.low %v774_v41, %v781_v42  ;;  %v889_v38 = vcombine.high %v867_v26, %v867_v26  ;;  %v890_v39 = vcombine.high %v874_v27, %v874_v27  ;;  %v891_v40 = vcombine.high %v881_v28, %v881_v28 }
  0xc3   : > { %v892_v41 = vcombine.high %v888_v29, %v888_v29  ;;  %v959_v42 = vcombine.high %v937_v30, %v937_v30  ;;  %v962_v45 = vcombine.high %v958_v33, %v958_v33  ;;  %v1026_v47 = vcombine.high %v1004_v34, %v1004_v34 }
  0xc4   : > { %v784_v44 = vsel %vm663_vm0, %v782_v43, 0.0  ;;  %v960_v43 = vcombine.high %v944_v31, %v944_v31  ;;  %v1027_v48 = vcombine.high %v1011_v35, %v1011_v35  ;;  %v1028_v50 = vcombine.high %v1018_v36, %v1018_v36 }
  0xc5   : > { %785 = vadd.xlane.f32.xlu0 %v784_v44  ;;  %v961_v44 = vcombine.high %v951_v32, %v951_v32  ;;  %v1029_v51 = vcombine.high %v1025_v37, %v1025_v37 }
 0x152   : > { %v786_v56 = vpop.xlane.xlu0 %785 }
 0x153   : > { %v787_v58 = vmul.f32 0.0625, %v786_v56 }
 0x155   : > { %v788_v8 = vadd.f32 1e-05, %v787_v58 }
 0x157   : > { %2531 = vrsqrt.f32 %v788_v8 }
 0x161   : > { %v2532_v46 = vpop.eup %2531 }
 0x162   : > { %v794_v52 = vrot.slane %v2532_v46, %v672_v59  ;;  %v798_v53 = vrot.slane %v2532_v46, %v676_v60  ;;  %v802_v54 = vrot.slane %v2532_v46, %v680_v61  ;;  %v806_v55 = vrot.slane %v2532_v46, %v684_v62 }
 0x163   : > { %v810_v56 = vrot.slane %v2532_v46, %v688_v0  ;;  %v814_v58 = vrot.slane %v2532_v46, %v692_v1  ;;  %v818_v63 = vrot.slane %v2532_v46, %v696_v2  ;;  %v822_v59 = vrot.slane %v2532_v46, %v700_v3 }
 0x164   : > { %v831_v60 = vmul.f32 %v794_v52, %v2713_v15  ;;  %v832_v5 = vmul.f32 %v798_v53, %v2715_v16  ;;  %v833_v61 = vmul.f32 %v802_v54, %v2717_v17  ;;  %v834_v62 = vmul.f32 %v806_v55, %v2719_v18 }
 0x165   : > { %v835_v6 = vmul.f32 %v810_v56, %v2721_v19  ;;  %v836_v0 = vmul.f32 %v814_v58, %v2723_v20  ;;  %v837_v1 = vmul.f32 %v818_v63, %v2725_v21  ;;  %v838_v7 = vmul.f32 %v822_v59, %v2727_v22 }
 0x166   : > { %v901_v2 = vmul.f32 %v867_v26, %v831_v60  ;;  %v902_v8 = vmul.f32 %v881_v28, %v832_v5  ;;  %v903_v4 = vmul.f32 %v889_v38, %v833_v61  ;;  %v904_v3 = vmul.f32 %v891_v40, %v834_v62 }
 0x167   : > { %v905_v10 = vmul.f32 %v874_v27, %v835_v6  ;;  %v906_v15 = vmul.f32 %v888_v29, %v836_v0  ;;  %v907_v11 = vmul.f32 %v890_v39, %v837_v1  ;;  %v908_v16 = vmul.f32 %v892_v41, %v838_v7 }
 0x168   : > { %v971_v12 = vadd.f32 %v937_v30, %v901_v2  ;;  %v972_v17 = vadd.f32 %v951_v32, %v902_v8  ;;  %v973_v13 = vadd.f32 %v959_v42, %v903_v4  ;;  %v974_v18 = vadd.f32 %v961_v44, %v904_v3 }
 0x169   : > { %v975_v14 = vadd.f32 %v944_v31, %v905_v10  ;;  %v976_v19 = vadd.f32 %v958_v33, %v906_v15  ;;  %v977_v23 = vadd.f32 %v960_v43, %v907_v11  ;;  %v978_v20 = vadd.f32 %v962_v45, %v908_v16  ;;  %v2389_v43 = vld [vmem:[%s2994_s7] ss:$0 sm:$0xff] }
 0x16a   : > { %v1038_v24 = vadd.f32 %v1004_v34, %v971_v12  ;;  %v1039_v21 = vadd.f32 %v1018_v36, %v972_v17  ;;  %v1040_v25 = vadd.f32 %v1026_v47, %v973_v13  ;;  %v1041_v22 = vadd.f32 %v1028_v50, %v974_v18 }
 0x16b   : > { %v1042_v26 = vadd.f32 %v1011_v35, %v975_v14  ;;  %v1043_v28 = vadd.f32 %v1025_v37, %v976_v19  ;;  %v1044_v38 = vadd.f32 %v1027_v48, %v977_v23  ;;  %v1045_v40 = vadd.f32 %v1029_v51, %v978_v20 }
 0x16c   : > { %v1063_v27 = vcombine.low %v1038_v24, %v1039_v21  ;;  %v1064_v29 = vcombine.low %v1040_v25, %v1041_v22 }
 0x16d   : > { %v1065_v39 = vcombine.low %v1042_v26, %v1043_v28  ;;  %v1066_v41 = vcombine.low %v1044_v38, %v1045_v40 }
 0x16e   : > { %v1073_v30 = vrot.slane %v1063_v27, %v2671_v9  ;;  %v1080_v32 = vrot.slane %v1064_v29, %v2671_v9 }
 0x16f   : > { %v1087_v31 = vrot.slane %v1065_v39, %v2671_v9  ;;  %v1094_v33 = vrot.slane %v1066_v41, %v2671_v9 }
 0x170   : > { %v1095_v34 = vcombine.low %v1073_v30, %v1080_v32 }
 0x171   : > { %v1096_v36 = vcombine.low %v1087_v31, %v1094_v33 }
 0x172   : > { %v1103_v42 = vrot.slane %v1095_v34, %v2671_v9 }
 0x173   : > { %v1110_v35 = vrot.slane %v1096_v36, %v2671_v9 }
 0x175   : > { %v2821_v37 = vcombine.low %v1103_v42, %v1110_v35 }
 0x177   : > { %2448 = vmatmul.mubr.msk.f32.vlgmr.msra.gmra.mrb[0].mxu0 %vm663_vm0, %v2821_v37 }
 0x178   : > { %2457 = vmatprep.mubr.msk.f32.mxu0 %vm2561_vm1, %v2562_v49 }
 0x24a   : > { %v1180_v44 = vpop.f32.mrb[0].mxu0 }
 0x24b   : > { %v1181_v45 = vadd.f32 %v2389_v43, %v1180_v44  ;;  %v2449_v46 = vpop.f32.mrb[1].mxu0  ;;  %v1856_v44 = vld [vmem:[%s2995_s8] sm:$0xf] }
 0x24d   : > { %1191 = vrot.lane.b32.xlu0 %v1181_v45, %s2563_s27  ;;  %1185 = vrot.lane.b32.xlu1 %v1181_v45, %s2564_s28  ;;  %v1194_v52 = vmul.f32 0.5, %v1181_v45 }
 0x251   : > { %1188 = vrot.lane.b32.xlu1 %v1181_v45, %s2565_s29  ;;  %s2959_s29 = scalar_lea.vmem %s3002_s15, %s2661_s22 }
 0x255   : > { %1198 = vrot.lane.b32.xlu1 %v1181_v45, %s2566_s30 }
 0x2bf   : > { %v2830_v47 = vpop.permute.xlu1 %1185  ;;  %v2836_v50 = vpop.permute.xlu0 %1191 }
 0x2c0   : > { %1276 = vrot.lane.b32.xlu1 %v2830_v47, %s2566_s30  ;;  %v1195_v54 = vmul.f32 0.5, %v2830_v47  ;;  %v1197_v63 = vmul.f32 0.5, %v2836_v50 }
 0x2c3   : > { %v2833_v48 = vpop.permute.xlu1 %1188 }
 0x2c4   : > { %1353 = vrot.lane.b32.xlu1 %v2833_v48, %s2566_s30  ;;  %v1196_v56 = vmul.f32 0.5, %v2833_v48 }
 0x2c7   : > { %v1199_v51 = vpop.permute.xlu1 %1198 }
 0x2c8   : > { %1430 = vrot.lane.b32.xlu1 %v2836_v50, %s2566_s30  ;;  %2451 = vmatpush3.xpose.msk.msra.mxu1 %vm1200_vm2, %v1199_v51 }
 0x2c9   : > { %2460 = vmatprep.subr.mxu1 %v2562_v49 }
 0x2cb   : > { %2453 = vmatmul.mubr.msk.f32.vlgmr.msra.gmra.mrb[0].mxu1 %vm1200_vm2, %v1194_v52  ;;  %v1859_v52 = vld [vmem:[%s2995_s8 + $0xc] sm:$0xf] }
 0x2cc   : > { %2462 = vmatprep.mubr.msk.f32.mxu1 %vm2561_vm1, %v2562_v49 }
 0x332   : > { %v1277_v53 = vpop.permute.xlu1 %1276 }
 0x333   : > { %2456 = vmatpush3.xpose.msk.msra.mxu0 %vm1200_vm2, %v1277_v53 }
 0x334   : > { %2465 = vmatprep.subr.mxu0 %v2562_v49 }
 0x336   : > { %2458 = vmatmul.mubr.msk.f32.vlgmr.msra.gmra.mrb[2].mxu0 %vm1200_vm2, %v1195_v54  ;;  %v1354_v55 = vpop.permute.xlu1 %1353 }
 0x337   : > { %2461 = vmatpush3.xpose.msk.msra.mxu1 %vm1200_vm2, %v1354_v55  ;;  %2467 = vmatprep.mubr.msk.f32.mxu0 %vm2561_vm1, %v2562_v49 }
 0x338   : > { %2470 = vmatprep.subr.mxu1 %v2562_v49 }
 0x33a   : > { %v1431_v58 = vpop.permute.xlu1 %1430  ;;  %2463 = vmatmul.mubr.msk.f32.vlgmr.msra.gmra.mrb[2].mxu1 %vm1200_vm2, %v1196_v56 }
 0x33b   : > { %2466 = vmatpush3.xpose.msk.msra.mxu0 %vm1200_vm2, %v1431_v58  ;;  %2472 = vmatprep.mubr.msk.f32.mxu1 %vm2561_vm1, %v2562_v49 }
 0x33c   : > { %2475 = vmatprep.subr.mxu0 %v2562_v49 }
 0x33e   : > { %2468 = vmatmul.mubr.msk.f32.vlgmr.msra.gmra.mrb[4].mxu0 %vm1200_vm2, %v1197_v63 }
 0x33f   : > { %2477 = vmatprep.mubr.msk.f32.mxu0 %vm2561_vm1, %v2562_v49 }
 0x39e   : > { %v1272_v59 = vpop.f32.mrb[0].mxu1 }
 0x39f   : > { %v2454_v60 = vpop.f32.mrb[1].mxu1  ;;  %v1508_v5 = vsel %vm1507_vm3, %v1272_v59, -inf }
 0x3a0   : > { %1509 = vmax.xlane.f32.xlu1 %v1508_v5 }
 0x409   : > { %v1349_v61 = vpop.f32.mrb[2].mxu0 }
 0x40a   : > { %v2459_v62 = vpop.f32.mrb[3].mxu0  ;;  %v1511_v6 = vsel %vm1507_vm3, %v1349_v61, -inf }
 0x40b   : > { %1512 = vmax.xlane.f32.xlu0 %v1511_v6 }
 0x40d   : > { %v1426_v0 = vpop.f32.mrb[2].mxu1 }
 0x40e   : > { %v2464_v1 = vpop.f32.mrb[3].mxu1  ;;  %v1514_v7 = vsel %vm1507_vm3, %v1426_v0, -inf }
 0x40f   : > { %1515 = vmax.xlane.f32.xlu1 %v1514_v7 }
 0x411   : > { %v1503_v2 = vpop.f32.mrb[4].mxu0 }
 0x412   : > { %v2469_v8 = vpop.f32.mrb[5].mxu0  ;;  %v1517_v4 = vsel %vm1507_vm3, %v1503_v2, -inf }
 0x413   : > { %1518 = vmax.xlane.f32.xlu0 %v1517_v4 }
 0x420   : > { %1552 = vrot.lane.b32.xlu1 %v1181_v45, %s2567_s16 }
 0x42d   : > { %v1510_v3 = vpop.xlane.xlu1 %1509 }
 0x42e   : > { %v1520_v10 = vsub.f32 %v1272_v59, %v1510_v3  ;;  %v2411_v3 = vld [vmem:[%s2996_s9] ss:$0 sm:$0xff] }
 0x430   : > { %v1524_v15 = vmul.f32 1.442695, %v1520_v10 }
 0x432   : > { %2533 = vpow2.f32 %v1524_v15 }
 0x43c   : > { %v2534_v11 = vpop.eup %2533 }
 0x43d   : > { %v1532_v16 = vsel %vm1507_vm3, %v2534_v11, 0.0 }
 0x444   : > { %1533 = vadd.xlane.f32.xlu1 %v1532_v16 }
 0x498   : > { %v1513_v12 = vpop.xlane.xlu0 %1512 }
 0x499   : > { %v1521_v17 = vsub.f32 %v1349_v61, %v1513_v12 }
 0x49b   : > { %v1526_v13 = vmul.f32 1.442695, %v1521_v17 }
 0x49c   : > { %v1516_v18 = vpop.xlane.xlu1 %1515 }
 0x49d   : > { %2535 = vpow2.f32 %v1526_v13  ;;  %v1522_v14 = vsub.f32 %v1426_v0, %v1516_v18 }
 0x49f   : > { %v1528_v19 = vmul.f32 1.442695, %v1522_v14 }
 0x4a0   : > { %v1553_v23 = vpop.permute.xlu1 %1552  ;;  %v1519_v20 = vpop.xlane.xlu0 %1518 }
 0x4a1   : > { %2537 = vpow2.f32 %v1528_v19  ;;  %v1523_v24 = vsub.f32 %v1503_v2, %v1519_v20  ;;  %2471 = vmatpush3.msra.mxu1 %v1553_v23 }
 0x4a2   : > { %2480 = vmatprep.subr.mxu1 %v2562_v49 }
 0x4a3   : > { %v1530_v21 = vmul.f32 1.442695, %v1523_v24 }
 0x4a5   : > { %2539 = vpow2.f32 %v1530_v21 }
 0x4a7   : > { %v2536_v25 = vpop.eup %2535 }
 0x4a8   : > { %v1535_v22 = vsel %vm1507_vm3, %v2536_v25, 0.0 }
 0x4a9   : > { %1536 = vadd.xlane.f32.xlu0 %v1535_v22  ;;  %v2413_v22 = vld [vmem:[%s2998_s11] ss:$0 sm:$0xff] }
 0x4ab   : > { %v2538_v26 = vpop.eup %2537 }
 0x4ac   : > { %v1538_v28 = vsel %vm1507_vm3, %v2538_v26, 0.0 }
 0x4ad   : > { %1539 = vadd.xlane.f32.xlu1 %v1538_v28 }
 0x4af   : > { %v2540_v38 = vpop.eup %2539 }
 0x4b0   : > { %v1541_v40 = vsel %vm1507_vm3, %v2540_v38, 0.0 }
 0x4b1   : > { %1542 = vadd.xlane.f32.xlu0 %v1541_v40 }
 0x4be   : > { %1704 = vrot.lane.b32.xlu1 %v2833_v48, %s2567_s16  ;;  %v1858_v48 = vld [vmem:[%s2995_s8 + $0x8] sm:$0xf] }
 0x4c2   : > { %1780 = vrot.lane.b32.xlu1 %v2836_v50, %s2567_s16 }
 0x4c7   : > { %1628 = vrot.lane.b32.xlu0 %v2830_v47, %s2567_s16  ;;  %v1857_v47 = vld [vmem:[%s2995_s8 + $0x4] sm:$0xf] }
 0x4d1   : > { %v1534_v27 = vpop.xlane.xlu1 %1533 }
 0x4d2   : > { %2541 = vrcp.f32 %v1534_v27 }
 0x4dc   : > { %v2542_v29 = vpop.eup %2541 }
 0x4dd   : > { %v1548_v39 = vmul.f32 %v2542_v29, %v2534_v11  ;;  %v2270_v29 = vld [vmem:[%s2999_s12] sm:$0x1] }
 0x4df   : > { %2473 = vmatmul.mubr.msk.f32.vlgmr.msra.gmra.mrb[4].mxu1 %vm1507_vm3, %v1548_v39 }
 0x4e0   : > { %2482 = vmatprep.mubr.msk.f32.mxu1 %vm2561_vm1, %v2562_v49 }
 0x536   : > { %v1537_v41 = vpop.xlane.xlu0 %1536 }
 0x537   : > { %2543 = vrcp.f32 %v1537_v41 }
 0x53a   : > { %v1540_v30 = vpop.xlane.xlu1 %1539 }
 0x53b   : > { %2545 = vrcp.f32 %v1540_v30 }
 0x53e   : > { %v1705_v32 = vpop.permute.xlu1 %1704  ;;  %v1543_v31 = vpop.xlane.xlu0 %1542 }
 0x53f   : > { %2547 = vrcp.f32 %v1543_v31  ;;  %2481 = vmatpush3.msra.mxu1 %v1705_v32 }
 0x540   : > { %2490 = vmatprep.subr.mxu1 %v2562_v49 }
 0x541   : > { %v2544_v33 = vpop.eup %2543 }
 0x542   : > { %v1549_v34 = vmul.f32 %v2544_v33, %v2536_v25  ;;  %v1629_v36 = vpop.permute.xlu0 %1628  ;;  %v1781_v42 = vpop.permute.xlu1 %1780 }
 0x543   : > { %2476 = vmatpush3.msra.mxu0 %v1629_v36 }
 0x544   : > { %2478 = vmatmul.mubr.msk.f32.vlgmr.msra.gmra.mrb[6].mxu0 %vm1507_vm3, %v1549_v34  ;;  %2485 = vmatprep.subr.mxu0 %v2562_v49 }
 0x545   : > { %v2546_v35 = vpop.eup %2545  ;;  %2486 = vmatpush3.msra.mxu0 %v1781_v42  ;;  %2487 = vmatprep.mubr.msk.f32.mxu0 %vm2561_vm1, %v2562_v49  ;;  %v2288_v42 = vld [vmem:[%s2946_s24] sm:$0x1] }
 0x546   : > { %v1550_v43 = vmul.f32 %v2546_v35, %v2538_v26  ;;  %2495 = vmatprep.subr.mxu0 %v2562_v49 }
 0x548   : > { %2483 = vmatmul.mubr.msk.f32.vlgmr.msra.gmra.mrb[6].mxu1 %vm1507_vm3, %v1550_v43 }
 0x549   : > { %v2548_v45 = vpop.eup %2547  ;;  %2491 = vmatpush3.msk.msra.mxu1 %vm1863_vm4, %v1856_v44  ;;  %2492 = vmatprep.mubr.msk.f32.mxu1 %vm2561_vm1, %v2562_v49 }
 0x54a   : > { %v1551_v46 = vmul.f32 %v2548_v45, %v2540_v38  ;;  %2500 = vmatprep.subr.mxu1 %v2562_v49 }
 0x54c   : > { %2488 = vmatmul.mubr.msk.f32.vlgmr.msra.gmra.mrb[8].mxu0 %vm1507_vm3, %v1551_v46 }
 0x54d   : > { %2497 = vmatprep.mubr.msk.f32.mxu0 %vm2561_vm1, %v2562_v49  ;;  %2496 = vmatpush3.msk.msra.mxu0 %vm1863_vm4, %v1857_v47 }
 0x54e   : > { %2505 = vmatprep.subr.mxu0 %v2562_v49 }
 0x5b2   : > { %v1624_v50 = vpop.f32.mrb[4].mxu1 }
 0x5b3   : > { %v2474_v51 = vpop.f32.mrb[5].mxu1  ;;  %2493 = vmatmul.mubr.msk.f32.vlgmr.msra.gmra.mrb[8].mxu1 %vm1200_vm2, %v1624_v50  ;;  %v2289_v50 = vld [vmem:[%s2946_s24 + $0x1] sm:$0x1] }
 0x5b4   : > { %2501 = vmatpush3.msk.msra.mxu1 %vm1863_vm4, %v1858_v48  ;;  %2502 = vmatprep.mubr.msk.f32.mxu1 %vm2561_vm1, %v2562_v49  ;;  %v2290_v51 = vld [vmem:[%s2946_s24 + $0x2] sm:$0x1] }
 0x617   : > { %v1700_v53 = vpop.f32.mrb[6].mxu0 }
 0x618   : > { %v2479_v54 = vpop.f32.mrb[7].mxu0  ;;  %2498 = vmatmul.mubr.msk.f32.vlgmr.msra.gmra.mrb[10].mxu0 %vm1200_vm2, %v1700_v53 }
 0x619   : > { %2506 = vmatpush3.msk.msra.mxu0 %vm1863_vm4, %v1859_v52  ;;  %2507 = vmatprep.mubr.msk.f32.mxu0 %vm2561_vm1, %v2562_v49  ;;  %v2292_v52 = vld [vmem:[%s2946_s24 + $0x4] sm:$0x1] }
 0x61b   : > { %v1776_v55 = vpop.f32.mrb[6].mxu1 }
 0x61c   : > { %v2484_v56 = vpop.f32.mrb[7].mxu1  ;;  %2503 = vmatmul.mubr.msk.f32.vlgmr.msra.gmra.mrb[10].mxu1 %vm1200_vm2, %v1776_v55 }
 0x61d   : > { %v2291_v56 = vld [vmem:[%s2946_s24 + $0x3] sm:$0x1] }
 0x61f   : > { %v1852_v58 = vpop.f32.mrb[8].mxu0 }
 0x620   : > { %v2489_v63 = vpop.f32.mrb[9].mxu0  ;;  %2508 = vmatmul.mubr.msk.f32.vlgmr.msra.gmra.mrb[12].mxu0 %vm1200_vm2, %v1852_v58  ;;  %v2293_v58 = vld [vmem:[%s2946_s24 + $0x5] sm:$0x1] }
 0x621   : > { %v2294_v63 = vld [vmem:[%s2946_s24 + $0x6] sm:$0x1] }
 0x686   : > { %v1933_v59 = vpop.f32.mrb[8].mxu1 }
 0x687   : > { %v2494_v60 = vpop.f32.mrb[9].mxu1  ;;  %v2165_v61 = vsel %vm663_vm0, %v1933_v59, 0.0 }
 0x6eb   : > { %v2009_v5 = vpop.f32.mrb[10].mxu0 }
 0x6ec   : > { %v2166_v62 = vsel %vm663_vm0, %v2009_v5, 0.0  ;;  %v2499_v6 = vpop.f32.mrb[11].mxu0 }
 0x6ed   : > { %v2167_v0 = vadd.f32 %v2166_v62, %v2165_v61 }
 0x6ef   : > { %v2085_v1 = vpop.f32.mrb[10].mxu1 }
 0x6f0   : > { %v2168_v49 = vsel %vm663_vm0, %v2085_v1, 0.0  ;;  %v2504_v7 = vpop.f32.mrb[11].mxu1 }
 0x6f1   : > { %v2169_v2 = vadd.f32 %v2168_v49, %v2167_v0  ;;  %v2295_v49 = vld [vmem:[%s2946_s24 + $0x7] sm:$0x1] }
 0x6f3   : > { %v2161_v8 = vpop.f32.mrb[12].mxu0 }
 0x6f4   : > { %v2170_v4 = vsel %vm663_vm0, %v2161_v8, 0.0  ;;  %v2509_v10 = vpop.f32.mrb[13].mxu0 }
 0x6f5   : > { %v2171_v15 = vadd.f32 %v2170_v4, %v2169_v2 }
 0x6f7   : > { %v2179_v11 = vadd.f32 %v2411_v3, %v2171_v15 }
 0x6f9   : > { %v2181_v16 = vadd.f32 %v2179_v11, %v2821_v37  ;;  %v2412_v37 = vld [vmem:[%s2997_s10] ss:$0 sm:$0xff] }
 0x6fb   : > { %v2184_v12 = vsel %vm663_vm0, %v2181_v16, 0.0 }
 0x6fc   : > { %2185 = vadd.xlane.f32.xlu0 %v2184_v12 }
 0x789   : > { %v2186_v17 = vpop.xlane.xlu0 %2185 }
 0x78a   : > { %v2187_v13 = vmul.f32 0.0625, %v2186_v17 }
 0x78c   : > { %v2188_v18 = vsub.f32 %v2181_v16, %v2187_v13 }
 0x78e   : > { %v2189_v14 = vmul.f32 %v2188_v18, %v2188_v18 }
 0x790   : > { %v2190_v19 = vsel %vm663_vm0, %v2189_v14, 0.0 }
 0x791   : > { %2191 = vadd.xlane.f32.xlu1 %v2190_v19 }
 0x81e   : > { %v2192_v23 = vpop.xlane.xlu1 %2191 }
 0x81f   : > { %v2193_v20 = vmul.f32 0.0625, %v2192_v23 }
 0x821   : > { %v2194_v24 = vadd.f32 1e-05, %v2193_v20 }
 0x823   : > { %2549 = vrsqrt.f32 %v2194_v24 }
 0x82d   : > { %v2550_v21 = vpop.eup %2549 }
 0x82e   : > { %v2196_v25 = vmul.f32 %v2550_v21, %v2188_v18 }
 0x830   : > { %v2203_v26 = vmul.f32 %v2412_v37, %v2196_v25 }
 0x832   : > { %v2210_v28 = vadd.f32 %v2413_v22, %v2203_v26 }
 0x834   : > { %v2211_v38 = vadd.f32 %v2210_v28, %v2685_v57  ;;  %v2279_v57 = vld [vmem:[%s3000_s13] sm:$0x1] }
 0x836   : > { %v2213_v40 = vcombine.high %v2211_v38, %v2211_v38  ;;  %v2220_v27 = vrot.slane %v2211_v38, %v2671_v9 }
 0x838   : > { %v2227_v39 = vrot.slane %v2213_v40, %v2671_v9  ;;  %v2228_v41 = vcombine.high %v2220_v27, %v2220_v27  ;;  %v2236_v30 = vrot.slane %v2220_v27, %v2671_v9 }
 0x83a   : > { %v2229_v32 = vcombine.high %v2227_v39, %v2227_v39  ;;  %v2243_v31 = vrot.slane %v2227_v39, %v2671_v9  ;;  %v2250_v33 = vrot.slane %v2228_v41, %v2671_v9  ;;  %v2258_v34 = vcombine.high %v2236_v30, %v2236_v30 }
 0x83b   : > { %v2271_v36 = vmul.f32 %v2270_v29, %v2236_v30 }
 0x83c   : > { %v2257_v35 = vrot.slane %v2229_v32, %v2671_v9  ;;  %v2259_v43 = vcombine.high %v2243_v31, %v2243_v31  ;;  %v2260_v44 = vcombine.high %v2250_v33, %v2250_v33  ;;  %v2272_v45 = vmul.f32 %v2270_v29, %v2250_v33 }
 0x83d   : > { %v2273_v46 = vmul.f32 %v2270_v29, %v2258_v34  ;;  %v2275_v47 = vmul.f32 %v2270_v29, %v2243_v31  ;;  %v2280_v48 = vadd.f32 %v2279_v57, %v2271_v36 }
 0x83e   : > { %v2261_v9 = vcombine.high %v2257_v35, %v2257_v35  ;;  %v2274_v53 = vmul.f32 %v2270_v29, %v2260_v44  ;;  %v2276_v54 = vmul.f32 %v2270_v29, %v2257_v35  ;;  %v2277_v55 = vmul.f32 %v2270_v29, %v2259_v43 }
 0x83f   : > { %v2281_v59 = vadd.f32 %v2279_v57, %v2272_v45  ;;  %v2282_v60 = vadd.f32 %v2279_v57, %v2273_v46  ;;  %v2284_v5 = vadd.f32 %v2279_v57, %v2275_v47  ;;  %v2296_v61 = vadd.f32 %v2288_v42, %v2280_v48 }
 0x840   : > { %v2278_v62 = vmul.f32 %v2270_v29, %v2261_v9  ;;  %v2283_v6 = vadd.f32 %v2279_v57, %v2274_v53  ;;  %v2285_v0 = vadd.f32 %v2279_v57, %v2276_v54  ;;  %v2286_v1 = vadd.f32 %v2279_v57, %v2277_v55 }
 0x841   : > { %v2297_v7 = vadd.f32 %v2289_v50, %v2281_v59  ;;  %v2298_v2 = vadd.f32 %v2290_v51, %v2282_v60  ;;  %v2300_v8 = vadd.f32 %v2292_v52, %v2284_v5  ;;  %2305 = vst.msk [vmem:[%s2959_s29] sm:$0x1] %vm2304_vm5, %v2296_v61 }
 0x842   : > { %v2287_v4 = vadd.f32 %v2279_v57, %v2278_v62  ;;  %v2299_v3 = vadd.f32 %v2291_v56, %v2283_v6  ;;  %v2301_v10 = vadd.f32 %v2293_v58, %v2285_v0  ;;  %v2302_v15 = vadd.f32 %v2294_v63, %v2286_v1 }
 0x843   : > { %2306 = vst.msk [vmem:[%s2959_s29 + $0x1] sm:$0x1] %vm2304_vm5, %v2297_v7  ;;  %2307 = vst.msk [vmem:[%s2959_s29 + $0x2] sm:$0x1] %vm2304_vm5, %v2298_v2 }
 0x844   : > { %2309 = vst.msk [vmem:[%s2959_s29 + $0x4] sm:$0x1] %vm2304_vm5, %v2300_v8  ;;  %v2303_v11 = vadd.f32 %v2295_v49, %v2287_v4  ;;  %2308 = vst.msk [vmem:[%s2959_s29 + $0x3] sm:$0x1] %vm2304_vm5, %v2299_v3 }
 0x845   : > { %2310 = vst.msk [vmem:[%s2959_s29 + $0x5] sm:$0x1] %vm2304_vm5, %v2301_v10  ;;  %2311 = vst.msk [vmem:[%s2959_s29 + $0x6] sm:$0x1] %vm2304_vm5, %v2302_v15 }
 0x846   : > { %2312 = vst.msk [vmem:[%s2959_s29 + $0x7] sm:$0x1] %vm2304_vm5, %v2303_v11 }
 0x847 PF: > { %s25_s18 = sadd.s32 1, %s2557_s18  }
 0x848   : > { %p22_p4 = scmp.ge.s32.totalorder %s25_s18, 18  }
 0x84a   :  { %24 = sbr.rel (!%p22_p4) target bundleno = 1 (0x1), region = 113 }

// kernel: separation_forward.20
= control target key start
LH: loop header
LB: loop body
LE: loop exit
PB: predicated region body
PF: predicated region fallthrough
CT: control target
= control target key end

     0   :  { %v389_v0 = vmov 0   ;;  %vm102_vm2 = vcmask 130048   ;;  %s563_s1 = inlined_call_operand.<no memory space> [shape: f32[1,1], index: 1, kind: input, shape index: {}]   ;;  %s564_s2 = inlined_call_operand.vmem [shape: f32[16,32], index: 2, kind: input, shape index: {}]   ;;  %s565_s0 = inlined_call_operand.vmem [shape: f32[128,16], index: 0, kind: input, shape index: {}]   ;;  %s566_s3 = inlined_call_operand.vmem [shape: f32[1,32], index: 3, kind: input, shape index: {}]   ;;  %s567_s4 = inlined_call_operand.vmem [shape: f32[128,32], index: 4, kind: output, shape index: {}]  }
   0x1   :  { %388 = vset.pattern.permute.xlu0 %v389_v0  ;;  %v9_v1 = vstv %s563_s1  ;;  %v93_v2 = vld [vmem:[%s564_s2] sm:$0xff]  ;;  %v94_v3 = vld [vmem:[%s564_s2 + $0x8] sm:$0xff]  ;;  %v21_v10 = vld [vmem:[%s565_s0 + $0x10] sm:$0xff] }
   0x2   :  { %10 = vst [vmem:[#allocation2] sm:$0x1] %v9_v1  ;;  %v381_v4 = vpack.c.bf16 %v94_v3, %v93_v2  ;;  %v19_v6 = vld [vmem:[%s565_s0] sm:$0xff]  ;;  %v20_v8 = vld [vmem:[%s565_s0 + $0x8] sm:$0xff]  ;;  %v29_v11 = vld [vmem:[%s565_s0 + $0x50] sm:$0xff]  ;;  %vm37_vm5 = vcmp.ge.f32.partialorder %v21_v10, 0.0 }
   0x3   :  { %v27_v7 = vld [vmem:[%s565_s0 + $0x40] sm:$0xff]  ;;  %v28_v9 = vld [vmem:[%s565_s0 + $0x48] sm:$0xff]  ;;  %vm35_vm0 = vcmp.ge.f32.partialorder %v19_v6, 0.0  ;;  %v22_v12 = vld [vmem:[%s565_s0 + $0x18] sm:$0xff]  ;;  %vm36_vm3 = vcmp.ge.f32.partialorder %v20_v8, 0.0  ;;  %vm45_vm6 = vcmp.ge.f32.partialorder %v29_v11, 0.0 }
   0x4   :  { %382 = vmatprep.subr.bf16.mxu0 %v381_v4  ;;  %385 = vmatprep.subr.bf16.mxu1 %v381_v4  ;;  %vm43_vm1 = vcmp.ge.f32.partialorder %v27_v7, 0.0  ;;  %vm44_vm4 = vcmp.ge.f32.partialorder %v28_v9, 0.0  ;;  %v30_v18 = vld [vmem:[%s565_s0 + $0x58] sm:$0xff]  ;;  %v23_v22 = vld [vmem:[%s565_s0 + $0x20] sm:$0xff]  ;;  %vm38_vm7 = vcmp.ge.f32.partialorder %v22_v12, 0.0  ;;  %v24_v30 = vld [vmem:[%s565_s0 + $0x28] sm:$0xff] }
   0x5   :  { %384 = vmatpush3.bf16.msra.mxu0 %v381_v4  ;;  %386 = vmatpush3.bf16.msra.mxu1 %v381_v4  ;;  %v31_v23 = vld [vmem:[%s565_s0 + $0x60] sm:$0xff]  ;;  %vm46_vm8 = vcmp.ge.f32.partialorder %v30_v18, 0.0  ;;  %v32_v34 = vld [vmem:[%s565_s0 + $0x68] sm:$0xff]  ;;  %v25_v35 = vld [vmem:[%s565_s0 + $0x30] sm:$0xff]  ;;  %vm39_vm9 = vcmp.ge.f32.partialorder %v23_v22, 0.0  ;;  %vm40_vm11 = vcmp.ge.f32.partialorder %v24_v30, 0.0 }
   0x6   :  { %vm47_vm10 = vcmp.ge.f32.partialorder %v31_v23, 0.0  ;;  %v33_v36 = vld [vmem:[%s565_s0 + $0x70] sm:$0xff]  ;;  %vm48_vm12 = vcmp.ge.f32.partialorder %v32_v34, 0.0  ;;  %v26_v45 = vld [vmem:[%s565_s0 + $0x38] sm:$0xff]  ;;  %vm41_vm13 = vcmp.ge.f32.partialorder %v25_v35, 0.0 }
   0x7   :  { %v34_v46 = vld [vmem:[%s565_s0 + $0x78] sm:$0xff]  ;;  %vm49_vm14 = vcmp.ge.f32.partialorder %v33_v36, 0.0  ;;  %vm42_vm15 = vcmp.ge.f32.partialorder %v26_v45, 0.0  ;;  %v318_v55 = vld [vmem:[%s566_s3] ss:$0 sm:$0xff] }
   0x9   :  { %v317_v5 = vld [vmem:[#allocation2] ss:$0 sm:$0xff] }
   0xa   :  { %58 = vperm.xlu0 %388, %v317_v5  }
  0x89   :  { %v59_v13 = vpop.permute.xlu0 %58 }
  0x8a   :  { %v61_v14 = vmul.f32 %v59_v13, %v19_v6  ;;  %v69_v15 = vmul.f32 %v59_v13, %v27_v7  ;;  %v62_v16 = vmul.f32 %v59_v13, %v20_v8  ;;  %v70_v17 = vmul.f32 %v59_v13, %v28_v9 }
  0x8b   :  { %v63_v19 = vmul.f32 %v59_v13, %v21_v10  ;;  %v71_v20 = vmul.f32 %v59_v13, %v29_v11  ;;  %v64_v21 = vmul.f32 %v59_v13, %v22_v12  ;;  %v72_v29 = vmul.f32 %v59_v13, %v30_v18 }
  0x8c   :  { %v77_v24 = vsel %vm35_vm0, %v19_v6, %v61_v14  ;;  %v85_v25 = vsel %vm43_vm1, %v27_v7, %v69_v15  ;;  %v78_v26 = vsel %vm36_vm3, %v20_v8, %v62_v16  ;;  %v86_v27 = vsel %vm44_vm4, %v28_v9, %v70_v17 }
  0x8d   :  { %357 = vmatprep.mubr.msk.f32.mxu0 %vm102_vm2, %v77_v24  ;;  %369 = vmatprep.mubr.msk.f32.mxu1 %vm102_vm2, %v85_v25  ;;  %v79_v28 = vsel %vm37_vm5, %v21_v10, %v63_v19  ;;  %v87_v31 = vsel %vm45_vm6, %v29_v11, %v71_v20  ;;  %v65_v32 = vmul.f32 %v59_v13, %v23_v22  ;;  %vm50_vm0 = vcmp.ge.f32.partialorder %v34_v46, 0.0 }
  0x8e   :  { %358 = vmatmul.mubr.msk.f32.vlgmr.msra.gmra.mrb[0].mxu0 %vm102_vm2, %v78_v26  ;;  %370 = vmatmul.mubr.msk.f32.vlgmr.msra.gmra.mrb[0].mxu1 %vm102_vm2, %v86_v27  ;;  %v73_v33 = vmul.f32 %v59_v13, %v31_v23  ;;  %v80_v37 = vsel %vm38_vm7, %v22_v12, %v64_v21  ;;  %v88_v38 = vsel %vm46_vm8, %v30_v18, %v72_v29  ;;  %vm296_vm1 = vcmask 261120  }
  0x8f   :  { %360 = vmatprep.mubr.msk.f32.mxu0 %vm102_vm2, %v79_v28  ;;  %372 = vmatprep.mubr.msk.f32.mxu1 %vm102_vm2, %v87_v31  ;;  %v66_v39 = vmul.f32 %v59_v13, %v24_v30  ;;  %v74_v40 = vmul.f32 %v59_v13, %v32_v34  ;;  %v67_v41 = vmul.f32 %v59_v13, %v25_v35 }
  0x90   :  { %v81_v42 = vsel %vm39_vm9, %v23_v22, %v65_v32  ;;  %v89_v43 = vsel %vm47_vm10, %v31_v23, %v73_v33  ;;  %v75_v44 = vmul.f32 %v59_v13, %v33_v36  ;;  %v68_v49 = vmul.f32 %v59_v13, %v26_v45 }
  0x91   :  { %v82_v47 = vsel %vm40_vm11, %v24_v30, %v66_v39  ;;  %v90_v48 = vsel %vm48_vm12, %v32_v34, %v74_v40  ;;  %v76_v50 = vmul.f32 %v59_v13, %v34_v46  ;;  %v83_v51 = vsel %vm41_vm13, %v25_v35, %v67_v41 }
  0x92   :  { %361 = vmatmul.mubr.msk.f32.gmra.mrb[2].mxu0 %vm102_vm2, %v80_v37  ;;  %373 = vmatmul.mubr.msk.f32.gmra.mrb[2].mxu1 %vm102_vm2, %v88_v38  ;;  %v91_v52 = vsel %vm49_vm14, %v33_v36, %v75_v44  ;;  %v84_v53 = vsel %vm42_vm15, %v26_v45, %v68_v49 }
  0x93   :  { %363 = vmatprep.mubr.msk.f32.mxu0 %vm102_vm2, %v81_v42  ;;  %375 = vmatprep.mubr.msk.f32.mxu1 %vm102_vm2, %v89_v43  ;;  %v92_v54 = vsel %vm50_vm0, %v34_v46, %v76_v50 }
  0x96   :  { %364 = vmatmul.mubr.msk.f32.gmra.mrb[4].mxu0 %vm102_vm2, %v82_v47  ;;  %376 = vmatmul.mubr.msk.f32.gmra.mrb[4].mxu1 %vm102_vm2, %v90_v48 }
  0x97   :  { %366 = vmatprep.mubr.msk.f32.mxu0 %vm102_vm2, %v83_v51  ;;  %378 = vmatprep.mubr.msk.f32.mxu1 %vm102_vm2, %v91_v52 }
  0x9a   :  { %367 = vmatmul.mubr.msk.f32.gmra.mrb[6].mxu0 %vm102_vm2, %v84_v53  ;;  %379 = vmatmul.mubr.msk.f32.gmra.mrb[6].mxu1 %vm102_vm2, %v92_v54 }
 0x161   :  { %v359_v56 = vpop.f32.mrb[0].mxu0  ;;  %v371_v57 = vpop.f32.mrb[0].mxu1 }
 0x162   :  { %v223_v58 = vadd.f32 %v359_v56, %v318_v55  ;;  %v263_v59 = vadd.f32 %v371_v57, %v318_v55  ;;  %v217_v60 = vpop.f32.mrb[1].mxu0  ;;  %v257_v61 = vpop.f32.mrb[1].mxu1 }
 0x163   :  { %v218_v62 = vadd.f32 %v318_v55, %v217_v60  ;;  %v258_v63 = vadd.f32 %v318_v55, %v257_v61 }
 0x164   :  { %298 = vst.msk [vmem:[%s567_s4 + $0x8] sm:$0xff] %vm296_vm1, %v223_v58  ;;  %306 = vst.msk [vmem:[%s567_s4 + $0x48] sm:$0xff] %vm296_vm1, %v263_v59 }
 0x165   :  { %297 = vst.msk [vmem:[%s567_s4] sm:$0xff] %vm296_vm1, %v218_v62  ;;  %305 = vst.msk [vmem:[%s567_s4 + $0x40] sm:$0xff] %vm296_vm1, %v258_v63  ;;  %v362_v0 = vpop.f32.mrb[2].mxu0  ;;  %v374_v1 = vpop.f32.mrb[2].mxu1 }
 0x166   :  { %v233_v2 = vadd.f32 %v362_v0, %v318_v55  ;;  %v273_v3 = vadd.f32 %v374_v1, %v318_v55  ;;  %v227_v4 = vpop.f32.mrb[3].mxu0  ;;  %v267_v5 = vpop.f32.mrb[3].mxu1 }
 0x167   :  { %v228_v6 = vadd.f32 %v318_v55, %v227_v4  ;;  %v268_v7 = vadd.f32 %v318_v55, %v267_v5 }
 0x168   :  { %300 = vst.msk [vmem:[%s567_s4 + $0x18] sm:$0xff] %vm296_vm1, %v233_v2  ;;  %308 = vst.msk [vmem:[%s567_s4 + $0x58] sm:$0xff] %vm296_vm1, %v273_v3 }
 0x169   :  { %299 = vst.msk [vmem:[%s567_s4 + $0x10] sm:$0xff] %vm296_vm1, %v228_v6  ;;  %307 = vst.msk [vmem:[%s567_s4 + $0x50] sm:$0xff] %vm296_vm1, %v268_v7  ;;  %v365_v8 = vpop.f32.mrb[4].mxu0  ;;  %v377_v9 = vpop.f32.mrb[4].mxu1 }
 0x16a   :  { %v243_v10 = vadd.f32 %v365_v8, %v318_v55  ;;  %v283_v11 = vadd.f32 %v377_v9, %v318_v55  ;;  %v237_v12 = vpop.f32.mrb[5].mxu0  ;;  %v277_v13 = vpop.f32.mrb[5].mxu1 }
 0x16b   :  { %v238_v14 = vadd.f32 %v318_v55, %v237_v12  ;;  %v278_v15 = vadd.f32 %v318_v55, %v277_v13 }
 0x16c   :  { %302 = vst.msk [vmem:[%s567_s4 + $0x28] sm:$0xff] %vm296_vm1, %v243_v10  ;;  %310 = vst.msk [vmem:[%s567_s4 + $0x68] sm:$0xff] %vm296_vm1, %v283_v11 }
 0x16d   :  { %301 = vst.msk [vmem:[%s567_s4 + $0x20] sm:$0xff] %vm296_vm1, %v238_v14  ;;  %309 = vst.msk [vmem:[%s567_s4 + $0x60] sm:$0xff] %vm296_vm1, %v278_v15  ;;  %v368_v16 = vpop.f32.mrb[6].mxu0  ;;  %v380_v17 = vpop.f32.mrb[6].mxu1 }
 0x16e   :  { %v253_v18 = vadd.f32 %v368_v16, %v318_v55  ;;  %v293_v19 = vadd.f32 %v380_v17, %v318_v55  ;;  %v247_v20 = vpop.f32.mrb[7].mxu0  ;;  %v287_v21 = vpop.f32.mrb[7].mxu1 }
 0x16f   :  { %v248_v22 = vadd.f32 %v318_v55, %v247_v20  ;;  %v288_v23 = vadd.f32 %v318_v55, %v287_v21 }
 0x170   :  { %304 = vst.msk [vmem:[%s567_s4 + $0x38] sm:$0xff] %vm296_vm1, %v253_v18  ;;  %312 = vst.msk [vmem:[%s567_s4 + $0x78] sm:$0xff] %vm296_vm1, %v293_v19 }
 0x171   :  { %303 = vst.msk [vmem:[%s567_s4 + $0x30] sm:$0xff] %vm296_vm1, %v248_v22  ;;  %311 = vst.msk [vmem:[%s567_s4 + $0x70] sm:$0xff] %vm296_vm1, %v288_v23 }

// kernel: separation_forward.21
= control target key start
LH: loop header
LB: loop body
LE: loop exit
PB: predicated region body
PF: predicated region fallthrough
CT: control target
= control target key end

     0   :  { %v713_v0 = vmov 0.0|0.0   ;;  %vm714_vm0 = vmmov 0   ;;  %v715_v3 = vmov 0.0   ;;  %vm43_vm1 = vcmask 130048   ;;  %s962_s1 = inlined_call_operand.vmem [shape: f32[16,16], index: 1, kind: input, shape index: {}]   ;;  %s963_s0 = inlined_call_operand.vmem [shape: f32[88,16], index: 0, kind: input, shape index: {}]   ;;  %s964_s5 = inlined_call_operand.vmem [shape: f32[16,16], index: 5, kind: input, shape index: {}]   ;;  %s965_s3 = inlined_call_operand.vmem [shape: f32[1,16], index: 3, kind: input, shape index: {}]   ;;  %s966_s4 = inlined_call_operand.vmem [shape: f32[1,16], index: 4, kind: input, shape index: {}]   ;;  %s967_s2 = inlined_call_operand.vmem [shape: f32[1,16], index: 2, kind: input, shape index: {}]   ;;  %s968_s6 = inlined_call_operand.vmem [shape: f32[88,16], index: 6, kind: output, shape index: {}]  }
   0x1   :  { %638 = vmatprep.subr.bf16.mxu0 %v713_v0  ;;  %v34_v1 = vld [vmem:[%s962_s1] sm:$0xff]  ;;  %v35_v2 = vld [vmem:[%s962_s1 + $0x8] sm:$0xff]  ;;  %568 = vmatprep.mubr.msk.f32.mxu0 %vm714_vm0, %v715_v3  ;;  %v25_v7 = vld [vmem:[%s963_s0 + $0x10] sm:$0xff] }
   0x2   :  { %v639_v4 = vpack.c.bf16 %v35_v2, %v34_v1  ;;  %641 = vmatprep.subr.bf16.mxu1 %v713_v0  ;;  %605 = vmatprep.mubr.msk.f32.mxu1 %vm714_vm0, %v715_v3  ;;  %v23_v5 = vld [vmem:[%s963_s0] sm:$0xff]  ;;  %v24_v6 = vld [vmem:[%s963_s0 + $0x8] sm:$0xff]  ;;  %v26_v8 = vld [vmem:[%s963_s0 + $0x18] sm:$0xff] }
   0x3   :  { %v27_v9 = vld [vmem:[%s963_s0 + $0x20] sm:$0xff]  ;;  %v28_v10 = vld [vmem:[%s963_s0 + $0x28] sm:$0xff]  ;;  %v29_v11 = vld [vmem:[%s963_s0 + $0x30] sm:$0xff] }
   0x4   :  { %640 = vmatpush3.bf16.msra.mxu0 %v639_v4  ;;  %v30_v12 = vld [vmem:[%s963_s0 + $0x38] sm:$0xff]  ;;  %v31_v13 = vld [vmem:[%s963_s0 + $0x40] sm:$0xff]  ;;  %v818_v14 = vld [vmem:[%s963_s0 + $0x48] sm:$0xff] }
   0x5   :  { %v827_v15 = vld [vmem:[%s963_s0 + $0x50] sm:$0xff]  ;;  %v321_v16 = vld [vmem:[%s964_s5] sm:$0xff]  ;;  %v322_v17 = vld [vmem:[%s964_s5 + $0x8] sm:$0xff] }
   0x6   :  { %v642_v18 = vpack.c.bf16 %v322_v17, %v321_v16  ;;  %v840_v19 = vld [vmem:[%s965_s3] ss:$0 sm:$0xff] }
   0x7   :  { %569 = vmatmul.mubr.msk.f32.vlgmr.msra.gmra.mrb[0].mxu0 %vm43_vm1, %v23_v5  ;;  %v215_v20 = vmul.f32 %v840_v19, %v23_v5  ;;  %v846_v21 = vld [vmem:[%s966_s4] ss:$0 sm:$0xff]  ;;  %v216_v23 = vmul.f32 %v840_v19, %v24_v6  ;;  %v217_v26 = vmul.f32 %v840_v19, %v25_v7  ;;  %v218_v29 = vmul.f32 %v840_v19, %v26_v8 }
   0x8   :  { %571 = vmatprep.mubr.msk.f32.mxu0 %vm714_vm0, %v715_v3  ;;  %643 = vmatpush3.bf16.msra.mxu1 %v642_v18  ;;  %v219_v32 = vmul.f32 %v840_v19, %v27_v9  ;;  %v220_v35 = vmul.f32 %v840_v19, %v28_v10  ;;  %v221_v39 = vmul.f32 %v840_v19, %v29_v11  ;;  %v863_v42 = vld [vmem:[%s967_s2] ss:$0 sm:$0xff] }
   0x9   :  { %v233_v22 = vadd.f32 %v846_v21, %v215_v20  ;;  %v234_v25 = vadd.f32 %v846_v21, %v216_v23  ;;  %v235_v28 = vadd.f32 %v846_v21, %v217_v26  ;;  %v236_v31 = vadd.f32 %v846_v21, %v218_v29 }
   0xa   :  { %v237_v34 = vadd.f32 %v846_v21, %v219_v32  ;;  %v238_v38 = vadd.f32 %v846_v21, %v220_v35  ;;  %v239_v44 = vadd.f32 %v846_v21, %v221_v39  ;;  %v222_v45 = vmul.f32 %v840_v19, %v30_v12 }
   0xb   :  { %572 = vmatmul.mubr.msk.f32.gmra.mrb[2].mxu0 %vm43_vm1, %v24_v6  ;;  %v516_v24 = vmul.f32 -1.442695, %v233_v22  ;;  %v517_v27 = vmul.f32 -1.442695, %v234_v25  ;;  %v518_v30 = vmul.f32 -1.442695, %v235_v28  ;;  %v223_v53 = vmul.f32 %v840_v19, %v31_v13 }
   0xc   :  { %574 = vmatprep.mubr.msk.f32.mxu0 %vm714_vm0, %v715_v3  ;;  %v519_v33 = vmul.f32 -1.442695, %v236_v31  ;;  %v520_v37 = vmul.f32 -1.442695, %v237_v34  ;;  %v521_v43 = vmul.f32 -1.442695, %v238_v38  ;;  %v240_v52 = vadd.f32 %v846_v21, %v222_v45 }
   0xd   :  { %647 = vpow2.f32 %v516_v24  ;;  %v522_v51 = vmul.f32 -1.442695, %v239_v44  ;;  %v241_v60 = vadd.f32 %v846_v21, %v223_v53  ;;  %v224_v61 = vmul.f32 %v840_v19, %v818_v14 }
   0xe   :  { %649 = vpow2.f32 %v517_v27  ;;  %v523_v59 = vmul.f32 -1.442695, %v240_v52 }
   0xf   :  { %575 = vmatmul.mubr.msk.f32.gmra.mrb[4].mxu0 %vm43_vm1, %v25_v7  ;;  %651 = vpow2.f32 %v518_v30  ;;  %v524_v5 = vmul.f32 -1.442695, %v241_v60  ;;  %v242_v6 = vadd.f32 %v846_v21, %v224_v61  ;;  %v225_v7 = vmul.f32 %v840_v19, %v827_v15 }
  0x10   :  { %577 = vmatprep.mubr.msk.f32.mxu0 %vm714_vm0, %v715_v3  ;;  %653 = vpow2.f32 %v519_v33 }
  0x11   :  { %655 = vpow2.f32 %v520_v37  ;;  %v525_v17 = vmul.f32 -1.442695, %v242_v6  ;;  %v243_v18 = vadd.f32 %v846_v21, %v225_v7 }
  0x13   :  { %578 = vmatmul.mubr.msk.f32.gmra.mrb[6].mxu0 %vm43_vm1, %v26_v8  ;;  %v526_v27 = vmul.f32 -1.442695, %v243_v18 }
  0x14   :  { %580 = vmatprep.mubr.msk.f32.mxu0 %vm714_vm0, %v715_v3 }
  0x17   :  { %581 = vmatmul.mubr.msk.f32.gmra.mrb[8].mxu0 %vm43_vm1, %v27_v9  ;;  %v648_v36 = vpop.eup %647 }
  0x18   :  { %583 = vmatprep.mubr.msk.f32.mxu0 %vm714_vm0, %v715_v3  ;;  %v277_v40 = vadd.f32 1.0, %v648_v36  ;;  %v650_v41 = vpop.eup %649 }
  0x19   :  { %v278_v47 = vadd.f32 1.0, %v650_v41  ;;  %v652_v50 = vpop.eup %651 }
  0x1a   :  { %657 = vrcp.f32 %v277_v40  ;;  %v279_v55 = vadd.f32 1.0, %v652_v50  ;;  %v654_v58 = vpop.eup %653 }
  0x1b   :  { %584 = vmatmul.mubr.msk.f32.gmra.mrb[10].mxu0 %vm43_vm1, %v28_v10  ;;  %v280_v63 = vadd.f32 1.0, %v654_v58  ;;  %v656_v2 = vpop.eup %655 }
  0x1c   :  { %586 = vmatprep.mubr.msk.f32.mxu0 %vm714_vm0, %v715_v3  ;;  %v281_v10 = vadd.f32 1.0, %v656_v2 }
  0x1f   :  { %587 = vmatmul.mubr.msk.f32.gmra.mrb[12].mxu0 %vm43_vm1, %v29_v11 }
  0x20   :  { %589 = vmatprep.mubr.msk.f32.mxu0 %vm714_vm0, %v715_v3 }
  0x23   :  { %590 = vmatmul.mubr.msk.f32.gmra.mrb[14].mxu0 %vm43_vm1, %v30_v12 }
  0x24   :  { %592 = vmatprep.mubr.msk.f32.mxu0 %vm714_vm0, %v715_v3  ;;  %v658_v4 = vpop.eup %657 }
  0x27   :  { %593 = vmatmul.mubr.msk.f32.gmra.mrb[16].mxu0 %vm43_vm1, %v31_v13 }
  0x28   :  { %595 = vmatprep.mubr.msk.f32.mxu0 %vm714_vm0, %v715_v3 }
  0x2b   :  { %596 = vmatmul.mubr.msk.f32.gmra.mrb[18].mxu0 %vm43_vm1, %v818_v14 }
  0x2c   :  { %598 = vmatprep.mubr.msk.f32.mxu0 %vm714_vm0, %v715_v3 }
  0x2f   :  { %599 = vmatmul.mubr.msk.f32.gmra.mrb[20].mxu0 %vm43_vm1, %v827_v15 }
  0xda   :  { %v143_v46 = vpop.f32.mrb[0].mxu0 }
  0xdb   :  { %v144_v48 = vadd.f32 %v863_v42, %v143_v46  ;;  %v570_v49 = vpop.f32.mrb[1].mxu0 }
  0xdd   :  { %659 = vtanh.f32 %v144_v48 }
  0xde   :  { %661 = vpow2.f32 %v521_v43  ;;  %v148_v54 = vpop.f32.mrb[2].mxu0 }
  0xdf   :  { %663 = vrcp.f32 %v278_v47  ;;  %v149_v56 = vadd.f32 %v863_v42, %v148_v54  ;;  %v573_v57 = vpop.f32.mrb[3].mxu0 }
  0xe1   :  { %665 = vtanh.f32 %v149_v56 }
  0xe2   :  { %667 = vpow2.f32 %v522_v51  ;;  %v153_v62 = vpop.f32.mrb[4].mxu0 }
  0xe3   :  { %669 = vrcp.f32 %v279_v55  ;;  %v154_v0 = vadd.f32 %v863_v42, %v153_v62  ;;  %v576_v1 = vpop.f32.mrb[5].mxu0 }
  0xe5   :  { %671 = vtanh.f32 %v154_v0 }
  0xe6   :  { %673 = vpow2.f32 %v523_v59  ;;  %v158_v8 = vpop.f32.mrb[6].mxu0 }
  0xe7   :  { %v660_v9 = vpop.eup %659  ;;  %675 = vrcp.f32 %v280_v63  ;;  %v159_v11 = vadd.f32 %v863_v42, %v158_v8  ;;  %v579_v12 = vpop.f32.mrb[7].mxu0 }
  0xe8   :  { %v662_v13 = vpop.eup %661  ;;  %v310_v14 = vmul.f32 %v660_v9, %v658_v4 }
  0xe9   :  { %v664_v16 = vpop.eup %663  ;;  %677 = vtanh.f32 %v159_v11  ;;  %v282_v15 = vadd.f32 1.0, %v662_v13 }
  0xea   :  { %679 = vpow2.f32 %v524_v5  ;;  %v163_v20 = vpop.f32.mrb[8].mxu0  ;;  %606 = vmatmul.mubr.msk.f32.vlgmr.msra.gmra.mrb[0].mxu1 %vm43_vm1, %v310_v14 }
  0xeb   :  { %v666_v22 = vpop.eup %665  ;;  %681 = vrcp.f32 %v281_v10  ;;  %v164_v19 = vadd.f32 %v863_v42, %v163_v20  ;;  %v582_v23 = vpop.f32.mrb[9].mxu0  ;;  %608 = vmatprep.mubr.msk.f32.mxu1 %vm714_vm0, %v715_v3 }
  0xec   :  { %v668_v24 = vpop.eup %667  ;;  %v311_v25 = vmul.f32 %v666_v22, %v664_v16 }
  0xed   :  { %v670_v26 = vpop.eup %669  ;;  %683 = vtanh.f32 %v164_v19  ;;  %v283_v29 = vadd.f32 1.0, %v668_v24 }
  0xee   :  { %685 = vpow2.f32 %v525_v17  ;;  %v168_v28 = vpop.f32.mrb[10].mxu0  ;;  %609 = vmatmul.mubr.msk.f32.gmra.mrb[2].mxu1 %vm43_vm1, %v311_v25 }
  0xef   :  { %v672_v21 = vpop.eup %671  ;;  %687 = vrcp.f32 %v282_v15  ;;  %v169_v30 = vadd.f32 %v863_v42, %v168_v28  ;;  %v585_v31 = vpop.f32.mrb[11].mxu0  ;;  %611 = vmatprep.mubr.msk.f32.mxu1 %vm714_vm0, %v715_v3 }
  0xf0   :  { %v674_v32 = vpop.eup %673  ;;  %v312_v33 = vmul.f32 %v672_v21, %v670_v26 }
  0xf1   :  { %v676_v34 = vpop.eup %675  ;;  %689 = vtanh.f32 %v169_v30  ;;  %v284_v37 = vadd.f32 1.0, %v674_v32 }
  0xf2   :  { %691 = vpow2.f32 %v526_v27  ;;  %v173_v35 = vpop.f32.mrb[12].mxu0  ;;  %612 = vmatmul.mubr.msk.f32.gmra.mrb[4].mxu1 %vm43_vm1, %v312_v33 }
  0xf3   :  { %v678_v36 = vpop.eup %677  ;;  %693 = vrcp.f32 %v283_v29  ;;  %v174_v38 = vadd.f32 %v863_v42, %v173_v35  ;;  %v588_v39 = vpop.f32.mrb[13].mxu0  ;;  %614 = vmatprep.mubr.msk.f32.mxu1 %vm714_vm0, %v715_v3 }
  0xf4   :  { %v680_v40 = vpop.eup %679  ;;  %v313_v41 = vmul.f32 %v678_v36, %v676_v34 }
  0xf5   :  { %v682_v43 = vpop.eup %681  ;;  %695 = vtanh.f32 %v174_v38  ;;  %v285_v46 = vadd.f32 1.0, %v680_v40 }
  0xf6   :  { %v178_v44 = vpop.f32.mrb[14].mxu0  ;;  %615 = vmatmul.mubr.msk.f32.gmra.mrb[6].mxu1 %vm43_vm1, %v313_v41  ;;  %697 = vrcp.f32 %v284_v37 }
  0xf7   :  { %v684_v45 = vpop.eup %683  ;;  %v179_v47 = vadd.f32 %v863_v42, %v178_v44  ;;  %v591_v48 = vpop.f32.mrb[15].mxu0  ;;  %617 = vmatprep.mubr.msk.f32.mxu1 %vm714_vm0, %v715_v3 }
  0xf8   :  { %v686_v49 = vpop.eup %685  ;;  %v314_v50 = vmul.f32 %v684_v45, %v682_v43 }
  0xf9   :  { %v688_v51 = vpop.eup %687  ;;  %699 = vtanh.f32 %v179_v47  ;;  %v286_v54 = vadd.f32 1.0, %v686_v49 }
  0xfa   :  { %v183_v52 = vpop.f32.mrb[16].mxu0  ;;  %618 = vmatmul.mubr.msk.f32.gmra.mrb[8].mxu1 %vm43_vm1, %v314_v50  ;;  %701 = vrcp.f32 %v285_v46 }
  0xfb   :  { %v690_v53 = vpop.eup %689  ;;  %v184_v55 = vadd.f32 %v863_v42, %v183_v52  ;;  %v594_v56 = vpop.f32.mrb[17].mxu0  ;;  %620 = vmatprep.mubr.msk.f32.mxu1 %vm714_vm0, %v715_v3 }
  0xfc   :  { %v692_v57 = vpop.eup %691  ;;  %v315_v58 = vmul.f32 %v690_v53, %v688_v51 }
  0xfd   :  { %v694_v59 = vpop.eup %693  ;;  %703 = vtanh.f32 %v184_v55  ;;  %v287_v62 = vadd.f32 1.0, %v692_v57 }
  0xfe   :  { %v188_v60 = vpop.f32.mrb[18].mxu0  ;;  %621 = vmatmul.mubr.msk.f32.gmra.mrb[10].mxu1 %vm43_vm1, %v315_v58  ;;  %705 = vrcp.f32 %v286_v54 }
  0xff   :  { %v696_v61 = vpop.eup %695  ;;  %v189_v63 = vadd.f32 %v863_v42, %v188_v60  ;;  %v597_v0 = vpop.f32.mrb[19].mxu0  ;;  %623 = vmatprep.mubr.msk.f32.mxu1 %vm714_vm0, %v715_v3 }
 0x100   :  { %v316_v1 = vmul.f32 %v696_v61, %v694_v59  ;;  %v698_v2 = vpop.eup %697 }
 0x101   :  { %707 = vtanh.f32 %v189_v63 }
 0x102   :  { %v193_v4 = vpop.f32.mrb[20].mxu0  ;;  %624 = vmatmul.mubr.msk.f32.gmra.mrb[12].mxu1 %vm43_vm1, %v316_v1  ;;  %709 = vrcp.f32 %v287_v62 }
 0x103   :  { %v700_v5 = vpop.eup %699  ;;  %v194_v6 = vadd.f32 %v863_v42, %v193_v4  ;;  %v600_v7 = vpop.f32.mrb[21].mxu0  ;;  %626 = vmatprep.mubr.msk.f32.mxu1 %vm714_vm0, %v715_v3 }
 0x104   :  { %v317_v8 = vmul.f32 %v700_v5, %v698_v2  ;;  %v702_v9 = vpop.eup %701 }
 0x105   :  { %711 = vtanh.f32 %v194_v6 }
 0x106   :  { %627 = vmatmul.mubr.msk.f32.gmra.mrb[14].mxu1 %vm43_vm1, %v317_v8 }
 0x107   :  { %v704_v10 = vpop.eup %703  ;;  %629 = vmatprep.mubr.msk.f32.mxu1 %vm714_vm0, %v715_v3 }
 0x108   :  { %v318_v11 = vmul.f32 %v704_v10, %v702_v9  ;;  %v706_v12 = vpop.eup %705 }
 0x10a   :  { %630 = vmatmul.mubr.msk.f32.gmra.mrb[16].mxu1 %vm43_vm1, %v318_v11 }
 0x10b   :  { %v708_v13 = vpop.eup %707  ;;  %632 = vmatprep.mubr.msk.f32.mxu1 %vm714_vm0, %v715_v3 }
 0x10c   :  { %v319_v42 = vmul.f32 %v708_v13, %v706_v12  ;;  %v710_v14 = vpop.eup %709 }
 0x10e   :  { %633 = vmatmul.mubr.msk.f32.gmra.mrb[18].mxu1 %vm43_vm1, %v319_v42 }
 0x10f   :  { %v712_v16 = vpop.eup %711  ;;  %635 = vmatprep.mubr.msk.f32.mxu1 %vm714_vm0, %v715_v3 }
 0x110   :  { %v320_v17 = vmul.f32 %v712_v16, %v710_v14 }
 0x112   :  { %636 = vmatmul.mubr.msk.f32.gmra.mrb[20].mxu1 %vm43_vm1, %v320_v17 }
 0x1bd   :  { %v422_v18 = vpop.f32.mrb[0].mxu1 }
 0x1be   :  { %v476_v20 = vmax.f32 %v422_v18, 0.0  ;;  %v607_v22 = vpop.f32.mrb[1].mxu1 }
 0x1c0   :  { %487 = vst.msk [vmem:[%s968_s6] sm:$0xff] %vm43_vm1, %v476_v20 }
 0x1c1   :  { %v427_v15 = vpop.f32.mrb[2].mxu1 }
 0x1c2   :  { %v477_v19 = vmax.f32 %v427_v15, 0.0  ;;  %v610_v23 = vpop.f32.mrb[3].mxu1 }
 0x1c4   :  { %488 = vst.msk [vmem:[%s968_s6 + $0x8] sm:$0xff] %vm43_vm1, %v477_v19 }
 0x1c5   :  { %v432_v3 = vpop.f32.mrb[4].mxu1 }
 0x1c6   :  { %v478_v24 = vmax.f32 %v432_v3, 0.0  ;;  %v613_v25 = vpop.f32.mrb[5].mxu1 }
 0x1c8   :  { %489 = vst.msk [vmem:[%s968_s6 + $0x10] sm:$0xff] %vm43_vm1, %v478_v24 }
 0x1c9   :  { %v437_v26 = vpop.f32.mrb[6].mxu1 }
 0x1ca   :  { %v479_v27 = vmax.f32 %v437_v26, 0.0  ;;  %v616_v28 = vpop.f32.mrb[7].mxu1 }
 0x1cc   :  { %490 = vst.msk [vmem:[%s968_s6 + $0x18] sm:$0xff] %vm43_vm1, %v479_v27 }
 0x1cd   :  { %v442_v21 = vpop.f32.mrb[8].mxu1 }
 0x1ce   :  { %v480_v29 = vmax.f32 %v442_v21, 0.0  ;;  %v619_v30 = vpop.f32.mrb[9].mxu1 }
 0x1d0   :  { %491 = vst.msk [vmem:[%s968_s6 + $0x20] sm:$0xff] %vm43_vm1, %v480_v29 }
 0x1d1   :  { %v447_v31 = vpop.f32.mrb[10].mxu1 }
 0x1d2   :  { %v481_v32 = vmax.f32 %v447_v31, 0.0  ;;  %v622_v33 = vpop.f32.mrb[11].mxu1 }
 0x1d4   :  { %492 = vst.msk [vmem:[%s968_s6 + $0x28] sm:$0xff] %vm43_vm1, %v481_v32 }
 0x1d5   :  { %v452_v34 = vpop.f32.mrb[12].mxu1 }
 0x1d6   :  { %v482_v35 = vmax.f32 %v452_v34, 0.0  ;;  %v625_v36 = vpop.f32.mrb[13].mxu1 }
 0x1d8   :  { %493 = vst.msk [vmem:[%s968_s6 + $0x30] sm:$0xff] %vm43_vm1, %v482_v35 }
 0x1d9   :  { %v457_v37 = vpop.f32.mrb[14].mxu1 }
 0x1da   :  { %v483_v38 = vmax.f32 %v457_v37, 0.0  ;;  %v628_v39 = vpop.f32.mrb[15].mxu1 }
 0x1dc   :  { %494 = vst.msk [vmem:[%s968_s6 + $0x38] sm:$0xff] %vm43_vm1, %v483_v38 }
 0x1dd   :  { %v462_v40 = vpop.f32.mrb[16].mxu1 }
 0x1de   :  { %v484_v41 = vmax.f32 %v462_v40, 0.0  ;;  %v631_v43 = vpop.f32.mrb[17].mxu1 }
 0x1e0   :  { %495 = vst.msk [vmem:[%s968_s6 + $0x40] sm:$0xff] %vm43_vm1, %v484_v41 }
 0x1e1   :  { %v467_v44 = vpop.f32.mrb[18].mxu1 }
 0x1e2   :  { %v485_v45 = vmax.f32 %v467_v44, 0.0  ;;  %v634_v46 = vpop.f32.mrb[19].mxu1 }
 0x1e4   :  { %496 = vst.msk [vmem:[%s968_s6 + $0x48] sm:$0xff] %vm43_vm1, %v485_v45 }
 0x1e5   :  { %v472_v47 = vpop.f32.mrb[20].mxu1 }
 0x1e6   :  { %v486_v48 = vmax.f32 %v472_v47, 0.0  ;;  %v637_v49 = vpop.f32.mrb[21].mxu1 }
 0x1e8   :  { %497 = vst.msk [vmem:[%s968_s6 + $0x50] sm:$0xff] %vm43_vm1, %v486_v48 }

</bundles_post_ra>
